<compile_context>
chip_gen: v6e
topology: v6e:2x2x1
jax: 0.10.0
libtpu: 0.0.40
codegen_flags: <defaults>
</compile_context>

<pallas_src>
import functools

import jax
import jax.numpy as jnp
from jax.experimental import pallas as pl
from jax.experimental.pallas import tpu as pltpu


# ----------------------------- fused Pallas kernel ----------------------------

def _fused_gcn_kernel(*refs, layer_meta, bh):
    """All STCL layers + Linear head for one batch half, fully in VMEM.

    refs layout (inputs, then outputs):
      refs[0]             x_ref     (1, bh*C0, Npad*F0)           bf16
      refs[1]             yt_ref    (1, bh, 1)                    f32 (yt_1 + head_b)
      refs[2]             hw_ref    (Npad*F_last, 1)              bf16 padded head weight
      refs[3 + 3*l + 0]   kr_ref_l  (Npad*F_in, Npad*F_out)       bf16 kron(adj_n^T, fc_w^T)
      refs[3 + 3*l + 1]   mx_ref_l  (bh*C_out, bh*C_in)           bf16 kron(I_bh, conv_w)
      refs[3 + 3*l + 2]   b2_ref_l  (C_out, Npad*F_out)           f32 folded bias
      refs[-2]            pred_ref  (1, bh, 1)                    f32
      refs[-1]            feats_ref (1, bh*C_last, Npad*F_last)   f32
    """
    n_layers = len(layer_meta)
    x_ref, yt_ref, hw_ref = refs[0], refs[1], refs[2]
    w_refs = refs[3:3 + 3 * n_layers]
    pred_ref, feats_ref = refs[-2], refs[-1]

    act = x_ref[0]                                   # bf16 (bh*C0, Npad*F0)
    y = None
    for li, (c_out, mix_first) in enumerate(layer_meta):
        kr = w_refs[3 * li][...]                     # bf16
        mx = w_refs[3 * li + 1][...]                 # bf16
        b2 = w_refs[3 * li + 2][...]                 # f32  (C_out, Npad*F_out)

        if mix_first:
            # channel mix first (cheaper when C_out < C_in), then graph-conv+fc
            xm = jnp.dot(mx, act, preferred_element_type=jnp.float32)
            y = jnp.dot(xm.astype(jnp.bfloat16), kr,
                        preferred_element_type=jnp.float32)
        else:
            h = jnp.dot(act, kr, preferred_element_type=jnp.float32)
            y = jnp.dot(mx, h.astype(jnp.bfloat16),
                        preferred_element_type=jnp.float32)

        # folded bias (conv(fc_b) + conv_b), broadcast over the folded batch.
        if c_out == 1 or bh == 1:
            y = y + b2                               # size-1 sublane broadcast
        else:
            y = y + jnp.concatenate([b2] * bh, axis=0)   # sublane-aligned repeat

        act = y.astype(jnp.bfloat16)                 # feed next layer / head

    # last STCL layer output (float32), node-padded.
    feats_ref[0] = y

    # Linear head as an MXU matvec; head bias already folded into yt.
    pred = jnp.dot(act, hw_ref[...], preferred_element_type=jnp.float32)
    pred_ref[0] = pred + yt_ref[0]


# ------------------------------- weight prep ----------------------------------

def normalize_adj(adj):
    """D^-1/2 (A + I) D^-1/2  (matches the torch normalize_adj)."""
    n = adj.shape[0]
    a = adj + jnp.eye(n, dtype=adj.dtype)
    deg = jnp.sum(a, axis=1) + 1e-6
    dinv = deg ** -0.5
    return (dinv[:, None] * a) * dinv[None, :]


def prepare_fused_params(adj, layer_params, head_w, head_b, *, num_nodes,
                         n_pad, batch_half):
    """Build every pallas operand ONCE (hoisted out of the jitted forward)."""
    an = normalize_adj(adj)
    an_pad = jnp.zeros((n_pad, n_pad), adj.dtype)
    an_pad = an_pad.at[:num_nodes, :num_nodes].set(an)   # padded rows/cols == 0

    weights = []
    layer_meta = []
    for fc_w, fc_b, conv_w, conv_b in layer_params:
        f_out, f_in = fc_w.shape
        c_out, c_in = conv_w.shape[0], conv_w.shape[1]
        cw = conv_w.reshape(c_out, c_in)

        # fused graph-conv + Linear weight (node-padded), bf16
        kr = jnp.kron(an_pad.T, fc_w.T).astype(jnp.bfloat16)      # (np*Fi, np*Fo)
        # block-diagonal channel mix over the folded batch half, bf16
        mx = jnp.kron(jnp.eye(batch_half, dtype=cw.dtype),
                      cw).astype(jnp.bfloat16)                    # (bh*Co, bh*Ci)
        # folded bias conv(fc_b) + conv_b, broadcast over (padded) nodes, f32
        s = jnp.sum(cw, axis=1)
        b2 = s[:, None] * fc_b[None, :] + conv_b[:, None]         # (Co, Fo)
        b2 = jnp.tile(b2[:, None, :], (1, n_pad, 1)).reshape(c_out, n_pad * f_out)
        weights += [kr, mx, b2.astype(jnp.float32)]
        layer_meta.append((c_out, c_out < c_in))

    f_last = layer_params[-1][0].shape[0]
    c_last = layer_params[-1][2].shape[0]
    assert c_last == 1, "head folding assumes conv_out_channels == 1 (as in spec)"
    # node-padded head weight (zeros at the padded node block), bf16, (D_pad, 1)
    wh = head_w.reshape(num_nodes, f_last)
    wh = jnp.zeros((n_pad, f_last), head_w.dtype).at[:num_nodes].set(wh)
    wh = wh.reshape(n_pad * f_last, 1).astype(jnp.bfloat16)

    return {"weights": tuple(weights), "head_w_pad": wh,
            "layer_meta": tuple(layer_meta)}


# ------------------------------ fused forward ----------------------------------

def multilayer_gcn_forward(x, yt_1, weights, head_w_pad, head_b, *,
                           layer_meta, num_nodes, n_pad, num_cores):
    """Full MultiLayerGCN forward in one pallas_call.

    Returns (prediction (B, 1), last-layer features (B, C_last, N, F_last)).
    """
    B, c0, n, f0 = x.shape
    assert B % num_cores == 0
    bh = B // num_cores
    n_layers = len(layer_meta)
    c_last = layer_meta[-1][0]
    nf_last = weights[3 * (n_layers - 1)].shape[1]
    f_last = nf_last // n_pad

    # pad nodes to n_pad and fold (batch_half, channel) into the matmul M dim.
    xp = jnp.pad(x, ((0, 0), (0, 0), (0, n_pad - n), (0, 0)))
    x2 = xp.reshape(num_cores, bh * c0, n_pad * f0).astype(jnp.bfloat16)
    yt = (yt_1 + head_b.reshape(1, 1)).astype(jnp.float32)
    yt = yt.reshape(num_cores, bh, 1)

    act_spec = pl.BlockSpec((1, bh * c0, n_pad * f0), lambda g: (g, 0, 0))
    yt_spec = pl.BlockSpec((1, bh, 1), lambda g: (g, 0, 0))
    const2d = lambda g: (0, 0)
    hw_spec = pl.BlockSpec(head_w_pad.shape, const2d)
    w_specs = [pl.BlockSpec(w.shape, const2d) for w in weights]

    out_shape = (
        jax.ShapeDtypeStruct((num_cores, bh, 1), jnp.float32),
        jax.ShapeDtypeStruct((num_cores, bh * c_last, nf_last), jnp.float32),
    )
    out_specs = (
        pl.BlockSpec((1, bh, 1), lambda g: (g, 0, 0)),
        pl.BlockSpec((1, bh * c_last, nf_last), lambda g: (g, 0, 0)),
    )

    # rough cost estimate for the whole call
    flops = 0
    rows, nf = bh * c0, n_pad * f0
    for li, (c_out, mix_first) in enumerate(layer_meta):
        kr, mx = weights[3 * li], weights[3 * li + 1]
        if mix_first:
            flops += 2 * mx.shape[0] * rows * nf
            flops += 2 * mx.shape[0] * kr.shape[0] * kr.shape[1]
        else:
            flops += 2 * rows * kr.shape[0] * kr.shape[1]
            flops += 2 * mx.shape[0] * mx.shape[1] * kr.shape[1]
        rows, nf = mx.shape[0], kr.shape[1]
    flops += 2 * rows * nf                       # head matvec
    flops *= num_cores
    bytes_accessed = (x2.size * 2 + yt.size * 4 + head_w_pad.size * 2
                      + sum(w.size * w.dtype.itemsize for w in weights)
                      + num_cores * (bh + bh * c_last * nf_last) * 4)

    kernel = functools.partial(_fused_gcn_kernel, layer_meta=layer_meta, bh=bh)
    pred, feats = pl.pallas_call(
        kernel,
        out_shape=out_shape,
        grid_spec=pltpu.PrefetchScalarGridSpec(
            num_scalar_prefetch=0,
            grid=(num_cores,),
            in_specs=[act_spec, yt_spec, hw_spec, *w_specs],
            out_specs=out_specs,
        ),
        compiler_params=pltpu.CompilerParams(
            dimension_semantics=("parallel",)),
        cost_estimate=pl.CostEstimate(flops=int(flops), transcendentals=0,
                                      bytes_accessed=int(bytes_accessed)),
    )(x2, yt, head_w_pad, *weights)

    pred = pred.reshape(B, 1)
    feats = feats.reshape(B, c_last, n_pad, f_last)[:, :, :num_nodes, :]
    return pred, feats


# --------------------------- glue / pure-JAX reference -------------------------

def cropping(x, window_size=2, step_size=1):
    """JAX port of the torch Cropping module."""
    _, _, _, F = x.shape
    new_f = F - window_size + 1
    windows = [x[..., i:i + window_size]
               for i in range(0, new_f, step_size)
               if i + window_size <= F]
    return jnp.concatenate(windows, axis=2)


def stcl_reference(x, adj_norm, fc_w, fc_b, conv_w, conv_b):
    B, C, N, F = x.shape
    xr = x.reshape(B * C, N, F)
    out = jnp.einsum('nm,bmf->bnf', adj_norm, xr)
    out = out @ fc_w.T + fc_b
    out = out.reshape(B, C, N, -1)
    cw = conv_w.reshape(conv_w.shape[0], conv_w.shape[1])
    out = jnp.einsum('oc,bcnf->bonf', cw, out) + conv_b[None, :, None, None]
    return out


def model_reference(x, yt_1, adj, layer_params, head_w, head_b):
    adj_norm = normalize_adj(adj)
    h = x
    for fc_w, fc_b, conv_w, conv_b in layer_params:
        h = stcl_reference(h, adj_norm, fc_w, fc_b, conv_w, conv_b)
    flat = h.reshape(h.shape[0], -1)
    out = yt_1 + flat @ head_w.T + head_b
    return out, h


# ------------------------------------ main -------------------------------------

if __name__ == "__main__":
    key = jax.random.PRNGKey(0)
    ks = jax.random.split(key, 16)

    # Small demo shapes consistent with the module
    # (batch 32 -> 8, conv_hid_channels 128 -> 32; B kept even for the 2-way
    #  v7x TensorCore split -> folded M = 128 per core on the mid layers).
    B = 8
    conv_in_channels = 1
    conv_hid_channels = 32
    conv_out_channels = 1
    in_features = 2
    hidden_features = 32
    out_features = 64
    num_layers = 5
    NUM_CORES = 2          # leading "parallel" grid axis over batch halves
    N_PAD = 16             # node dim padded 15 -> 16 for exact lane/K tiles

    # raw input (B, 1, 5, 4) -> Cropping -> (B, 1, 15, 2)
    x_raw = jax.random.normal(ks[0], (B, conv_in_channels, 5, 4), jnp.float32)
    x = cropping(x_raw)
    num_nodes = x.shape[2]                                   # 15
    assert x.shape == (B, conv_in_channels, num_nodes, in_features)

    # learned adjacency parameter (random positive stand-in) + previous target.
    adj = jnp.abs(jax.random.normal(ks[1], (num_nodes, num_nodes), jnp.float32))
    yt_1 = jax.random.normal(ks[2], (B, 1), jnp.float32)

    # layer configs mirroring MultiLayerGCN.__init__: (F_in, F_out, C_in, C_out)
    cfgs = [(in_features, hidden_features, conv_in_channels, conv_hid_channels)]
    for _ in range(num_layers - 2):
        cfgs.append((hidden_features, hidden_features,
                     conv_hid_channels, conv_hid_channels))
    cfgs.append((hidden_features, out_features,
                 conv_hid_channels, conv_out_channels))

    layer_params = []
    kidx = 3
    for (fi, fo, ci, co) in cfgs:
        k1, k2, k3, k4 = jax.random.split(ks[kidx], 4)
        kidx += 1
        fc_w = jax.random.normal(k1, (fo, fi), jnp.float32) / jnp.sqrt(fi)
        fc_b = 0.1 * jax.random.normal(k2, (fo,), jnp.float32)
        conv_w = jax.random.normal(k3, (co, ci, 1, 1), jnp.float32) / jnp.sqrt(ci)
        conv_b = 0.1 * jax.random.normal(k4, (co,), jnp.float32)
        layer_params.append((fc_w, fc_b, conv_w, conv_b))
    layer_params = tuple(layer_params)

    D = out_features * conv_out_channels * num_nodes
    head_w = jax.random.normal(ks[kidx], (1, D), jnp.float32) / jnp.sqrt(D)
    head_b = 0.1 * jax.random.normal(ks[kidx + 1], (1,), jnp.float32)

    # weight prep hoisted out of the jitted forward (runs once).
    prep = prepare_fused_params(adj, layer_params, head_w, head_b,
                                num_nodes=num_nodes, n_pad=N_PAD,
                                batch_half=B // NUM_CORES)
    fwd = jax.jit(functools.partial(
        multilayer_gcn_forward,
        layer_meta=prep["layer_meta"], num_nodes=num_nodes,
        n_pad=N_PAD, num_cores=NUM_CORES))

    out, feats = fwd(x, yt_1, prep["weights"], prep["head_w_pad"], head_b)
    out = jax.block_until_ready(out)
    feats = jax.block_until_ready(feats)

    ref_out, ref_feats = model_reference(x, yt_1, adj, layer_params,
                                         head_w, head_b)

    assert out.shape == (B, 1)
    assert feats.shape == (B, conv_out_channels, num_nodes, out_features)

    # bf16 operands (per perf review) vs f32-parameter reference at default
    # matmul precision over a 5-layer stack: compare against the global scale.
    tol = 5e-2
    scale_f = float(jnp.max(jnp.abs(ref_feats))) + 1e-6
    scale_o = float(jnp.max(jnp.abs(ref_out))) + 1e-6
    err_f = float(jnp.max(jnp.abs(feats - ref_feats)))
    err_o = float(jnp.max(jnp.abs(out - ref_out)))
    assert err_f <= tol * scale_f, ("feature mismatch", err_f, scale_f)
    assert err_o <= tol * scale_o, ("output mismatch", err_o, scale_o)

    print("KERNEL_OK")
</pallas_src>

<mosaic_0001>
module attributes {stable_mosaic.version = 11 : i64} {
  func.func @_fused_gcn_kernel(%arg0: i32, %arg1: memref<1x4x32xbf16, #tpu.memory_space<vmem>>, %arg2: memref<1x4x1xf32, #tpu.memory_space<vmem>>, %arg3: memref<1024x1xbf16, #tpu.memory_space<vmem>>, %arg4: memref<32x512xbf16, #tpu.memory_space<vmem>>, %arg5: memref<128x4xbf16, #tpu.memory_space<vmem>>, %arg6: memref<32x512xf32, #tpu.memory_space<vmem>>, %arg7: memref<512x512xbf16, #tpu.memory_space<vmem>>, %arg8: memref<128x128xbf16, #tpu.memory_space<vmem>>, %arg9: memref<32x512xf32, #tpu.memory_space<vmem>>, %arg10: memref<512x512xbf16, #tpu.memory_space<vmem>>, %arg11: memref<128x128xbf16, #tpu.memory_space<vmem>>, %arg12: memref<32x512xf32, #tpu.memory_space<vmem>>, %arg13: memref<512x512xbf16, #tpu.memory_space<vmem>>, %arg14: memref<128x128xbf16, #tpu.memory_space<vmem>>, %arg15: memref<32x512xf32, #tpu.memory_space<vmem>>, %arg16: memref<512x1024xbf16, #tpu.memory_space<vmem>>, %arg17: memref<4x128xbf16, #tpu.memory_space<vmem>>, %arg18: memref<1x1024xf32, #tpu.memory_space<vmem>>, %arg19: memref<1x4x1xf32, #tpu.memory_space<vmem>>, %arg20: memref<1x4x1024xf32, #tpu.memory_space<vmem>>) attributes {dimension_semantics = [#tpu.dimension_semantics<parallel>], iteration_bounds = array<i64: 2>, scalar_prefetch = 0 : i64, scratch_operands = 0 : i64, tpu.core_type = #tpu.core_type<tc>, window_params = [{transform_indices = @transform_0, window_bounds = array<i64: 1, 4, 32>}, {transform_indices = @transform_1, window_bounds = array<i64: 1, 4, 1>}, {pipeline_mode = #tpu.pipeline_mode<synchronous>, transform_indices = @transform_2, window_bounds = array<i64: 1024, 1>}, {pipeline_mode = #tpu.pipeline_mode<synchronous>, transform_indices = @transform_3, window_bounds = array<i64: 32, 512>}, {pipeline_mode = #tpu.pipeline_mode<synchronous>, transform_indices = @transform_4, window_bounds = array<i64: 128, 4>}, {pipeline_mode = #tpu.pipeline_mode<synchronous>, transform_indices = @transform_5, window_bounds = array<i64: 32, 512>}, {pipeline_mode = #tpu.pipeline_mode<synchronous>, transform_indices = @transform_6, window_bounds = array<i64: 512, 512>}, {pipeline_mode = #tpu.pipeline_mode<synchronous>, transform_indices = @transform_7, window_bounds = array<i64: 128, 128>}, {pipeline_mode = #tpu.pipeline_mode<synchronous>, transform_indices = @transform_8, window_bounds = array<i64: 32, 512>}, {pipeline_mode = #tpu.pipeline_mode<synchronous>, transform_indices = @transform_9, window_bounds = array<i64: 512, 512>}, {pipeline_mode = #tpu.pipeline_mode<synchronous>, transform_indices = @transform_10, window_bounds = array<i64: 128, 128>}, {pipeline_mode = #tpu.pipeline_mode<synchronous>, transform_indices = @transform_11, window_bounds = array<i64: 32, 512>}, {pipeline_mode = #tpu.pipeline_mode<synchronous>, transform_indices = @transform_12, window_bounds = array<i64: 512, 512>}, {pipeline_mode = #tpu.pipeline_mode<synchronous>, transform_indices = @transform_13, window_bounds = array<i64: 128, 128>}, {pipeline_mode = #tpu.pipeline_mode<synchronous>, transform_indices = @transform_14, window_bounds = array<i64: 32, 512>}, {pipeline_mode = #tpu.pipeline_mode<synchronous>, transform_indices = @transform_15, window_bounds = array<i64: 512, 1024>}, {pipeline_mode = #tpu.pipeline_mode<synchronous>, transform_indices = @transform_16, window_bounds = array<i64: 4, 128>}, {pipeline_mode = #tpu.pipeline_mode<synchronous>, transform_indices = @transform_17, window_bounds = array<i64: 1, 1024>}, {transform_indices = @transform_18, window_bounds = array<i64: 1, 4, 1>}, {transform_indices = @transform_19, window_bounds = array<i64: 1, 4, 1024>}]} {
    %c0 = arith.constant 0 : index
    %c0_0 = arith.constant 0 : index
    %c0_1 = arith.constant 0 : index
    %0 = vector.load %arg1[%c0, %c0_0, %c0_1] : memref<1x4x32xbf16, #tpu.memory_space<vmem>>, vector<1x4x32xbf16>
    %1 = vector.shape_cast %0 : vector<1x4x32xbf16> to vector<4x32xbf16>
    %c0_2 = arith.constant 0 : index
    %c0_3 = arith.constant 0 : index
    %2 = vector.load %arg4[%c0_2, %c0_3] : memref<32x512xbf16, #tpu.memory_space<vmem>>, vector<32x512xbf16>
    %c0_4 = arith.constant 0 : index
    %c0_5 = arith.constant 0 : index
    %3 = vector.load %arg5[%c0_4, %c0_5] : memref<128x4xbf16, #tpu.memory_space<vmem>>, vector<128x4xbf16>
    %c0_6 = arith.constant 0 : index
    %c0_7 = arith.constant 0 : index
    %4 = vector.load %arg6[%c0_6, %c0_7] : memref<32x512xf32, #tpu.memory_space<vmem>>, vector<32x512xf32>
    %cst = arith.constant dense<0.000000e+00> : vector<4x512xf32>
    %5 = tpu.matmul %1, %2, %cst {dimension_numbers = #tpu.dot_dimension_numbers<[1], [0], [0], [1], [0, 0, 1, 1], [], []>} : vector<4x32xbf16>, vector<32x512xbf16>, vector<4x512xf32> -> vector<4x512xf32>
    %6 = arith.truncf %5 : vector<4x512xf32> to vector<4x512xbf16>
    %cst_8 = arith.constant dense<0.000000e+00> : vector<128x512xf32>
    %7 = tpu.matmul %3, %6, %cst_8 {dimension_numbers = #tpu.dot_dimension_numbers<[1], [0], [0], [1], [0, 0, 1, 1], [], []>} : vector<128x4xbf16>, vector<4x512xbf16>, vector<128x512xf32> -> vector<128x512xf32>
    %8 = tpu.concatenate %4, %4, %4, %4 in 0 : vector<32x512xf32>, vector<32x512xf32>, vector<32x512xf32>, vector<32x512xf32> -> vector<128x512xf32>
    %9 = arith.addf %7, %8 : vector<128x512xf32>
    %10 = arith.truncf %9 : vector<128x512xf32> to vector<128x512xbf16>
    %c0_9 = arith.constant 0 : index
    %c0_10 = arith.constant 0 : index
    %11 = vector.load %arg7[%c0_9, %c0_10] : memref<512x512xbf16, #tpu.memory_space<vmem>>, vector<512x512xbf16>
    %c0_11 = arith.constant 0 : index
    %c0_12 = arith.constant 0 : index
    %12 = vector.load %arg8[%c0_11, %c0_12] : memref<128x128xbf16, #tpu.memory_space<vmem>>, vector<128x128xbf16>
    %c0_13 = arith.constant 0 : index
    %c0_14 = arith.constant 0 : index
    %13 = vector.load %arg9[%c0_13, %c0_14] : memref<32x512xf32, #tpu.memory_space<vmem>>, vector<32x512xf32>
    %cst_15 = arith.constant dense<0.000000e+00> : vector<128x512xf32>
    %14 = tpu.matmul %10, %11, %cst_15 {dimension_numbers = #tpu.dot_dimension_numbers<[1], [0], [0], [1], [0, 0, 1, 1], [], []>} : vector<128x512xbf16>, vector<512x512xbf16>, vector<128x512xf32> -> vector<128x512xf32>
    %15 = arith.truncf %14 : vector<128x512xf32> to vector<128x512xbf16>
    %cst_16 = arith.constant dense<0.000000e+00> : vector<128x512xf32>
    %16 = tpu.matmul %12, %15, %cst_16 {dimension_numbers = #tpu.dot_dimension_numbers<[1], [0], [0], [1], [0, 0, 1, 1], [], []>} : vector<128x128xbf16>, vector<128x512xbf16>, vector<128x512xf32> -> vector<128x512xf32>
    %17 = tpu.concatenate %13, %13, %13, %13 in 0 : vector<32x512xf32>, vector<32x512xf32>, vector<32x512xf32>, vector<32x512xf32> -> vector<128x512xf32>
    %18 = arith.addf %16, %17 : vector<128x512xf32>
    %19 = arith.truncf %18 : vector<128x512xf32> to vector<128x512xbf16>
    %c0_17 = arith.constant 0 : index
    %c0_18 = arith.constant 0 : index
    %20 = vector.load %arg10[%c0_17, %c0_18] : memref<512x512xbf16, #tpu.memory_space<vmem>>, vector<512x512xbf16>
    %c0_19 = arith.constant 0 : index
    %c0_20 = arith.constant 0 : index
    %21 = vector.load %arg11[%c0_19, %c0_20] : memref<128x128xbf16, #tpu.memory_space<vmem>>, vector<128x128xbf16>
    %c0_21 = arith.constant 0 : index
    %c0_22 = arith.constant 0 : index
    %22 = vector.load %arg12[%c0_21, %c0_22] : memref<32x512xf32, #tpu.memory_space<vmem>>, vector<32x512xf32>
    %cst_23 = arith.constant dense<0.000000e+00> : vector<128x512xf32>
    %23 = tpu.matmul %19, %20, %cst_23 {dimension_numbers = #tpu.dot_dimension_numbers<[1], [0], [0], [1], [0, 0, 1, 1], [], []>} : vector<128x512xbf16>, vector<512x512xbf16>, vector<128x512xf32> -> vector<128x512xf32>
    %24 = arith.truncf %23 : vector<128x512xf32> to vector<128x512xbf16>
    %cst_24 = arith.constant dense<0.000000e+00> : vector<128x512xf32>
    %25 = tpu.matmul %21, %24, %cst_24 {dimension_numbers = #tpu.dot_dimension_numbers<[1], [0], [0], [1], [0, 0, 1, 1], [], []>} : vector<128x128xbf16>, vector<128x512xbf16>, vector<128x512xf32> -> vector<128x512xf32>
    %26 = tpu.concatenate %22, %22, %22, %22 in 0 : vector<32x512xf32>, vector<32x512xf32>, vector<32x512xf32>, vector<32x512xf32> -> vector<128x512xf32>
    %27 = arith.addf %25, %26 : vector<128x512xf32>
    %28 = arith.truncf %27 : vector<128x512xf32> to vector<128x512xbf16>
    %c0_25 = arith.constant 0 : index
    %c0_26 = arith.constant 0 : index
    %29 = vector.load %arg13[%c0_25, %c0_26] : memref<512x512xbf16, #tpu.memory_space<vmem>>, vector<512x512xbf16>
    %c0_27 = arith.constant 0 : index
    %c0_28 = arith.constant 0 : index
    %30 = vector.load %arg14[%c0_27, %c0_28] : memref<128x128xbf16, #tpu.memory_space<vmem>>, vector<128x128xbf16>
    %c0_29 = arith.constant 0 : index
    %c0_30 = arith.constant 0 : index
    %31 = vector.load %arg15[%c0_29, %c0_30] : memref<32x512xf32, #tpu.memory_space<vmem>>, vector<32x512xf32>
    %cst_31 = arith.constant dense<0.000000e+00> : vector<128x512xf32>
    %32 = tpu.matmul %28, %29, %cst_31 {dimension_numbers = #tpu.dot_dimension_numbers<[1], [0], [0], [1], [0, 0, 1, 1], [], []>} : vector<128x512xbf16>, vector<512x512xbf16>, vector<128x512xf32> -> vector<128x512xf32>
    %33 = arith.truncf %32 : vector<128x512xf32> to vector<128x512xbf16>
    %cst_32 = arith.constant dense<0.000000e+00> : vector<128x512xf32>
    %34 = tpu.matmul %30, %33, %cst_32 {dimension_numbers = #tpu.dot_dimension_numbers<[1], [0], [0], [1], [0, 0, 1, 1], [], []>} : vector<128x128xbf16>, vector<128x512xbf16>, vector<128x512xf32> -> vector<128x512xf32>
    %35 = tpu.concatenate %31, %31, %31, %31 in 0 : vector<32x512xf32>, vector<32x512xf32>, vector<32x512xf32>, vector<32x512xf32> -> vector<128x512xf32>
    %36 = arith.addf %34, %35 : vector<128x512xf32>
    %37 = arith.truncf %36 : vector<128x512xf32> to vector<128x512xbf16>
    %c0_33 = arith.constant 0 : index
    %c0_34 = arith.constant 0 : index
    %38 = vector.load %arg16[%c0_33, %c0_34] : memref<512x1024xbf16, #tpu.memory_space<vmem>>, vector<512x1024xbf16>
    %c0_35 = arith.constant 0 : index
    %c0_36 = arith.constant 0 : index
    %39 = vector.load %arg17[%c0_35, %c0_36] : memref<4x128xbf16, #tpu.memory_space<vmem>>, vector<4x128xbf16>
    %c0_37 = arith.constant 0 : index
    %c0_38 = arith.constant 0 : index
    %40 = vector.load %arg18[%c0_37, %c0_38] : memref<1x1024xf32, #tpu.memory_space<vmem>>, vector<1x1024xf32>
    %cst_39 = arith.constant dense<0.000000e+00> : vector<4x512xf32>
    %41 = tpu.matmul %39, %37, %cst_39 {dimension_numbers = #tpu.dot_dimension_numbers<[1], [0], [0], [1], [0, 0, 1, 1], [], []>} : vector<4x128xbf16>, vector<128x512xbf16>, vector<4x512xf32> -> vector<4x512xf32>
    %42 = arith.truncf %41 : vector<4x512xf32> to vector<4x512xbf16>
    %cst_40 = arith.constant dense<0.000000e+00> : vector<4x1024xf32>
    %43 = tpu.matmul %42, %38, %cst_40 {dimension_numbers = #tpu.dot_dimension_numbers<[1], [0], [0], [1], [0, 0, 1, 1], [], []>} : vector<4x512xbf16>, vector<512x1024xbf16>, vector<4x1024xf32> -> vector<4x1024xf32>
    %44 = vector.broadcast %40 : vector<1x1024xf32> to vector<4x1024xf32>
    %45 = arith.addf %43, %44 : vector<4x1024xf32>
    %46 = arith.truncf %45 : vector<4x1024xf32> to vector<4x1024xbf16>
    %c0_41 = arith.constant 0 : index
    %c0_42 = arith.constant 0 : index
    %c0_43 = arith.constant 0 : index
    %47 = vector.load %arg20[%c0_41, %c0_42, %c0_43] : memref<1x4x1024xf32, #tpu.memory_space<vmem>>, vector<1x4x1024xf32>
    %48 = vector.shape_cast %47 : vector<1x4x1024xf32> to vector<4x1024xf32>
    %49 = vector.shape_cast %45 : vector<4x1024xf32> to vector<1x4x1024xf32>
    tpu.vector_store %arg20[%c0_41, %c0_42, %c0_43], %49 {strides = array<i32>} : memref<1x4x1024xf32, #tpu.memory_space<vmem>>, vector<1x4x1024xf32>,
    %c0_44 = arith.constant 0 : index
    %c0_45 = arith.constant 0 : index
    %50 = vector.load %arg3[%c0_44, %c0_45] : memref<1024x1xbf16, #tpu.memory_space<vmem>>, vector<1024x1xbf16>
    %cst_46 = arith.constant dense<0.000000e+00> : vector<4x1xf32>
    %51 = tpu.matmul %46, %50, %cst_46 {dimension_numbers = #tpu.dot_dimension_numbers<[1], [0], [0], [1], [0, 0, 1, 1], [], []>} : vector<4x1024xbf16>, vector<1024x1xbf16>, vector<4x1xf32> -> vector<4x1xf32>
    %c0_47 = arith.constant 0 : index
    %c0_48 = arith.constant 0 : index
    %c0_49 = arith.constant 0 : index
    %52 = vector.load %arg2[%c0_47, %c0_48, %c0_49] : memref<1x4x1xf32, #tpu.memory_space<vmem>>, vector<1x4x1xf32>
    %53 = vector.shape_cast %52 : vector<1x4x1xf32> to vector<4x1xf32>
    %54 = arith.addf %51, %53 : vector<4x1xf32>
    %c0_50 = arith.constant 0 : index
    %c0_51 = arith.constant 0 : index
    %c0_52 = arith.constant 0 : index
    %55 = vector.load %arg19[%c0_50, %c0_51, %c0_52] : memref<1x4x1xf32, #tpu.memory_space<vmem>>, vector<1x4x1xf32>
    %56 = vector.shape_cast %55 : vector<1x4x1xf32> to vector<4x1xf32>
    %57 = vector.shape_cast %54 : vector<4x1xf32> to vector<1x4x1xf32>
    tpu.vector_store %arg19[%c0_50, %c0_51, %c0_52], %57 {strides = array<i32>} : memref<1x4x1xf32, #tpu.memory_space<vmem>>, vector<1x4x1xf32>,
    return
  }
  func.func @transform_0(%arg0: i32) -> (i32, i32, i32) {
    %c0_i32 = arith.constant 0 : i32
    %c0_i32_0 = arith.constant 0 : i32
    %c0_i32_1 = arith.constant 0 : i32
    return %arg0, %c0_i32, %c0_i32_0 : i32, i32, i32
  }
  func.func @transform_1(%arg0: i32) -> (i32, i32, i32) {
    %c0_i32 = arith.constant 0 : i32
    %c0_i32_0 = arith.constant 0 : i32
    %c0_i32_1 = arith.constant 0 : i32
    return %arg0, %c0_i32, %c0_i32_0 : i32, i32, i32
  }
  func.func @transform_2(%arg0: i32) -> (i32, i32) {
    %c0_i32 = arith.constant 0 : i32
    %c0_i32_0 = arith.constant 0 : i32
    %c0_i32_1 = arith.constant 0 : i32
    return %c0_i32, %c0_i32_0 : i32, i32
  }
  func.func @transform_3(%arg0: i32) -> (i32, i32) {
    %c0_i32 = arith.constant 0 : i32
    %c0_i32_0 = arith.constant 0 : i32
    %c0_i32_1 = arith.constant 0 : i32
    return %c0_i32, %c0_i32_0 : i32, i32
  }
  func.func @transform_4(%arg0: i32) -> (i32, i32) {
    %c0_i32 = arith.constant 0 : i32
    %c0_i32_0 = arith.constant 0 : i32
    %c0_i32_1 = arith.constant 0 : i32
    return %c0_i32, %c0_i32_0 : i32, i32
  }
  func.func @transform_5(%arg0: i32) -> (i32, i32) {
    %c0_i32 = arith.constant 0 : i32
    %c0_i32_0 = arith.constant 0 : i32
    %c0_i32_1 = arith.constant 0 : i32
    return %c0_i32, %c0_i32_0 : i32, i32
  }
  func.func @transform_6(%arg0: i32) -> (i32, i32) {
    %c0_i32 = arith.constant 0 : i32
    %c0_i32_0 = arith.constant 0 : i32
    %c0_i32_1 = arith.constant 0 : i32
    return %c0_i32, %c0_i32_0 : i32, i32
  }
  func.func @transform_7(%arg0: i32) -> (i32, i32) {
    %c0_i32 = arith.constant 0 : i32
    %c0_i32_0 = arith.constant 0 : i32
    %c0_i32_1 = arith.constant 0 : i32
    return %c0_i32, %c0_i32_0 : i32, i32
  }
  func.func @transform_8(%arg0: i32) -> (i32, i32) {
    %c0_i32 = arith.constant 0 : i32
    %c0_i32_0 = arith.constant 0 : i32
    %c0_i32_1 = arith.constant 0 : i32
    return %c0_i32, %c0_i32_0 : i32, i32
  }
  func.func @transform_9(%arg0: i32) -> (i32, i32) {
    %c0_i32 = arith.constant 0 : i32
    %c0_i32_0 = arith.constant 0 : i32
    %c0_i32_1 = arith.constant 0 : i32
    return %c0_i32, %c0_i32_0 : i32, i32
  }
  func.func @transform_10(%arg0: i32) -> (i32, i32) {
    %c0_i32 = arith.constant 0 : i32
    %c0_i32_0 = arith.constant 0 : i32
    %c0_i32_1 = arith.constant 0 : i32
    return %c0_i32, %c0_i32_0 : i32, i32
  }
  func.func @transform_11(%arg0: i32) -> (i32, i32) {
    %c0_i32 = arith.constant 0 : i32
    %c0_i32_0 = arith.constant 0 : i32
    %c0_i32_1 = arith.constant 0 : i32
    return %c0_i32, %c0_i32_0 : i32, i32
  }
  func.func @transform_12(%arg0: i32) -> (i32, i32) {
    %c0_i32 = arith.constant 0 : i32
    %c0_i32_0 = arith.constant 0 : i32
    %c0_i32_1 = arith.constant 0 : i32
    return %c0_i32, %c0_i32_0 : i32, i32
  }
  func.func @transform_13(%arg0: i32) -> (i32, i32) {
    %c0_i32 = arith.constant 0 : i32
    %c0_i32_0 = arith.constant 0 : i32
    %c0_i32_1 = arith.constant 0 : i32
    return %c0_i32, %c0_i32_0 : i32, i32
  }
  func.func @transform_14(%arg0: i32) -> (i32, i32) {
    %c0_i32 = arith.constant 0 : i32
    %c0_i32_0 = arith.constant 0 : i32
    %c0_i32_1 = arith.constant 0 : i32
    return %c0_i32, %c0_i32_0 : i32, i32
  }
  func.func @transform_15(%arg0: i32) -> (i32, i32) {
    %c0_i32 = arith.constant 0 : i32
    %c0_i32_0 = arith.constant 0 : i32
    %c0_i32_1 = arith.constant 0 : i32
    return %c0_i32, %c0_i32_0 : i32, i32
  }
  func.func @transform_16(%arg0: i32) -> (i32, i32) {
    %c0_i32 = arith.constant 0 : i32
    %c0_i32_0 = arith.constant 0 : i32
    %c0_i32_1 = arith.constant 0 : i32
    return %c0_i32, %c0_i32_0 : i32, i32
  }
  func.func @transform_17(%arg0: i32) -> (i32, i32) {
    %c0_i32 = arith.constant 0 : i32
    %c0_i32_0 = arith.constant 0 : i32
    %c0_i32_1 = arith.constant 0 : i32
    return %c0_i32, %c0_i32_0 : i32, i32
  }
  func.func @transform_18(%arg0: i32) -> (i32, i32, i32) {
    %c0_i32 = arith.constant 0 : i32
    %c0_i32_0 = arith.constant 0 : i32
    %c0_i32_1 = arith.constant 0 : i32
    return %arg0, %c0_i32, %c0_i32_0 : i32, i32, i32
  }
  func.func @transform_19(%arg0: i32) -> (i32, i32, i32) {
    %c0_i32 = arith.constant 0 : i32
    %c0_i32_0 = arith.constant 0 : i32
    %c0_i32_1 = arith.constant 0 : i32
    return %arg0, %c0_i32, %c0_i32_0 : i32, i32, i32
  }
}

</mosaic_0001>

<bundles_post_ra>
// kernel: multilayer_gcn_forward.1
= control target key start
LH: loop header
LB: loop body
LE: loop exit
PB: predicated region body
PF: predicated region fallthrough
CT: control target
= control target key end

     0   :  { %s13195_s0 = inlined_call_operand.vmem [shape: bf16[2,4,32], index: 0, kind: input, shape index: {}]   ;;  %s13196_s1 = inlined_call_operand.vmem [shape: f32[2,4,1], index: 1, kind: input, shape index: {}]   ;;  %s13197_s2 = inlined_call_operand.vmem [shape: bf16[1024,1], index: 2, kind: input, shape index: {}]   ;;  %s13198_s3 = inlined_call_operand.vmem [shape: bf16[32,512], index: 3, kind: input, shape index: {}]   ;;  %s13199_s4 = inlined_call_operand.vmem [shape: bf16[128,4], index: 4, kind: input, shape index: {}]   ;;  %s13200_s5 = inlined_call_operand.vmem [shape: f32[32,512], index: 5, kind: input, shape index: {}]   ;;  %s13201_s6 = inlined_call_operand.hbm [shape: bf16[512,512], index: 6, kind: input, shape index: {}]   ;;  %s13202_s7 = inlined_call_operand.vmem [shape: bf16[128,128], index: 7, kind: input, shape index: {}]   ;;  %s13203_s8 = inlined_call_operand.vmem [shape: f32[32,512], index: 8, kind: input, shape index: {}]   ;;  %s13204_s9 = inlined_call_operand.hbm [shape: bf16[512,512], index: 9, kind: input, shape index: {}]   ;;  %s13205_s10 = inlined_call_operand.vmem [shape: bf16[128,128], index: 10, kind: input, shape index: {}]   ;;  %s13206_s11 = inlined_call_operand.vmem [shape: f32[32,512], index: 11, kind: input, shape index: {}]   ;;  %s13207_s12 = inlined_call_operand.hbm [shape: bf16[512,512], index: 12, kind: input, shape index: {}]   ;;  %s13208_s13 = inlined_call_operand.vmem [shape: bf16[128,128], index: 13, kind: input, shape index: {}]   ;;  %s13209_s14 = inlined_call_operand.vmem [shape: f32[32,512], index: 14, kind: input, shape index: {}]   ;;  %s13210_s15 = inlined_call_operand.hbm [shape: bf16[512,1024], index: 15, kind: input, shape index: {}]   ;;  %s13211_s16 = inlined_call_operand.hbm [shape: bf16[4,128], index: 16, kind: input, shape index: {}]   ;;  %s13212_s17 = inlined_call_operand.vmem [shape: f32[1,1024], index: 17, kind: input, shape index: {}]   ;;  %s13213_s18 = inlined_call_operand.vmem [shape: f32[2,4,1], index: 18, kind: output, shape index: {0}]   ;;  %s13214_s19 = inlined_call_operand.vmem [shape: f32[2,4,1024], index: 19, kind: output, shape index: {1}]  }
   0x1   :  { %13249 = sst [smem:[#allocation34_spill]] %s13195_s0 }
   0x2   :  { %13250 = sst [smem:[#allocation35_spill]] %s13196_s1 }
   0x3   :  { %13251 = sst [smem:[#allocation36_spill]] %s13197_s2 }
   0x4   :  { %13252 = sst [smem:[#allocation37_spill]] %s13198_s3 }
   0x5   :  { %13253 = sst [smem:[#allocation38_spill]] %s13204_s9 }
   0x6   :  { %25 = vsyncpa [#allocation3], 0 }
   0x7   :  { %26 = vsyncpa [#allocation5], 0 }
   0x8   :  { %27 = vsyncpa [#allocation8], 0  ;;  %s10704_s0 = smov 0  }
   0x9 LB: > { %s10710_s30 = sadd.s32 4294967295, %s10592_s0   ;;  %p8823_p0 = scmp.ge.s32.totalorder %s10592_s0, 1  ;;  %s10592_s0 = sphi %s10704_s0, %s33_s0  }
   0xa   : > { %p478_p1 = scmp.lt.s32.totalorder %s10592_s0, 3  ;;  %p9732_p2 = scmp.eq.s32.totalorder %s10710_s30, 0 }
   0xb   : > { %s10594_s21 = smov [#allocation4]   ;;  %s10595_s22 = smov [#allocation7]  }
   0xc   : > { %p10715_p3 = pnand %p8823_p0, %p478_p1  ;;  %s521_s1 = sshll.u32 %s10594_s21, 4  ;;  %s522_s1 = int_to_ptr.vmem [resolvable:$true] %s521_s1 }
   0xd   : > { %s559_s2 = sshll.u32 %s10595_s22, 4  ;;  %s10596_s24 = smov [#allocation2]   ;;  %s10721_s2 = int_to_ptr.vmem [resolvable:$true] %s559_s2 }
   0xe   : > { %p9716_p4 = pneg %p10715_p3  ;;  %s10729_s25 = sshll.u32 %s10596_s24, 4  ;;  %s503_s25 = int_to_ptr.vmem [resolvable:$true] %s10729_s25 }
   0xf   : > { %s10455_s26 = scalar_lea.vmem %s522_s1, 16384  ;;  %p10463_p10 = scmp.lt.s32.totalorder %s522_s1, %s522_s1 }
  0x10   : > { %p10725_p5 = pnand %p9732_p2, %p9716_p4  ;;  %p10456_p7 = scmp.ne.s32.totalorder %s522_s1, %s10455_s26 }
  0x11   : > { %p10464_p11 = scmp.lt.s32.totalorder %s10455_s26, %s10455_s26 }
  0x12   : > { %p10733_p6 = pneg %p10725_p5 }
  0x13   : > { %p10465_p12 = por %p10464_p11, %p10463_p10 }
  0x14   : > { %p10458_p8 = pnand %p10456_p7, %p10733_p6 }
  0x16   : > { %p10459_p9 = pneg %p10458_p8 }
  0x18   : > { %p10466_p13 = pnand %p10465_p12, %p10459_p9 }
  0x1a   : > { %10469 = shalt.err (!%p10466_p13)
}
  0x1b   : > { %s13217_s27 = smov 256   ;;  %s13219_s28 = smov 16  }
  0x1c   : > { %s13257_s9 = sld [smem:[#allocation38_spill]]  ;;  %s10481_s22 = scalar_lea.vmem %s10721_s2, 32768 }
  0x1d   : > { %p10482_p0 = scmp.ne.s32.totalorder %s10721_s2, %s10481_s22  ;;  %p10489_p7 = scmp.lt.s32.totalorder %s10721_s2, %s10721_s2 }
  0x1e   : > { %p10490_p8 = scmp.lt.s32.totalorder %s10481_s22, %s10481_s22 }
  0x1f   : > { %p10484_p1 = pnand %p10482_p0, %p10733_p6 }
  0x20   : > { %p10491_p9 = por %p10490_p8, %p10489_p7 }
  0x21   : > { %p10485_p4 = pneg %p10484_p1 }
  0x22   : > { %9722 = dma.hbm_to_vmem [thread:$0]  (!%p10725_p5), %s13257_s9, 16384, %s522_s1, [#allocation5], %s13217_s27, %s13217_s27, %s13219_s28  }
  0x23   : > { %p10492_p10 = pnand %p10491_p9, %p10485_p4 }
  0x25   : > { %10495 = shalt.err (!%p10492_p10)
}
  0x26   : > { %s10599_s24 = smov 512   ;;  %s10600_s26 = smov 32  }
  0x27   : > { %9728 = dma.hbm_to_vmem [thread:$0]  (!%p10725_p5), %s13210_s15, 32768, %s10721_s2, [#allocation8], %s10599_s24, %s10599_s24, %s10600_s26  }
  0x28   : > { %s10601_s21 = smov [#allocation6]   ;;  %s10507_s28 = scalar_lea.vmem %s503_s25, 16384 }
  0x29   : > { %s540_s27 = sshll.u32 %s10601_s21, 4  ;;  %p10508_p11 = scmp.ne.s32.totalorder %s503_s25, %s10507_s28  ;;  %s541_s27 = int_to_ptr.vmem [resolvable:$true] %s540_s27 }
  0x2a   : > { %p10515_p0 = scmp.lt.s32.totalorder %s503_s25, %s503_s25  ;;  %p10516_p1 = scmp.lt.s32.totalorder %s10507_s28, %s10507_s28 }
  0x2b   : > { %p10510_p12 = pnand %p10508_p11, %p10733_p6 }
  0x2c   : > { %p10517_p4 = por %p10516_p1, %p10515_p0 }
  0x2d   : > { %p10511_p13 = pneg %p10510_p12 }
  0x2f   : > { %p10518_p7 = pnand %p10517_p4, %p10511_p13 }
  0x31   : > { %10521 = shalt.err (!%p10518_p7)
}
  0x32   : > { %s13258_s22 = smov 16   ;;  %s13259_s9 = smov 256  }
  0x33   : > { %9719 = dma.hbm_to_vmem [thread:$0]  (!%p10725_p5), %s13201_s6, 16384, %s503_s25, [#allocation3], %s13259_s9, %s13259_s9, %s13258_s22  }
  0x34   : > { %s10533_s24 = scalar_lea.vmem %s541_s27, 16384  ;;  %p10541_p11 = scmp.lt.s32.totalorder %s541_s27, %s541_s27 }
  0x35   : > { %p10534_p8 = scmp.ne.s32.totalorder %s541_s27, %s10533_s24  ;;  %p10542_p12 = scmp.lt.s32.totalorder %s10533_s24, %s10533_s24 }
  0x37   : > { %p10536_p9 = pnand %p10534_p8, %p10733_p6  ;;  %p10543_p13 = por %p10542_p12, %p10541_p11 }
  0x39   : > { %p10537_p10 = pneg %p10536_p9 }
  0x3b   : > { %p10544_p0 = pnand %p10543_p13, %p10537_p10 }
  0x3d   : > { %10547 = shalt.err (!%p10544_p0)
}
  0x3e   : > { %9725 = dma.hbm_to_vmem [thread:$0]  (!%p10725_p5), %s13207_s12, 16384, %s541_s27, [#allocation5], %s13259_s9, %s13259_s9, %s13258_s22  }
  0x3f   : > { %s10602_s25 = smov [#allocation9]  }
  0x40   : > { %s573_s1 = sshll.u32 %s10602_s25, 4  ;;  %s574_s1 = int_to_ptr.vmem [resolvable:$true] %s573_s1 }
  0x41   : > { %s10559_s21 = scalar_lea.vmem %s574_s1, 32  ;;  %p10567_p8 = scmp.lt.s32.totalorder %s574_s1, %s574_s1 }
  0x42   : > { %p10560_p1 = scmp.ne.s32.totalorder %s574_s1, %s10559_s21  ;;  %p10568_p9 = scmp.lt.s32.totalorder %s10559_s21, %s10559_s21 }
  0x44   : > { %p10562_p4 = pnand %p10560_p1, %p10733_p6  ;;  %p10569_p10 = por %p10568_p9, %p10567_p8 }
  0x46   : > { %p10563_p7 = pneg %p10562_p4 }
  0x48   : > { %p10570_p11 = pnand %p10569_p10, %p10563_p7 }
  0x4a   : > { %10573 = shalt.err (!%p10570_p11)
}
  0x4b   : > { %9731 = dma.hbm_to_vmem [thread:$0]  (!%p10725_p5), %s13211_s16, 32, %s574_s1, [#allocation8]  }
  0x4c   : > { %603 = sbr.rel (%p10715_p3) target bundleno = 3061 (0xbf5), region = 92 }
  0x51   : > { %10579 = dma.done.wait (%p9732_p2), [#allocation3], 16384  }
  0x52   : > { %10581 = vsyncadd (%p9732_p2), [#allocation3], 4294950912 }
  0x53   : > { %10583 = dma.done.wait (%p9732_p2), [#allocation5], 32768  }
  0x54   : > { %10585 = vsyncadd (%p9732_p2), [#allocation5], 4294934528 }
  0x55   : > { %10587 = dma.done.wait (%p9732_p2), [#allocation8], 32800  }
  0x56   : > { %10589 = vsyncadd (%p9732_p2), [#allocation8], 4294934496  ;;  %p682_p3 = scmp.lt.s32.totalorder %s10710_s30, 1  ;;  %v13221_v0 = vmov 0   ;;  %s13260_s23 = sld [smem:[#allocation37_spill]]  ;;  %vm781_vm0 = vcmask 261120  }
  0x57   : > { %817 = vmatprep.mubr.bf16.mxu0 %v13221_v0  ;;  %858 = vmatprep.mubr.bf16.mxu1 %v13221_v0  ;;  %s13261_s9 = sld [smem:[#allocation34_spill]]  ;;  %vm936_vm1 = vcmask 1041408   ;;  %vm911_vm2 = vcmask 31744   ;;  %v9782_v14 = vld [vmem:[#allocation2 + $0xe4] ss:$16 sps:$4 sm:$0xff]   ;;  %v9773_v35 = vld [vmem:[%s13199_s4 + $0x8] sm:$0xff]  }
  0x58   : > { %s13418_s30 = smov (!%p682_p3, %s10710_s30), 1  ;;  %v9785_v15 = vld [vmem:[#allocation2 + $0x2e4] ss:$16 sps:$4 sm:$0xff]   ;;  %v9780_v25 = vld [vmem:[#allocation2 + $0xe0] ss:$16 sps:$4 sm:$0xff]   ;;  %v9775_v53 = vld [vmem:[%s13199_s4 + $0x18] sm:$0xff]  }
  0x59   : > { %s8836_s3 = sshll.u32 %s13418_s30, 1  ;;  %v9772_v22 = vld [vmem:[%s13199_s4] sm:$0xff]   ;;  %v9774_v44 = vld [vmem:[%s13199_s4 + $0x10] sm:$0xff]   ;;  %s13415_s25 = sld [smem:[#allocation36_spill]]  ;;  %vm8671_vm3 = vcmask 3072  }
  0x5a   : > { %v9783_v26 = vld [vmem:[#allocation2 + $0x2e0] ss:$16 sps:$4 sm:$0xff]   ;;  %v9788_v29 = vld [vmem:[#allocation2 + $0xc4] ss:$16 sps:$4 sm:$0xff]   ;;  %s9607_s2 = sshll.u32 %s13418_s30, 5  ;;  %s8837_s27 = sshll.u32 %s13418_s30, 2 }
  0x5b   : > { %v9791_v30 = vld [vmem:[#allocation2 + $0x2c4] ss:$16 sps:$4 sm:$0xff]   ;;  %v9786_v31 = vld [vmem:[#allocation2 + $0xc0] ss:$16 sps:$4 sm:$0xff]   ;;  %s13039_s26 = scalar_lea.vmem %s13214_s19, %s9607_s2  ;;  %s13416_s28 = sld [smem:[#allocation35_spill]] }
  0x5c   : > { %v9760_v1 = vld [vmem:[%s13260_s23 + $0x24] ss:$16 sps:$4 sm:$0xff]   ;;  %v9762_v2 = vld [vmem:[%s13260_s23 + $0x2c] ss:$16 sps:$4 sm:$0xff]   ;;  %v9764_v3 = vld [vmem:[%s13260_s23 + $0x20] ss:$16 sps:$4 sm:$0xff]   ;;  %s693_s1 = scalar_lea.vmem %s13213_s18, %s8837_s27 }
  0x5d   : > { %797 = vmatprep.subr.bf16.mxu0 %v9760_v1  ;;  %v9765_v4 = vld [vmem:[%s13260_s23 + $0x28] ss:$16 sps:$4 sm:$0xff]   ;;  %838 = vmatprep.subr.bf16.mxu1 %v9762_v2  ;;  %v9766_v5 = vld [vmem:[%s13260_s23 + $0x4] ss:$16 sps:$4 sm:$0xff]   ;;  %s685_s20 = scalar_lea.vmem %s13261_s9, %s8836_s3  ;;  %v9768_v6 = vld [vmem:[%s13260_s23 + $0xc] ss:$16 sps:$4 sm:$0xff]  }
  0x5e   : > { %798 = vmatpush1.bf16.msra.mxu0 %v9764_v3  ;;  %839 = vmatpush1.bf16.msra.mxu1 %v9765_v4  ;;  %v9770_v7 = vld [vmem:[%s13260_s23] ss:$16 sps:$4 sm:$0xff]   ;;  %v9771_v8 = vld [vmem:[%s13260_s23 + $0x8] ss:$16 sps:$4 sm:$0xff]   ;;  %v9794_v33 = vld [vmem:[#allocation2 + $0xa4] ss:$16 sps:$4 sm:$0xff]  }
  0x5f   : > { %799 = vmatprep.subr.bf16.mxu0 %v9766_v5  ;;  %840 = vmatprep.subr.bf16.mxu1 %v9768_v6  ;;  %v700_v9 = vld [vmem:[%s685_s20] sm:$0x3]  ;;  %v9797_v34 = vld [vmem:[#allocation2 + $0x2a4] ss:$16 sps:$4 sm:$0xff]  }
  0x60   : > { %v9789_v32 = vld [vmem:[#allocation2 + $0x2c0] ss:$16 sps:$4 sm:$0xff]   ;;  %v9800_v38 = vld [vmem:[#allocation2 + $0x84] ss:$16 sps:$4 sm:$0xff]  }
  0x61   : > { %v9792_v36 = vld [vmem:[#allocation2 + $0xa0] ss:$16 sps:$4 sm:$0xff]   ;;  %v9803_v39 = vld [vmem:[#allocation2 + $0x284] ss:$16 sps:$4 sm:$0xff]   ;;  %s689_s3 = scalar_lea.vmem %s13416_s28, %s8837_s27 }
  0x62   : > { %800 = vmatpush1.bf16.msra.mxu0 %v9770_v7  ;;  %841 = vmatpush1.bf16.msra.mxu1 %v9771_v8  ;;  %v9795_v37 = vld [vmem:[#allocation2 + $0x2a0] ss:$16 sps:$4 sm:$0xff]   ;;  %v9806_v42 = vld [vmem:[#allocation2 + $0x64] ss:$16 sps:$4 sm:$0xff]   ;;  %v9777_v8 = vld [vmem:[%s13199_s4 + $0x28] sm:$0xff]  }
  0x63   : > { %v9798_v40 = vld [vmem:[#allocation2 + $0x80] ss:$16 sps:$4 sm:$0xff]   ;;  %v9809_v43 = vld [vmem:[#allocation2 + $0x264] ss:$16 sps:$4 sm:$0xff]  }
  0x64   : > { %v9801_v41 = vld [vmem:[#allocation2 + $0x280] ss:$16 sps:$4 sm:$0xff]   ;;  %v9812_v47 = vld [vmem:[#allocation2 + $0x44] ss:$16 sps:$4 sm:$0xff]  }
  0x65   : > { %8849 = vmatmul.mubr.msk.bf16.vlgmr.msra.gmra.mxu0 %vm781_vm0, %v700_v9  ;;  %8850 = vmatmul.mubr.msk.bf16.vlgmr.msra.gmra.mxu1 %vm781_vm0, %v700_v9  ;;  %v9804_v45 = vld [vmem:[#allocation2 + $0x60] ss:$16 sps:$4 sm:$0xff]   ;;  %v9815_v48 = vld [vmem:[#allocation2 + $0x244] ss:$16 sps:$4 sm:$0xff]  }
  0x66   : > { %981 = vmatprep.mubr.bf16.mxu0 %v13221_v0  ;;  %1094 = vmatprep.mubr.bf16.mxu1 %v13221_v0  ;;  %v9807_v46 = vld [vmem:[#allocation2 + $0x260] ss:$16 sps:$4 sm:$0xff]   ;;  %v9818_v51 = vld [vmem:[#allocation2 + $0x24] ss:$16 sps:$4 sm:$0xff]  }
  0x67   : > { %v9810_v49 = vld [vmem:[#allocation2 + $0x40] ss:$16 sps:$4 sm:$0xff]   ;;  %v9821_v52 = vld [vmem:[#allocation2 + $0x224] ss:$16 sps:$4 sm:$0xff]  }
  0x68   : > { %v9813_v50 = vld [vmem:[#allocation2 + $0x240] ss:$16 sps:$4 sm:$0xff]   ;;  %v9824_v56 = vld [vmem:[#allocation2 + $0x4] ss:$16 sps:$4 sm:$0xff]  }
  0x69   : > { %v9816_v54 = vld [vmem:[#allocation2 + $0x20] ss:$16 sps:$4 sm:$0xff]   ;;  %v9827_v57 = vld [vmem:[#allocation2 + $0x204] ss:$16 sps:$4 sm:$0xff]  }
  0x6a   : > { %v9819_v55 = vld [vmem:[#allocation2 + $0x220] ss:$16 sps:$4 sm:$0xff]   ;;  %v9830_v60 = vld [vmem:[#allocation2 + $0x1e4] ss:$16 sps:$4 sm:$0xff]  }
  0x6b   : > { %v9822_v58 = vld [vmem:[#allocation2] ss:$16 sps:$4 sm:$0xff]   ;;  %v9833_v61 = vld [vmem:[#allocation2 + $0x3e4] ss:$16 sps:$4 sm:$0xff]  }
  0x6c   : > { %v9825_v59 = vld [vmem:[#allocation2 + $0x200] ss:$16 sps:$4 sm:$0xff]   ;;  %v9836_v2 = vld [vmem:[#allocation2 + $0x1c4] ss:$16 sps:$4 sm:$0xff]  }
  0x6d   : > { %v9776_v62 = vld [vmem:[%s13199_s4 + $0x20] sm:$0xff]  }
  0x6e   : > { %v9828_v63 = vld [vmem:[#allocation2 + $0x1e0] ss:$16 sps:$4 sm:$0xff]   ;;  %v9839_v3 = vld [vmem:[#allocation2 + $0x3c4] ss:$16 sps:$4 sm:$0xff]  }
  0x6f   : > { %v9831_v1 = vld [vmem:[#allocation2 + $0x3e0] ss:$16 sps:$4 sm:$0xff]   ;;  %v9842_v6 = vld [vmem:[#allocation2 + $0x1a4] ss:$16 sps:$4 sm:$0xff]  }
  0x70   : > { %v9834_v4 = vld [vmem:[#allocation2 + $0x1c0] ss:$16 sps:$4 sm:$0xff]   ;;  %v9845_v7 = vld [vmem:[#allocation2 + $0x3a4] ss:$16 sps:$4 sm:$0xff]  }
  0x71   : > { %v9837_v5 = vld [vmem:[#allocation2 + $0x3c0] ss:$16 sps:$4 sm:$0xff]  }
  0x72   : > { %v9840_v9 = vld [vmem:[#allocation2 + $0x1a0] ss:$16 sps:$4 sm:$0xff]  }
 0x125   : > { %v819_v10 = vpop.f32.mrf.mxu0  ;;  %v860_v11 = vpop.f32.mrf.mxu1 }
 0x126   : > { %v867_v12 = vpack.c.bf16 %v819_v10, %v819_v10  ;;  %v869_v13 = vpack.c.bf16 %v860_v11, %v860_v11  ;;  %v9843_v10 = vld [vmem:[#allocation2 + $0x3a0] ss:$16 sps:$4 sm:$0xff]   ;;  %v9848_v11 = vld [vmem:[#allocation2 + $0x184] ss:$16 sps:$4 sm:$0xff]  }
 0x127   : > { %v821_v16 = vpop.f32.mrf.mxu0  ;;  %v862_v17 = vpop.f32.mrf.mxu1 }
 0x128   : > { %v938_v18 = vsel %vm936_vm1, %v867_v12, 0  ;;  %v944_v19 = vsel %vm936_vm1, %v869_v13, 0  ;;  %v868_v20 = vpack.c.bf16 %v821_v16, %v821_v16  ;;  %v870_v21 = vpack.c.bf16 %v862_v17, %v862_v17  ;;  %v9851_v12 = vld [vmem:[#allocation2 + $0x384] ss:$16 sps:$4 sm:$0xff]   ;;  %v9846_v13 = vld [vmem:[#allocation2 + $0x180] ss:$16 sps:$4 sm:$0xff]  }
 0x129   : > { %v823_v23 = vpop.f32.mrf.mxu0  ;;  %v864_v24 = vpop.f32.mrf.mxu1  ;;  %v9857_v16 = vld [vmem:[#allocation2 + $0x364] ss:$16 sps:$4 sm:$0xff]  }
 0x12a   : > { %8859 = vmatprep.subr.msk.bf16.mxu0 %vm936_vm1, %v868_v20  ;;  %8868 = vmatprep.subr.msk.bf16.mxu1 %vm936_vm1, %v870_v21  ;;  %v9778_v17 = vld [vmem:[%s13199_s4 + $0x30] sm:$0xff]   ;;  %v9779_v20 = vld [vmem:[%s13199_s4 + $0x38] sm:$0xff]  }
 0x12b   : > { %v824_v27 = vpop.f32.mrf.mxu0  ;;  %v865_v28 = vpop.f32.mrf.mxu1  ;;  %964 = vmatpush1.bf16.msra.mxu0 %v938_v18  ;;  %1077 = vmatpush1.bf16.msra.mxu1 %v944_v19  ;;  %v9852_v18 = vld [vmem:[#allocation2 + $0x160] ss:$16 sps:$4 sm:$0xff]   ;;  %v9860_v21 = vld [vmem:[#allocation2 + $0x144] ss:$16 sps:$4 sm:$0xff]  }
 0x12c   : > { %2007 = vmatprep.subr.bf16.mxu0 %v9782_v14  ;;  %2120 = vmatprep.subr.bf16.mxu1 %v9785_v15  ;;  %v9849_v14 = vld [vmem:[#allocation2 + $0x380] ss:$16 sps:$4 sm:$0xff]   ;;  %v9854_v15 = vld [vmem:[#allocation2 + $0x164] ss:$16 sps:$4 sm:$0xff]  }
 0x12d   : > { %v9855_v19 = vld [vmem:[#allocation2 + $0x360] ss:$16 sps:$4 sm:$0xff]  }
 0x12e   : > { %8860 = vmatmul.mubr.msk.bf16.vlgmr.msra.gmra.mxu0 %vm911_vm2, %v9772_v22  ;;  %8869 = vmatmul.mubr.msk.bf16.vlgmr.msra.gmra.mxu1 %vm911_vm2, %v9772_v22  ;;  %v9863_v22 = vld [vmem:[#allocation2 + $0x344] ss:$16 sps:$4 sm:$0xff]   ;;  %v9858_v23 = vld [vmem:[#allocation2 + $0x140] ss:$16 sps:$4 sm:$0xff]  }
 0x12f   : > { %991 = vmatprep.mubr.bf16.mxu0 %v13221_v0  ;;  %1104 = vmatprep.mubr.bf16.mxu1 %v13221_v0  ;;  %v9861_v24 = vld [vmem:[#allocation2 + $0x340] ss:$16 sps:$4 sm:$0xff]  }
 0x130   : > { %2008 = vmatpush1.bf16.msra.mxu0 %v9780_v25  ;;  %2121 = vmatpush1.bf16.msra.mxu1 %v9783_v26  ;;  %v9866_v25 = vld [vmem:[#allocation2 + $0x124] ss:$16 sps:$4 sm:$0xff]   ;;  %v9864_v27 = vld [vmem:[#allocation2 + $0x120] ss:$16 sps:$4 sm:$0xff]  }
 0x131   : > { %2009 = vmatprep.subr.bf16.mxu0 %v9788_v29  ;;  %2122 = vmatprep.subr.bf16.mxu1 %v9791_v30  ;;  %v9869_v26 = vld [vmem:[#allocation2 + $0x324] ss:$16 sps:$4 sm:$0xff]   ;;  %v9867_v28 = vld [vmem:[#allocation2 + $0x320] ss:$16 sps:$4 sm:$0xff]  }
 0x132   : > { %v9872_v29 = vld [vmem:[#allocation2 + $0x104] ss:$16 sps:$4 sm:$0xff]   ;;  %v9870_v30 = vld [vmem:[#allocation2 + $0x100] ss:$16 sps:$4 sm:$0xff]  }
 0x134   : > { %2010 = vmatpush1.bf16.msra.mxu0 %v9786_v31  ;;  %2123 = vmatpush1.bf16.msra.mxu1 %v9789_v32  ;;  %v9873_v31 = vld [vmem:[#allocation2 + $0x300] ss:$16 sps:$4 sm:$0xff]   ;;  %v9875_v32 = vld [vmem:[#allocation2 + $0x304] ss:$16 sps:$4 sm:$0xff]  }
 0x135   : > { %2011 = vmatprep.subr.bf16.mxu0 %v9794_v33  ;;  %2124 = vmatprep.subr.bf16.mxu1 %v9797_v34  ;;  %v9878_v33 = vld [vmem:[#allocation2 + $0xec] ss:$16 sps:$4 sm:$0xff]  }
 0x136   : > { %8861 = vmatmul.mubr.msk.bf16.gmra.mxu0 %vm911_vm2, %v9773_v35  ;;  %8870 = vmatmul.mubr.msk.bf16.gmra.mxu1 %vm911_vm2, %v9773_v35  ;;  %v9881_v34 = vld [vmem:[#allocation2 + $0x2ec] ss:$16 sps:$4 sm:$0xff]  }
 0x137   : > { %1001 = vmatprep.mubr.bf16.mxu0 %v13221_v0  ;;  %1114 = vmatprep.mubr.bf16.mxu1 %v13221_v0 }
 0x138   : > { %2012 = vmatpush1.bf16.msra.mxu0 %v9792_v36  ;;  %2125 = vmatpush1.bf16.msra.mxu1 %v9795_v37 }
 0x139   : > { %2013 = vmatprep.subr.bf16.mxu0 %v9800_v38  ;;  %2126 = vmatprep.subr.bf16.mxu1 %v9803_v39  ;;  %v10898_v39 = vld [vmem:[%s13200_s5 + $0x8] sm:$0xff] }
 0x13c   : > { %2014 = vmatpush1.bf16.msra.mxu0 %v9798_v40  ;;  %2127 = vmatpush1.bf16.msra.mxu1 %v9801_v41  ;;  %v10903_v40 = vld [vmem:[%s13200_s5 + $0x20] sm:$0xff]  ;;  %v10908_v41 = vld [vmem:[%s13200_s5 + $0x30] sm:$0xff] }
 0x13d   : > { %2015 = vmatprep.subr.bf16.mxu0 %v9806_v42  ;;  %2128 = vmatprep.subr.bf16.mxu1 %v9809_v43  ;;  %v10913_v42 = vld [vmem:[%s13200_s5 + $0x18] sm:$0xff] }
 0x13e   : > { %8862 = vmatmul.mubr.msk.bf16.gmra.mxu0 %vm911_vm2, %v9774_v44  ;;  %8871 = vmatmul.mubr.msk.bf16.gmra.mxu1 %vm911_vm2, %v9774_v44 }
 0x13f   : > { %1011 = vmatprep.mubr.bf16.mxu0 %v13221_v0  ;;  %1124 = vmatprep.mubr.bf16.mxu1 %v13221_v0 }
 0x140   : > { %2016 = vmatpush1.bf16.msra.mxu0 %v9804_v45  ;;  %2129 = vmatpush1.bf16.msra.mxu1 %v9807_v46  ;;  %v10918_v45 = vld [vmem:[%s13200_s5 + $0x28] sm:$0xff]  ;;  %v10923_v46 = vld [vmem:[%s13200_s5 + $0x38] sm:$0xff] }
 0x141   : > { %2017 = vmatprep.subr.bf16.mxu0 %v9812_v47  ;;  %2130 = vmatprep.subr.bf16.mxu1 %v9815_v48  ;;  %v10928_v47 = vld [vmem:[%s13200_s5] sm:$0xff]  ;;  %v10933_v48 = vld [vmem:[%s13200_s5 + $0x10] sm:$0xff] }
 0x144   : > { %2018 = vmatpush1.bf16.msra.mxu0 %v9810_v49  ;;  %2131 = vmatpush1.bf16.msra.mxu1 %v9813_v50 }
 0x145   : > { %2019 = vmatprep.subr.bf16.mxu0 %v9818_v51  ;;  %2132 = vmatprep.subr.bf16.mxu1 %v9821_v52 }
 0x146   : > { %8863 = vmatmul.mubr.msk.bf16.gmra.mxu0 %vm911_vm2, %v9775_v53  ;;  %8872 = vmatmul.mubr.msk.bf16.gmra.mxu1 %vm911_vm2, %v9775_v53 }
 0x147   : > { %1021 = vmatprep.mubr.bf16.mxu0 %v13221_v0  ;;  %1134 = vmatprep.mubr.bf16.mxu1 %v13221_v0 }
 0x148   : > { %2020 = vmatpush1.bf16.msra.mxu0 %v9816_v54  ;;  %2133 = vmatpush1.bf16.msra.mxu1 %v9819_v55 }
 0x149   : > { %2021 = vmatprep.subr.bf16.mxu0 %v9824_v56  ;;  %2134 = vmatprep.subr.bf16.mxu1 %v9827_v57 }
 0x14c   : > { %2022 = vmatpush1.bf16.msra.mxu0 %v9822_v58  ;;  %2135 = vmatpush1.bf16.msra.mxu1 %v9825_v59 }
 0x14d   : > { %2023 = vmatprep.subr.bf16.mxu0 %v9830_v60  ;;  %2136 = vmatprep.subr.bf16.mxu1 %v9833_v61 }
 0x14e   : > { %8864 = vmatmul.mubr.msk.bf16.gmra.mxu0 %vm911_vm2, %v9776_v62  ;;  %8873 = vmatmul.mubr.msk.bf16.gmra.mxu1 %vm911_vm2, %v9776_v62 }
 0x14f   : > { %1031 = vmatprep.mubr.bf16.mxu0 %v13221_v0  ;;  %1144 = vmatprep.mubr.bf16.mxu1 %v13221_v0 }
 0x150   : > { %2024 = vmatpush2.bf16.msra.mxu0 %v9828_v63  ;;  %2137 = vmatpush2.bf16.msra.mxu1 %v9831_v1  ;;  %v9876_v63 = vld [vmem:[#allocation2 + $0xe8] ss:$16 sps:$4 sm:$0xff]  }
 0x151   : > { %2025 = vmatprep.subr.bf16.mxu0 %v9836_v2  ;;  %2138 = vmatprep.subr.bf16.mxu1 %v9839_v3  ;;  %v9879_v1 = vld [vmem:[#allocation2 + $0x2e8] ss:$16 sps:$4 sm:$0xff]  }
 0x154   : > { %2026 = vmatpush2.bf16.msra.mxu0 %v9834_v4  ;;  %2139 = vmatpush2.bf16.msra.mxu1 %v9837_v5 }
 0x155   : > { %2027 = vmatprep.subr.bf16.mxu0 %v9842_v6  ;;  %2140 = vmatprep.subr.bf16.mxu1 %v9845_v7  ;;  %v9884_v6 = vld [vmem:[#allocation2 + $0xcc] ss:$16 sps:$4 sm:$0xff]  }
 0x156   : > { %8865 = vmatmul.mubr.msk.bf16.gmra.mxu0 %vm911_vm2, %v9777_v8  ;;  %8874 = vmatmul.mubr.msk.bf16.gmra.mxu1 %vm911_vm2, %v9777_v8  ;;  %v9887_v7 = vld [vmem:[#allocation2 + $0x2cc] ss:$16 sps:$4 sm:$0xff]  }
 0x157   : > { %1041 = vmatprep.mubr.bf16.mxu0 %v13221_v0  ;;  %1154 = vmatprep.mubr.bf16.mxu1 %v13221_v0  ;;  %v10954_v8 = vld [vmem:[%s13200_s5 + $0x48] sm:$0xff] }
 0x158   : > { %2028 = vmatpush2.bf16.msra.mxu0 %v9840_v9  ;;  %2141 = vmatpush2.bf16.msra.mxu1 %v9843_v10  ;;  %v10961_v9 = vld [vmem:[%s13200_s5 + $0x60] sm:$0xff]  ;;  %v10966_v10 = vld [vmem:[%s13200_s5 + $0x70] sm:$0xff] }
 0x159   : > { %2029 = vmatprep.subr.bf16.mxu0 %v9848_v11  ;;  %2142 = vmatprep.subr.bf16.mxu1 %v9851_v12  ;;  %v10971_v11 = vld [vmem:[%s13200_s5 + $0x58] sm:$0xff] }
 0x15c   : > { %2030 = vmatpush2.bf16.msra.mxu0 %v9846_v13  ;;  %2143 = vmatpush2.bf16.msra.mxu1 %v9849_v14  ;;  %v10978_v14 = vld [vmem:[%s13200_s5 + $0x68] sm:$0xff] }
 0x15d   : > { %2031 = vmatprep.subr.bf16.mxu0 %v9854_v15  ;;  %2144 = vmatprep.subr.bf16.mxu1 %v9857_v16  ;;  %v10983_v15 = vld [vmem:[%s13200_s5 + $0x78] sm:$0xff]  ;;  %v10988_v16 = vld [vmem:[%s13200_s5 + $0x40] sm:$0xff] }
 0x15e   : > { %8866 = vmatmul.mubr.msk.bf16.gmra.mxu0 %vm911_vm2, %v9778_v17  ;;  %8875 = vmatmul.mubr.msk.bf16.gmra.mxu1 %vm911_vm2, %v9778_v17  ;;  %v10993_v17 = vld [vmem:[%s13200_s5 + $0x50] sm:$0xff] }
 0x15f   : > { %1051 = vmatprep.mubr.bf16.mxu0 %v13221_v0  ;;  %1164 = vmatprep.mubr.bf16.mxu1 %v13221_v0 }
 0x160   : > { %2032 = vmatpush2.bf16.msra.mxu0 %v9852_v18  ;;  %2145 = vmatpush2.bf16.msra.mxu1 %v9855_v19  ;;  %v9882_v18 = vld [vmem:[#allocation2 + $0xc8] ss:$16 sps:$4 sm:$0xff]  }
 0x161   : > { %2033 = vmatprep.subr.bf16.mxu0 %v9860_v21  ;;  %2146 = vmatprep.subr.bf16.mxu1 %v9863_v22 }
 0x164   : > { %2034 = vmatpush2.bf16.msra.mxu0 %v9858_v23  ;;  %2147 = vmatpush2.bf16.msra.mxu1 %v9861_v24  ;;  %v9885_v23 = vld [vmem:[#allocation2 + $0x2c8] ss:$16 sps:$4 sm:$0xff]   ;;  %v9890_v24 = vld [vmem:[#allocation2 + $0xac] ss:$16 sps:$4 sm:$0xff]  }
 0x165   : > { %2035 = vmatprep.subr.bf16.mxu0 %v9866_v25  ;;  %2148 = vmatprep.subr.bf16.mxu1 %v9869_v26 }
 0x166   : > { %8867 = vmatmul.mubr.msk.bf16.gmra.mxu0 %vm911_vm2, %v9779_v20  ;;  %8876 = vmatmul.mubr.msk.bf16.gmra.mxu1 %vm911_vm2, %v9779_v20 }
 0x168   : > { %2036 = vmatpush2.bf16.msra.mxu0 %v9864_v27  ;;  %2149 = vmatpush2.bf16.msra.mxu1 %v9867_v28 }
 0x169   : > { %2037 = vmatprep.subr.bf16.mxu0 %v9872_v29  ;;  %2150 = vmatprep.subr.bf16.mxu1 %v9875_v32 }
 0x16c   : > { %2038 = vmatpush2.bf16.msra.mxu0 %v9870_v30  ;;  %2151 = vmatpush2.bf16.msra.mxu1 %v9873_v31 }
 0x16d   : > { %2233 = vmatprep.subr.bf16.mxu0 %v9878_v33  ;;  %2346 = vmatprep.subr.bf16.mxu1 %v9881_v34 }
 0x1ee   : > { %v983_v35 = vpop.f32.mrf.mxu0  ;;  %v1096_v36 = vpop.f32.mrf.mxu1 }
 0x1ef   : > { %v984_v57 = vadd.f32 %v983_v35, %v10928_v47  ;;  %v1097_v58 = vadd.f32 %v1096_v36, %v10933_v48  ;;  %v9888_v35 = vld [vmem:[#allocation2 + $0xa8] ss:$16 sps:$4 sm:$0xff]   ;;  %v9893_v36 = vld [vmem:[#allocation2 + $0x2ac] ss:$16 sps:$4 sm:$0xff]  }
 0x1f0   : > { %v985_v37 = vpop.f32.mrf.mxu0  ;;  %v1098_v38 = vpop.f32.mrf.mxu1 }
 0x1f1   : > { %v986_v53 = vadd.f32 %v985_v37, %v10898_v39  ;;  %v1099_v54 = vadd.f32 %v1098_v38, %v10913_v42 }
 0x1f2   : > { %v987_v43 = vpop.f32.mrf.mxu0  ;;  %v1100_v44 = vpop.f32.mrf.mxu1 }
 0x1f3   : > { %v988_v49 = vadd.f32 %v987_v43, %v10903_v40  ;;  %v1101_v50 = vadd.f32 %v1100_v44, %v10908_v41 }
 0x1f4   : > { %v989_v51 = vpop.f32.mrf.mxu0  ;;  %v1102_v52 = vpop.f32.mrf.mxu1 }
 0x1f5   : > { %v990_v55 = vadd.f32 %v989_v51, %v10918_v45  ;;  %v1103_v56 = vadd.f32 %v1102_v52, %v10923_v46  ;;  %v10947_v2 = vpack.c.bf16 %v988_v49, %v984_v57  ;;  %v10949_v3 = vpack.c.bf16 %v1101_v50, %v1097_v58  ;;  %v9891_v49 = vld [vmem:[#allocation2 + $0x2a8] ss:$16 sps:$4 sm:$0xff]   ;;  %v9896_v50 = vld [vmem:[#allocation2 + $0x8c] ss:$16 sps:$4 sm:$0xff]  }
 0x1f6   : > { %v993_v59 = vpop.f32.mrf.mxu0  ;;  %v1106_v60 = vpop.f32.mrf.mxu1  ;;  %v9899_v51 = vld [vmem:[#allocation2 + $0x28c] ss:$16 sps:$4 sm:$0xff]  }
 0x1f7   : > { %v10943_v61 = vpack.c.bf16 %v990_v55, %v986_v53  ;;  %v10945_v62 = vpack.c.bf16 %v1103_v56, %v1099_v54  ;;  %v994_v29 = vadd.f32 %v993_v59, %v10988_v16  ;;  %v1107_v30 = vadd.f32 %v1106_v60, %v10993_v17  ;;  %v9894_v54 = vld [vmem:[#allocation2 + $0x88] ss:$16 sps:$4 sm:$0xff]   ;;  %v9902_v60 = vld [vmem:[#allocation2 + $0x6c] ss:$16 sps:$4 sm:$0xff]  }
 0x1f8   : > { %v995_v4 = vpop.f32.mrf.mxu0  ;;  %v1108_v5 = vpop.f32.mrf.mxu1  ;;  %v9897_v59 = vld [vmem:[#allocation2 + $0x288] ss:$16 sps:$4 sm:$0xff]  }
 0x1f9   : > { %2039 = vmatprep.mubr.bf16.mxu0 %v10943_v61  ;;  %2152 = vmatprep.mubr.bf16.mxu1 %v10945_v62  ;;  %v996_v25 = vadd.f32 %v995_v4, %v10954_v8  ;;  %v1109_v26 = vadd.f32 %v1108_v5, %v10971_v11 }
 0x1fa   : > { %v997_v12 = vpop.f32.mrf.mxu0  ;;  %v1110_v13 = vpop.f32.mrf.mxu1  ;;  %2040 = vmatmul.mubr.bf16.vlgmr.msra.gmra.mxu0 %v10947_v2  ;;  %2153 = vmatmul.mubr.bf16.vlgmr.msra.gmra.mxu1 %v10949_v3 }
 0x1fb   : > { %2234 = vmatpush1.bf16.msra.mxu0 %v9876_v63  ;;  %2347 = vmatpush1.bf16.msra.mxu1 %v9879_v1  ;;  %v998_v19 = vadd.f32 %v997_v12, %v10961_v9  ;;  %v1111_v20 = vadd.f32 %v1110_v13, %v10966_v10 }
 0x1fc   : > { %v999_v21 = vpop.f32.mrf.mxu0  ;;  %v1112_v22 = vpop.f32.mrf.mxu1  ;;  %2235 = vmatprep.subr.bf16.mxu0 %v9884_v6  ;;  %2348 = vmatprep.subr.bf16.mxu1 %v9887_v7 }
 0x1fd   : > { %v1000_v27 = vadd.f32 %v999_v21, %v10978_v14  ;;  %v1113_v28 = vadd.f32 %v1112_v22, %v10983_v15  ;;  %v11007_v37 = vpack.c.bf16 %v998_v19, %v994_v29  ;;  %v11009_v38 = vpack.c.bf16 %v1111_v20, %v1107_v30  ;;  %v9900_v20 = vld [vmem:[#allocation2 + $0x68] ss:$16 sps:$4 sm:$0xff]   ;;  %v9905_v21 = vld [vmem:[#allocation2 + $0x26c] ss:$16 sps:$4 sm:$0xff]  }
 0x1fe   : > { %v1003_v31 = vpop.f32.mrf.mxu0  ;;  %v1116_v32 = vpop.f32.mrf.mxu1 }
 0x1ff   : > { %v11003_v33 = vpack.c.bf16 %v1000_v27, %v996_v25  ;;  %v11005_v34 = vpack.c.bf16 %v1113_v28, %v1109_v26  ;;  %2236 = vmatpush1.bf16.msra.mxu0 %v9882_v18  ;;  %2349 = vmatpush1.bf16.msra.mxu1 %v9885_v23  ;;  %v1004_v6 = vadd.f32 %v1003_v31, %v10928_v47  ;;  %v9903_v26 = vld [vmem:[#allocation2 + $0x268] ss:$16 sps:$4 sm:$0xff]   ;;  %v9908_v27 = vld [vmem:[#allocation2 + $0x4c] ss:$16 sps:$4 sm:$0xff]  }
 0x200   : > { %v1005_v43 = vpop.f32.mrf.mxu0  ;;  %v1118_v44 = vpop.f32.mrf.mxu1  ;;  %2237 = vmatprep.subr.bf16.mxu0 %v9890_v24  ;;  %2350 = vmatprep.subr.bf16.mxu1 %v9893_v36  ;;  %v1117_v7 = vadd.f32 %v1116_v32, %v10933_v48  ;;  %v9911_v28 = vld [vmem:[#allocation2 + $0x24c] ss:$16 sps:$4 sm:$0xff]   ;;  %v9906_v31 = vld [vmem:[#allocation2 + $0x48] ss:$16 sps:$4 sm:$0xff]  }
 0x201   : > { %2049 = vmatprep.mubr.bf16.mxu0 %v11003_v33  ;;  %2162 = vmatprep.mubr.bf16.mxu1 %v11005_v34  ;;  %v1006_v63 = vadd.f32 %v1005_v43, %v10898_v39  ;;  %v1119_v1 = vadd.f32 %v1118_v44, %v10913_v42  ;;  %v9909_v44 = vld [vmem:[#allocation2 + $0x248] ss:$16 sps:$4 sm:$0xff]  }
 0x202   : > { %v1007_v52 = vpop.f32.mrf.mxu0  ;;  %v1120_v53 = vpop.f32.mrf.mxu1  ;;  %2050 = vmatmul.mubr.bf16.gmra.mxu0 %v11007_v37  ;;  %2163 = vmatmul.mubr.bf16.gmra.mxu1 %v11009_v38 }
 0x203   : > { %2238 = vmatpush1.bf16.msra.mxu0 %v9888_v35  ;;  %v1008_v55 = vadd.f32 %v1007_v52, %v10903_v40  ;;  %v1121_v56 = vadd.f32 %v1120_v53, %v10908_v41  ;;  %2351 = vmatpush1.bf16.msra.mxu1 %v9891_v49  ;;  %v9914_v49 = vld [vmem:[#allocation2 + $0x2c] ss:$16 sps:$4 sm:$0xff]  }
 0x204   : > { %v1009_v57 = vpop.f32.mrf.mxu0  ;;  %v1122_v58 = vpop.f32.mrf.mxu1  ;;  %2239 = vmatprep.subr.bf16.mxu0 %v9896_v50  ;;  %2352 = vmatprep.subr.bf16.mxu1 %v9899_v51 }
 0x205   : > { %v1010_v4 = vadd.f32 %v1009_v57, %v10918_v45  ;;  %v1123_v5 = vadd.f32 %v1122_v58, %v10923_v46  ;;  %v11027_v22 = vpack.c.bf16 %v1008_v55, %v1004_v6  ;;  %v11029_v23 = vpack.c.bf16 %v1121_v56, %v1117_v7  ;;  %v9915_v7 = vld [vmem:[#allocation2 + $0x228] ss:$16 sps:$4 sm:$0xff]  }
 0x206   : > { %v1013_v12 = vpop.f32.mrf.mxu0  ;;  %v1126_v13 = vpop.f32.mrf.mxu1 }
 0x207   : > { %v11023_v18 = vpack.c.bf16 %v1010_v4, %v1006_v63  ;;  %v11025_v19 = vpack.c.bf16 %v1123_v5, %v1119_v1  ;;  %2240 = vmatpush1.bf16.msra.mxu0 %v9894_v54  ;;  %2353 = vmatpush1.bf16.msra.mxu1 %v9897_v59  ;;  %v1014_v54 = vadd.f32 %v1013_v12, %v10988_v16  ;;  %v9917_v63 = vld [vmem:[#allocation2 + $0x22c] ss:$16 sps:$4 sm:$0xff]  }
 0x208   : > { %v1015_v24 = vpop.f32.mrf.mxu0  ;;  %v1128_v25 = vpop.f32.mrf.mxu1  ;;  %2241 = vmatprep.subr.bf16.mxu0 %v9902_v60  ;;  %2354 = vmatprep.subr.bf16.mxu1 %v9905_v21  ;;  %v1127_v55 = vadd.f32 %v1126_v13, %v10993_v17  ;;  %v9912_v60 = vld [vmem:[#allocation2 + $0x28] ss:$16 sps:$4 sm:$0xff]   ;;  %v9920_v12 = vld [vmem:[#allocation2 + $0xc] ss:$16 sps:$4 sm:$0xff]  }
 0x209   : > { %2059 = vmatprep.mubr.bf16.mxu0 %v11023_v18  ;;  %2172 = vmatprep.mubr.bf16.mxu1 %v11025_v19  ;;  %v1016_v50 = vadd.f32 %v1015_v24, %v10954_v8  ;;  %v1129_v51 = vadd.f32 %v1128_v25, %v10971_v11  ;;  %v9923_v13 = vld [vmem:[#allocation2 + $0x20c] ss:$16 sps:$4 sm:$0xff]   ;;  %v9918_v24 = vld [vmem:[#allocation2 + $0x8] ss:$16 sps:$4 sm:$0xff]  }
 0x20a   : > { %v1017_v29 = vpop.f32.mrf.mxu0  ;;  %v1130_v30 = vpop.f32.mrf.mxu1  ;;  %2060 = vmatmul.mubr.bf16.gmra.mxu0 %v11027_v22  ;;  %2173 = vmatmul.mubr.bf16.gmra.mxu1 %v11029_v23 }
 0x20b   : > { %2242 = vmatpush1.bf16.msra.mxu0 %v9900_v20  ;;  %v1018_v32 = vadd.f32 %v1017_v29, %v10961_v9  ;;  %v1131_v35 = vadd.f32 %v1130_v30, %v10966_v10  ;;  %2355 = vmatpush1.bf16.msra.mxu1 %v9903_v26  ;;  %v9921_v29 = vld [vmem:[#allocation2 + $0x208] ss:$16 sps:$4 sm:$0xff]   ;;  %v9926_v30 = vld [vmem:[#allocation2 + $0x1ec] ss:$16 sps:$4 sm:$0xff]  }
 0x20c   : > { %v1019_v36 = vpop.f32.mrf.mxu0  ;;  %v1132_v43 = vpop.f32.mrf.mxu1  ;;  %2243 = vmatprep.subr.bf16.mxu0 %v9908_v27  ;;  %2356 = vmatprep.subr.bf16.mxu1 %v9911_v28 }
 0x20d   : > { %v1020_v52 = vadd.f32 %v1019_v36, %v10978_v14  ;;  %v1133_v53 = vadd.f32 %v1132_v43, %v10983_v15  ;;  %v11047_v1 = vpack.c.bf16 %v1018_v32, %v1014_v54  ;;  %v11049_v4 = vpack.c.bf16 %v1131_v35, %v1127_v55  ;;  %v9929_v54 = vld [vmem:[#allocation2 + $0x3ec] ss:$16 sps:$4 sm:$0xff]  }
 0x20e   : > { %v1023_v56 = vpop.f32.mrf.mxu0  ;;  %v1136_v57 = vpop.f32.mrf.mxu1 }
 0x20f   : > { %v11043_v58 = vpack.c.bf16 %v1020_v52, %v1016_v50  ;;  %v11045_v59 = vpack.c.bf16 %v1133_v53, %v1129_v51  ;;  %2244 = vmatpush1.bf16.msra.mxu0 %v9906_v31  ;;  %2357 = vmatpush1.bf16.msra.mxu1 %v9909_v44  ;;  %v1024_v43 = vadd.f32 %v1023_v56, %v10928_v47  ;;  %v9924_v53 = vld [vmem:[#allocation2 + $0x1e8] ss:$16 sps:$4 sm:$0xff]  }
 0x210   : > { %v1025_v5 = vpop.f32.mrf.mxu0  ;;  %v1138_v6 = vpop.f32.mrf.mxu1  ;;  %2245 = vmatprep.subr.bf16.mxu0 %v9914_v49  ;;  %2358 = vmatprep.subr.bf16.mxu1 %v9917_v63  ;;  %v1137_v44 = vadd.f32 %v1136_v57, %v10933_v48  ;;  %v9927_v56 = vld [vmem:[#allocation2 + $0x3e8] ss:$16 sps:$4 sm:$0xff]   ;;  %v9935_v57 = vld [vmem:[#allocation2 + $0x3cc] ss:$16 sps:$4 sm:$0xff]  }
 0x211   : > { %2069 = vmatprep.mubr.bf16.mxu0 %v11043_v58  ;;  %2182 = vmatprep.mubr.bf16.mxu1 %v11045_v59  ;;  %v1026_v31 = vadd.f32 %v1025_v5, %v10898_v39  ;;  %v1139_v32 = vadd.f32 %v1138_v6, %v10913_v42  ;;  %v9932_v6 = vld [vmem:[#allocation2 + $0x1cc] ss:$16 sps:$4 sm:$0xff]  }
 0x212   : > { %v1027_v20 = vpop.f32.mrf.mxu0  ;;  %v1140_v21 = vpop.f32.mrf.mxu1  ;;  %2070 = vmatmul.mubr.bf16.gmra.mxu0 %v11047_v1  ;;  %2183 = vmatmul.mubr.bf16.gmra.mxu1 %v11049_v4 }
 0x213   : > { %2246 = vmatpush1.bf16.msra.mxu0 %v9912_v60  ;;  %v1028_v25 = vadd.f32 %v1027_v20, %v10903_v40  ;;  %v1141_v26 = vadd.f32 %v1140_v21, %v10908_v41  ;;  %2359 = vmatpush1.bf16.msra.mxu1 %v9915_v7 }
 0x214   : > { %v1029_v27 = vpop.f32.mrf.mxu0  ;;  %v1142_v28 = vpop.f32.mrf.mxu1  ;;  %2247 = vmatprep.subr.bf16.mxu0 %v9920_v12  ;;  %2360 = vmatprep.subr.bf16.mxu1 %v9923_v13  ;;  %v9930_v13 = vld [vmem:[#allocation2 + $0x1c8] ss:$16 sps:$4 sm:$0xff]  }
 0x215   : > { %v1030_v35 = vadd.f32 %v1029_v27, %v10918_v45  ;;  %v1143_v36 = vadd.f32 %v1142_v28, %v10923_v46  ;;  %v11067_v55 = vpack.c.bf16 %v1028_v25, %v1024_v43  ;;  %v11069_v60 = vpack.c.bf16 %v1141_v26, %v1137_v44  ;;  %v9933_v26 = vld [vmem:[#allocation2 + $0x3c8] ss:$16 sps:$4 sm:$0xff]   ;;  %v9938_v27 = vld [vmem:[#allocation2 + $0x1ac] ss:$16 sps:$4 sm:$0xff]  }
 0x216   : > { %v1033_v49 = vpop.f32.mrf.mxu0  ;;  %v1146_v50 = vpop.f32.mrf.mxu1 }
 0x217   : > { %v11063_v51 = vpack.c.bf16 %v1030_v35, %v1026_v31  ;;  %v11065_v52 = vpack.c.bf16 %v1143_v36, %v1139_v32  ;;  %2248 = vmatpush1.bf16.msra.mxu0 %v9918_v24  ;;  %2361 = vmatpush1.bf16.msra.mxu1 %v9921_v29  ;;  %v1034_v32 = vadd.f32 %v1033_v49, %v10988_v16  ;;  %v9939_v49 = vld [vmem:[#allocation2 + $0x3a8] ss:$16 sps:$4 sm:$0xff]  }
 0x218   : > { %v1035_v63 = vpop.f32.mrf.mxu0  ;;  %v1148_v5 = vpop.f32.mrf.mxu1  ;;  %2249 = vmatprep.subr.bf16.mxu0 %v9926_v30  ;;  %2362 = vmatprep.subr.bf16.mxu1 %v9929_v54  ;;  %v1147_v35 = vadd.f32 %v1146_v50, %v10993_v17  ;;  %v9936_v54 = vld [vmem:[#allocation2 + $0x1a8] ss:$16 sps:$4 sm:$0xff]   ;;  %v9947_v50 = vld [vmem:[#allocation2 + $0x38c] ss:$16 sps:$4 sm:$0xff]  }
 0x219   : > { %2079 = vmatprep.mubr.bf16.mxu0 %v11063_v51  ;;  %2192 = vmatprep.mubr.bf16.mxu1 %v11065_v52  ;;  %v1036_v28 = vadd.f32 %v1035_v63, %v10954_v8  ;;  %v1149_v29 = vadd.f32 %v1148_v5, %v10971_v11  ;;  %v9941_v63 = vld [vmem:[#allocation2 + $0x3ac] ss:$16 sps:$4 sm:$0xff]  }
 0x21a   : > { %v1037_v7 = vpop.f32.mrf.mxu0  ;;  %v1150_v12 = vpop.f32.mrf.mxu1  ;;  %2080 = vmatmul.mubr.bf16.gmra.mxu0 %v11067_v55  ;;  %2193 = vmatmul.mubr.bf16.gmra.mxu1 %v11069_v60 }
 0x21b   : > { %2250 = vmatpush2.bf16.msra.mxu0 %v9924_v53  ;;  %v1038_v20 = vadd.f32 %v1037_v7, %v10961_v9  ;;  %v1151_v21 = vadd.f32 %v1150_v12, %v10966_v10  ;;  %2363 = vmatpush2.bf16.msra.mxu1 %v9927_v56  ;;  %v9944_v7 = vld [vmem:[#allocation2 + $0x18c] ss:$16 sps:$4 sm:$0xff]  }
 0x21c   : > { %v1039_v24 = vpop.f32.mrf.mxu0  ;;  %v1152_v25 = vpop.f32.mrf.mxu1  ;;  %2251 = vmatprep.subr.bf16.mxu0 %v9932_v6  ;;  %2364 = vmatprep.subr.bf16.mxu1 %v9935_v57 }
 0x21d   : > { %v1040_v30 = vadd.f32 %v1039_v24, %v10978_v14  ;;  %v1153_v31 = vadd.f32 %v1152_v25, %v10983_v15  ;;  %v11087_v56 = vpack.c.bf16 %v1038_v20, %v1034_v32  ;;  %v11089_v5 = vpack.c.bf16 %v1151_v21, %v1147_v35 }
 0x21e   : > { %v1043_v36 = vpop.f32.mrf.mxu0  ;;  %v1156_v43 = vpop.f32.mrf.mxu1 }
 0x21f   : > { %v11083_v44 = vpack.c.bf16 %v1040_v30, %v1036_v28  ;;  %v11085_v53 = vpack.c.bf16 %v1153_v31, %v1149_v29  ;;  %2252 = vmatpush2.bf16.msra.mxu0 %v9930_v13  ;;  %2365 = vmatpush2.bf16.msra.mxu1 %v9933_v26  ;;  %v9942_v13 = vld [vmem:[#allocation2 + $0x188] ss:$16 sps:$4 sm:$0xff]   ;;  %v9950_v28 = vld [vmem:[#allocation2 + $0x16c] ss:$16 sps:$4 sm:$0xff]   ;;  %v1044_v35 = vadd.f32 %v1043_v36, %v10928_v47 }
 0x220   : > { %v1045_v6 = vpop.f32.mrf.mxu0  ;;  %v1158_v57 = vpop.f32.mrf.mxu1  ;;  %2253 = vmatprep.subr.bf16.mxu0 %v9938_v27  ;;  %2366 = vmatprep.subr.bf16.mxu1 %v9941_v63  ;;  %v9945_v27 = vld [vmem:[#allocation2 + $0x388] ss:$16 sps:$4 sm:$0xff]   ;;  %v9956_v36 = vld [vmem:[#allocation2 + $0x14c] ss:$16 sps:$4 sm:$0xff]  }
 0x221   : > { %2089 = vmatprep.mubr.bf16.mxu0 %v11083_v44  ;;  %2202 = vmatprep.mubr.bf16.mxu1 %v11085_v53  ;;  %v1046_v29 = vadd.f32 %v1045_v6, %v10898_v39  ;;  %v1159_v30 = vadd.f32 %v1158_v57, %v10913_v42  ;;  %v9953_v39 = vld [vmem:[#allocation2 + $0x36c] ss:$16 sps:$4 sm:$0xff]   ;;  %v9951_v47 = vld [vmem:[#allocation2 + $0x368] ss:$16 sps:$4 sm:$0xff]  }
 0x222   : > { %v1047_v12 = vpop.f32.mrf.mxu0  ;;  %v1160_v24 = vpop.f32.mrf.mxu1  ;;  %2090 = vmatmul.mubr.bf16.gmra.mxu0 %v11087_v56  ;;  %2203 = vmatmul.mubr.bf16.gmra.mxu1 %v11089_v5 }
 0x223   : > { %2254 = vmatpush2.bf16.msra.mxu0 %v9936_v54  ;;  %v1048_v20 = vadd.f32 %v1047_v12, %v10903_v40  ;;  %v1161_v21 = vadd.f32 %v1160_v24, %v10908_v41  ;;  %2367 = vmatpush2.bf16.msra.mxu1 %v9939_v49  ;;  %v1157_v40 = vadd.f32 %v1156_v43, %v10933_v48  ;;  %v9959_v48 = vld [vmem:[#allocation2 + $0x34c] ss:$16 sps:$4 sm:$0xff]  }
 0x224   : > { %v1049_v25 = vpop.f32.mrf.mxu0  ;;  %v1162_v26 = vpop.f32.mrf.mxu1  ;;  %2255 = vmatprep.subr.bf16.mxu0 %v9944_v7  ;;  %2368 = vmatprep.subr.bf16.mxu1 %v9947_v50  ;;  %v9948_v7 = vld [vmem:[#allocation2 + $0x168] ss:$16 sps:$4 sm:$0xff]  }
 0x225   : > { %v1050_v31 = vadd.f32 %v1049_v25, %v10918_v45  ;;  %v1163_v32 = vadd.f32 %v1162_v26, %v10923_v46  ;;  %v11107_v6 = vpack.c.bf16 %v1048_v20, %v1044_v35  ;;  %v11109_v42 = vpack.c.bf16 %v1161_v21, %v1157_v40  ;;  %v9954_v50 = vld [vmem:[#allocation2 + $0x148] ss:$16 sps:$4 sm:$0xff]   ;;  %v9962_v25 = vld [vmem:[#allocation2 + $0x12c] ss:$16 sps:$4 sm:$0xff]  }
 0x226   : > { %v1053_v41 = vpop.f32.mrf.mxu0  ;;  %v1166_v54 = vpop.f32.mrf.mxu1  ;;  %v9957_v21 = vld [vmem:[#allocation2 + $0x348] ss:$16 sps:$4 sm:$0xff]   ;;  %v9965_v35 = vld [vmem:[#allocation2 + $0x32c] ss:$16 sps:$4 sm:$0xff]  }
 0x227   : > { %v11103_v63 = vpack.c.bf16 %v1050_v31, %v1046_v29  ;;  %v11105_v49 = vpack.c.bf16 %v1163_v32, %v1159_v30  ;;  %2256 = vmatpush2.bf16.msra.mxu0 %v9942_v13  ;;  %2369 = vmatpush2.bf16.msra.mxu1 %v9945_v27  ;;  %v1054_v30 = vadd.f32 %v1053_v41, %v10988_v16  ;;  %v9960_v32 = vld [vmem:[#allocation2 + $0x128] ss:$16 sps:$4 sm:$0xff]  }
 0x228   : > { %v1055_v45 = vpop.f32.mrf.mxu0  ;;  %v1168_v46 = vpop.f32.mrf.mxu1  ;;  %2257 = vmatprep.subr.bf16.mxu0 %v9950_v28  ;;  %2370 = vmatprep.subr.bf16.mxu1 %v9953_v39  ;;  %v9969_v16 = vld [vmem:[#allocation2 + $0x308] ss:$16 sps:$4 sm:$0xff]  }
 0x229   : > { %2099 = vmatprep.mubr.bf16.mxu0 %v11103_v63  ;;  %2212 = vmatprep.mubr.bf16.mxu1 %v11105_v49  ;;  %v1056_v26 = vadd.f32 %v1055_v45, %v10954_v8  ;;  %v1169_v27 = vadd.f32 %v1168_v46, %v10971_v11  ;;  %v9963_v8 = vld [vmem:[#allocation2 + $0x328] ss:$16 sps:$4 sm:$0xff]   ;;  %v9968_v11 = vld [vmem:[#allocation2 + $0x10c] ss:$16 sps:$4 sm:$0xff]  }
 0x22a   : > { %v1057_v43 = vpop.f32.mrf.mxu0  ;;  %v1170_v57 = vpop.f32.mrf.mxu1  ;;  %2100 = vmatmul.mubr.bf16.gmra.mxu0 %v11107_v6  ;;  %2213 = vmatmul.mubr.bf16.gmra.mxu1 %v11109_v42 }
 0x22b   : > { %2258 = vmatpush2.bf16.msra.mxu0 %v9948_v7  ;;  %v1058_v12 = vadd.f32 %v1057_v43, %v10961_v9  ;;  %v1171_v24 = vadd.f32 %v1170_v57, %v10966_v10  ;;  %2371 = vmatpush2.bf16.msra.mxu1 %v9951_v47  ;;  %v1167_v9 = vadd.f32 %v1166_v54, %v10993_v17 }
 0x22c   : > { %v1059_v13 = vpop.f32.mrf.mxu0  ;;  %v1172_v20 = vpop.f32.mrf.mxu1  ;;  %2259 = vmatprep.subr.bf16.mxu0 %v9956_v36  ;;  %2372 = vmatprep.subr.bf16.mxu1 %v9959_v48 }
 0x22d   : > { %v1060_v28 = vadd.f32 %v1059_v13, %v10978_v14  ;;  %v1173_v29 = vadd.f32 %v1172_v20, %v10983_v15  ;;  %v1203_v40 = vpack.c.bf16 %v1058_v12, %v1054_v30  ;;  %v1205_v7 = vpack.c.bf16 %v1171_v24, %v1167_v9  ;;  %v9971_v14 = vld [vmem:[#allocation2 + $0x30c] ss:$16 sps:$4 sm:$0xff]   ;;  %v9966_v15 = vld [vmem:[#allocation2 + $0x108] ss:$16 sps:$4 sm:$0xff]  }
 0x22f   : > { %v1204_v10 = vpack.c.bf16 %v1060_v28, %v1056_v26  ;;  %v1206_v31 = vpack.c.bf16 %v1173_v29, %v1169_v27  ;;  %2260 = vmatpush2.bf16.msra.mxu0 %v9954_v50  ;;  %2373 = vmatpush2.bf16.msra.mxu1 %v9957_v21 }
 0x230   : > { %2261 = vmatprep.subr.bf16.mxu0 %v9962_v25  ;;  %2374 = vmatprep.subr.bf16.mxu1 %v9965_v35 }
 0x231   : > { %2109 = vmatprep.mubr.bf16.mxu0 %v1204_v10  ;;  %2222 = vmatprep.mubr.bf16.mxu1 %v1206_v31 }
 0x232   : > { %2110 = vmatmul.mubr.bf16.gmra.mxu0 %v1203_v40  ;;  %2223 = vmatmul.mubr.bf16.gmra.mxu1 %v1205_v7 }
 0x233   : > { %2262 = vmatpush2.bf16.msra.mxu0 %v9960_v32  ;;  %2265 = vmatprep.mubr.bf16.mxu0 %v10943_v61 }
 0x234   : > { %2375 = vmatpush2.bf16.msra.mxu1 %v9963_v8  ;;  %2378 = vmatprep.mubr.bf16.mxu1 %v10945_v62 }
 0x235   : > { %2263 = vmatprep.subr.bf16.mxu0 %v9968_v11  ;;  %2376 = vmatprep.subr.bf16.mxu1 %v9971_v14 }
 0x237   : > { %2264 = vmatpush2.bf16.msra.mxu0 %v9966_v15 }
 0x238   : > { %2377 = vmatpush2.bf16.msra.mxu1 %v9969_v16 }
 0x23a   : > { %2266 = vmatmul.mubr.bf16.vlgmr.msra.gmra.mxu0 %v10947_v2 }
 0x23b   : > { %2379 = vmatmul.mubr.bf16.vlgmr.msra.gmra.mxu1 %v10949_v3  ;;  %2275 = vmatprep.mubr.bf16.mxu0 %v11003_v33 }
 0x23c   : > { %2388 = vmatprep.mubr.bf16.mxu1 %v11005_v34 }
 0x242   : > { %2276 = vmatmul.mubr.bf16.gmra.mxu0 %v11007_v37 }
 0x243   : > { %2389 = vmatmul.mubr.bf16.gmra.mxu1 %v11009_v38  ;;  %2285 = vmatprep.mubr.bf16.mxu0 %v11023_v18 }
 0x244   : > { %2398 = vmatprep.mubr.bf16.mxu1 %v11025_v19 }
 0x24a   : > { %2286 = vmatmul.mubr.bf16.gmra.mxu0 %v11027_v22 }
 0x24b   : > { %2399 = vmatmul.mubr.bf16.gmra.mxu1 %v11029_v23  ;;  %2295 = vmatprep.mubr.bf16.mxu0 %v11043_v58 }
 0x24c   : > { %2408 = vmatprep.mubr.bf16.mxu1 %v11045_v59 }
 0x252   : > { %2296 = vmatmul.mubr.bf16.gmra.mxu0 %v11047_v1 }
 0x253   : > { %2409 = vmatmul.mubr.bf16.gmra.mxu1 %v11049_v4  ;;  %2305 = vmatprep.mubr.bf16.mxu0 %v11063_v51 }
 0x254   : > { %2418 = vmatprep.mubr.bf16.mxu1 %v11065_v52 }
 0x25a   : > { %2306 = vmatmul.mubr.bf16.gmra.mxu0 %v11067_v55 }
 0x25b   : > { %2419 = vmatmul.mubr.bf16.gmra.mxu1 %v11069_v60  ;;  %2315 = vmatprep.mubr.bf16.mxu0 %v11083_v44 }
 0x25c   : > { %2428 = vmatprep.mubr.bf16.mxu1 %v11085_v53 }
 0x262   : > { %2316 = vmatmul.mubr.bf16.gmra.mxu0 %v11087_v56 }
 0x263   : > { %2429 = vmatmul.mubr.bf16.gmra.mxu1 %v11089_v5  ;;  %2325 = vmatprep.mubr.bf16.mxu0 %v11103_v63 }
 0x264   : > { %2438 = vmatprep.mubr.bf16.mxu1 %v11105_v49 }
 0x26a   : > { %2326 = vmatmul.mubr.bf16.gmra.mxu0 %v11107_v6 }
 0x26b   : > { %2439 = vmatmul.mubr.bf16.gmra.mxu1 %v11109_v42  ;;  %2335 = vmatprep.mubr.bf16.mxu0 %v1204_v10 }
 0x26c   : > { %2448 = vmatprep.mubr.bf16.mxu1 %v1206_v31 }
 0x272   : > { %2336 = vmatmul.mubr.bf16.gmra.mxu0 %v1203_v40 }
 0x273   : > { %2449 = vmatmul.mubr.bf16.gmra.mxu1 %v1205_v7  ;;  %2571 = vmatprep.mubr.bf16.mxu0 %v13221_v0 }
 0x274   : > { %2684 = vmatprep.mubr.bf16.mxu1 %v13221_v0 }
 0x2ba   : > { %v2041_v61 = vpop.f32.mrf.mxu0  ;;  %v2154_v62 = vpop.f32.mrf.mxu1 }
 0x2bb   : > { %v11153_v2 = vadd.f32 %v2154_v62, %v2041_v61 }
 0x2bc   : > { %v2043_v3 = vpop.f32.mrf.mxu0  ;;  %v2156_v17 = vpop.f32.mrf.mxu1 }
 0x2bd   : > { %13262 = vst [vmem:[#allocation13_spill] sm:$0xff] %v11153_v2  ;;  %v11155_v33 = vadd.f32 %v2156_v17, %v2043_v3 }
 0x2be   : > { %v2045_v34 = vpop.f32.mrf.mxu0  ;;  %v2158_v37 = vpop.f32.mrf.mxu1 }
 0x2bf   : > { %13263 = vst [vmem:[#allocation14_spill] sm:$0xff] %v11155_v33  ;;  %v11157_v38 = vadd.f32 %v2158_v37, %v2045_v34 }
 0x2c0   : > { %v11159_v18 = vpop.f32.mrf.mxu0  ;;  %v11161_v19 = vpop.f32.mrf.mxu1 }
 0x2c1   : > { %13264 = vst [vmem:[#allocation15_spill] sm:$0xff] %v11157_v38  ;;  %13265 = vst [vmem:[#allocation16_spill] sm:$0xff] %v11159_v18 }
 0x2c2   : > { %13266 = vst [vmem:[#allocation17_spill] sm:$0xff] %v11161_v19  ;;  %v2051_v23 = vpop.f32.mrf.mxu0  ;;  %v2164_v58 = vpop.f32.mrf.mxu1 }
 0x2c3   : > { %v11165_v59 = vadd.f32 %v2164_v58, %v2051_v23 }
 0x2c4   : > { %v2053_v1 = vpop.f32.mrf.mxu0  ;;  %v2166_v4 = vpop.f32.mrf.mxu1 }
 0x2c5   : > { %13267 = vst [vmem:[#allocation18_spill] sm:$0xff] %v11165_v59  ;;  %v11167_v51 = vadd.f32 %v2166_v4, %v2053_v1 }
 0x2c6   : > { %v2055_v52 = vpop.f32.mrf.mxu0  ;;  %v2168_v55 = vpop.f32.mrf.mxu1 }
 0x2c7   : > { %13268 = vst [vmem:[#allocation19_spill] sm:$0xff] %v11167_v51  ;;  %v11169_v60 = vadd.f32 %v2168_v55, %v2055_v52 }
 0x2c8   : > { %v11171_v44 = vpop.f32.mrf.mxu0  ;;  %v11173_v53 = vpop.f32.mrf.mxu1 }
 0x2c9   : > { %13269 = vst [vmem:[#allocation20_spill] sm:$0xff] %v11169_v60 }
 0x2ca   : > { %v2061_v5 = vpop.f32.mrf.mxu0  ;;  %v2174_v41 = vpop.f32.mrf.mxu1 }
 0x2cb   : > { %v11177_v54 = vadd.f32 %v2174_v41, %v2061_v5 }
 0x2cc   : > { %v11179_v63 = vpop.f32.mrf.mxu0  ;;  %v11181_v49 = vpop.f32.mrf.mxu1 }
 0x2cd   : > { %13270 = vst [vmem:[#allocation21_spill] sm:$0xff] %v11177_v54 }
 0x2ce   : > { %v11183_v39 = vpop.f32.mrf.mxu0  ;;  %v11185_v6 = vpop.f32.mrf.mxu1 }
 0x2d0   : > { %v11187_v42 = vpop.f32.mrf.mxu0  ;;  %v11189_v45 = vpop.f32.mrf.mxu1 }
 0x2d2   : > { %v11191_v46 = vpop.f32.mrf.mxu0  ;;  %v11193_v47 = vpop.f32.mrf.mxu1 }
 0x2d4   : > { %v11195_v36 = vpop.f32.mrf.mxu0  ;;  %v11197_v48 = vpop.f32.mrf.mxu1 }
 0x2d6   : > { %v11199_v43 = vpop.f32.mrf.mxu0  ;;  %v11201_v57 = vpop.f32.mrf.mxu1 }
 0x2d8   : > { %v11203_v50 = vpop.f32.mrf.mxu0  ;;  %v11205_v12 = vpop.f32.mrf.mxu1 }
 0x2da   : > { %v11207_v24 = vpop.f32.mrf.mxu0  ;;  %v11209_v13 = vpop.f32.mrf.mxu1 }
 0x2dc   : > { %v11211_v20 = vpop.f32.mrf.mxu0  ;;  %v11213_v21 = vpop.f32.mrf.mxu1 }
 0x2de   : > { %v11215_v25 = vpop.f32.mrf.mxu0  ;;  %v11217_v26 = vpop.f32.mrf.mxu1 }
 0x2e0   : > { %v2087_v27 = vpop.f32.mrf.mxu0  ;;  %v2200_v28 = vpop.f32.mrf.mxu1 }
 0x2e2   : > { %v2091_v29 = vpop.f32.mrf.mxu0  ;;  %v2204_v30 = vpop.f32.mrf.mxu1 }
 0x2e4   : > { %v2093_v9 = vpop.f32.mrf.mxu0  ;;  %v2206_v10 = vpop.f32.mrf.mxu1 }
 0x2e6   : > { %v2095_v31 = vpop.f32.mrf.mxu0  ;;  %v2208_v32 = vpop.f32.mrf.mxu1 }
 0x2e8   : > { %v2097_v35 = vpop.f32.mrf.mxu0  ;;  %v2210_v40 = vpop.f32.mrf.mxu1 }
 0x2e9   : > { %v2211_v19 = vadd.f32 %v2210_v40, %v2097_v35  ;;  %v2185_v40 = vadd.f32 %v11193_v47, %v11191_v46  ;;  %v2171_v46 = vadd.f32 %v11173_v53, %v11171_v44 }
 0x2ea   : > { %v2101_v7 = vpop.f32.mrf.mxu0  ;;  %v2214_v8 = vpop.f32.mrf.mxu1 }
 0x2ec   : > { %v2103_v11 = vpop.f32.mrf.mxu0  ;;  %v2216_v14 = vpop.f32.mrf.mxu1 }
 0x2ed   : > { %v2217_v56 = vadd.f32 %v2216_v14, %v2103_v11  ;;  %v2209_v11 = vadd.f32 %v2208_v32, %v2095_v31 }
 0x2ee   : > { %v2105_v15 = vpop.f32.mrf.mxu0  ;;  %v2218_v16 = vpop.f32.mrf.mxu1 }
 0x2ef   : > { %v2219_v59 = vadd.f32 %v2218_v16, %v2105_v15 }
 0x2f0   : > { %v2107_v61 = vpop.f32.mrf.mxu0  ;;  %v2220_v62 = vpop.f32.mrf.mxu1 }
 0x2f1   : > { %v2221_v55 = vadd.f32 %v2220_v62, %v2107_v61  ;;  %v2207_v62 = vadd.f32 %v2206_v10, %v2093_v9 }
 0x2f2   : > { %v2111_v3 = vpop.f32.mrf.mxu0  ;;  %v2224_v17 = vpop.f32.mrf.mxu1 }
 0x2f3   : > { %v2225_v0 = vadd.f32 %v2224_v17, %v2111_v3  ;;  %v2484_v18 = vpack.c.bf16 %v2221_v55, %v2217_v56  ;;  %v2205_v56 = vadd.f32 %v2204_v30, %v2091_v29  ;;  %v2195_v30 = vadd.f32 %v11209_v13, %v11207_v24 }
 0x2f4   : > { %v2113_v34 = vpop.f32.mrf.mxu0  ;;  %v2226_v37 = vpop.f32.mrf.mxu1 }
 0x2f5   : > { %v2227_v5 = vadd.f32 %v2226_v37, %v2113_v34  ;;  %v13282_v37 = vld [vmem:[#allocation17_spill] sm:$0xff] }
 0x2f6   : > { %v2115_v23 = vpop.f32.mrf.mxu0  ;;  %v2228_v58 = vpop.f32.mrf.mxu1 }
 0x2f7   : > { %v2229_v1 = vadd.f32 %v2228_v58, %v2115_v23  ;;  %v2215_v23 = vadd.f32 %v2214_v8, %v2101_v7  ;;  %v2179_v7 = vadd.f32 %v11185_v6, %v11183_v39  ;;  %v13281_v6 = vld [vmem:[#allocation16_spill] sm:$0xff] }
 0x2f8   : > { %v2117_v4 = vpop.f32.mrf.mxu0  ;;  %v2230_v52 = vpop.f32.mrf.mxu1 }
 0x2f9   : > { %v2231_v41 = vadd.f32 %v2230_v52, %v2117_v4  ;;  %v2487_v60 = vpack.c.bf16 %v2229_v1, %v2225_v0  ;;  %v2483_v14 = vpack.c.bf16 %v2219_v59, %v2215_v23  ;;  %v2199_v59 = vadd.f32 %v11217_v26, %v11215_v25  ;;  %v13283_v4 = vld [vmem:[#allocation19_spill] sm:$0xff] }
 0x2fa   : > { %v2267_v22 = vpop.f32.mrf.mxu0  ;;  %v2189_v26 = vadd.f32 %v11201_v57, %v11199_v43  ;;  %v2177_v43 = vadd.f32 %v11181_v49, %v11179_v63  ;;  %v13280_v49 = vld [vmem:[#allocation21_spill] sm:$0xff]  ;;  %v2161_v1 = vadd.f32 %v13282_v37, %v13281_v6  ;;  %v2464_v52 = vpack.c.bf16 %v2171_v46, %v13283_v4 }
 0x2fb   : > { %v2488_v2 = vpack.c.bf16 %v2231_v41, %v2227_v5  ;;  %v2380_v38 = vpop.f32.mrf.mxu1  ;;  %v2475_v31 = vpack.c.bf16 %v2199_v59, %v2195_v30  ;;  %v2467_v34 = vpack.c.bf16 %v2179_v7, %v13280_v49  ;;  %v13284_v41 = vld [vmem:[#allocation14_spill] sm:$0xff]  ;;  %v13289_v59 = vld [vmem:[#allocation15_spill] sm:$0xff] }
 0x2fc   : > { %v11219_v33 = vadd.f32 %v2380_v38, %v2267_v22  ;;  %v2269_v51 = vpop.f32.mrf.mxu0  ;;  %v2201_v38 = vadd.f32 %v2200_v28, %v2087_v27  ;;  %v2480_v22 = vpack.c.bf16 %v2211_v19, %v2207_v62  ;;  %v2191_v27 = vadd.f32 %v11205_v12, %v11203_v50  ;;  %v9994_v37 = vld [vmem:[#allocation4 + $0x64] ss:$16 sps:$4 sm:$0xff]  }
 0x2fd   : > { %v2382_v54 = vpop.f32.mrf.mxu1  ;;  %2539 = vmatprep.subr.bf16.mxu0 %v2488_v2  ;;  %v2181_v12 = vadd.f32 %v11189_v45, %v11187_v42  ;;  %v2471_v42 = vpack.c.bf16 %v2189_v26, %v2185_v40  ;;  %v2460_v23 = vpack.c.bf16 %v2161_v1, %v13284_v41  ;;  %v9983_v26 = vld [vmem:[#allocation4 + $0xc0] ss:$16 sps:$4 sm:$0xff]  }
 0x2fe   : > { %13271 = vst [vmem:[#allocation22_spill] sm:$0xff] %v11219_v33  ;;  %v11221_v58 = vadd.f32 %v2382_v54, %v2269_v51  ;;  %v2271_v61 = vpop.f32.mrf.mxu0  ;;  %2540 = vmatpush1.bf16.msra.mxu0 %v2487_v60  ;;  %v2197_v60 = vadd.f32 %v11213_v21, %v11211_v20  ;;  %v2479_v54 = vpack.c.bf16 %v2209_v11, %v2205_v56  ;;  %v13286_v11 = vld [vmem:[#allocation18_spill] sm:$0xff] }
 0x2ff   : > { %v2384_v3 = vpop.f32.mrf.mxu1  ;;  %2541 = vmatprep.subr.bf16.mxu0 %v2484_v18  ;;  %v2187_v21 = vadd.f32 %v11197_v48, %v11195_v36  ;;  %v2468_v47 = vpack.c.bf16 %v2181_v12, %v2177_v43  ;;  %v9988_v12 = vld [vmem:[#allocation4 + $0xa4] ss:$16 sps:$4 sm:$0xff]  }
 0x300   : > { %13272 = vst [vmem:[#allocation23_spill] sm:$0xff] %v11221_v58  ;;  %v11223_v17 = vadd.f32 %v2384_v3, %v2271_v61  ;;  %v11225_v0 = vpop.f32.mrf.mxu0  ;;  %v2476_v28 = vpack.c.bf16 %v2201_v38, %v2197_v60  ;;  %v13285_v3 = vld [vmem:[#allocation20_spill] sm:$0xff] }
 0x301   : > { %13274 = vst [vmem:[#allocation25_spill] sm:$0xff] %v11225_v0  ;;  %v11227_v35 = vpop.f32.mrf.mxu1  ;;  %v2472_v24 = vpack.c.bf16 %v2191_v27, %v2187_v21  ;;  %v11306_v60 = vld [vmem:[%s13202_s7] sm:$0xff]  }
 0x302   : > { %13273 = vst [vmem:[#allocation24_spill] sm:$0xff] %v11223_v17  ;;  %13275 = vst [vmem:[#allocation26_spill] sm:$0xff] %v11227_v35  ;;  %v2277_v51 = vpop.f32.mrf.mxu0  ;;  %2542 = vmatpush1.bf16.msra.mxu0 %v2483_v14  ;;  %v13287_v14 = vpack.c.bf16 %v13285_v3, %v13286_v11  ;;  %v9980_v27 = vld [vmem:[#allocation4 + $0xe0] ss:$16 sps:$4 sm:$0xff]   ;;  %v9997_v11 = vld [vmem:[#allocation4 + $0x44] ss:$16 sps:$4 sm:$0xff]  }
 0x303   : > { %v2390_v18 = vpop.f32.mrf.mxu1  ;;  %2543 = vmatprep.subr.bf16.mxu0 %v2480_v22  ;;  %v9982_v22 = vld [vmem:[#allocation4 + $0xe4] ss:$16 sps:$4 sm:$0xff]   ;;  %13288 = vst [vmem:[#allocation21_spill] sm:$0xff] %v11306_v60  ;;  %v10004_v58 = vld [vmem:[#allocation4 + $0x1e0] ss:$16 sps:$4 sm:$0xff]  }
 0x304   : > { %v11235_v9 = vadd.f32 %v2390_v18, %v2277_v51  ;;  %v2279_v19 = vpop.f32.mrf.mxu0  ;;  %v10009_v35 = vld [vmem:[#allocation4 + $0x1c4] ss:$16 sps:$4 sm:$0xff]  }
 0x305   : > { %v2392_v29 = vpop.f32.mrf.mxu1 }
 0x306   : > { %13276 = vst [vmem:[#allocation27_spill] sm:$0xff] %v11235_v9  ;;  %v11241_v10 = vadd.f32 %v2392_v29, %v2279_v19  ;;  %v2281_v20 = vpop.f32.mrf.mxu0  ;;  %2544 = vmatpush1.bf16.msra.mxu0 %v2479_v54  ;;  %v13290_v54 = vld [vmem:[#allocation13_spill] sm:$0xff] }
 0x307   : > { %v2394_v25 = vpop.f32.mrf.mxu1  ;;  %2545 = vmatprep.subr.bf16.mxu0 %v2476_v28  ;;  %v13291_v19 = vpack.c.bf16 %v13289_v59, %v13290_v54  ;;  %v9985_v29 = vld [vmem:[#allocation4 + $0xc4] ss:$16 sps:$4 sm:$0xff]   ;;  %v9995_v54 = vld [vmem:[#allocation4 + $0x40] ss:$16 sps:$4 sm:$0xff]  }
 0x308   : > { %13277 = vst [vmem:[#allocation28_spill] sm:$0xff] %v11241_v10  ;;  %v11247_v32 = vadd.f32 %v2394_v25, %v2281_v20  ;;  %v11249_v50 = vpop.f32.mrf.mxu0  ;;  %v13292_v25 = vmov 0  }
 0x309   : > { %v11253_v13 = vpop.f32.mrf.mxu1 }
 0x30a   : > { %13278 = vst [vmem:[#allocation29_spill] sm:$0xff] %v11247_v32  ;;  %v2287_v48 = vpop.f32.mrf.mxu0  ;;  %2546 = vmatpush1.bf16.msra.mxu0 %v2475_v31 }
 0x30b   : > { %v2400_v57 = vpop.f32.mrf.mxu1  ;;  %2547 = vmatprep.subr.bf16.mxu0 %v2472_v24 }
 0x30c   : > { %v11263_v45 = vadd.f32 %v2400_v57, %v2287_v48  ;;  %v11265_v8 = vpop.f32.mrf.mxu0  ;;  %v11332_v48 = vld [vmem:[%s13202_s7 + $0x8] sm:$0xff]   ;;  %v9986_v57 = vld [vmem:[#allocation4 + $0xa0] ss:$16 sps:$4 sm:$0xff]  }
 0x30d   : > { %v11269_v15 = vpop.f32.mrf.mxu1  ;;  %13293 = vst [vmem:[#allocation16_spill] sm:$0xff] %v11332_v48 }
 0x30e   : > { %13279 = vst [vmem:[#allocation30_spill] sm:$0xff] %v11263_v45  ;;  %v11271_v16 = vpop.f32.mrf.mxu0  ;;  %2548 = vmatpush1.bf16.msra.mxu0 %v2471_v42  ;;  %v9991_v42 = vld [vmem:[#allocation4 + $0x84] ss:$16 sps:$4 sm:$0xff]  }
 0x30f   : > { %v11273_v63 = vpop.f32.mrf.mxu1  ;;  %2549 = vmatprep.subr.bf16.mxu0 %v2468_v47 }
 0x310   : > { %v11276_v39 = vpop.f32.mrf.mxu0 }
 0x311   : > { %v11281_v55 = vpop.f32.mrf.mxu1 }
 0x312   : > { %v11283_v44 = vpop.f32.mrf.mxu0  ;;  %2550 = vmatpush1.bf16.msra.mxu0 %v2467_v34  ;;  %v9989_v34 = vld [vmem:[#allocation4 + $0x80] ss:$16 sps:$4 sm:$0xff]  }
 0x313   : > { %v11285_v53 = vpop.f32.mrf.mxu1  ;;  %2551 = vmatprep.subr.bf16.mxu0 %v2464_v52  ;;  %v11351_v52 = vld [vmem:[%s13202_s7 + $0x10] sm:$0xff]  }
 0x314   : > { %v11287_v5 = vpop.f32.mrf.mxu0  ;;  %13294 = vst [vmem:[#allocation17_spill] sm:$0xff] %v11351_v52 }
 0x315   : > { %v11290_v61 = vpop.f32.mrf.mxu1 }
 0x316   : > { %v11292_v62 = vpop.f32.mrf.mxu0  ;;  %2552 = vmatpush1.bf16.msra.mxu0 %v13287_v14 }
 0x317   : > { %v11297_v38 = vpop.f32.mrf.mxu1  ;;  %2553 = vmatprep.subr.bf16.mxu0 %v2460_v23  ;;  %v9992_v23 = vld [vmem:[#allocation4 + $0x60] ss:$16 sps:$4 sm:$0xff]  }
 0x318   : > { %v11299_v56 = vpop.f32.mrf.mxu0 }
 0x319   : > { %v11301_v51 = vpop.f32.mrf.mxu1 }
 0x31a   : > { %v11308_v18 = vpop.f32.mrf.mxu0  ;;  %2554 = vmatpush1.bf16.msra.mxu0 %v13291_v19 }
 0x31b   : > { %v11313_v28 = vpop.f32.mrf.mxu1  ;;  %3597 = vmatprep.subr.bf16.mxu0 %v9982_v22 }
 0x31c   : > { %v11315_v30 = vpop.f32.mrf.mxu0 }
 0x31d   : > { %v11317_v20 = vpop.f32.mrf.mxu1  ;;  %2572 = vmatmul.mubr.bf16.vlgmr.msra.gmra.mxu0 %v11306_v60 }
 0x31e   : > { %v11320_v21 = vpop.f32.mrf.mxu0  ;;  %2581 = vmatprep.mubr.bf16.mxu0 %v13292_v25  ;;  %3598 = vmatpush1.bf16.msra.mxu0 %v9980_v27  ;;  %v10000_v27 = vld [vmem:[#allocation4 + $0x24] ss:$16 sps:$4 sm:$0xff]  }
 0x31f   : > { %v11323_v31 = vpop.f32.mrf.mxu1  ;;  %3599 = vmatprep.subr.bf16.mxu0 %v9985_v29 }
 0x320   : > { %v11325_v24 = vpop.f32.mrf.mxu0 }
 0x321   : > { %v11327_v40 = vpop.f32.mrf.mxu1 }
 0x322   : > { %v11334_v43 = vpop.f32.mrf.mxu0  ;;  %3600 = vmatpush1.bf16.msra.mxu0 %v9983_v26 }
 0x323   : > { %v11336_v7 = vpop.f32.mrf.mxu1  ;;  %3601 = vmatprep.subr.bf16.mxu0 %v9988_v12  ;;  %v11358_v12 = vld [vmem:[%s13202_s7 + $0x18] sm:$0xff]  }
 0x324   : > { %v11338_v46 = vpop.f32.mrf.mxu0  ;;  %13295 = vst [vmem:[#allocation19_spill] sm:$0xff] %v11358_v12 }
 0x325   : > { %v11340_v47 = vpop.f32.mrf.mxu1  ;;  %2582 = vmatmul.mubr.bf16.gmra.mxu0 %v11332_v48  ;;  %v10006_v48 = vld [vmem:[#allocation4 + $0x1e4] ss:$16 sps:$4 sm:$0xff]  }
 0x326   : > { %v11343_v49 = vpop.f32.mrf.mxu0  ;;  %2591 = vmatprep.mubr.bf16.mxu0 %v13292_v25  ;;  %3602 = vmatpush1.bf16.msra.mxu0 %v9986_v57 }
 0x327   : > { %v11346_v6 = vpop.f32.mrf.mxu1  ;;  %3603 = vmatprep.subr.bf16.mxu0 %v9991_v42  ;;  %v9998_v42 = vld [vmem:[#allocation4 + $0x20] ss:$16 sps:$4 sm:$0xff]  }
 0x328   : > { %v2323_v1 = vpop.f32.mrf.mxu0 }
 0x329   : > { %v2436_v4 = vpop.f32.mrf.mxu1 }
 0x32a   : > { %v2327_v41 = vpop.f32.mrf.mxu0  ;;  %3604 = vmatpush1.bf16.msra.mxu0 %v9989_v34 }
 0x32b   : > { %v2440_v3 = vpop.f32.mrf.mxu1  ;;  %3605 = vmatprep.subr.bf16.mxu0 %v9994_v37  ;;  %v10003_v37 = vld [vmem:[#allocation4 + $0x4] ss:$16 sps:$4 sm:$0xff]  }
 0x32c   : > { %v2329_v14 = vpop.f32.mrf.mxu0  ;;  %v2441_v45 = vadd.f32 %v2440_v3, %v2327_v41  ;;  %v13304_v41 = vld [vmem:[#allocation24_spill] sm:$0xff]  ;;  %v13305_v3 = vld [vmem:[#allocation22_spill] sm:$0xff] }
 0x32d   : > { %v2442_v22 = vpop.f32.mrf.mxu1  ;;  %2592 = vmatmul.mubr.bf16.gmra.mxu0 %v11351_v52 }
 0x32e   : > { %v2331_v59 = vpop.f32.mrf.mxu0  ;;  %2601 = vmatprep.mubr.bf16.mxu0 %v13292_v25  ;;  %3606 = vmatpush1.bf16.msra.mxu0 %v9992_v23 }
 0x32f   : > { %v2444_v19 = vpop.f32.mrf.mxu1  ;;  %3607 = vmatprep.subr.bf16.mxu0 %v9997_v11  ;;  %v10001_v11 = vld [vmem:[#allocation4] ss:$16 sps:$4 sm:$0xff]  }
 0x330   : > { %v2333_v29 = vpop.f32.mrf.mxu0 }
 0x331   : > { %v2446_v26 = vpop.f32.mrf.mxu1 }
 0x332   : > { %v2337_v57 = vpop.f32.mrf.mxu0  ;;  %3608 = vmatpush1.bf16.msra.mxu0 %v9995_v54  ;;  %v11365_v54 = vld [vmem:[%s13202_s7 + $0x20] sm:$0xff]  }
 0x333   : > { %v2450_v34 = vpop.f32.mrf.mxu1  ;;  %3609 = vmatprep.subr.bf16.mxu0 %v10000_v27  ;;  %v2447_v27 = vadd.f32 %v2446_v26, %v2333_v29  ;;  %v10024_v29 = vld [vmem:[#allocation4 + $0x124] ss:$16 sps:$4 sm:$0xff]   ;;  %v10022_v26 = vld [vmem:[#allocation4 + $0x120] ss:$16 sps:$4 sm:$0xff]  }
 0x334   : > { %v2339_v2 = vpop.f32.mrf.mxu0 }
 0x335   : > { %v2452_v36 = vpop.f32.mrf.mxu1  ;;  %2602 = vmatmul.mubr.bf16.gmra.mxu0 %v11358_v12  ;;  %v2451_v12 = vadd.f32 %v2450_v34, %v2337_v57  ;;  %v13308_v57 = vld [vmem:[#allocation16_spill] sm:$0xff] }
 0x336   : > { %v2341_v23 = vpop.f32.mrf.mxu0  ;;  %2611 = vmatprep.mubr.bf16.mxu0 %v13292_v25  ;;  %3610 = vmatpush1.bf16.msra.mxu0 %v9998_v42  ;;  %v2453_v9 = vadd.f32 %v2452_v36, %v2339_v2  ;;  %v2443_v42 = vadd.f32 %v2442_v22, %v2329_v14  ;;  %v2433_v2 = vadd.f32 %v11340_v47, %v11338_v46  ;;  %v13299_v47 = vld [vmem:[#allocation28_spill] sm:$0xff]  ;;  %v10021_v22 = vld [vmem:[#allocation4 + $0x144] ss:$16 sps:$4 sm:$0xff]  }
 0x337   : > { %v2454_v52 = vpop.f32.mrf.mxu1  ;;  %3611 = vmatprep.subr.bf16.mxu0 %v10003_v37  ;;  %v2445_v37 = vadd.f32 %v2444_v19, %v2331_v59  ;;  %v2431_v36 = vadd.f32 %v11336_v7, %v11334_v43  ;;  %v2421_v43 = vadd.f32 %v11313_v28, %v11308_v18  ;;  %v2411_v28 = vadd.f32 %v11285_v53, %v11283_v44  ;;  %v13296_v44 = vld [vmem:[#allocation30_spill] sm:$0xff]  ;;  %v13307_v59 = vld [vmem:[#allocation21_spill] sm:$0xff] }
 0x338   : > { %v2343_v60 = vpop.f32.mrf.mxu0  ;;  %v2455_v33 = vadd.f32 %v2454_v52, %v2341_v23  ;;  %v2437_v52 = vadd.f32 %v2436_v4, %v2323_v1  ;;  %v2486_v23 = vpack.c.bf16 %v2447_v27, %v2443_v42  ;;  %v13302_v1 = vld [vmem:[#allocation27_spill] sm:$0xff]  ;;  %v13306_v14 = vpack.c.bf16 %v13304_v41, %v13305_v3  ;;  %v10033_v27 = vld [vmem:[#allocation4 + $0xec] ss:$16 sps:$4 sm:$0xff]  }
 0x339   : > { %v2456_v17 = vpop.f32.mrf.mxu1  ;;  %v10019_v19 = vld [vmem:[#allocation4 + $0x140] ss:$16 sps:$4 sm:$0xff]   ;;  %v10031_v41 = vld [vmem:[#allocation4 + $0xe8] ss:$16 sps:$4 sm:$0xff]  }
 0x33a   : > { %v2457_v32 = vadd.f32 %v2456_v17, %v2343_v60  ;;  %3612 = vmatpush1.bf16.msra.mxu0 %v10001_v11  ;;  %v2489_v0 = vpack.c.bf16 %v2455_v33, %v2451_v12  ;;  %v10007_v17 = vld [vmem:[#allocation4 + $0x1c0] ss:$16 sps:$4 sm:$0xff]   ;;  %v2435_v33 = vadd.f32 %v11346_v6, %v11343_v49  ;;  %v2423_v60 = vadd.f32 %v11317_v20, %v11315_v30  ;;  %v10027_v12 = vld [vmem:[#allocation4 + $0x104] ss:$16 sps:$4 sm:$0xff]   ;;  %v11481_v3 = vld [vmem:[%s13203_s8 + $0x48] sm:$0xff] }
 0x33b   : > { %3613 = vmatprep.subr.bf16.mxu0 %v10006_v48  ;;  %v2425_v48 = vadd.f32 %v11323_v31, %v11320_v21  ;;  %v10013_v30 = vld [vmem:[#allocation4 + $0x180] ss:$16 sps:$4 sm:$0xff]   ;;  %v2413_v20 = vadd.f32 %v11290_v61, %v11287_v5  ;;  %v10018_v21 = vld [vmem:[#allocation4 + $0x164] ss:$16 sps:$4 sm:$0xff]   ;;  %v2415_v31 = vadd.f32 %v11297_v38, %v11292_v62  ;;  %v2403_v61 = vadd.f32 %v11269_v15, %v11265_v8  ;;  %v11417_v8 = vld [vmem:[%s13202_s7 + $0x38] sm:$0xff]  }
 0x33c   : > { %v2490_v10 = vpack.c.bf16 %v2457_v32, %v2453_v9  ;;  %v10012_v9 = vld [vmem:[#allocation4 + $0x1a4] ss:$16 sps:$4 sm:$0xff]   ;;  %v2485_v32 = vpack.c.bf16 %v2445_v37, %v2441_v45  ;;  %v2481_v46 = vpack.c.bf16 %v2435_v33, %v2431_v36  ;;  %v10016_v5 = vld [vmem:[#allocation4 + $0x160] ss:$16 sps:$4 sm:$0xff]   ;;  %v2405_v62 = vadd.f32 %v11273_v63, %v11271_v16 }
 0x33d   : > { %2612 = vmatmul.mubr.bf16.gmra.mxu0 %v11365_v54  ;;  %v10015_v45 = vld [vmem:[#allocation4 + $0x184] ss:$16 sps:$4 sm:$0xff]   ;;  %v2477_v7 = vpack.c.bf16 %v2425_v48, %v2421_v43  ;;  %v2473_v38 = vpack.c.bf16 %v2415_v31, %v2411_v28  ;;  %v13298_v16 = vld [vmem:[#allocation26_spill] sm:$0xff] }
 0x33e   : > { %2652 = vmatprep.subr.bf16.mxu1 %v2490_v10  ;;  %2621 = vmatprep.mubr.bf16.mxu0 %v13292_v25  ;;  %v11376_v10 = vld [vmem:[%s13202_s7 + $0x28] sm:$0xff]   ;;  %v2469_v53 = vpack.c.bf16 %v2405_v62, %v13296_v44  ;;  %v10025_v34 = vld [vmem:[#allocation4 + $0x100] ss:$16 sps:$4 sm:$0xff]   ;;  %v10030_v11 = vld [vmem:[#allocation4 + $0x2e4] ss:$16 sps:$4 sm:$0xff]  }
 0x33f   : > { %2653 = vmatpush1.bf16.msra.mxu1 %v2489_v0  ;;  %3614 = vmatpush2.bf16.msra.mxu0 %v10004_v58  ;;  %v2427_v0 = vadd.f32 %v11327_v40, %v11325_v24  ;;  %v2482_v58 = vpack.c.bf16 %v2437_v52, %v2433_v2  ;;  %v2417_v24 = vadd.f32 %v11301_v51, %v11299_v56  ;;  %v11399_v56 = vld [vmem:[%s13202_s7 + $0x30] sm:$0xff]   ;;  %v13297_v15 = vld [vmem:[#allocation25_spill] sm:$0xff]  ;;  %v10126_v62 = vld [vmem:[#allocation4 + $0x2ec] ss:$16 sps:$4 sm:$0xff]  }
 0x340   : > { %2654 = vmatprep.subr.bf16.mxu1 %v2486_v23  ;;  %3615 = vmatprep.subr.bf16.mxu0 %v10009_v35  ;;  %v10010_v35 = vld [vmem:[#allocation4 + $0x1a0] ss:$16 sps:$4 sm:$0xff]   ;;  %v2407_v51 = vadd.f32 %v11281_v55, %v11276_v39  ;;  %v2397_v39 = vadd.f32 %v11253_v13, %v11249_v50  ;;  %v2387_v63 = vadd.f32 %v13298_v16, %v13297_v15  ;;  %v10036_v37 = vld [vmem:[#allocation4 + $0x2c4] ss:$16 sps:$4 sm:$0xff]   ;;  %v11464_v16 = vld [vmem:[%s13203_s8 + $0x28] sm:$0xff] }
 0x341   : > { %v2478_v40 = vpack.c.bf16 %v2427_v0, %v2423_v60  ;;  %v2474_v18 = vpack.c.bf16 %v2417_v24, %v2413_v20  ;;  %v13300_v50 = vld [vmem:[#allocation23_spill] sm:$0xff]  ;;  %v13301_v6 = vld [vmem:[#allocation29_spill] sm:$0xff] }
 0x342   : > { %v2470_v55 = vpack.c.bf16 %v2407_v51, %v2403_v61  ;;  %v2466_v49 = vpack.c.bf16 %v2397_v39, %v13299_v47  ;;  %v2462_v13 = vpack.c.bf16 %v2387_v63, %v13300_v50  ;;  %v13303_v4 = vpack.c.bf16 %v13301_v6, %v13302_v1  ;;  %v10028_v42 = vld [vmem:[#allocation4 + $0x2e0] ss:$16 sps:$4 sm:$0xff]   ;;  %v10054_v0 = vld [vmem:[#allocation4 + $0x264] ss:$16 sps:$4 sm:$0xff]  }
 0x343   : > { %2655 = vmatpush1.bf16.msra.mxu1 %v2485_v32  ;;  %3616 = vmatpush2.bf16.msra.mxu0 %v10007_v17  ;;  %v13309_v52 = vld [vmem:[#allocation17_spill] sm:$0xff]  ;;  %v13310_v33 = vld [vmem:[#allocation19_spill] sm:$0xff] }
 0x344   : > { %2656 = vmatprep.subr.bf16.mxu1 %v2482_v58  ;;  %3617 = vmatprep.subr.bf16.mxu0 %v10012_v9  ;;  %v10034_v23 = vld [vmem:[#allocation4 + $0x2c0] ss:$16 sps:$4 sm:$0xff]   ;;  %v10042_v17 = vld [vmem:[#allocation4 + $0x2a4] ss:$16 sps:$4 sm:$0xff]  }
 0x345   : > { %2622 = vmatmul.mubr.bf16.gmra.mxu0 %v11376_v10  ;;  %v10040_v2 = vld [vmem:[#allocation4 + $0x2a0] ss:$16 sps:$4 sm:$0xff]   ;;  %v10048_v9 = vld [vmem:[#allocation4 + $0x284] ss:$16 sps:$4 sm:$0xff]  }
 0x346   : > { %2631 = vmatprep.mubr.bf16.mxu0 %v13292_v25  ;;  %v10046_v32 = vld [vmem:[#allocation4 + $0x280] ss:$16 sps:$4 sm:$0xff]   ;;  %v10060_v36 = vld [vmem:[#allocation4 + $0x244] ss:$16 sps:$4 sm:$0xff]  }
 0x347   : > { %2657 = vmatpush1.bf16.msra.mxu1 %v2481_v46  ;;  %3618 = vmatpush2.bf16.msra.mxu0 %v10010_v35  ;;  %v10052_v58 = vld [vmem:[#allocation4 + $0x260] ss:$16 sps:$4 sm:$0xff]   ;;  %v10066_v60 = vld [vmem:[#allocation4 + $0x224] ss:$16 sps:$4 sm:$0xff]  }
 0x348   : > { %2658 = vmatprep.subr.bf16.mxu1 %v2478_v40  ;;  %3619 = vmatprep.subr.bf16.mxu0 %v10015_v45  ;;  %v10058_v35 = vld [vmem:[#allocation4 + $0x240] ss:$16 sps:$4 sm:$0xff]   ;;  %v10072_v48 = vld [vmem:[#allocation4 + $0x204] ss:$16 sps:$4 sm:$0xff]  }
 0x349   : > { %v10064_v45 = vld [vmem:[#allocation4 + $0x220] ss:$16 sps:$4 sm:$0xff]   ;;  %v10078_v24 = vld [vmem:[#allocation4 + $0x3e4] ss:$16 sps:$4 sm:$0xff]  }
 0x34a   : > { %v10070_v46 = vld [vmem:[#allocation4 + $0x200] ss:$16 sps:$4 sm:$0xff]   ;;  %v10102_v31 = vld [vmem:[#allocation4 + $0x364] ss:$16 sps:$4 sm:$0xff]  }
 0x34b   : > { %2659 = vmatpush1.bf16.msra.mxu1 %v2477_v7  ;;  %3620 = vmatpush2.bf16.msra.mxu0 %v10013_v30  ;;  %v10076_v40 = vld [vmem:[#allocation4 + $0x3e0] ss:$16 sps:$4 sm:$0xff]   ;;  %v10090_v30 = vld [vmem:[#allocation4 + $0x3a4] ss:$16 sps:$4 sm:$0xff]  }
 0x34c   : > { %2660 = vmatprep.subr.bf16.mxu1 %v2474_v18  ;;  %3621 = vmatprep.subr.bf16.mxu0 %v10018_v21  ;;  %v10082_v43 = vld [vmem:[#allocation4 + $0x3c0] ss:$16 sps:$4 sm:$0xff]   ;;  %v10114_v18 = vld [vmem:[#allocation4 + $0x324] ss:$16 sps:$4 sm:$0xff]  }
 0x34d   : > { %2632 = vmatmul.mubr.bf16.gmra.mxu0 %v11399_v56  ;;  %v10088_v20 = vld [vmem:[#allocation4 + $0x3a0] ss:$16 sps:$4 sm:$0xff]  }
 0x34e   : > { %2641 = vmatprep.mubr.bf16.mxu0 %v13292_v25  ;;  %v10094_v21 = vld [vmem:[#allocation4 + $0x380] ss:$16 sps:$4 sm:$0xff]  }
 0x34f   : > { %2661 = vmatpush1.bf16.msra.mxu1 %v2473_v38  ;;  %3622 = vmatpush2.bf16.msra.mxu0 %v10016_v5  ;;  %v10100_v7 = vld [vmem:[#allocation4 + $0x360] ss:$16 sps:$4 sm:$0xff]   ;;  %v10120_v5 = vld [vmem:[#allocation4 + $0x304] ss:$16 sps:$4 sm:$0xff]  }
 0x350   : > { %2662 = vmatprep.subr.bf16.mxu1 %v2470_v55  ;;  %3623 = vmatprep.subr.bf16.mxu0 %v10021_v22  ;;  %v10106_v51 = vld [vmem:[#allocation4 + $0x340] ss:$16 sps:$4 sm:$0xff]   ;;  %v11453_v55 = vld [vmem:[%s13203_s8 + $0x8] sm:$0xff] }
 0x351   : > { %v10112_v28 = vld [vmem:[#allocation4 + $0x320] ss:$16 sps:$4 sm:$0xff]  }
 0x352   : > { %v10118_v61 = vld [vmem:[#allocation4 + $0x300] ss:$16 sps:$4 sm:$0xff]  }
 0x353   : > { %2663 = vmatpush1.bf16.msra.mxu1 %v2469_v53  ;;  %3624 = vmatpush2.bf16.msra.mxu0 %v10019_v19  ;;  %v11448_v39 = vld [vmem:[%s13203_s8] sm:$0xff] }
 0x354   : > { %2664 = vmatprep.subr.bf16.mxu1 %v2466_v49  ;;  %3625 = vmatprep.subr.bf16.mxu0 %v10024_v29  ;;  %v11458_v53 = vld [vmem:[%s13203_s8 + $0x20] sm:$0xff] }
 0x355   : > { %2642 = vmatmul.mubr.bf16.gmra.mxu0 %v11417_v8  ;;  %v11486_v22 = vld [vmem:[%s13203_s8 + $0x60] sm:$0xff] }
 0x357   : > { %2665 = vmatpush1.bf16.msra.mxu1 %v13303_v4  ;;  %3626 = vmatpush2.bf16.msra.mxu0 %v10022_v26  ;;  %v11476_v4 = vld [vmem:[%s13203_s8 + $0x40] sm:$0xff]  ;;  %v11494_v26 = vld [vmem:[%s13203_s8 + $0x68] sm:$0xff] }
 0x358   : > { %2666 = vmatprep.subr.bf16.mxu1 %v2462_v13  ;;  %3627 = vmatprep.subr.bf16.mxu0 %v10027_v12 }
 0x35b   : > { %2667 = vmatpush1.bf16.msra.mxu1 %v13306_v14  ;;  %3628 = vmatpush2.bf16.msra.mxu0 %v10025_v34  ;;  %v10037_v34 = vld [vmem:[#allocation4 + $0xc8] ss:$16 sps:$4 sm:$0xff]  }
 0x35c   : > { %3710 = vmatprep.subr.bf16.mxu1 %v10030_v11  ;;  %3823 = vmatprep.subr.bf16.mxu0 %v10033_v27  ;;  %v10045_v27 = vld [vmem:[#allocation4 + $0xac] ss:$16 sps:$4 sm:$0xff]  }
 0x35e   : > { %2685 = vmatmul.mubr.bf16.vlgmr.msra.gmra.mxu1 %v13307_v59  ;;  %v10039_v59 = vld [vmem:[#allocation4 + $0xcc] ss:$16 sps:$4 sm:$0xff]  }
 0x35f   : > { %2694 = vmatprep.mubr.bf16.mxu1 %v13292_v25  ;;  %3711 = vmatpush1.bf16.msra.mxu1 %v10028_v42 }
 0x360   : > { %3712 = vmatprep.subr.bf16.mxu1 %v10036_v37 }
 0x363   : > { %3713 = vmatpush1.bf16.msra.mxu1 %v10034_v23 }
 0x364   : > { %3714 = vmatprep.subr.bf16.mxu1 %v10042_v17  ;;  %v10043_v17 = vld [vmem:[#allocation4 + $0xa8] ss:$16 sps:$4 sm:$0xff]  }
 0x366   : > { %2695 = vmatmul.mubr.bf16.gmra.mxu1 %v13308_v57 }
 0x367   : > { %2704 = vmatprep.mubr.bf16.mxu1 %v13292_v25  ;;  %3715 = vmatpush1.bf16.msra.mxu1 %v10040_v2 }
 0x368   : > { %3716 = vmatprep.subr.bf16.mxu1 %v10048_v9  ;;  %v10051_v9 = vld [vmem:[#allocation4 + $0x8c] ss:$16 sps:$4 sm:$0xff]  }
 0x36b   : > { %3717 = vmatpush1.bf16.msra.mxu1 %v10046_v32 }
 0x36c   : > { %3718 = vmatprep.subr.bf16.mxu1 %v10054_v0 }
 0x36e   : > { %2705 = vmatmul.mubr.bf16.gmra.mxu1 %v13309_v52 }
 0x36f   : > { %2714 = vmatprep.mubr.bf16.mxu1 %v13292_v25  ;;  %3719 = vmatpush1.bf16.msra.mxu1 %v10052_v58 }
 0x370   : > { %3720 = vmatprep.subr.bf16.mxu1 %v10060_v36  ;;  %v10049_v36 = vld [vmem:[#allocation4 + $0x88] ss:$16 sps:$4 sm:$0xff]  }
 0x373   : > { %3721 = vmatpush1.bf16.msra.mxu1 %v10058_v35 }
 0x374   : > { %3722 = vmatprep.subr.bf16.mxu1 %v10066_v60  ;;  %v10057_v60 = vld [vmem:[#allocation4 + $0x6c] ss:$16 sps:$4 sm:$0xff]  }
 0x376   : > { %2715 = vmatmul.mubr.bf16.gmra.mxu1 %v13310_v33 }
 0x377   : > { %2724 = vmatprep.mubr.bf16.mxu1 %v13292_v25  ;;  %3723 = vmatpush1.bf16.msra.mxu1 %v10064_v45 }
 0x378   : > { %3724 = vmatprep.subr.bf16.mxu1 %v10072_v48 }
 0x37b   : > { %3725 = vmatpush1.bf16.msra.mxu1 %v10070_v46 }
 0x37c   : > { %3726 = vmatprep.subr.bf16.mxu1 %v10078_v24 }
 0x37e   : > { %2725 = vmatmul.mubr.bf16.gmra.mxu1 %v11365_v54  ;;  %v10084_v54 = vld [vmem:[#allocation4 + $0x3c4] ss:$16 sps:$4 sm:$0xff]  }
 0x37f   : > { %2734 = vmatprep.mubr.bf16.mxu1 %v13292_v25  ;;  %3727 = vmatpush2.bf16.msra.mxu1 %v10076_v40  ;;  %v10055_v40 = vld [vmem:[#allocation4 + $0x68] ss:$16 sps:$4 sm:$0xff]  }
 0x380   : > { %3728 = vmatprep.subr.bf16.mxu1 %v10084_v54 }
 0x383   : > { %3729 = vmatpush2.bf16.msra.mxu1 %v10082_v43  ;;  %v10063_v43 = vld [vmem:[#allocation4 + $0x4c] ss:$16 sps:$4 sm:$0xff]  }
 0x384   : > { %3730 = vmatprep.subr.bf16.mxu1 %v10090_v30 }
 0x386   : > { %2735 = vmatmul.mubr.bf16.gmra.mxu1 %v11376_v10  ;;  %v10096_v10 = vld [vmem:[#allocation4 + $0x384] ss:$16 sps:$4 sm:$0xff]  }
 0x387   : > { %2744 = vmatprep.mubr.bf16.mxu1 %v13292_v25  ;;  %3731 = vmatpush2.bf16.msra.mxu1 %v10088_v20 }
 0x388   : > { %3732 = vmatprep.subr.bf16.mxu1 %v10096_v10 }
 0x38b   : > { %3733 = vmatpush2.bf16.msra.mxu1 %v10094_v21 }
 0x38c   : > { %3734 = vmatprep.subr.bf16.mxu1 %v10102_v31  ;;  %v10061_v31 = vld [vmem:[#allocation4 + $0x48] ss:$16 sps:$4 sm:$0xff]  }
 0x38e   : > { %2745 = vmatmul.mubr.bf16.gmra.mxu1 %v11399_v56  ;;  %v10108_v56 = vld [vmem:[#allocation4 + $0x344] ss:$16 sps:$4 sm:$0xff]  }
 0x38f   : > { %2754 = vmatprep.mubr.bf16.mxu1 %v13292_v25  ;;  %3735 = vmatpush2.bf16.msra.mxu1 %v10100_v7 }
 0x390   : > { %3736 = vmatprep.subr.bf16.mxu1 %v10108_v56  ;;  %v10069_v56 = vld [vmem:[#allocation4 + $0x2c] ss:$16 sps:$4 sm:$0xff]  }
 0x393   : > { %3737 = vmatpush2.bf16.msra.mxu1 %v10106_v51 }
 0x394   : > { %3738 = vmatprep.subr.bf16.mxu1 %v10114_v18 }
 0x396   : > { %2755 = vmatmul.mubr.bf16.gmra.mxu1 %v11417_v8 }
 0x397   : > { %3739 = vmatpush2.bf16.msra.mxu1 %v10112_v28 }
 0x398   : > { %3740 = vmatprep.subr.bf16.mxu1 %v10120_v5 }
 0x39b   : > { %3741 = vmatpush2.bf16.msra.mxu1 %v10118_v61  ;;  %v10067_v61 = vld [vmem:[#allocation4 + $0x28] ss:$16 sps:$4 sm:$0xff]  }
 0x39c   : > { %3936 = vmatprep.subr.bf16.mxu1 %v10126_v62 }
 0x3dd   : > { %v2573_v38 = vpop.f32.mrf.mxu0 }
 0x3de   : > { %v2574_v8 = vadd.f32 %v2573_v38, %v11448_v39  ;;  %v10075_v38 = vld [vmem:[#allocation4 + $0xc] ss:$16 sps:$4 sm:$0xff]  }
 0x3df   : > { %v2575_v44 = vpop.f32.mrf.mxu0 }
 0x3e0   : > { %v2576_v63 = vadd.f32 %v2575_v44, %v11453_v55 }
 0x3e1   : > { %v2577_v15 = vpop.f32.mrf.mxu0 }
 0x3e2   : > { %v2578_v47 = vadd.f32 %v2577_v15, %v11458_v53 }
 0x3e3   : > { %v2579_v49 = vpop.f32.mrf.mxu0 }
 0x3e4   : > { %v2580_v50 = vadd.f32 %v2579_v49, %v11464_v16  ;;  %v11469_v13 = vpack.c.bf16 %v2578_v47, %v2574_v8  ;;  %v10073_v47 = vld [vmem:[#allocation4 + $0x8] ss:$16 sps:$4 sm:$0xff]  }
 0x3e5   : > { %v2583_v6 = vpop.f32.mrf.mxu0 }
 0x3e6   : > { %v11471_v1 = vpack.c.bf16 %v2580_v50, %v2576_v63  ;;  %v2584_v19 = vadd.f32 %v2583_v6, %v11476_v4  ;;  %v10081_v50 = vld [vmem:[#allocation4 + $0x1ec] ss:$16 sps:$4 sm:$0xff]  }
 0x3e7   : > { %v2585_v14 = vpop.f32.mrf.mxu0 }
 0x3e8   : > { %3629 = vmatprep.mubr.bf16.mxu0 %v11471_v1  ;;  %v2586_v12 = vadd.f32 %v2585_v14, %v11481_v3 }
 0x3e9   : > { %v2587_v29 = vpop.f32.mrf.mxu0  ;;  %3630 = vmatmul.mubr.bf16.vlgmr.msra.gmra.mxu0 %v11469_v13 }
 0x3ea   : > { %v2588_v57 = vadd.f32 %v2587_v29, %v11486_v22  ;;  %3824 = vmatpush1.bf16.msra.mxu0 %v10031_v41 }
 0x3eb   : > { %v2589_v11 = vpop.f32.mrf.mxu0  ;;  %3825 = vmatprep.subr.bf16.mxu0 %v10039_v59 }
 0x3ec   : > { %v2590_v42 = vadd.f32 %v2589_v11, %v11494_v26  ;;  %v11499_v37 = vpack.c.bf16 %v2588_v57, %v2584_v19  ;;  %v10079_v19 = vld [vmem:[#allocation4 + $0x1e8] ss:$16 sps:$4 sm:$0xff]  }
 0x3ed   : > { %v2593_v52 = vpop.f32.mrf.mxu0 }
 0x3ee   : > { %v11501_v23 = vpack.c.bf16 %v2590_v42, %v2586_v12  ;;  %3826 = vmatpush1.bf16.msra.mxu0 %v10037_v34  ;;  %v2594_v33 = vadd.f32 %v2593_v52, %v11448_v39  ;;  %v10087_v12 = vld [vmem:[#allocation4 + $0x1cc] ss:$16 sps:$4 sm:$0xff]   ;;  %v10085_v42 = vld [vmem:[#allocation4 + $0x1c8] ss:$16 sps:$4 sm:$0xff]  }
 0x3ef   : > { %v2595_v2 = vpop.f32.mrf.mxu0  ;;  %3827 = vmatprep.subr.bf16.mxu0 %v10045_v27 }
 0x3f0   : > { %3639 = vmatprep.mubr.bf16.mxu0 %v11501_v23  ;;  %v2596_v0 = vadd.f32 %v2595_v2, %v11453_v55 }
 0x3f1   : > { %v2597_v32 = vpop.f32.mrf.mxu0  ;;  %3640 = vmatmul.mubr.bf16.gmra.mxu0 %v11499_v37 }
 0x3f2   : > { %v2598_v58 = vadd.f32 %v2597_v32, %v11458_v53  ;;  %3828 = vmatpush1.bf16.msra.mxu0 %v10043_v17  ;;  %v10093_v17 = vld [vmem:[#allocation4 + $0x1ac] ss:$16 sps:$4 sm:$0xff]  }
 0x3f3   : > { %v2599_v35 = vpop.f32.mrf.mxu0  ;;  %3829 = vmatprep.subr.bf16.mxu0 %v10051_v9 }
 0x3f4   : > { %v2600_v45 = vadd.f32 %v2599_v35, %v11464_v16  ;;  %v11509_v48 = vpack.c.bf16 %v2598_v58, %v2594_v33 }
 0x3f5   : > { %v2603_v46 = vpop.f32.mrf.mxu0 }
 0x3f6   : > { %v11511_v24 = vpack.c.bf16 %v2600_v45, %v2596_v0  ;;  %3830 = vmatpush1.bf16.msra.mxu0 %v10049_v36  ;;  %v2604_v30 = vadd.f32 %v2603_v46, %v11476_v4  ;;  %v10091_v0 = vld [vmem:[#allocation4 + $0x1a8] ss:$16 sps:$4 sm:$0xff]   ;;  %v10099_v36 = vld [vmem:[#allocation4 + $0x18c] ss:$16 sps:$4 sm:$0xff]  }
 0x3f7   : > { %v2605_v54 = vpop.f32.mrf.mxu0  ;;  %3831 = vmatprep.subr.bf16.mxu0 %v10057_v60 }
 0x3f8   : > { %3649 = vmatprep.mubr.bf16.mxu0 %v11511_v24  ;;  %v2606_v10 = vadd.f32 %v2605_v54, %v11481_v3 }
 0x3f9   : > { %v2607_v20 = vpop.f32.mrf.mxu0  ;;  %3650 = vmatmul.mubr.bf16.gmra.mxu0 %v11509_v48 }
 0x3fa   : > { %v2608_v21 = vadd.f32 %v2607_v20, %v11486_v22  ;;  %3832 = vmatpush1.bf16.msra.mxu0 %v10055_v40  ;;  %v10097_v40 = vld [vmem:[#allocation4 + $0x188] ss:$16 sps:$4 sm:$0xff]  }
 0x3fb   : > { %v2609_v7 = vpop.f32.mrf.mxu0  ;;  %3833 = vmatprep.subr.bf16.mxu0 %v10063_v43  ;;  %v10105_v43 = vld [vmem:[#allocation4 + $0x16c] ss:$16 sps:$4 sm:$0xff]  }
 0x3fc   : > { %v2610_v51 = vadd.f32 %v2609_v7, %v11494_v26  ;;  %v11519_v18 = vpack.c.bf16 %v2608_v21, %v2604_v30  ;;  %v10111_v7 = vld [vmem:[#allocation4 + $0x14c] ss:$16 sps:$4 sm:$0xff]  }
 0x3fd   : > { %v2613_v28 = vpop.f32.mrf.mxu0 }
 0x3fe   : > { %v11521_v5 = vpack.c.bf16 %v2610_v51, %v2606_v10  ;;  %3834 = vmatpush1.bf16.msra.mxu0 %v10061_v31  ;;  %v2614_v44 = vadd.f32 %v2613_v28, %v11448_v39  ;;  %v10109_v51 = vld [vmem:[#allocation4 + $0x148] ss:$16 sps:$4 sm:$0xff]  }
 0x3ff   : > { %v2615_v62 = vpop.f32.mrf.mxu0  ;;  %3835 = vmatprep.subr.bf16.mxu0 %v10069_v56 }
 0x400   : > { %3659 = vmatprep.mubr.bf16.mxu0 %v11521_v5  ;;  %v2616_v15 = vadd.f32 %v2615_v62, %v11453_v55 }
 0x401   : > { %v2617_v8 = vpop.f32.mrf.mxu0  ;;  %3660 = vmatmul.mubr.bf16.gmra.mxu0 %v11519_v18 }
 0x402   : > { %v2618_v63 = vadd.f32 %v2617_v8, %v11458_v53  ;;  %3836 = vmatpush1.bf16.msra.mxu0 %v10067_v61  ;;  %v10117_v61 = vld [vmem:[#allocation4 + $0x12c] ss:$16 sps:$4 sm:$0xff]  }
 0x403   : > { %v2619_v49 = vpop.f32.mrf.mxu0  ;;  %3837 = vmatprep.subr.bf16.mxu0 %v10075_v38 }
 0x404   : > { %v2620_v6 = vadd.f32 %v2619_v49, %v11464_v16  ;;  %v11529_v41 = vpack.c.bf16 %v2618_v63, %v2614_v44  ;;  %v10121_v49 = vld [vmem:[#allocation4 + $0x108] ss:$16 sps:$4 sm:$0xff]  }
 0x405   : > { %v2623_v14 = vpop.f32.mrf.mxu0 }
 0x406   : > { %v11531_v59 = vpack.c.bf16 %v2620_v6, %v2616_v15  ;;  %3838 = vmatpush1.bf16.msra.mxu0 %v10073_v47  ;;  %v2624_v57 = vadd.f32 %v2623_v14, %v11476_v4  ;;  %v10123_v15 = vld [vmem:[#allocation4 + $0x10c] ss:$16 sps:$4 sm:$0xff]  }
 0x407   : > { %v2625_v29 = vpop.f32.mrf.mxu0  ;;  %3839 = vmatprep.subr.bf16.mxu0 %v10081_v50  ;;  %v11579_v47 = vld [vmem:[%s13203_s8 + $0x38] sm:$0xff]  ;;  %v11584_v50 = vld [vmem:[%s13203_s8 + $0x10] sm:$0xff] }
 0x408   : > { %3669 = vmatprep.mubr.bf16.mxu0 %v11531_v59  ;;  %v2626_v11 = vadd.f32 %v2625_v29, %v11481_v3 }
 0x409   : > { %v2627_v34 = vpop.f32.mrf.mxu0  ;;  %3670 = vmatmul.mubr.bf16.gmra.mxu0 %v11529_v41 }
 0x40a   : > { %v2628_v27 = vadd.f32 %v2627_v34, %v11486_v22  ;;  %3840 = vmatpush2.bf16.msra.mxu0 %v10079_v19  ;;  %v10124_v34 = vld [vmem:[#allocation4 + $0x2e8] ss:$16 sps:$4 sm:$0xff]  }
 0x40b   : > { %v2629_v52 = vpop.f32.mrf.mxu0  ;;  %3841 = vmatprep.subr.bf16.mxu0 %v10087_v12 }
 0x40c   : > { %v2630_v2 = vadd.f32 %v2629_v52, %v11494_v26  ;;  %v11539_v9 = vpack.c.bf16 %v2628_v27, %v2624_v57  ;;  %v11598_v52 = vld [vmem:[%s13203_s8 + $0x70] sm:$0xff] }
 0x40d   : > { %v2633_v33 = vpop.f32.mrf.mxu0 }
 0x40e   : > { %v11541_v32 = vpack.c.bf16 %v2630_v2, %v2626_v11  ;;  %3842 = vmatpush2.bf16.msra.mxu0 %v10085_v42  ;;  %v2634_v35 = vadd.f32 %v2633_v33, %v11448_v39  ;;  %v10103_v39 = vld [vmem:[#allocation4 + $0x168] ss:$16 sps:$4 sm:$0xff]   ;;  %v10129_v42 = vld [vmem:[#allocation4 + $0x2cc] ss:$16 sps:$4 sm:$0xff]  }
 0x40f   : > { %v2635_v58 = vpop.f32.mrf.mxu0  ;;  %3843 = vmatprep.subr.bf16.mxu0 %v10093_v17  ;;  %v11604_v17 = vld [vmem:[%s13203_s8 + $0x58] sm:$0xff] }
 0x410   : > { %3679 = vmatprep.mubr.bf16.mxu0 %v11541_v32  ;;  %v2636_v45 = vadd.f32 %v2635_v58, %v11453_v55  ;;  %v11611_v33 = vld [vmem:[%s13203_s8 + $0x78] sm:$0xff] }
 0x411   : > { %v2637_v60 = vpop.f32.mrf.mxu0  ;;  %3680 = vmatmul.mubr.bf16.gmra.mxu0 %v11539_v9 }
 0x412   : > { %v2638_v46 = vadd.f32 %v2637_v60, %v11458_v53  ;;  %3844 = vmatpush2.bf16.msra.mxu0 %v10091_v0  ;;  %v11616_v0 = vld [vmem:[%s13203_s8 + $0x50] sm:$0xff] }
 0x413   : > { %v2639_v54 = vpop.f32.mrf.mxu0  ;;  %3845 = vmatprep.subr.bf16.mxu0 %v10099_v36 }
 0x414   : > { %v2640_v30 = vadd.f32 %v2639_v54, %v11464_v16  ;;  %v11549_v20 = vpack.c.bf16 %v2638_v46, %v2634_v35  ;;  %v10132_v35 = vld [vmem:[#allocation4 + $0x2ac] ss:$16 sps:$4 sm:$0xff]   ;;  %v10130_v54 = vld [vmem:[#allocation4 + $0x2a8] ss:$16 sps:$4 sm:$0xff]  }
 0x415   : > { %v2643_v10 = vpop.f32.mrf.mxu0 }
 0x416   : > { %v11551_v21 = vpack.c.bf16 %v2640_v30, %v2636_v45  ;;  %3846 = vmatpush2.bf16.msra.mxu0 %v10097_v40  ;;  %v2644_v55 = vadd.f32 %v2643_v10, %v11476_v4  ;;  %v10115_v4 = vld [vmem:[#allocation4 + $0x128] ss:$16 sps:$4 sm:$0xff]   ;;  %v10135_v10 = vld [vmem:[#allocation4 + $0x28c] ss:$16 sps:$4 sm:$0xff]  }
 0x417   : > { %v2645_v31 = vpop.f32.mrf.mxu0  ;;  %3847 = vmatprep.subr.bf16.mxu0 %v10105_v43 }
 0x418   : > { %3689 = vmatprep.mubr.bf16.mxu0 %v11551_v21  ;;  %v2646_v56 = vadd.f32 %v2645_v31, %v11481_v3  ;;  %v11567_v3 = vld [vmem:[%s13203_s8 + $0x30] sm:$0xff]  ;;  %v10133_v31 = vld [vmem:[#allocation4 + $0x288] ss:$16 sps:$4 sm:$0xff]  }
 0x419   : > { %v2647_v53 = vpop.f32.mrf.mxu0  ;;  %3690 = vmatmul.mubr.bf16.gmra.mxu0 %v11549_v20 }
 0x41a   : > { %v2648_v16 = vadd.f32 %v2647_v53, %v11486_v22  ;;  %3848 = vmatpush2.bf16.msra.mxu0 %v10103_v39  ;;  %v11573_v22 = vld [vmem:[%s13203_s8 + $0x18] sm:$0xff] }
 0x41b   : > { %v2649_v28 = vpop.f32.mrf.mxu0  ;;  %3849 = vmatprep.subr.bf16.mxu0 %v10111_v7  ;;  %v10138_v53 = vld [vmem:[#allocation4 + $0x26c] ss:$16 sps:$4 sm:$0xff]  }
 0x41c   : > { %v2650_v62 = vadd.f32 %v2649_v28, %v11494_v26  ;;  %v11559_v38 = vpack.c.bf16 %v2648_v16, %v2644_v55 }
 0x41e   : > { %v11561_v44 = vpack.c.bf16 %v2650_v62, %v2646_v56  ;;  %v2686_v8 = vpop.f32.mrf.mxu1  ;;  %3850 = vmatpush2.bf16.msra.mxu0 %v10109_v51 }
 0x41f   : > { %3851 = vmatprep.subr.bf16.mxu0 %v10117_v61  ;;  %v10136_v61 = vld [vmem:[#allocation4 + $0x268] ss:$16 sps:$4 sm:$0xff]  }
 0x420   : > { %v2688_v63 = vpop.f32.mrf.mxu1  ;;  %3699 = vmatprep.mubr.bf16.mxu0 %v11561_v44 }
 0x421   : > { %3700 = vmatmul.mubr.bf16.gmra.mxu0 %v11559_v38  ;;  %v2689_v19 = vadd.f32 %v2688_v63, %v11573_v22 }
 0x422   : > { %v2690_v26 = vpop.f32.mrf.mxu1  ;;  %3852 = vmatpush2.bf16.msra.mxu0 %v10115_v4  ;;  %3855 = vmatprep.mubr.bf16.mxu0 %v11471_v1  ;;  %v2687_v1 = vadd.f32 %v2686_v8, %v11584_v50  ;;  %v10141_v8 = vld [vmem:[#allocation4 + $0x24c] ss:$16 sps:$4 sm:$0xff]  }
 0x423   : > { %3853 = vmatprep.subr.bf16.mxu0 %v10123_v15  ;;  %v2691_v6 = vadd.f32 %v2690_v26, %v11567_v3  ;;  %v10139_v15 = vld [vmem:[#allocation4 + $0x248] ss:$16 sps:$4 sm:$0xff]  }
 0x424   : > { %v2692_v14 = vpop.f32.mrf.mxu1 }
 0x425   : > { %v2693_v29 = vadd.f32 %v2692_v14, %v11579_v47  ;;  %v11592_v11 = vpack.c.bf16 %v2691_v6, %v2687_v1  ;;  %v10142_v1 = vld [vmem:[#allocation4 + $0x228] ss:$16 sps:$4 sm:$0xff]  }
 0x426   : > { %v2696_v12 = vpop.f32.mrf.mxu1  ;;  %3854 = vmatpush2.bf16.msra.mxu0 %v10121_v49  ;;  %v10144_v49 = vld [vmem:[#allocation4 + $0x22c] ss:$16 sps:$4 sm:$0xff]  }
 0x427   : > { %v11590_v57 = vpack.c.bf16 %v2693_v29, %v2689_v19  ;;  %v2697_v45 = vadd.f32 %v2696_v12, %v11616_v0 }
 0x428   : > { %v2698_v27 = vpop.f32.mrf.mxu1 }
 0x429   : > { %3742 = vmatprep.mubr.bf16.mxu1 %v11590_v57  ;;  %3856 = vmatmul.mubr.bf16.vlgmr.msra.gmra.mxu0 %v11469_v13  ;;  %v10127_v13 = vld [vmem:[#allocation4 + $0x2c8] ss:$16 sps:$4 sm:$0xff]   ;;  %v2699_v60 = vadd.f32 %v2698_v27, %v11604_v17 }
 0x42a   : > { %v2700_v2 = vpop.f32.mrf.mxu1  ;;  %3743 = vmatmul.mubr.bf16.vlgmr.msra.gmra.mxu1 %v11592_v11  ;;  %3865 = vmatprep.mubr.bf16.mxu0 %v11501_v23 }
 0x42b   : > { %3937 = vmatpush1.bf16.msra.mxu1 %v10124_v34  ;;  %v2701_v58 = vadd.f32 %v2700_v2, %v11598_v52  ;;  %v10147_v34 = vld [vmem:[#allocation4 + $0x20c] ss:$16 sps:$4 sm:$0xff]  }
 0x42c   : > { %v2702_v36 = vpop.f32.mrf.mxu1  ;;  %3938 = vmatprep.subr.bf16.mxu1 %v10129_v42  ;;  %v10145_v42 = vld [vmem:[#allocation4 + $0x208] ss:$16 sps:$4 sm:$0xff]  }
 0x42d   : > { %v2703_v23 = vadd.f32 %v2702_v36, %v11611_v33  ;;  %v11624_v43 = vpack.c.bf16 %v2701_v58, %v2697_v45  ;;  %v10150_v58 = vld [vmem:[#allocation4 + $0x3ec] ss:$16 sps:$4 sm:$0xff]   ;;  %v10148_v45 = vld [vmem:[#allocation4 + $0x3e8] ss:$16 sps:$4 sm:$0xff]  }
 0x42e   : > { %v2706_v46 = vpop.f32.mrf.mxu1 }
 0x42f   : > { %v11622_v40 = vpack.c.bf16 %v2703_v23, %v2699_v60  ;;  %3939 = vmatpush1.bf16.msra.mxu1 %v10127_v13  ;;  %v2707_v51 = vadd.f32 %v2706_v46, %v11584_v50 }
 0x430   : > { %v2708_v30 = vpop.f32.mrf.mxu1  ;;  %3940 = vmatprep.subr.bf16.mxu1 %v10132_v35 }
 0x431   : > { %3752 = vmatprep.mubr.bf16.mxu1 %v11622_v40  ;;  %3866 = vmatmul.mubr.bf16.gmra.mxu0 %v11499_v37  ;;  %v2709_v56 = vadd.f32 %v2708_v30, %v11573_v22 }
 0x432   : > { %v2710_v39 = vpop.f32.mrf.mxu1  ;;  %3753 = vmatmul.mubr.bf16.gmra.mxu1 %v11624_v43  ;;  %3875 = vmatprep.mubr.bf16.mxu0 %v11511_v24 }
 0x433   : > { %3941 = vmatpush1.bf16.msra.mxu1 %v10130_v54  ;;  %v2711_v7 = vadd.f32 %v2710_v39, %v11567_v3  ;;  %v10153_v54 = vld [vmem:[#allocation4 + $0x3cc] ss:$16 sps:$4 sm:$0xff]  }
 0x434   : > { %v2712_v55 = vpop.f32.mrf.mxu1  ;;  %3942 = vmatprep.subr.bf16.mxu1 %v10135_v10  ;;  %v10151_v10 = vld [vmem:[#allocation4 + $0x3c8] ss:$16 sps:$4 sm:$0xff]  }
 0x435   : > { %v2713_v16 = vadd.f32 %v2712_v55, %v11579_v47  ;;  %v11636_v62 = vpack.c.bf16 %v2711_v7, %v2707_v51  ;;  %v10156_v7 = vld [vmem:[#allocation4 + $0x3ac] ss:$16 sps:$4 sm:$0xff]   ;;  %v10154_v51 = vld [vmem:[#allocation4 + $0x3a8] ss:$16 sps:$4 sm:$0xff]  }
 0x436   : > { %v2716_v28 = vpop.f32.mrf.mxu1 }
 0x437   : > { %v11634_v37 = vpack.c.bf16 %v2713_v16, %v2709_v56  ;;  %3943 = vmatpush1.bf16.msra.mxu1 %v10133_v31  ;;  %v2717_v19 = vadd.f32 %v2716_v28, %v11616_v0 }
 0x438   : > { %v2718_v24 = vpop.f32.mrf.mxu1  ;;  %3944 = vmatprep.subr.bf16.mxu1 %v10138_v53 }
 0x439   : > { %3762 = vmatprep.mubr.bf16.mxu1 %v11634_v37  ;;  %3876 = vmatmul.mubr.bf16.gmra.mxu0 %v11509_v48  ;;  %v2719_v6 = vadd.f32 %v2718_v24, %v11604_v17 }
 0x43a   : > { %v2720_v4 = vpop.f32.mrf.mxu1  ;;  %3763 = vmatmul.mubr.bf16.gmra.mxu1 %v11636_v62  ;;  %3885 = vmatprep.mubr.bf16.mxu0 %v11521_v5 }
 0x43b   : > { %3945 = vmatpush1.bf16.msra.mxu1 %v10136_v61  ;;  %v2721_v63 = vadd.f32 %v2720_v4, %v11598_v52  ;;  %v10159_v61 = vld [vmem:[#allocation4 + $0x38c] ss:$16 sps:$4 sm:$0xff]  }
 0x43c   : > { %v2722_v26 = vpop.f32.mrf.mxu1  ;;  %3946 = vmatprep.subr.bf16.mxu1 %v10141_v8  ;;  %v10157_v8 = vld [vmem:[#allocation4 + $0x388] ss:$16 sps:$4 sm:$0xff]  }
 0x43d   : > { %v2723_v14 = vadd.f32 %v2722_v26, %v11611_v33  ;;  %v11648_v12 = vpack.c.bf16 %v2721_v63, %v2717_v19  ;;  %v10162_v63 = vld [vmem:[#allocation4 + $0x36c] ss:$16 sps:$4 sm:$0xff]   ;;  %v10160_v19 = vld [vmem:[#allocation4 + $0x368] ss:$16 sps:$4 sm:$0xff]  }
 0x43e   : > { %v2726_v29 = vpop.f32.mrf.mxu1 }
 0x43f   : > { %v11646_v48 = vpack.c.bf16 %v2723_v14, %v2719_v6  ;;  %3947 = vmatpush1.bf16.msra.mxu1 %v10139_v15  ;;  %v2727_v60 = vadd.f32 %v2726_v29, %v11584_v50 }
 0x440   : > { %v2728_v5 = vpop.f32.mrf.mxu1  ;;  %3948 = vmatprep.subr.bf16.mxu1 %v10144_v49 }
 0x441   : > { %3772 = vmatprep.mubr.bf16.mxu1 %v11646_v48  ;;  %3886 = vmatmul.mubr.bf16.gmra.mxu0 %v11519_v18  ;;  %v2729_v36 = vadd.f32 %v2728_v5, %v11573_v22  ;;  %v10168_v5 = vld [vmem:[#allocation4 + $0x32c] ss:$16 sps:$4 sm:$0xff]  }
 0x442   : > { %v2730_v27 = vpop.f32.mrf.mxu1  ;;  %3773 = vmatmul.mubr.bf16.gmra.mxu1 %v11648_v12  ;;  %3895 = vmatprep.mubr.bf16.mxu0 %v11531_v59 }
 0x443   : > { %3949 = vmatpush1.bf16.msra.mxu1 %v10142_v1  ;;  %v2731_v2 = vadd.f32 %v2730_v27, %v11567_v3 }
 0x444   : > { %v2732_v13 = vpop.f32.mrf.mxu1  ;;  %3950 = vmatprep.subr.bf16.mxu1 %v10147_v34 }
 0x445   : > { %v2733_v35 = vadd.f32 %v2732_v13, %v11579_v47  ;;  %v11660_v46 = vpack.c.bf16 %v2731_v2, %v2727_v60 }
 0x446   : > { %v2736_v23 = vpop.f32.mrf.mxu1 }
 0x447   : > { %v11658_v18 = vpack.c.bf16 %v2733_v35, %v2729_v36  ;;  %3951 = vmatpush1.bf16.msra.mxu1 %v10145_v42  ;;  %v2737_v56 = vadd.f32 %v2736_v23, %v11616_v0 }
 0x448   : > { %v2738_v59 = vpop.f32.mrf.mxu1  ;;  %3952 = vmatprep.subr.bf16.mxu1 %v10150_v58  ;;  %v10171_v58 = vld [vmem:[#allocation4 + $0x30c] ss:$16 sps:$4 sm:$0xff]  }
 0x449   : > { %3782 = vmatprep.mubr.bf16.mxu1 %v11658_v18  ;;  %3896 = vmatmul.mubr.bf16.gmra.mxu0 %v11529_v41  ;;  %v2739_v55 = vadd.f32 %v2738_v59, %v11604_v17 }
 0x44a   : > { %v2740_v30 = vpop.f32.mrf.mxu1  ;;  %3783 = vmatmul.mubr.bf16.gmra.mxu1 %v11660_v46  ;;  %3905 = vmatprep.mubr.bf16.mxu0 %v11541_v32 }
 0x44b   : > { %3953 = vmatpush2.bf16.msra.mxu1 %v10148_v45  ;;  %v2741_v39 = vadd.f32 %v2740_v30, %v11598_v52 }
 0x44c   : > { %v2742_v31 = vpop.f32.mrf.mxu1  ;;  %3954 = vmatprep.subr.bf16.mxu1 %v10153_v54 }
 0x44d   : > { %v2743_v53 = vadd.f32 %v2742_v31, %v11611_v33  ;;  %v11672_v28 = vpack.c.bf16 %v2741_v39, %v2737_v56 }
 0x44e   : > { %v2746_v16 = vpop.f32.mrf.mxu1 }
 0x44f   : > { %v11670_v41 = vpack.c.bf16 %v2743_v53, %v2739_v55  ;;  %3955 = vmatpush2.bf16.msra.mxu1 %v10151_v10  ;;  %v2747_v6 = vadd.f32 %v2746_v16, %v11584_v50 }
 0x450   : > { %v2748_v32 = vpop.f32.mrf.mxu1  ;;  %3956 = vmatprep.subr.bf16.mxu1 %v10156_v7 }
 0x451   : > { %3792 = vmatprep.mubr.bf16.mxu1 %v11670_v41  ;;  %3906 = vmatmul.mubr.bf16.gmra.mxu0 %v11539_v9  ;;  %v2749_v26 = vadd.f32 %v2748_v32, %v11573_v22  ;;  %v10163_v22 = vld [vmem:[#allocation4 + $0x348] ss:$16 sps:$4 sm:$0xff]  }
 0x452   : > { %v2750_v24 = vpop.f32.mrf.mxu1  ;;  %3793 = vmatmul.mubr.bf16.gmra.mxu1 %v11672_v28  ;;  %3915 = vmatprep.mubr.bf16.mxu0 %v11551_v21  ;;  %v10165_v21 = vld [vmem:[#allocation4 + $0x34c] ss:$16 sps:$4 sm:$0xff]  }
 0x453   : > { %3957 = vmatpush2.bf16.msra.mxu1 %v10154_v51  ;;  %v2751_v4 = vadd.f32 %v2750_v24, %v11567_v3 }
 0x454   : > { %v2752_v15 = vpop.f32.mrf.mxu1  ;;  %3958 = vmatprep.subr.bf16.mxu1 %v10159_v61 }
 0x455   : > { %v2753_v49 = vadd.f32 %v2752_v15, %v11579_v47  ;;  %v2791_v29 = vpack.c.bf16 %v2751_v4, %v2747_v6 }
 0x456   : > { %v2756_v14 = vpop.f32.mrf.mxu1 }
 0x457   : > { %v2792_v9 = vpack.c.bf16 %v2753_v49, %v2749_v26  ;;  %3959 = vmatpush2.bf16.msra.mxu1 %v10157_v8  ;;  %v2757_v42 = vadd.f32 %v2756_v14, %v11616_v0 }
 0x458   : > { %v2758_v1 = vpop.f32.mrf.mxu1  ;;  %3960 = vmatprep.subr.bf16.mxu1 %v10162_v63 }
 0x459   : > { %3802 = vmatprep.mubr.bf16.mxu1 %v2792_v9  ;;  %3916 = vmatmul.mubr.bf16.gmra.mxu0 %v11549_v20  ;;  %v2759_v34 = vadd.f32 %v2758_v1, %v11604_v17  ;;  %v10166_v20 = vld [vmem:[#allocation4 + $0x328] ss:$16 sps:$4 sm:$0xff]  }
 0x45a   : > { %v2760_v3 = vpop.f32.mrf.mxu1  ;;  %3803 = vmatmul.mubr.bf16.gmra.mxu1 %v2791_v29  ;;  %3925 = vmatprep.mubr.bf16.mxu0 %v11561_v44  ;;  %v10169_v44 = vld [vmem:[#allocation4 + $0x308] ss:$16 sps:$4 sm:$0xff]  }
 0x45b   : > { %3961 = vmatpush2.bf16.msra.mxu1 %v10160_v19  ;;  %v2761_v47 = vadd.f32 %v2760_v3, %v11598_v52 }
 0x45c   : > { %v2762_v50 = vpop.f32.mrf.mxu1  ;;  %3962 = vmatprep.subr.bf16.mxu1 %v10165_v21 }
 0x45d   : > { %v2763_v27 = vadd.f32 %v2762_v50, %v11611_v33  ;;  %v2795_v13 = vpack.c.bf16 %v2761_v47, %v2757_v42 }
 0x45f   : > { %v2796_v2 = vpack.c.bf16 %v2763_v27, %v2759_v34  ;;  %3963 = vmatpush2.bf16.msra.mxu1 %v10163_v22 }
 0x460   : > { %3964 = vmatprep.subr.bf16.mxu1 %v10168_v5 }
 0x461   : > { %3812 = vmatprep.mubr.bf16.mxu1 %v2796_v2  ;;  %3926 = vmatmul.mubr.bf16.gmra.mxu0 %v11559_v38 }
 0x462   : > { %3813 = vmatmul.mubr.bf16.gmra.mxu1 %v2795_v13  ;;  %4161 = vmatprep.mubr.bf16.mxu0 %v13292_v25 }
 0x463   : > { %3965 = vmatpush2.bf16.msra.mxu1 %v10166_v20  ;;  %3968 = vmatprep.mubr.bf16.mxu1 %v11590_v57 }
 0x464   : > { %3966 = vmatprep.subr.bf16.mxu1 %v10171_v58 }
 0x467   : > { %3967 = vmatpush2.bf16.msra.mxu1 %v10169_v44 }
 0x46a   : > { %3969 = vmatmul.mubr.bf16.vlgmr.msra.gmra.mxu1 %v11592_v11 }
 0x46b   : > { %3978 = vmatprep.mubr.bf16.mxu1 %v11622_v40 }
 0x472   : > { %3979 = vmatmul.mubr.bf16.gmra.mxu1 %v11624_v43 }
 0x473   : > { %3988 = vmatprep.mubr.bf16.mxu1 %v11634_v37 }
 0x47a   : > { %3989 = vmatmul.mubr.bf16.gmra.mxu1 %v11636_v62 }
 0x47b   : > { %3998 = vmatprep.mubr.bf16.mxu1 %v11646_v48 }
 0x482   : > { %3999 = vmatmul.mubr.bf16.gmra.mxu1 %v11648_v12 }
 0x483   : > { %4008 = vmatprep.mubr.bf16.mxu1 %v11658_v18 }
 0x48a   : > { %4009 = vmatmul.mubr.bf16.gmra.mxu1 %v11660_v46 }
 0x48b   : > { %4018 = vmatprep.mubr.bf16.mxu1 %v11670_v41 }
 0x492   : > { %4019 = vmatmul.mubr.bf16.gmra.mxu1 %v11672_v28 }
 0x493   : > { %4028 = vmatprep.mubr.bf16.mxu1 %v2792_v9 }
 0x49a   : > { %4029 = vmatmul.mubr.bf16.gmra.mxu1 %v2791_v29 }
 0x49b   : > { %4038 = vmatprep.mubr.bf16.mxu1 %v2796_v2 }
 0x4a2   : > { %4039 = vmatmul.mubr.bf16.gmra.mxu1 %v2795_v13 }
 0x4a3   : > { %4274 = vmatprep.mubr.bf16.mxu1 %v13292_v25 }
 0x4a9   : > { %v3631_v38 = vpop.f32.mrf.mxu0 }
 0x4ab   : > { %v3633_v57 = vpop.f32.mrf.mxu0 }
 0x4ad   : > { %v3635_v11 = vpop.f32.mrf.mxu0 }
 0x4af   : > { %v11703_v52 = vpop.f32.mrf.mxu0 }
 0x4b0   : > { %13311 = vst [vmem:[#allocation14_spill] sm:$0xff] %v11703_v52 }
 0x4b1   : > { %v3641_v17 = vpop.f32.mrf.mxu0 }
 0x4b3   : > { %v3643_v33 = vpop.f32.mrf.mxu0 }
 0x4b5   : > { %v3645_v0 = vpop.f32.mrf.mxu0 }
 0x4b7   : > { %v11705_v40 = vpop.f32.mrf.mxu0 }
 0x4b8   : > { %13312 = vst [vmem:[#allocation20_spill] sm:$0xff] %v11705_v40 }
 0x4b9   : > { %v3651_v43 = vpop.f32.mrf.mxu0 }
 0x4bb   : > { %v11707_v37 = vpop.f32.mrf.mxu0 }
 0x4bd   : > { %v11709_v62 = vpop.f32.mrf.mxu0 }
 0x4bf   : > { %v11711_v48 = vpop.f32.mrf.mxu0 }
 0x4c1   : > { %v11713_v12 = vpop.f32.mrf.mxu0 }
 0x4c3   : > { %v11715_v36 = vpop.f32.mrf.mxu0 }
 0x4c5   : > { %v11717_v35 = vpop.f32.mrf.mxu0 }
 0x4c7   : > { %v11719_v60 = vpop.f32.mrf.mxu0 }
 0x4c9   : > { %v11721_v23 = vpop.f32.mrf.mxu0 }
 0x4cb   : > { %v11723_v18 = vpop.f32.mrf.mxu0 }
 0x4cd   : > { %v11725_v45 = vpop.f32.mrf.mxu0 }
 0x4cf   : > { %v11727_v46 = vpop.f32.mrf.mxu0 }
 0x4d1   : > { %v11729_v59 = vpop.f32.mrf.mxu0 }
 0x4d3   : > { %v11731_v54 = vpop.f32.mrf.mxu0 }
 0x4d5   : > { %v11733_v30 = vpop.f32.mrf.mxu0 }
 0x4d7   : > { %v11735_v10 = vpop.f32.mrf.mxu0 }
 0x4d9   : > { %v11737_v39 = vpop.f32.mrf.mxu0 }
 0x4db   : > { %v11739_v31 = vpop.f32.mrf.mxu0 }
 0x4dd   : > { %v11741_v7 = vpop.f32.mrf.mxu0 }
 0x4df   : > { %v11743_v55 = vpop.f32.mrf.mxu0 }
 0x4e1   : > { %v11745_v53 = vpop.f32.mrf.mxu0 }
 0x4e3   : > { %v3703_v56 = vpop.f32.mrf.mxu0 }
 0x4e5   : > { %v3705_v16 = vpop.f32.mrf.mxu0 }
 0x4e7   : > { %v3707_v41 = vpop.f32.mrf.mxu0 }
 0x4e9   : > { %v11749_v32 = vpop.f32.mrf.mxu0 }
 0x4ea   : > { %v3744_v51 = vpop.f32.mrf.mxu1 }
 0x4eb   : > { %v11747_v28 = vadd.f32 %v3744_v51, %v3631_v38  ;;  %v11755_v15 = vpop.f32.mrf.mxu0 }
 0x4ec   : > { %v3746_v61 = vpop.f32.mrf.mxu1 }
 0x4ed   : > { %13313 = vst [vmem:[#allocation18_spill] sm:$0xff] %v11747_v28  ;;  %v11751_v24 = vadd.f32 %v3746_v61, %v3633_v57  ;;  %v11763_v14 = vpop.f32.mrf.mxu0 }
 0x4ee   : > { %v3748_v8 = vpop.f32.mrf.mxu1 }
 0x4ef   : > { %13314 = vst [vmem:[#allocation15_spill] sm:$0xff] %v11751_v24  ;;  %v11753_v4 = vadd.f32 %v3748_v8, %v3635_v11  ;;  %v11769_v21 = vpop.f32.mrf.mxu0 }
 0x4f0   : > { %v11757_v63 = vpop.f32.mrf.mxu1  ;;  %13320 = vst [vmem:[#allocation23_spill] sm:$0xff] %v11769_v21 }
 0x4f1   : > { %13315 = vst [vmem:[#allocation13_spill] sm:$0xff] %v11753_v4  ;;  %13316 = vst [vmem:[#allocation30_spill] sm:$0xff] %v11757_v63  ;;  %v11777_v5 = vpop.f32.mrf.mxu0 }
 0x4f2   : > { %v3754_v49 = vpop.f32.mrf.mxu1 }
 0x4f3   : > { %v11761_v6 = vadd.f32 %v3754_v49, %v3641_v17  ;;  %v11783_v42 = vpop.f32.mrf.mxu0 }
 0x4f4   : > { %v3756_v9 = vpop.f32.mrf.mxu1 }
 0x4f5   : > { %13317 = vst [vmem:[#allocation25_spill] sm:$0xff] %v11761_v6  ;;  %v11765_v19 = vadd.f32 %v3756_v9, %v3643_v33  ;;  %v11789_v13 = vpop.f32.mrf.mxu0 }
 0x4f6   : > { %v3758_v29 = vpop.f32.mrf.mxu1 }
 0x4f7   : > { %13318 = vst [vmem:[#allocation26_spill] sm:$0xff] %v11765_v19  ;;  %v11767_v1 = vadd.f32 %v3758_v29, %v3645_v0  ;;  %v11795_v38 = vpop.f32.mrf.mxu0 }
 0x4f8   : > { %v11771_v3 = vpop.f32.mrf.mxu1  ;;  %13324 = vst [vmem:[#allocation22_spill] sm:$0xff] %v11795_v38 }
 0x4f9   : > { %13319 = vst [vmem:[#allocation28_spill] sm:$0xff] %v11767_v1  ;;  %13321 = vst [vmem:[#allocation29_spill] sm:$0xff] %v11771_v3  ;;  %v11801_v17 = vpop.f32.mrf.mxu0 }
 0x4fa   : > { %v3764_v47 = vpop.f32.mrf.mxu1 }
 0x4fb   : > { %v11775_v50 = vadd.f32 %v3764_v47, %v3651_v43  ;;  %v11803_v43 = vpop.f32.mrf.mxu0 }
 0x4fc   : > { %v11779_v34 = vpop.f32.mrf.mxu1  ;;  %13325 = vst [vmem:[#allocation21_spill] sm:$0xff] %v11803_v43 }
 0x4fd   : > { %13322 = vst [vmem:[#allocation27_spill] sm:$0xff] %v11775_v50  ;;  %v11805_v8 = vpop.f32.mrf.mxu0 }
 0x4fe   : > { %v11781_v27 = vpop.f32.mrf.mxu1  ;;  %13326 = vst [vmem:[#allocation16_spill] sm:$0xff] %v11805_v8 }
 0x4ff   : > { %13323 = vst [vmem:[#allocation24_spill] sm:$0xff] %v11781_v27  ;;  %v11807_v29 = vpop.f32.mrf.mxu0 }
 0x500   : > { %v11785_v2 = vpop.f32.mrf.mxu1  ;;  %13327 = vst [vmem:[#allocation17_spill] sm:$0xff] %v11807_v29 }
 0x501   : > { %v11809_v22 = vpop.f32.mrf.mxu0 }
 0x502   : > { %v11787_v20 = vpop.f32.mrf.mxu1  ;;  %13328 = vst [vmem:[#allocation19_spill] sm:$0xff] %v11809_v22 }
 0x503   : > { %v11811_v25 = vpop.f32.mrf.mxu0 }
 0x504   : > { %v11791_v58 = vpop.f32.mrf.mxu1  ;;  %13329 = vst [vmem:[#allocation31_spill] sm:$0xff] %v11811_v25 }
 0x505   : > { %v11813_v6 = vpop.f32.mrf.mxu0 }
 0x506   : > { %v11793_v44 = vpop.f32.mrf.mxu1  ;;  %13330 = vst [vmem:[#allocation32_spill] sm:$0xff] %v11813_v6 }
 0x507   : > { %v11815_v24 = vpop.f32.mrf.mxu0 }
 0x508   : > { %v11797_v57 = vpop.f32.mrf.mxu1  ;;  %13331 = vst [vmem:[#allocation33_spill] sm:$0xff] %v11815_v24 }
 0x509   : > { %v11823_v6 = vpop.f32.mrf.mxu0 }
 0x50a   : > { %v11799_v11 = vpop.f32.mrf.mxu1 }
 0x50c   : > { %v3786_v33 = vpop.f32.mrf.mxu1 }
 0x50e   : > { %v3788_v0 = vpop.f32.mrf.mxu1 }
 0x510   : > { %v3790_v51 = vpop.f32.mrf.mxu1 }
 0x512   : > { %v3794_v61 = vpop.f32.mrf.mxu1 }
 0x514   : > { %v3796_v49 = vpop.f32.mrf.mxu1 }
 0x516   : > { %v3798_v9 = vpop.f32.mrf.mxu1 }
 0x518   : > { %v3800_v47 = vpop.f32.mrf.mxu1 }
 0x51a   : > { %v3804_v26 = vpop.f32.mrf.mxu1 }
 0x51c   : > { %v3806_v21 = vpop.f32.mrf.mxu1 }
 0x51d   : > { %v3807_v3 = vadd.f32 %v3806_v21, %v11739_v31 }
 0x51e   : > { %v3808_v38 = vpop.f32.mrf.mxu1 }
 0x51f   : > { %v3809_v27 = vadd.f32 %v3808_v38, %v11741_v7  ;;  %v11835_v7 = vpop.f32.mrf.mxu0 }
 0x520   : > { %v3810_v28 = vpop.f32.mrf.mxu1 }
 0x521   : > { %v3811_v29 = vadd.f32 %v3810_v28, %v11743_v55  ;;  %v3799_v28 = vadd.f32 %v3798_v9, %v11733_v30  ;;  %v3789_v30 = vadd.f32 %v3788_v0, %v11725_v45  ;;  %v13334_v0 = vld [vmem:[#allocation29_spill] sm:$0xff] }
 0x522   : > { %v3814_v4 = vpop.f32.mrf.mxu1 }
 0x523   : > { %v3815_v22 = vadd.f32 %v3814_v4, %v11745_v53  ;;  %v4074_v55 = vpack.c.bf16 %v3811_v29, %v3807_v3  ;;  %v3805_v53 = vadd.f32 %v3804_v26, %v11737_v39  ;;  %v3791_v4 = vadd.f32 %v3790_v51, %v11727_v46  ;;  %v11849_v26 = vpop.f32.mrf.mxu0 }
 0x524   : > { %v3816_v43 = vpop.f32.mrf.mxu1 }
 0x525   : > { %v3817_v63 = vadd.f32 %v3816_v43, %v3703_v56 }
 0x526   : > { %v3818_v1 = vpop.f32.mrf.mxu1 }
 0x527   : > { %v3819_v8 = vadd.f32 %v3818_v1, %v3705_v16  ;;  %v3801_v1 = vadd.f32 %v3800_v47, %v11735_v10  ;;  %v4073_v10 = vpack.c.bf16 %v3809_v27, %v3805_v53 }
 0x528   : > { %v3820_v19 = vpop.f32.mrf.mxu1 }
 0x529   : > { %v3821_v52 = vadd.f32 %v3820_v19, %v3707_v41  ;;  %v4077_v24 = vpack.c.bf16 %v3819_v8, %v3815_v22  ;;  %v3781_v19 = vadd.f32 %v11797_v57, %v11719_v60  ;;  %v3777_v22 = vadd.f32 %v11791_v58, %v11715_v36 }
 0x52a   : > { %v3970_v50 = vpop.f32.mrf.mxu1  ;;  %v3775_v36 = vadd.f32 %v11787_v20, %v11713_v12 }
 0x52b   : > { %v4078_v25 = vpack.c.bf16 %v3821_v52, %v3817_v63  ;;  %v11821_v40 = vadd.f32 %v3970_v50, %v11749_v32  ;;  %v3797_v52 = vadd.f32 %v3796_v49, %v11731_v54  ;;  %v3779_v50 = vadd.f32 %v11793_v44, %v11717_v35  ;;  %v13332_v44 = vld [vmem:[#allocation24_spill] sm:$0xff]  ;;  %v13338_v49 = vld [vmem:[#allocation26_spill] sm:$0xff] }
 0x52c   : > { %v3972_v16 = vpop.f32.mrf.mxu1  ;;  %v3767_v35 = vadd.f32 %v11779_v34, %v11707_v37  ;;  %v3769_v57 = vadd.f32 %v13332_v44, %v11709_v62  ;;  %v13335_v37 = vld [vmem:[#allocation27_spill] sm:$0xff]  ;;  %v13336_v62 = vld [vmem:[#allocation14_spill] sm:$0xff] }
 0x52d   : > { %v11828_v56 = vadd.f32 %v3972_v16, %v11755_v15  ;;  %4129 = vmatprep.subr.bf16.mxu0 %v4078_v25  ;;  %v4070_v25 = vpack.c.bf16 %v3801_v1, %v3797_v52  ;;  %v3787_v15 = vadd.f32 %v3786_v33, %v11723_v18  ;;  %v3785_v18 = vadd.f32 %v11799_v11, %v11721_v23  ;;  %v13333_v33 = vld [vmem:[#allocation20_spill] sm:$0xff]  ;;  %v13339_v1 = vld [vmem:[#allocation15_spill] sm:$0xff]  ;;  %v13341_v52 = vld [vmem:[#allocation25_spill] sm:$0xff] }
 0x52e   : > { %v3974_v31 = vpop.f32.mrf.mxu1  ;;  %4130 = vmatpush1.bf16.msra.mxu0 %v4077_v24  ;;  %v3795_v24 = vadd.f32 %v3794_v61, %v11729_v59  ;;  %v3771_v23 = vadd.f32 %v11785_v2, %v11711_v48  ;;  %v4061_v48 = vpack.c.bf16 %v3779_v50, %v3775_v36  ;;  %v3761_v12 = vadd.f32 %v13334_v0, %v13333_v33  ;;  %v13337_v61 = vld [vmem:[#allocation30_spill] sm:$0xff]  ;;  %v10191_v44 = vld [vmem:[#allocation6 + $0x84] ss:$16 sps:$4 sm:$0xff]  }
 0x52f   : > { %v11833_v41 = vadd.f32 %v3974_v31, %v11763_v14  ;;  %4131 = vmatprep.subr.bf16.mxu0 %v4074_v55  ;;  %v4066_v21 = vpack.c.bf16 %v3791_v4, %v3787_v15  ;;  %v4065_v60 = vpack.c.bf16 %v3789_v30, %v3785_v18  ;;  %v4057_v34 = vpack.c.bf16 %v3769_v57, %v13335_v37  ;;  %v13340_v31 = vld [vmem:[#allocation28_spill] sm:$0xff]  ;;  %v13343_v15 = vld [vmem:[#allocation13_spill] sm:$0xff]  ;;  %v13344_v30 = vld [vmem:[#allocation18_spill] sm:$0xff] }
 0x530   : > { %v11838_v32 = vpop.f32.mrf.mxu1  ;;  %v4069_v14 = vpack.c.bf16 %v3799_v28, %v3795_v24  ;;  %v4058_v20 = vpack.c.bf16 %v3771_v23, %v3767_v35  ;;  %v3751_v8 = vadd.f32 %v13337_v61, %v13336_v62  ;;  %v4054_v9 = vpack.c.bf16 %v3761_v12, %v13338_v49  ;;  %v11917_v24 = vld [vmem:[%s13205_s10] sm:$0xff]   ;;  %v11937_v36 = vld [vmem:[%s13205_s10 + $0x8] sm:$0xff]  }
 0x531   : > { %v13342_v28 = vpack.c.bf16 %v13340_v31, %v13341_v52  ;;  %v10183_v50 = vld [vmem:[#allocation6 + $0xc0] ss:$16 sps:$4 sm:$0xff]   ;;  %13347 = vst [vmem:[#allocation24_spill] sm:$0xff] %v11937_v36  ;;  %v10194_v12 = vld [vmem:[#allocation6 + $0x64] ss:$16 sps:$4 sm:$0xff]  }
 0x532   : > { %v3980_v54 = vpop.f32.mrf.mxu1  ;;  %4132 = vmatpush1.bf16.msra.mxu0 %v4073_v10  ;;  %v4050_v55 = vpack.c.bf16 %v3751_v8, %v13339_v1  ;;  %v10182_v10 = vld [vmem:[#allocation6 + $0xe4] ss:$16 sps:$4 sm:$0xff]   ;;  %v10186_v35 = vld [vmem:[#allocation6 + $0xa0] ss:$16 sps:$4 sm:$0xff]  }
 0x533   : > { %v11846_v63 = vadd.f32 %v3980_v54, %v11777_v5  ;;  %4133 = vmatprep.subr.bf16.mxu0 %v4070_v25  ;;  %v11865_v5 = vpop.f32.mrf.mxu0  ;;  %v10189_v0 = vld [vmem:[#allocation6 + $0x80] ss:$16 sps:$4 sm:$0xff]   ;;  %v10197_v8 = vld [vmem:[#allocation6 + $0x44] ss:$16 sps:$4 sm:$0xff]  }
 0x534   : > { %v3982_v46 = vpop.f32.mrf.mxu1  ;;  %v10192_v61 = vld [vmem:[#allocation6 + $0x60] ss:$16 sps:$4 sm:$0xff]   ;;  %v10200_v31 = vld [vmem:[#allocation6 + $0x24] ss:$16 sps:$4 sm:$0xff]  }
 0x535   : > { %v11854_v59 = vadd.f32 %v3982_v46, %v11783_v42  ;;  %v4062_v42 = vpack.c.bf16 %v3781_v19, %v3777_v22  ;;  %v11882_v2 = vpop.f32.mrf.mxu0  ;;  %v10180_v46 = vld [vmem:[#allocation6 + $0xe0] ss:$16 sps:$4 sm:$0xff]   ;;  %v10185_v19 = vld [vmem:[#allocation6 + $0xc4] ss:$16 sps:$4 sm:$0xff]   ;;  %v13346_v22 = vmov 0  }
 0x536   : > { %v3984_v3 = vpop.f32.mrf.mxu1  ;;  %4134 = vmatpush1.bf16.msra.mxu0 %v4069_v14  ;;  %v13345_v14 = vpack.c.bf16 %v13343_v15, %v13344_v30  ;;  %v10198_v30 = vld [vmem:[#allocation6 + $0x20] ss:$16 sps:$4 sm:$0xff]  }
 0x537   : > { %v11861_v45 = vadd.f32 %v3984_v3, %v11789_v13  ;;  %4135 = vmatprep.subr.bf16.mxu0 %v4066_v21 }
 0x538   : > { %v11867_v27 = vpop.f32.mrf.mxu1 }
 0x53a   : > { %v3990_v13 = vpop.f32.mrf.mxu1  ;;  %4136 = vmatpush1.bf16.msra.mxu0 %v4065_v60  ;;  %v10188_v60 = vld [vmem:[#allocation6 + $0xa4] ss:$16 sps:$4 sm:$0xff]  }
 0x53b   : > { %v11878_v58 = vadd.f32 %v3990_v13, %v11801_v17  ;;  %4137 = vmatprep.subr.bf16.mxu0 %v4062_v42  ;;  %v11891_v17 = vpop.f32.mrf.mxu0 }
 0x53c   : > { %v11884_v11 = vpop.f32.mrf.mxu1 }
 0x53d   : > { %v11900_v47 = vpop.f32.mrf.mxu0 }
 0x53e   : > { %v11888_v43 = vpop.f32.mrf.mxu1  ;;  %4138 = vmatpush1.bf16.msra.mxu0 %v4061_v48 }
 0x53f   : > { %4139 = vmatprep.subr.bf16.mxu0 %v4058_v20  ;;  %v11910_v4 = vpop.f32.mrf.mxu0 }
 0x540   : > { %v11893_v51 = vpop.f32.mrf.mxu1 }
 0x541   : > { %v11924_v21 = vpop.f32.mrf.mxu0 }
 0x542   : > { %v11898_v29 = vpop.f32.mrf.mxu1  ;;  %4140 = vmatpush1.bf16.msra.mxu0 %v4057_v34  ;;  %v11950_v34 = vld [vmem:[%s13205_s10 + $0x10] sm:$0xff]  }
 0x543   : > { %4141 = vmatprep.subr.bf16.mxu0 %v4054_v9  ;;  %v3919_v23 = vpop.f32.mrf.mxu0  ;;  %13348 = vst [vmem:[#allocation20_spill] sm:$0xff] %v11950_v34 }
 0x544   : > { %v11902_v16 = vpop.f32.mrf.mxu1 }
 0x545   : > { %v3921_v57 = vpop.f32.mrf.mxu0 }
 0x546   : > { %v11905_v53 = vpop.f32.mrf.mxu1  ;;  %4142 = vmatpush1.bf16.msra.mxu0 %v13342_v28 }
 0x547   : > { %4143 = vmatprep.subr.bf16.mxu0 %v4050_v55  ;;  %v3923_v20 = vpop.f32.mrf.mxu0  ;;  %v10195_v55 = vld [vmem:[#allocation6 + $0x40] ss:$16 sps:$4 sm:$0xff]  }
 0x548   : > { %v11912_v25 = vpop.f32.mrf.mxu1 }
 0x549   : > { %v3927_v49 = vpop.f32.mrf.mxu0 }
 0x54a   : > { %v11919_v54 = vpop.f32.mrf.mxu1  ;;  %4144 = vmatpush1.bf16.msra.mxu0 %v13345_v14  ;;  %v10203_v14 = vld [vmem:[#allocation6 + $0x4] ss:$16 sps:$4 sm:$0xff]  }
 0x54b   : > { %5187 = vmatprep.subr.bf16.mxu0 %v10182_v10  ;;  %v3929_v52 = vpop.f32.mrf.mxu0  ;;  %v11957_v10 = vld [vmem:[%s13205_s10 + $0x18] sm:$0xff]  }
 0x54c   : > { %v11926_v18 = vpop.f32.mrf.mxu1  ;;  %13349 = vst [vmem:[#allocation29_spill] sm:$0xff] %v11957_v10 }
 0x54d   : > { %4162 = vmatmul.mubr.bf16.vlgmr.msra.gmra.mxu0 %v11917_v24 }
 0x54e   : > { %v11929_v3 = vpop.f32.mrf.mxu1  ;;  %4171 = vmatprep.mubr.bf16.mxu0 %v13346_v22  ;;  %5188 = vmatpush1.bf16.msra.mxu0 %v10180_v46  ;;  %v3931_v46 = vpop.f32.mrf.mxu0 }
 0x54f   : > { %5189 = vmatprep.subr.bf16.mxu0 %v10185_v19 }
 0x550   : > { %v11932_v42 = vpop.f32.mrf.mxu1 }
 0x552   : > { %v11939_v13 = vpop.f32.mrf.mxu1  ;;  %5190 = vmatpush1.bf16.msra.mxu0 %v10183_v50 }
 0x553   : > { %5191 = vmatprep.subr.bf16.mxu0 %v10188_v60  ;;  %v10201_v60 = vld [vmem:[#allocation6] ss:$16 sps:$4 sm:$0xff]  }
 0x554   : > { %v11941_v48 = vpop.f32.mrf.mxu1 }
 0x555   : > { %4172 = vmatmul.mubr.bf16.gmra.mxu0 %v11937_v36  ;;  %v10209_v36 = vld [vmem:[#allocation6 + $0x1c4] ss:$16 sps:$4 sm:$0xff]  }
 0x556   : > { %v11944_v33 = vpop.f32.mrf.mxu1  ;;  %4181 = vmatprep.mubr.bf16.mxu0 %v13346_v22  ;;  %5192 = vmatpush1.bf16.msra.mxu0 %v10186_v35  ;;  %v10206_v35 = vld [vmem:[#allocation6 + $0x1e4] ss:$16 sps:$4 sm:$0xff]  }
 0x557   : > { %5193 = vmatprep.subr.bf16.mxu0 %v10191_v44  ;;  %v3933_v44 = vpop.f32.mrf.mxu0 }
 0x558   : > { %v4026_v37 = vpop.f32.mrf.mxu1 }
 0x55a   : > { %v4030_v62 = vpop.f32.mrf.mxu1  ;;  %5194 = vmatpush1.bf16.msra.mxu0 %v10189_v0 }
 0x55b   : > { %5195 = vmatprep.subr.bf16.mxu0 %v10194_v12 }
 0x55c   : > { %v4032_v9 = vpop.f32.mrf.mxu1 }
 0x55d   : > { %4182 = vmatmul.mubr.bf16.gmra.mxu0 %v11950_v34  ;;  %v4033_v38 = vadd.f32 %v4032_v9, %v3919_v23  ;;  %v10204_v34 = vld [vmem:[#allocation6 + $0x1e0] ss:$16 sps:$4 sm:$0xff]   ;;  %v4023_v23 = vadd.f32 %v11941_v48, %v11891_v17  ;;  %v4021_v17 = vadd.f32 %v11939_v13, %v11882_v2  ;;  %v4013_v48 = vadd.f32 %v11926_v18, %v11835_v7 }
 0x55e   : > { %v4034_v1 = vpop.f32.mrf.mxu1  ;;  %4191 = vmatprep.mubr.bf16.mxu0 %v13346_v22  ;;  %5196 = vmatpush1.bf16.msra.mxu0 %v10192_v61  ;;  %v4011_v2 = vadd.f32 %v11919_v54, %v11823_v6  ;;  %v13351_v7 = vld [vmem:[#allocation31_spill] sm:$0xff] }
 0x55f   : > { %5197 = vmatprep.subr.bf16.mxu0 %v10197_v8  ;;  %v4003_v18 = vadd.f32 %v11902_v16, %v13351_v7  ;;  %v12002_v6 = vld [vmem:[%s13205_s10 + $0x30] sm:$0xff]  }
 0x560   : > { %v4036_v28 = vpop.f32.mrf.mxu1  ;;  %v13354_v54 = vld [vmem:[#allocation19_spill] sm:$0xff] }
 0x561   : > { %v4037_v61 = vadd.f32 %v4036_v28, %v3923_v20  ;;  %v4031_v20 = vadd.f32 %v4030_v62, %v11924_v21  ;;  %v11979_v21 = vld [vmem:[%s13205_s10 + $0x28] sm:$0xff]   ;;  %v4001_v16 = vadd.f32 %v11898_v29, %v13354_v54  ;;  %v13358_v29 = vld [vmem:[#allocation23_spill] sm:$0xff]  ;;  %v12049_v54 = vld [vmem:[%s13206_s11] sm:$0xff] }
 0x562   : > { %v4040_v15 = vpop.f32.mrf.mxu1  ;;  %5198 = vmatpush1.bf16.msra.mxu0 %v10195_v55  ;;  %v10294_v7 = vld [vmem:[#allocation6 + $0x380] ss:$16 sps:$4 sm:$0xff]  }
 0x563   : > { %5199 = vmatprep.subr.bf16.mxu0 %v10200_v31  ;;  %v11964_v31 = vld [vmem:[%s13205_s10 + $0x20] sm:$0xff]   ;;  %v4041_v39 = vadd.f32 %v4040_v15, %v3927_v49 }
 0x564   : > { %v4042_v19 = vpop.f32.mrf.mxu1  ;;  %v10207_v49 = vld [vmem:[#allocation6 + $0x1c0] ss:$16 sps:$4 sm:$0xff]  }
 0x565   : > { %4192 = vmatmul.mubr.bf16.gmra.mxu0 %v11957_v10  ;;  %v4043_v8 = vadd.f32 %v4042_v19, %v3929_v52  ;;  %v13356_v19 = vld [vmem:[#allocation16_spill] sm:$0xff] }
 0x566   : > { %v4044_v50 = vpop.f32.mrf.mxu1  ;;  %4201 = vmatprep.mubr.bf16.mxu0 %v13346_v22  ;;  %5200 = vmatpush1.bf16.msra.mxu0 %v10198_v30  ;;  %v4035_v30 = vadd.f32 %v4034_v1, %v3921_v57  ;;  %v13353_v1 = vld [vmem:[#allocation17_spill] sm:$0xff] }
 0x567   : > { %5201 = vmatprep.subr.bf16.mxu0 %v10203_v14  ;;  %v4045_v0 = vadd.f32 %v4044_v50, %v3931_v46  ;;  %v4027_v46 = vadd.f32 %v4026_v37, %v11910_v4  ;;  %v4076_v50 = vpack.c.bf16 %v4037_v61, %v4033_v38  ;;  %v10212_v38 = vld [vmem:[#allocation6 + $0x1a4] ss:$16 sps:$4 sm:$0xff]   ;;  %v4017_v4 = vadd.f32 %v11932_v42, %v11865_v5  ;;  %v12021_v61 = vld [vmem:[%s13205_s10 + $0x38] sm:$0xff]  }
 0x568   : > { %v4046_v12 = vpop.f32.mrf.mxu1  ;;  %v4075_v57 = vpack.c.bf16 %v4035_v30, %v4031_v20  ;;  %v10215_v42 = vld [vmem:[#allocation6 + $0x184] ss:$16 sps:$4 sm:$0xff]   ;;  %v3997_v52 = vadd.f32 %v11893_v51, %v13353_v1 }
 0x569   : > { %v4047_v55 = vadd.f32 %v4046_v12, %v3933_v44  ;;  %v4079_v14 = vpack.c.bf16 %v4045_v0, %v4041_v39  ;;  %v4025_v39 = vadd.f32 %v11944_v33, %v11900_v47  ;;  %v4072_v37 = vpack.c.bf16 %v4027_v46, %v4023_v23  ;;  %v10210_v47 = vld [vmem:[#allocation6 + $0x1a0] ss:$16 sps:$4 sm:$0xff]   ;;  %v10227_v30 = vld [vmem:[#allocation6 + $0x104] ss:$16 sps:$4 sm:$0xff]  }
 0x56a   : > { %5202 = vmatpush1.bf16.msra.mxu0 %v10201_v60  ;;  %v13350_v33 = vld [vmem:[#allocation33_spill] sm:$0xff]  ;;  %v4068_v62 = vpack.c.bf16 %v4017_v4, %v4013_v48  ;;  %v3995_v60 = vadd.f32 %v11888_v43, %v13356_v19  ;;  %v3977_v12 = vadd.f32 %v11838_v32, %v13358_v29  ;;  %v13360_v32 = vpack.c.bf16 %v11833_v41, %v11821_v40  ;;  %v10233_v41 = vld [vmem:[#allocation6 + $0xec] ss:$16 sps:$4 sm:$0xff]  }
 0x56b   : > { %v4080_v10 = vpack.c.bf16 %v4047_v55, %v4043_v8  ;;  %5203 = vmatprep.subr.bf16.mxu0 %v10206_v35  ;;  %v4071_v5 = vpack.c.bf16 %v4025_v39, %v4021_v17  ;;  %v13357_v35 = vld [vmem:[#allocation22_spill] sm:$0xff]  ;;  %v13359_v8 = vpack.c.bf16 %v11861_v45, %v11846_v63  ;;  %v13361_v63 = vld [vmem:[#allocation24_spill] sm:$0xff]  ;;  %v10230_v40 = vld [vmem:[#allocation6 + $0x2e4] ss:$16 sps:$4 sm:$0xff]  }
 0x56c   : > { %v3987_v44 = vadd.f32 %v11867_v27, %v13357_v35  ;;  %v4052_v27 = vpack.c.bf16 %v3977_v12, %v11828_v56  ;;  %v10224_v56 = vld [vmem:[#allocation6 + $0x124] ss:$16 sps:$4 sm:$0xff]   ;;  %v10222_v55 = vld [vmem:[#allocation6 + $0x120] ss:$16 sps:$4 sm:$0xff]  }
 0x56d   : > { %4202 = vmatmul.mubr.bf16.gmra.mxu0 %v11964_v31  ;;  %4242 = vmatprep.subr.bf16.mxu1 %v4080_v10  ;;  %v13355_v10 = vld [vmem:[#allocation21_spill] sm:$0xff]  ;;  %v13362_v46 = vld [vmem:[#allocation20_spill] sm:$0xff] }
 0x56e   : > { %4243 = vmatpush1.bf16.msra.mxu1 %v4079_v14  ;;  %4211 = vmatprep.mubr.bf16.mxu0 %v13346_v22  ;;  %v3993_v15 = vadd.f32 %v11884_v11, %v13355_v10  ;;  %v4059_v11 = vpack.c.bf16 %v3995_v60, %v11878_v58  ;;  %v4056_v43 = vpack.c.bf16 %v3987_v44, %v11854_v59  ;;  %v10221_v59 = vld [vmem:[#allocation6 + $0x144] ss:$16 sps:$4 sm:$0xff]   ;;  %v10219_v58 = vld [vmem:[#allocation6 + $0x140] ss:$16 sps:$4 sm:$0xff]   ;;  %v12065_v60 = vld [vmem:[%s13206_s11 + $0x28] sm:$0xff] }
 0x56f   : > { %4244 = vmatprep.subr.bf16.mxu1 %v4076_v50  ;;  %5204 = vmatpush2.bf16.msra.mxu0 %v10204_v34  ;;  %v4007_v34 = vadd.f32 %v11912_v25, %v13350_v33  ;;  %v10218_v25 = vld [vmem:[#allocation6 + $0x164] ss:$16 sps:$4 sm:$0xff]   ;;  %v10225_v45 = vld [vmem:[#allocation6 + $0x100] ss:$16 sps:$4 sm:$0xff]  }
 0x570   : > { %5205 = vmatprep.subr.bf16.mxu0 %v10209_v36  ;;  %v4015_v36 = vadd.f32 %v11929_v3, %v11849_v26  ;;  %v10213_v26 = vld [vmem:[#allocation6 + $0x180] ss:$16 sps:$4 sm:$0xff]   ;;  %v4060_v0 = vpack.c.bf16 %v3997_v52, %v3993_v15  ;;  %v10236_v14 = vld [vmem:[#allocation6 + $0x2c4] ss:$16 sps:$4 sm:$0xff]  }
 0x571   : > { %v13352_v3 = vld [vmem:[#allocation32_spill] sm:$0xff]  ;;  %v4064_v28 = vpack.c.bf16 %v4007_v34, %v4003_v18  ;;  %v10242_v20 = vld [vmem:[#allocation6 + $0x2a4] ss:$16 sps:$4 sm:$0xff]  }
 0x572   : > { %4245 = vmatpush1.bf16.msra.mxu1 %v4075_v57  ;;  %v4005_v13 = vadd.f32 %v11905_v53, %v13352_v3  ;;  %v4067_v9 = vpack.c.bf16 %v4015_v36, %v4011_v2  ;;  %v10216_v53 = vld [vmem:[#allocation6 + $0x160] ss:$16 sps:$4 sm:$0xff]   ;;  %v10266_v48 = vld [vmem:[#allocation6 + $0x224] ss:$16 sps:$4 sm:$0xff]  }
 0x573   : > { %4246 = vmatprep.subr.bf16.mxu1 %v4072_v37  ;;  %5206 = vmatpush2.bf16.msra.mxu0 %v10207_v49  ;;  %v10234_v50 = vld [vmem:[#allocation6 + $0x2c0] ss:$16 sps:$4 sm:$0xff]   ;;  %v10248_v49 = vld [vmem:[#allocation6 + $0x284] ss:$16 sps:$4 sm:$0xff]  }
 0x574   : > { %5207 = vmatprep.subr.bf16.mxu0 %v10212_v38  ;;  %v4063_v51 = vpack.c.bf16 %v4005_v13, %v4001_v16  ;;  %v10240_v23 = vld [vmem:[#allocation6 + $0x2a0] ss:$16 sps:$4 sm:$0xff]   ;;  %v10254_v38 = vld [vmem:[#allocation6 + $0x264] ss:$16 sps:$4 sm:$0xff]   ;;  %v12054_v16 = vld [vmem:[%s13206_s11 + $0x8] sm:$0xff] }
 0x575   : > { %4212 = vmatmul.mubr.bf16.gmra.mxu0 %v11979_v21  ;;  %v13363_v39 = vld [vmem:[#allocation29_spill] sm:$0xff] }
 0x576   : > { %4247 = vmatpush1.bf16.msra.mxu1 %v4071_v5  ;;  %4221 = vmatprep.mubr.bf16.mxu0 %v13346_v22  ;;  %v10246_v57 = vld [vmem:[#allocation6 + $0x280] ss:$16 sps:$4 sm:$0xff]   ;;  %v10260_v37 = vld [vmem:[#allocation6 + $0x244] ss:$16 sps:$4 sm:$0xff]  }
 0x577   : > { %4248 = vmatprep.subr.bf16.mxu1 %v4068_v62  ;;  %5208 = vmatpush2.bf16.msra.mxu0 %v10210_v47  ;;  %v10252_v4 = vld [vmem:[#allocation6 + $0x260] ss:$16 sps:$4 sm:$0xff]   ;;  %v10272_v36 = vld [vmem:[#allocation6 + $0x204] ss:$16 sps:$4 sm:$0xff]  }
 0x578   : > { %5209 = vmatprep.subr.bf16.mxu0 %v10215_v42  ;;  %v10258_v17 = vld [vmem:[#allocation6 + $0x240] ss:$16 sps:$4 sm:$0xff]   ;;  %v10278_v42 = vld [vmem:[#allocation6 + $0x3e4] ss:$16 sps:$4 sm:$0xff]  }
 0x579   : > { %v10264_v47 = vld [vmem:[#allocation6 + $0x220] ss:$16 sps:$4 sm:$0xff]   ;;  %v10290_v62 = vld [vmem:[#allocation6 + $0x3a4] ss:$16 sps:$4 sm:$0xff]  }
 0x57a   : > { %4249 = vmatpush1.bf16.msra.mxu1 %v4067_v9  ;;  %v10270_v5 = vld [vmem:[#allocation6 + $0x200] ss:$16 sps:$4 sm:$0xff]   ;;  %v10302_v18 = vld [vmem:[#allocation6 + $0x364] ss:$16 sps:$4 sm:$0xff]  }
 0x57b   : > { %4250 = vmatprep.subr.bf16.mxu1 %v4064_v28  ;;  %5210 = vmatpush2.bf16.msra.mxu0 %v10213_v26  ;;  %v10276_v33 = vld [vmem:[#allocation6 + $0x3e0] ss:$16 sps:$4 sm:$0xff]   ;;  %v10308_v3 = vld [vmem:[#allocation6 + $0x344] ss:$16 sps:$4 sm:$0xff]   ;;  %v10326_v28 = vld [vmem:[#allocation6 + $0x2ec] ss:$16 sps:$4 sm:$0xff]  }
 0x57c   : > { %5211 = vmatprep.subr.bf16.mxu0 %v10218_v25  ;;  %v10282_v34 = vld [vmem:[#allocation6 + $0x3c0] ss:$16 sps:$4 sm:$0xff]   ;;  %v10314_v9 = vld [vmem:[#allocation6 + $0x324] ss:$16 sps:$4 sm:$0xff]  }
 0x57d   : > { %4222 = vmatmul.mubr.bf16.gmra.mxu0 %v12002_v6  ;;  %v10288_v2 = vld [vmem:[#allocation6 + $0x3a0] ss:$16 sps:$4 sm:$0xff]   ;;  %v10320_v1 = vld [vmem:[#allocation6 + $0x304] ss:$16 sps:$4 sm:$0xff]  }
 0x57e   : > { %4251 = vmatpush1.bf16.msra.mxu1 %v4063_v51  ;;  %4231 = vmatprep.mubr.bf16.mxu0 %v13346_v22  ;;  %v10300_v26 = vld [vmem:[#allocation6 + $0x360] ss:$16 sps:$4 sm:$0xff]  }
 0x57f   : > { %4252 = vmatprep.subr.bf16.mxu1 %v4060_v0  ;;  %5212 = vmatpush2.bf16.msra.mxu0 %v10216_v53  ;;  %v10306_v13 = vld [vmem:[#allocation6 + $0x340] ss:$16 sps:$4 sm:$0xff]  }
 0x580   : > { %5213 = vmatprep.subr.bf16.mxu0 %v10221_v59  ;;  %v10312_v25 = vld [vmem:[#allocation6 + $0x320] ss:$16 sps:$4 sm:$0xff]   ;;  %v10239_v59 = vld [vmem:[#allocation6 + $0xcc] ss:$16 sps:$4 sm:$0xff]  }
 0x581   : > { %v10318_v52 = vld [vmem:[#allocation6 + $0x300] ss:$16 sps:$4 sm:$0xff]  }
 0x582   : > { %4253 = vmatpush1.bf16.msra.mxu1 %v4059_v11  ;;  %v12059_v15 = vld [vmem:[%s13206_s11 + $0x20] sm:$0xff] }
 0x583   : > { %4254 = vmatprep.subr.bf16.mxu1 %v4056_v43  ;;  %5214 = vmatpush2.bf16.msra.mxu0 %v10219_v58  ;;  %v12077_v43 = vld [vmem:[%s13206_s11 + $0x40] sm:$0xff] }
 0x584   : > { %5215 = vmatprep.subr.bf16.mxu0 %v10224_v56 }
 0x585   : > { %4232 = vmatmul.mubr.bf16.gmra.mxu0 %v12021_v61 }
 0x586   : > { %4255 = vmatpush1.bf16.msra.mxu1 %v13359_v8 }
 0x587   : > { %4256 = vmatprep.subr.bf16.mxu1 %v4052_v27  ;;  %5216 = vmatpush2.bf16.msra.mxu0 %v10222_v55  ;;  %v12082_v27 = vld [vmem:[%s13206_s11 + $0x48] sm:$0xff] }
 0x588   : > { %5217 = vmatprep.subr.bf16.mxu0 %v10227_v30  ;;  %v12095_v55 = vld [vmem:[%s13206_s11 + $0x68] sm:$0xff] }
 0x58a   : > { %4257 = vmatpush1.bf16.msra.mxu1 %v13360_v32  ;;  %v12087_v32 = vld [vmem:[%s13206_s11 + $0x60] sm:$0xff] }
 0x58b   : > { %5218 = vmatpush2.bf16.msra.mxu0 %v10225_v45  ;;  %5300 = vmatprep.subr.bf16.mxu1 %v10230_v40  ;;  %v10237_v45 = vld [vmem:[#allocation6 + $0xc8] ss:$16 sps:$4 sm:$0xff]  }
 0x58c   : > { %5413 = vmatprep.subr.bf16.mxu0 %v10233_v41  ;;  %v10245_v41 = vld [vmem:[#allocation6 + $0xac] ss:$16 sps:$4 sm:$0xff]  }
 0x58d   : > { %4275 = vmatmul.mubr.bf16.vlgmr.msra.gmra.mxu1 %v11917_v24  ;;  %v10228_v24 = vld [vmem:[#allocation6 + $0x2e0] ss:$16 sps:$4 sm:$0xff]  }
 0x58e   : > { %4284 = vmatprep.mubr.bf16.mxu1 %v13346_v22  ;;  %5301 = vmatpush1.bf16.msra.mxu1 %v10228_v24 }
 0x58f   : > { %5302 = vmatprep.subr.bf16.mxu1 %v10236_v14 }
 0x592   : > { %5303 = vmatpush1.bf16.msra.mxu1 %v10234_v50 }
 0x593   : > { %5304 = vmatprep.subr.bf16.mxu1 %v10242_v20  ;;  %v10243_v20 = vld [vmem:[#allocation6 + $0xa8] ss:$16 sps:$4 sm:$0xff]  }
 0x595   : > { %4285 = vmatmul.mubr.bf16.gmra.mxu1 %v13361_v63 }
 0x596   : > { %4294 = vmatprep.mubr.bf16.mxu1 %v13346_v22  ;;  %5305 = vmatpush1.bf16.msra.mxu1 %v10240_v23 }
 0x597   : > { %5306 = vmatprep.subr.bf16.mxu1 %v10248_v49  ;;  %v10251_v49 = vld [vmem:[#allocation6 + $0x8c] ss:$16 sps:$4 sm:$0xff]  }
 0x59a   : > { %5307 = vmatpush1.bf16.msra.mxu1 %v10246_v57 }
 0x59b   : > { %5308 = vmatprep.subr.bf16.mxu1 %v10254_v38 }
 0x59d   : > { %4295 = vmatmul.mubr.bf16.gmra.mxu1 %v13362_v46 }
 0x59e   : > { %4304 = vmatprep.mubr.bf16.mxu1 %v13346_v22  ;;  %5309 = vmatpush1.bf16.msra.mxu1 %v10252_v4 }
 0x59f   : > { %5310 = vmatprep.subr.bf16.mxu1 %v10260_v37  ;;  %v10249_v37 = vld [vmem:[#allocation6 + $0x88] ss:$16 sps:$4 sm:$0xff]  }
 0x5a2   : > { %5311 = vmatpush1.bf16.msra.mxu1 %v10258_v17 }
 0x5a3   : > { %5312 = vmatprep.subr.bf16.mxu1 %v10266_v48  ;;  %v10257_v48 = vld [vmem:[#allocation6 + $0x6c] ss:$16 sps:$4 sm:$0xff]  }
 0x5a5   : > { %4305 = vmatmul.mubr.bf16.gmra.mxu1 %v13363_v39 }
 0x5a6   : > { %4314 = vmatprep.mubr.bf16.mxu1 %v13346_v22  ;;  %5313 = vmatpush1.bf16.msra.mxu1 %v10264_v47 }
 0x5a7   : > { %5314 = vmatprep.subr.bf16.mxu1 %v10272_v36 }
 0x5aa   : > { %5315 = vmatpush1.bf16.msra.mxu1 %v10270_v5 }
 0x5ab   : > { %5316 = vmatprep.subr.bf16.mxu1 %v10278_v42 }
 0x5ad   : > { %4315 = vmatmul.mubr.bf16.gmra.mxu1 %v11964_v31  ;;  %v10284_v31 = vld [vmem:[#allocation6 + $0x3c4] ss:$16 sps:$4 sm:$0xff]  }
 0x5ae   : > { %4324 = vmatprep.mubr.bf16.mxu1 %v13346_v22  ;;  %5317 = vmatpush2.bf16.msra.mxu1 %v10276_v33  ;;  %v10255_v33 = vld [vmem:[#allocation6 + $0x68] ss:$16 sps:$4 sm:$0xff]  }
 0x5af   : > { %5318 = vmatprep.subr.bf16.mxu1 %v10284_v31 }
 0x5b2   : > { %5319 = vmatpush2.bf16.msra.mxu1 %v10282_v34  ;;  %v10263_v34 = vld [vmem:[#allocation6 + $0x4c] ss:$16 sps:$4 sm:$0xff]  }
 0x5b3   : > { %5320 = vmatprep.subr.bf16.mxu1 %v10290_v62 }
 0x5b5   : > { %4325 = vmatmul.mubr.bf16.gmra.mxu1 %v11979_v21  ;;  %v10296_v21 = vld [vmem:[#allocation6 + $0x384] ss:$16 sps:$4 sm:$0xff]  }
 0x5b6   : > { %4334 = vmatprep.mubr.bf16.mxu1 %v13346_v22  ;;  %5321 = vmatpush2.bf16.msra.mxu1 %v10288_v2 }
 0x5b7   : > { %5322 = vmatprep.subr.bf16.mxu1 %v10296_v21 }
 0x5ba   : > { %5323 = vmatpush2.bf16.msra.mxu1 %v10294_v7 }
 0x5bb   : > { %5324 = vmatprep.subr.bf16.mxu1 %v10302_v18  ;;  %v10261_v18 = vld [vmem:[#allocation6 + $0x48] ss:$16 sps:$4 sm:$0xff]  }
 0x5bd   : > { %4335 = vmatmul.mubr.bf16.gmra.mxu1 %v12002_v6 }
 0x5be   : > { %4344 = vmatprep.mubr.bf16.mxu1 %v13346_v22  ;;  %5325 = vmatpush2.bf16.msra.mxu1 %v10300_v26 }
 0x5bf   : > { %5326 = vmatprep.subr.bf16.mxu1 %v10308_v3  ;;  %v10269_v3 = vld [vmem:[#allocation6 + $0x2c] ss:$16 sps:$4 sm:$0xff]  }
 0x5c2   : > { %5327 = vmatpush2.bf16.msra.mxu1 %v10306_v13 }
 0x5c3   : > { %5328 = vmatprep.subr.bf16.mxu1 %v10314_v9 }
 0x5c5   : > { %4345 = vmatmul.mubr.bf16.gmra.mxu1 %v12021_v61  ;;  %v10231_v61 = vld [vmem:[#allocation6 + $0xe8] ss:$16 sps:$4 sm:$0xff]  }
 0x5c6   : > { %5329 = vmatpush2.bf16.msra.mxu1 %v10312_v25 }
 0x5c7   : > { %5330 = vmatprep.subr.bf16.mxu1 %v10320_v1 }
 0x5ca   : > { %5331 = vmatpush2.bf16.msra.mxu1 %v10318_v52  ;;  %v10267_v52 = vld [vmem:[#allocation6 + $0x28] ss:$16 sps:$4 sm:$0xff]  }
 0x5cb   : > { %5526 = vmatprep.subr.bf16.mxu1 %v10326_v28 }
 0x60d   : > { %v4163_v6 = vpop.f32.mrf.mxu0 }
 0x60e   : > { %v4164_v53 = vadd.f32 %v4163_v6, %v12049_v54  ;;  %v10275_v6 = vld [vmem:[#allocation6 + $0xc] ss:$16 sps:$4 sm:$0xff]  }
 0x60f   : > { %v4165_v10 = vpop.f32.mrf.mxu0 }
 0x610   : > { %v4166_v51 = vadd.f32 %v4165_v10, %v12054_v16 }
 0x611   : > { %v4167_v19 = vpop.f32.mrf.mxu0 }
 0x612   : > { %v4168_v35 = vadd.f32 %v4167_v19, %v12059_v15 }
 0x613   : > { %v4169_v44 = vpop.f32.mrf.mxu0 }
 0x614   : > { %v4170_v0 = vadd.f32 %v4169_v44, %v12065_v60  ;;  %v12070_v11 = vpack.c.bf16 %v4168_v35, %v4164_v53  ;;  %v10273_v35 = vld [vmem:[#allocation6 + $0x8] ss:$16 sps:$4 sm:$0xff]  }
 0x615   : > { %v4173_v29 = vpop.f32.mrf.mxu0 }
 0x616   : > { %v12072_v12 = vpack.c.bf16 %v4170_v0, %v4166_v51  ;;  %v4174_v58 = vadd.f32 %v4173_v29, %v12077_v43  ;;  %v10281_v0 = vld [vmem:[#allocation6 + $0x1ec] ss:$16 sps:$4 sm:$0xff]  }
 0x617   : > { %v4175_v8 = vpop.f32.mrf.mxu0 }
 0x618   : > { %5219 = vmatprep.mubr.bf16.mxu0 %v12072_v12  ;;  %v4176_v30 = vadd.f32 %v4175_v8, %v12082_v27 }
 0x619   : > { %v4177_v56 = vpop.f32.mrf.mxu0  ;;  %5220 = vmatmul.mubr.bf16.vlgmr.msra.gmra.mxu0 %v12070_v11 }
 0x61a   : > { %v4178_v63 = vadd.f32 %v4177_v56, %v12087_v32  ;;  %5414 = vmatpush1.bf16.msra.mxu0 %v10231_v61 }
 0x61b   : > { %v4179_v40 = vpop.f32.mrf.mxu0  ;;  %5415 = vmatprep.subr.bf16.mxu0 %v10239_v59 }
 0x61c   : > { %v4180_v24 = vadd.f32 %v4179_v40, %v12095_v55  ;;  %v12100_v14 = vpack.c.bf16 %v4178_v63, %v4174_v58  ;;  %v10279_v58 = vld [vmem:[#allocation6 + $0x1e8] ss:$16 sps:$4 sm:$0xff]  }
 0x61d   : > { %v4183_v46 = vpop.f32.mrf.mxu0 }
 0x61e   : > { %v12102_v50 = vpack.c.bf16 %v4180_v24, %v4176_v30  ;;  %5416 = vmatpush1.bf16.msra.mxu0 %v10237_v45  ;;  %v4184_v39 = vadd.f32 %v4183_v46, %v12049_v54  ;;  %v10287_v30 = vld [vmem:[#allocation6 + $0x1cc] ss:$16 sps:$4 sm:$0xff]   ;;  %v10285_v24 = vld [vmem:[#allocation6 + $0x1c8] ss:$16 sps:$4 sm:$0xff]  }
 0x61f   : > { %v4185_v23 = vpop.f32.mrf.mxu0  ;;  %5417 = vmatprep.subr.bf16.mxu0 %v10245_v41 }
 0x620   : > { %5229 = vmatprep.mubr.bf16.mxu0 %v12102_v50  ;;  %v4186_v38 = vadd.f32 %v4185_v23, %v12054_v16 }
 0x621   : > { %v4187_v57 = vpop.f32.mrf.mxu0  ;;  %5230 = vmatmul.mubr.bf16.gmra.mxu0 %v12100_v14 }
 0x622   : > { %v4188_v4 = vadd.f32 %v4187_v57, %v12059_v15  ;;  %5418 = vmatpush1.bf16.msra.mxu0 %v10243_v20  ;;  %v10293_v20 = vld [vmem:[#allocation6 + $0x1ac] ss:$16 sps:$4 sm:$0xff]  }
 0x623   : > { %v4189_v17 = vpop.f32.mrf.mxu0  ;;  %5419 = vmatprep.subr.bf16.mxu0 %v10251_v49 }
 0x624   : > { %v4190_v47 = vadd.f32 %v4189_v17, %v12065_v60  ;;  %v12110_v36 = vpack.c.bf16 %v4188_v4, %v4184_v39 }
 0x625   : > { %v4193_v5 = vpop.f32.mrf.mxu0 }
 0x626   : > { %v12112_v42 = vpack.c.bf16 %v4190_v47, %v4186_v38  ;;  %5420 = vmatpush1.bf16.msra.mxu0 %v10249_v37  ;;  %v4194_v62 = vadd.f32 %v4193_v5, %v12077_v43  ;;  %v10291_v38 = vld [vmem:[#allocation6 + $0x1a8] ss:$16 sps:$4 sm:$0xff]   ;;  %v10299_v37 = vld [vmem:[#allocation6 + $0x18c] ss:$16 sps:$4 sm:$0xff]  }
 0x627   : > { %v4195_v31 = vpop.f32.mrf.mxu0  ;;  %5421 = vmatprep.subr.bf16.mxu0 %v10257_v48 }
 0x628   : > { %5239 = vmatprep.mubr.bf16.mxu0 %v12112_v42  ;;  %v4196_v21 = vadd.f32 %v4195_v31, %v12082_v27 }
 0x629   : > { %v4197_v2 = vpop.f32.mrf.mxu0  ;;  %5240 = vmatmul.mubr.bf16.gmra.mxu0 %v12110_v36 }
 0x62a   : > { %v4198_v7 = vadd.f32 %v4197_v2, %v12087_v32  ;;  %5422 = vmatpush1.bf16.msra.mxu0 %v10255_v33  ;;  %v10297_v33 = vld [vmem:[#allocation6 + $0x188] ss:$16 sps:$4 sm:$0xff]  }
 0x62b   : > { %v4199_v26 = vpop.f32.mrf.mxu0  ;;  %5423 = vmatprep.subr.bf16.mxu0 %v10263_v34  ;;  %v10305_v34 = vld [vmem:[#allocation6 + $0x16c] ss:$16 sps:$4 sm:$0xff]  }
 0x62c   : > { %v4200_v13 = vadd.f32 %v4199_v26, %v12095_v55  ;;  %v12120_v9 = vpack.c.bf16 %v4198_v7, %v4194_v62  ;;  %v10311_v26 = vld [vmem:[#allocation6 + $0x14c] ss:$16 sps:$4 sm:$0xff]  }
 0x62d   : > { %v4203_v25 = vpop.f32.mrf.mxu0 }
 0x62e   : > { %v12122_v1 = vpack.c.bf16 %v4200_v13, %v4196_v21  ;;  %5424 = vmatpush1.bf16.msra.mxu0 %v10261_v18  ;;  %v4204_v10 = vadd.f32 %v4203_v25, %v12049_v54  ;;  %v10309_v13 = vld [vmem:[#allocation6 + $0x148] ss:$16 sps:$4 sm:$0xff]  }
 0x62f   : > { %v4205_v28 = vpop.f32.mrf.mxu0  ;;  %5425 = vmatprep.subr.bf16.mxu0 %v10269_v3 }
 0x630   : > { %5249 = vmatprep.mubr.bf16.mxu0 %v12122_v1  ;;  %v4206_v19 = vadd.f32 %v4205_v28, %v12054_v16 }
 0x631   : > { %v4207_v53 = vpop.f32.mrf.mxu0  ;;  %5250 = vmatmul.mubr.bf16.gmra.mxu0 %v12120_v9 }
 0x632   : > { %v4208_v51 = vadd.f32 %v4207_v53, %v12059_v15  ;;  %5426 = vmatpush1.bf16.msra.mxu0 %v10267_v52  ;;  %v10317_v52 = vld [vmem:[#allocation6 + $0x12c] ss:$16 sps:$4 sm:$0xff]  }
 0x633   : > { %v4209_v44 = vpop.f32.mrf.mxu0  ;;  %5427 = vmatprep.subr.bf16.mxu0 %v10275_v6 }
 0x634   : > { %v4210_v29 = vadd.f32 %v4209_v44, %v12065_v60  ;;  %v12130_v61 = vpack.c.bf16 %v4208_v51, %v4204_v10  ;;  %v10323_v51 = vld [vmem:[#allocation6 + $0x10c] ss:$16 sps:$4 sm:$0xff]   ;;  %v12184_v44 = vld [vmem:[%s13206_s11 + $0x10] sm:$0xff] }
 0x635   : > { %v4213_v8 = vpop.f32.mrf.mxu0 }
 0x636   : > { %v12132_v59 = vpack.c.bf16 %v4210_v29, %v4206_v19  ;;  %5428 = vmatpush1.bf16.msra.mxu0 %v10273_v35  ;;  %v4214_v63 = vadd.f32 %v4213_v8, %v12077_v43  ;;  %v12179_v35 = vld [vmem:[%s13206_s11 + $0x38] sm:$0xff] }
 0x637   : > { %v4215_v56 = vpop.f32.mrf.mxu0  ;;  %5429 = vmatprep.subr.bf16.mxu0 %v10281_v0  ;;  %v10321_v0 = vld [vmem:[#allocation6 + $0x108] ss:$16 sps:$4 sm:$0xff]  }
 0x638   : > { %5259 = vmatprep.mubr.bf16.mxu0 %v12132_v59  ;;  %v4216_v40 = vadd.f32 %v4215_v56, %v12082_v27 }
 0x639   : > { %v4217_v45 = vpop.f32.mrf.mxu0  ;;  %5260 = vmatmul.mubr.bf16.gmra.mxu0 %v12130_v61 }
 0x63a   : > { %v4218_v41 = vadd.f32 %v4217_v45, %v12087_v32  ;;  %5430 = vmatpush2.bf16.msra.mxu0 %v10279_v58 }
 0x63b   : > { %v4219_v46 = vpop.f32.mrf.mxu0  ;;  %5431 = vmatprep.subr.bf16.mxu0 %v10287_v30 }
 0x63c   : > { %v4220_v23 = vadd.f32 %v4219_v46, %v12095_v55  ;;  %v12140_v49 = vpack.c.bf16 %v4218_v41, %v4214_v63  ;;  %v12199_v46 = vld [vmem:[%s13206_s11 + $0x70] sm:$0xff] }
 0x63d   : > { %v4223_v39 = vpop.f32.mrf.mxu0 }
 0x63e   : > { %v12142_v57 = vpack.c.bf16 %v4220_v23, %v4216_v40  ;;  %5432 = vmatpush2.bf16.msra.mxu0 %v10285_v24  ;;  %v4224_v17 = vadd.f32 %v4223_v39, %v12049_v54  ;;  %v10303_v54 = vld [vmem:[#allocation6 + $0x168] ss:$16 sps:$4 sm:$0xff]  }
 0x63f   : > { %v4225_v4 = vpop.f32.mrf.mxu0  ;;  %5433 = vmatprep.subr.bf16.mxu0 %v10293_v20  ;;  %v10324_v40 = vld [vmem:[#allocation6 + $0x2e8] ss:$16 sps:$4 sm:$0xff]  }
 0x640   : > { %5269 = vmatprep.mubr.bf16.mxu0 %v12142_v57  ;;  %v4226_v47 = vadd.f32 %v4225_v4, %v12054_v16  ;;  %v12204_v20 = vld [vmem:[%s13206_s11 + $0x58] sm:$0xff] }
 0x641   : > { %v4227_v48 = vpop.f32.mrf.mxu0  ;;  %5270 = vmatmul.mubr.bf16.gmra.mxu0 %v12140_v49  ;;  %v12211_v39 = vld [vmem:[%s13206_s11 + $0x78] sm:$0xff] }
 0x642   : > { %v4228_v5 = vadd.f32 %v4227_v48, %v12059_v15  ;;  %5434 = vmatpush2.bf16.msra.mxu0 %v10291_v38  ;;  %v12216_v38 = vld [vmem:[%s13206_s11 + $0x50] sm:$0xff]  ;;  %v10327_v4 = vld [vmem:[#allocation6 + $0x2c8] ss:$16 sps:$4 sm:$0xff]   ;;  %v10332_v48 = vld [vmem:[#allocation6 + $0x2ac] ss:$16 sps:$4 sm:$0xff]  }
 0x643   : > { %v4229_v31 = vpop.f32.mrf.mxu0  ;;  %5435 = vmatprep.subr.bf16.mxu0 %v10299_v37 }
 0x644   : > { %v4230_v62 = vadd.f32 %v4229_v31, %v12065_v60  ;;  %v12150_v2 = vpack.c.bf16 %v4228_v5, %v4224_v17 }
 0x645   : > { %v4233_v21 = vpop.f32.mrf.mxu0 }
 0x646   : > { %v12152_v7 = vpack.c.bf16 %v4230_v62, %v4226_v47  ;;  %5436 = vmatpush2.bf16.msra.mxu0 %v10297_v33  ;;  %v4234_v16 = vadd.f32 %v4233_v21, %v12077_v43  ;;  %v10315_v43 = vld [vmem:[#allocation6 + $0x128] ss:$16 sps:$4 sm:$0xff]   ;;  %v10335_v21 = vld [vmem:[#allocation6 + $0x28c] ss:$16 sps:$4 sm:$0xff]  }
 0x647   : > { %v4235_v18 = vpop.f32.mrf.mxu0  ;;  %5437 = vmatprep.subr.bf16.mxu0 %v10305_v34  ;;  %v10330_v34 = vld [vmem:[#allocation6 + $0x2a8] ss:$16 sps:$4 sm:$0xff]  }
 0x648   : > { %5279 = vmatprep.mubr.bf16.mxu0 %v12152_v7  ;;  %v4236_v3 = vadd.f32 %v4235_v18, %v12082_v27  ;;  %v12168_v27 = vld [vmem:[%s13206_s11 + $0x30] sm:$0xff]  ;;  %v10333_v18 = vld [vmem:[#allocation6 + $0x288] ss:$16 sps:$4 sm:$0xff]  }
 0x649   : > { %v4237_v15 = vpop.f32.mrf.mxu0  ;;  %5280 = vmatmul.mubr.bf16.gmra.mxu0 %v12150_v2 }
 0x64a   : > { %v4238_v60 = vadd.f32 %v4237_v15, %v12087_v32  ;;  %5438 = vmatpush2.bf16.msra.mxu0 %v10303_v54  ;;  %v12173_v32 = vld [vmem:[%s13206_s11 + $0x18] sm:$0xff] }
 0x64b   : > { %v4239_v25 = vpop.f32.mrf.mxu0  ;;  %5439 = vmatprep.subr.bf16.mxu0 %v10311_v26  ;;  %v10338_v15 = vld [vmem:[#allocation6 + $0x26c] ss:$16 sps:$4 sm:$0xff]  }
 0x64c   : > { %v4240_v28 = vadd.f32 %v4239_v25, %v12095_v55  ;;  %v12160_v6 = vpack.c.bf16 %v4238_v60, %v4234_v16 }
 0x64d   : > { %v4276_v10 = vpop.f32.mrf.mxu1 }
 0x64e   : > { %v12162_v53 = vpack.c.bf16 %v4240_v28, %v4236_v3  ;;  %5440 = vmatpush2.bf16.msra.mxu0 %v10309_v13  ;;  %v4277_v30 = vadd.f32 %v4276_v10, %v12184_v44  ;;  %v10341_v10 = vld [vmem:[#allocation6 + $0x24c] ss:$16 sps:$4 sm:$0xff]  }
 0x64f   : > { %v4278_v19 = vpop.f32.mrf.mxu1  ;;  %5441 = vmatprep.subr.bf16.mxu0 %v10317_v52 }
 0x650   : > { %5289 = vmatprep.mubr.bf16.mxu0 %v12162_v53  ;;  %v4279_v58 = vadd.f32 %v4278_v19, %v12173_v32  ;;  %v10339_v19 = vld [vmem:[#allocation6 + $0x248] ss:$16 sps:$4 sm:$0xff]  }
 0x651   : > { %v4280_v55 = vpop.f32.mrf.mxu1  ;;  %5290 = vmatmul.mubr.bf16.gmra.mxu0 %v12160_v6 }
 0x652   : > { %5442 = vmatpush2.bf16.msra.mxu0 %v10315_v43  ;;  %5445 = vmatprep.mubr.bf16.mxu0 %v12072_v12  ;;  %v4281_v29 = vadd.f32 %v4280_v55, %v12168_v27  ;;  %v10329_v12 = vld [vmem:[#allocation6 + $0x2cc] ss:$16 sps:$4 sm:$0xff]  }
 0x653   : > { %v4282_v8 = vpop.f32.mrf.mxu1  ;;  %5443 = vmatprep.subr.bf16.mxu0 %v10323_v51 }
 0x654   : > { %v4283_v56 = vadd.f32 %v4282_v8, %v12179_v35  ;;  %v12193_v41 = vpack.c.bf16 %v4281_v29, %v4277_v30 }
 0x655   : > { %v4286_v63 = vpop.f32.mrf.mxu1 }
 0x656   : > { %v12191_v45 = vpack.c.bf16 %v4283_v56, %v4279_v58  ;;  %5444 = vmatpush2.bf16.msra.mxu0 %v10321_v0  ;;  %v4287_v5 = vadd.f32 %v4286_v63, %v12216_v38  ;;  %v10344_v0 = vld [vmem:[#allocation6 + $0x22c] ss:$16 sps:$4 sm:$0xff]  }
 0x657   : > { %v4288_v24 = vpop.f32.mrf.mxu1 }
 0x658   : > { %5332 = vmatprep.mubr.bf16.mxu1 %v12191_v45 }
 0x659   : > { %v4290_v23 = vpop.f32.mrf.mxu1  ;;  %5333 = vmatmul.mubr.bf16.vlgmr.msra.gmra.mxu1 %v12193_v41  ;;  %5446 = vmatmul.mubr.bf16.vlgmr.msra.gmra.mxu0 %v12070_v11  ;;  %v4289_v11 = vadd.f32 %v4288_v24, %v12204_v20 }
 0x65a   : > { %5455 = vmatprep.mubr.bf16.mxu0 %v12102_v50  ;;  %5527 = vmatpush1.bf16.msra.mxu1 %v10324_v40  ;;  %v4291_v37 = vadd.f32 %v4290_v23, %v12199_v46  ;;  %v10347_v40 = vld [vmem:[#allocation6 + $0x20c] ss:$16 sps:$4 sm:$0xff]  }
 0x65b   : > { %v4292_v17 = vpop.f32.mrf.mxu1  ;;  %5528 = vmatprep.subr.bf16.mxu1 %v10329_v12  ;;  %v10345_v12 = vld [vmem:[#allocation6 + $0x208] ss:$16 sps:$4 sm:$0xff]  }
 0x65c   : > { %v4293_v47 = vadd.f32 %v4292_v17, %v12211_v39  ;;  %v12225_v62 = vpack.c.bf16 %v4291_v37, %v4287_v5  ;;  %v10350_v37 = vld [vmem:[#allocation6 + $0x3ec] ss:$16 sps:$4 sm:$0xff]  }
 0x65d   : > { %v4296_v33 = vpop.f32.mrf.mxu1 }
 0x65e   : > { %v12223_v31 = vpack.c.bf16 %v4293_v47, %v4289_v11  ;;  %5529 = vmatpush1.bf16.msra.mxu1 %v10327_v4  ;;  %v4297_v13 = vadd.f32 %v4296_v33, %v12184_v44 }
 0x65f   : > { %v4298_v50 = vpop.f32.mrf.mxu1  ;;  %5530 = vmatprep.subr.bf16.mxu1 %v10332_v48 }
 0x660   : > { %5342 = vmatprep.mubr.bf16.mxu1 %v12223_v31  ;;  %v4299_v3 = vadd.f32 %v4298_v50, %v12173_v32 }
 0x661   : > { %v4300_v54 = vpop.f32.mrf.mxu1  ;;  %5343 = vmatmul.mubr.bf16.gmra.mxu1 %v12225_v62  ;;  %5456 = vmatmul.mubr.bf16.gmra.mxu0 %v12100_v14  ;;  %v10336_v14 = vld [vmem:[#allocation6 + $0x268] ss:$16 sps:$4 sm:$0xff]  }
 0x662   : > { %5465 = vmatprep.mubr.bf16.mxu0 %v12112_v42  ;;  %5531 = vmatpush1.bf16.msra.mxu1 %v10330_v34  ;;  %v4301_v26 = vadd.f32 %v4300_v54, %v12168_v27  ;;  %v10353_v34 = vld [vmem:[#allocation6 + $0x3cc] ss:$16 sps:$4 sm:$0xff]  }
 0x663   : > { %v4302_v16 = vpop.f32.mrf.mxu1  ;;  %5532 = vmatprep.subr.bf16.mxu1 %v10335_v21  ;;  %v10351_v21 = vld [vmem:[#allocation6 + $0x3c8] ss:$16 sps:$4 sm:$0xff]  }
 0x664   : > { %v4303_v60 = vadd.f32 %v4302_v16, %v12179_v35  ;;  %v12237_v28 = vpack.c.bf16 %v4301_v26, %v4297_v13  ;;  %v10356_v26 = vld [vmem:[#allocation6 + $0x3ac] ss:$16 sps:$4 sm:$0xff]  }
 0x665   : > { %v4306_v25 = vpop.f32.mrf.mxu1 }
 0x666   : > { %v12235_v52 = vpack.c.bf16 %v4303_v60, %v4299_v3  ;;  %5533 = vmatpush1.bf16.msra.mxu1 %v10333_v18  ;;  %v4307_v58 = vadd.f32 %v4306_v25, %v12216_v38 }
 0x667   : > { %v4308_v42 = vpop.f32.mrf.mxu1  ;;  %5534 = vmatprep.subr.bf16.mxu1 %v10338_v15 }
 0x668   : > { %5352 = vmatprep.mubr.bf16.mxu1 %v12235_v52  ;;  %v4309_v29 = vadd.f32 %v4308_v42, %v12204_v20 }
 0x669   : > { %v4310_v43 = vpop.f32.mrf.mxu1  ;;  %5353 = vmatmul.mubr.bf16.gmra.mxu1 %v12237_v28  ;;  %5466 = vmatmul.mubr.bf16.gmra.mxu0 %v12110_v36  ;;  %v10342_v36 = vld [vmem:[#allocation6 + $0x228] ss:$16 sps:$4 sm:$0xff]  }
 0x66a   : > { %5475 = vmatprep.mubr.bf16.mxu0 %v12122_v1  ;;  %5535 = vmatpush1.bf16.msra.mxu1 %v10336_v14  ;;  %v4311_v51 = vadd.f32 %v4310_v43, %v12199_v46  ;;  %v10359_v14 = vld [vmem:[#allocation6 + $0x38c] ss:$16 sps:$4 sm:$0xff]  }
 0x66b   : > { %v4312_v55 = vpop.f32.mrf.mxu1  ;;  %5536 = vmatprep.subr.bf16.mxu1 %v10341_v10  ;;  %v10357_v10 = vld [vmem:[#allocation6 + $0x388] ss:$16 sps:$4 sm:$0xff]  }
 0x66c   : > { %v4313_v8 = vadd.f32 %v4312_v55, %v12211_v39  ;;  %v12249_v63 = vpack.c.bf16 %v4311_v51, %v4307_v58  ;;  %v10362_v51 = vld [vmem:[#allocation6 + $0x36c] ss:$16 sps:$4 sm:$0xff]  }
 0x66d   : > { %v4316_v56 = vpop.f32.mrf.mxu1 }
 0x66e   : > { %v12247_v30 = vpack.c.bf16 %v4313_v8, %v4309_v29  ;;  %5537 = vmatpush1.bf16.msra.mxu1 %v10339_v19  ;;  %v4317_v11 = vadd.f32 %v4316_v56, %v12184_v44  ;;  %v10360_v56 = vld [vmem:[#allocation6 + $0x368] ss:$16 sps:$4 sm:$0xff]  }
 0x66f   : > { %v4318_v1 = vpop.f32.mrf.mxu1  ;;  %5538 = vmatprep.subr.bf16.mxu1 %v10344_v0 }
 0x670   : > { %5362 = vmatprep.mubr.bf16.mxu1 %v12247_v30  ;;  %v4319_v17 = vadd.f32 %v4318_v1, %v12173_v32 }
 0x671   : > { %v4320_v24 = vpop.f32.mrf.mxu1  ;;  %5363 = vmatmul.mubr.bf16.gmra.mxu1 %v12249_v63  ;;  %5476 = vmatmul.mubr.bf16.gmra.mxu0 %v12120_v9  ;;  %v10348_v9 = vld [vmem:[#allocation6 + $0x3e8] ss:$16 sps:$4 sm:$0xff]  }
 0x672   : > { %5485 = vmatprep.mubr.bf16.mxu0 %v12132_v59  ;;  %5539 = vmatpush1.bf16.msra.mxu1 %v10342_v36  ;;  %v4321_v23 = vadd.f32 %v4320_v24, %v12168_v27 }
 0x673   : > { %v4322_v4 = vpop.f32.mrf.mxu1  ;;  %5540 = vmatprep.subr.bf16.mxu1 %v10347_v40 }
 0x674   : > { %v4323_v48 = vadd.f32 %v4322_v4, %v12179_v35  ;;  %v12261_v33 = vpack.c.bf16 %v4321_v23, %v4317_v11  ;;  %v10366_v4 = vld [vmem:[#allocation6 + $0x328] ss:$16 sps:$4 sm:$0xff]  }
 0x675   : > { %v4326_v47 = vpop.f32.mrf.mxu1 }
 0x676   : > { %v12259_v5 = vpack.c.bf16 %v4323_v48, %v4319_v17  ;;  %5541 = vmatpush1.bf16.msra.mxu1 %v10345_v12  ;;  %v4327_v3 = vadd.f32 %v4326_v47, %v12216_v38 }
 0x677   : > { %v4328_v59 = vpop.f32.mrf.mxu1  ;;  %5542 = vmatprep.subr.bf16.mxu1 %v10350_v37 }
 0x678   : > { %5372 = vmatprep.mubr.bf16.mxu1 %v12259_v5  ;;  %v4329_v16 = vadd.f32 %v4328_v59, %v12204_v20 }
 0x679   : > { %v4330_v50 = vpop.f32.mrf.mxu1  ;;  %5373 = vmatmul.mubr.bf16.gmra.mxu1 %v12261_v33  ;;  %5486 = vmatmul.mubr.bf16.gmra.mxu0 %v12130_v61  ;;  %v10354_v61 = vld [vmem:[#allocation6 + $0x3a8] ss:$16 sps:$4 sm:$0xff]  }
 0x67a   : > { %5495 = vmatprep.mubr.bf16.mxu0 %v12142_v57  ;;  %5543 = vmatpush2.bf16.msra.mxu1 %v10348_v9  ;;  %v4331_v54 = vadd.f32 %v4330_v50, %v12199_v46 }
 0x67b   : > { %v4332_v18 = vpop.f32.mrf.mxu1  ;;  %5544 = vmatprep.subr.bf16.mxu1 %v10353_v34 }
 0x67c   : > { %v4333_v15 = vadd.f32 %v4332_v18, %v12211_v39  ;;  %v12273_v25 = vpack.c.bf16 %v4331_v54, %v4327_v3 }
 0x67d   : > { %v4336_v60 = vpop.f32.mrf.mxu1 }
 0x67e   : > { %v12271_v13 = vpack.c.bf16 %v4333_v15, %v4329_v16  ;;  %5545 = vmatpush2.bf16.msra.mxu1 %v10351_v21  ;;  %v4337_v29 = vadd.f32 %v4336_v60, %v12184_v44  ;;  %v10368_v44 = vld [vmem:[#allocation6 + $0x32c] ss:$16 sps:$4 sm:$0xff]  }
 0x67f   : > { %v4338_v57 = vpop.f32.mrf.mxu1  ;;  %5546 = vmatprep.subr.bf16.mxu1 %v10356_v26 }
 0x680   : > { %5382 = vmatprep.mubr.bf16.mxu1 %v12271_v13  ;;  %v4339_v55 = vadd.f32 %v4338_v57, %v12173_v32 }
 0x681   : > { %v4340_v42 = vpop.f32.mrf.mxu1  ;;  %5383 = vmatmul.mubr.bf16.gmra.mxu1 %v12273_v25  ;;  %5496 = vmatmul.mubr.bf16.gmra.mxu0 %v12140_v49 }
 0x682   : > { %5505 = vmatprep.mubr.bf16.mxu0 %v12152_v7  ;;  %5547 = vmatpush2.bf16.msra.mxu1 %v10354_v61  ;;  %v4341_v43 = vadd.f32 %v4340_v42, %v12168_v27  ;;  %v10365_v7 = vld [vmem:[#allocation6 + $0x34c] ss:$16 sps:$4 sm:$0xff]   ;;  %v10363_v27 = vld [vmem:[#allocation6 + $0x348] ss:$16 sps:$4 sm:$0xff]  }
 0x683   : > { %v4342_v19 = vpop.f32.mrf.mxu1  ;;  %5548 = vmatprep.subr.bf16.mxu1 %v10359_v14 }
 0x684   : > { %v4343_v0 = vadd.f32 %v4342_v19, %v12179_v35  ;;  %v4381_v49 = vpack.c.bf16 %v4341_v43, %v4337_v29 }
 0x685   : > { %v4346_v8 = vpop.f32.mrf.mxu1 }
 0x686   : > { %v4382_v58 = vpack.c.bf16 %v4343_v0, %v4339_v55  ;;  %5549 = vmatpush2.bf16.msra.mxu1 %v10357_v10  ;;  %v4347_v12 = vadd.f32 %v4346_v8, %v12216_v38 }
 0x687   : > { %v4348_v36 = vpop.f32.mrf.mxu1  ;;  %5550 = vmatprep.subr.bf16.mxu1 %v10362_v51 }
 0x688   : > { %5392 = vmatprep.mubr.bf16.mxu1 %v4382_v58  ;;  %v4349_v40 = vadd.f32 %v4348_v36, %v12204_v20 }
 0x689   : > { %v4350_v1 = vpop.f32.mrf.mxu1  ;;  %5393 = vmatmul.mubr.bf16.gmra.mxu1 %v4381_v49  ;;  %5506 = vmatmul.mubr.bf16.gmra.mxu0 %v12150_v2  ;;  %v10371_v2 = vld [vmem:[#allocation6 + $0x30c] ss:$16 sps:$4 sm:$0xff]  }
 0x68a   : > { %5515 = vmatprep.mubr.bf16.mxu0 %v12162_v53  ;;  %5551 = vmatpush2.bf16.msra.mxu1 %v10360_v56  ;;  %v4351_v32 = vadd.f32 %v4350_v1, %v12199_v46  ;;  %v10369_v53 = vld [vmem:[#allocation6 + $0x308] ss:$16 sps:$4 sm:$0xff]  }
 0x68b   : > { %v4352_v35 = vpop.f32.mrf.mxu1  ;;  %5552 = vmatprep.subr.bf16.mxu1 %v10365_v7 }
 0x68c   : > { %v4353_v24 = vadd.f32 %v4352_v35, %v12211_v39  ;;  %v4385_v37 = vpack.c.bf16 %v4351_v32, %v4347_v12 }
 0x68e   : > { %v4386_v23 = vpack.c.bf16 %v4353_v24, %v4349_v40  ;;  %5553 = vmatpush2.bf16.msra.mxu1 %v10363_v27 }
 0x68f   : > { %5554 = vmatprep.subr.bf16.mxu1 %v10368_v44 }
 0x690   : > { %5402 = vmatprep.mubr.bf16.mxu1 %v4386_v23 }
 0x691   : > { %5403 = vmatmul.mubr.bf16.gmra.mxu1 %v4385_v37  ;;  %5516 = vmatmul.mubr.bf16.gmra.mxu0 %v12160_v6 }
 0x692   : > { %5555 = vmatpush2.bf16.msra.mxu1 %v10366_v4  ;;  %5558 = vmatprep.mubr.bf16.mxu1 %v12191_v45 }
 0x693   : > { %5556 = vmatprep.subr.bf16.mxu1 %v10371_v2  ;;  %5751 = vmatprep.mubr.bf16.mxu0 %v13346_v22 }
 0x696   : > { %5557 = vmatpush2.bf16.msra.mxu1 %v10369_v53 }
 0x699   : > { %5559 = vmatmul.mubr.bf16.vlgmr.msra.gmra.mxu1 %v12193_v41 }
 0x69a   : > { %5568 = vmatprep.mubr.bf16.mxu1 %v12223_v31 }
 0x6a1   : > { %5569 = vmatmul.mubr.bf16.gmra.mxu1 %v12225_v62 }
 0x6a2   : > { %5578 = vmatprep.mubr.bf16.mxu1 %v12235_v52 }
 0x6a9   : > { %5579 = vmatmul.mubr.bf16.gmra.mxu1 %v12237_v28 }
 0x6aa   : > { %5588 = vmatprep.mubr.bf16.mxu1 %v12247_v30 }
 0x6b1   : > { %5589 = vmatmul.mubr.bf16.gmra.mxu1 %v12249_v63 }
 0x6b2   : > { %5598 = vmatprep.mubr.bf16.mxu1 %v12259_v5 }
 0x6b9   : > { %5599 = vmatmul.mubr.bf16.gmra.mxu1 %v12261_v33 }
 0x6ba   : > { %5608 = vmatprep.mubr.bf16.mxu1 %v12271_v13 }
 0x6c1   : > { %5609 = vmatmul.mubr.bf16.gmra.mxu1 %v12273_v25 }
 0x6c2   : > { %5618 = vmatprep.mubr.bf16.mxu1 %v4382_v58 }
 0x6c9   : > { %5619 = vmatmul.mubr.bf16.gmra.mxu1 %v4381_v49 }
 0x6ca   : > { %5628 = vmatprep.mubr.bf16.mxu1 %v4386_v23 }
 0x6d1   : > { %5629 = vmatmul.mubr.bf16.gmra.mxu1 %v4385_v37 }
 0x6d2   : > { %5864 = vmatprep.mubr.bf16.mxu1 %v13346_v22 }
 0x6d9   : > { %v5221_v6 = vpop.f32.mrf.mxu0 }
 0x6db   : > { %v5223_v45 = vpop.f32.mrf.mxu0 }
 0x6dd   : > { %v5225_v41 = vpop.f32.mrf.mxu0 }
 0x6df   : > { %v12304_v46 = vpop.f32.mrf.mxu0 }
 0x6e0   : > { %13364 = vst [vmem:[#allocation27_spill] sm:$0xff] %v12304_v46 }
 0x6e1   : > { %v5231_v20 = vpop.f32.mrf.mxu0 }
 0x6e3   : > { %v5233_v39 = vpop.f32.mrf.mxu0 }
 0x6e5   : > { %v5235_v38 = vpop.f32.mrf.mxu0 }
 0x6e7   : > { %v12306_v31 = vpop.f32.mrf.mxu0 }
 0x6e8   : > { %13365 = vst [vmem:[#allocation14_spill] sm:$0xff] %v12306_v31 }
 0x6e9   : > { %v5241_v62 = vpop.f32.mrf.mxu0 }
 0x6eb   : > { %v12308_v52 = vpop.f32.mrf.mxu0 }
 0x6ed   : > { %v12310_v28 = vpop.f32.mrf.mxu0 }
 0x6ee   : > { %13366 = vst [vmem:[#allocation30_spill] sm:$0xff] %v12310_v28 }
 0x6ef   : > { %v12312_v30 = vpop.f32.mrf.mxu0 }
 0x6f1   : > { %v12314_v63 = vpop.f32.mrf.mxu0 }
 0x6f3   : > { %v12316_v17 = vpop.f32.mrf.mxu0 }
 0x6f5   : > { %v12318_v48 = vpop.f32.mrf.mxu0 }
 0x6f7   : > { %v12320_v11 = vpop.f32.mrf.mxu0 }
 0x6f9   : > { %v12322_v47 = vpop.f32.mrf.mxu0 }
 0x6fb   : > { %v12324_v5 = vpop.f32.mrf.mxu0 }
 0x6fd   : > { %v12326_v9 = vpop.f32.mrf.mxu0 }
 0x6ff   : > { %v12328_v33 = vpop.f32.mrf.mxu0 }
 0x701   : > { %v12330_v59 = vpop.f32.mrf.mxu0 }
 0x703   : > { %v12332_v34 = vpop.f32.mrf.mxu0 }
 0x705   : > { %v12334_v50 = vpop.f32.mrf.mxu0 }
 0x707   : > { %v12336_v21 = vpop.f32.mrf.mxu0 }
 0x709   : > { %v12338_v54 = vpop.f32.mrf.mxu0 }
 0x70b   : > { %v12340_v18 = vpop.f32.mrf.mxu0 }
 0x70d   : > { %v12342_v26 = vpop.f32.mrf.mxu0 }
 0x70f   : > { %v12344_v16 = vpop.f32.mrf.mxu0 }
 0x711   : > { %v12346_v15 = vpop.f32.mrf.mxu0 }
 0x713   : > { %v5293_v3 = vpop.f32.mrf.mxu0 }
 0x715   : > { %v5295_v60 = vpop.f32.mrf.mxu0 }
 0x717   : > { %v5297_v13 = vpop.f32.mrf.mxu0 }
 0x719   : > { %v5334_v61 = vpop.f32.mrf.mxu1  ;;  %v12350_v57 = vpop.f32.mrf.mxu0 }
 0x71a   : > { %v12348_v25 = vadd.f32 %v5334_v61, %v5221_v6 }
 0x71b   : > { %v5336_v14 = vpop.f32.mrf.mxu1  ;;  %v12356_v19 = vpop.f32.mrf.mxu0 }
 0x71c   : > { %13367 = vst [vmem:[#allocation26_spill] sm:$0xff] %v12348_v25  ;;  %v12352_v42 = vadd.f32 %v5336_v14, %v5223_v45 }
 0x71d   : > { %v5338_v10 = vpop.f32.mrf.mxu1  ;;  %v12364_v8 = vpop.f32.mrf.mxu0 }
 0x71e   : > { %13368 = vst [vmem:[#allocation15_spill] sm:$0xff] %v12352_v42  ;;  %v12354_v43 = vadd.f32 %v5338_v10, %v5225_v41 }
 0x71f   : > { %v12358_v51 = vpop.f32.mrf.mxu1  ;;  %v12370_v7 = vpop.f32.mrf.mxu0 }
 0x720   : > { %13369 = vst [vmem:[#allocation28_spill] sm:$0xff] %v12354_v43  ;;  %13370 = vst [vmem:[#allocation25_spill] sm:$0xff] %v12358_v51 }
 0x721   : > { %v5344_v0 = vpop.f32.mrf.mxu1  ;;  %v12378_v44 = vpop.f32.mrf.mxu0 }
 0x722   : > { %v12362_v29 = vadd.f32 %v5344_v0, %v5231_v20 }
 0x723   : > { %v5346_v58 = vpop.f32.mrf.mxu1  ;;  %v12384_v12 = vpop.f32.mrf.mxu0 }
 0x724   : > { %13371 = vst [vmem:[#allocation13_spill] sm:$0xff] %v12362_v29  ;;  %v12366_v56 = vadd.f32 %v5346_v58, %v5233_v39 }
 0x725   : > { %v5348_v49 = vpop.f32.mrf.mxu1  ;;  %v12390_v37 = vpop.f32.mrf.mxu0 }
 0x726   : > { %13372 = vst [vmem:[#allocation18_spill] sm:$0xff] %v12366_v56  ;;  %v12368_v36 = vadd.f32 %v5348_v49, %v5235_v38 }
 0x727   : > { %v12372_v1 = vpop.f32.mrf.mxu1  ;;  %v12396_v6 = vpop.f32.mrf.mxu0 }
 0x728   : > { %13373 = vst [vmem:[#allocation33_spill] sm:$0xff] %v12368_v36  ;;  %13374 = vst [vmem:[#allocation31_spill] sm:$0xff] %v12372_v1 }
 0x729   : > { %v5354_v32 = vpop.f32.mrf.mxu1  ;;  %v12402_v20 = vpop.f32.mrf.mxu0 }
 0x72a   : > { %v12376_v35 = vadd.f32 %v5354_v32, %v5241_v62  ;;  %13377 = vst [vmem:[#allocation19_spill] sm:$0xff] %v12402_v20 }
 0x72b   : > { %v12380_v40 = vpop.f32.mrf.mxu1  ;;  %v12404_v62 = vpop.f32.mrf.mxu0 }
 0x72c   : > { %13375 = vst [vmem:[#allocation32_spill] sm:$0xff] %v12376_v35  ;;  %13378 = vst [vmem:[#allocation21_spill] sm:$0xff] %v12404_v62 }
 0x72d   : > { %v12382_v24 = vpop.f32.mrf.mxu1  ;;  %v12406_v10 = vpop.f32.mrf.mxu0 }
 0x72e   : > { %13376 = vst [vmem:[#allocation17_spill] sm:$0xff] %v12382_v24  ;;  %13379 = vst [vmem:[#allocation16_spill] sm:$0xff] %v12406_v10 }
 0x72f   : > { %v12386_v23 = vpop.f32.mrf.mxu1  ;;  %v12408_v49 = vpop.f32.mrf.mxu0 }
 0x730   : > { %13380 = vst [vmem:[#allocation22_spill] sm:$0xff] %v12408_v49 }
 0x731   : > { %v12388_v4 = vpop.f32.mrf.mxu1  ;;  %v12410_v27 = vpop.f32.mrf.mxu0 }
 0x732   : > { %13381 = vst [vmem:[#allocation23_spill] sm:$0xff] %v12410_v27 }
 0x733   : > { %v12392_v2 = vpop.f32.mrf.mxu1  ;;  %v12412_v43 = vpop.f32.mrf.mxu0 }
 0x734   : > { %13382 = vst [vmem:[#allocation24_spill] sm:$0xff] %v12412_v43 }
 0x735   : > { %v12394_v53 = vpop.f32.mrf.mxu1  ;;  %v12414_v42 = vpop.f32.mrf.mxu0 }
 0x736   : > { %13383 = vst [vmem:[#allocation20_spill] sm:$0xff] %v12414_v42 }
 0x737   : > { %v12398_v45 = vpop.f32.mrf.mxu1  ;;  %v12416_v51 = vpop.f32.mrf.mxu0 }
 0x738   : > { %13384 = vst [vmem:[#allocation29_spill] sm:$0xff] %v12416_v51 }
 0x739   : > { %v12400_v41 = vpop.f32.mrf.mxu1  ;;  %v12424_v42 = vpop.f32.mrf.mxu0 }
 0x73b   : > { %v5376_v39 = vpop.f32.mrf.mxu1 }
 0x73d   : > { %v5378_v38 = vpop.f32.mrf.mxu1 }
 0x73f   : > { %v5380_v61 = vpop.f32.mrf.mxu1 }
 0x741   : > { %v5384_v14 = vpop.f32.mrf.mxu1 }
 0x743   : > { %v5386_v0 = vpop.f32.mrf.mxu1 }
 0x745   : > { %v5388_v58 = vpop.f32.mrf.mxu1 }
 0x747   : > { %v5390_v32 = vpop.f32.mrf.mxu1 }
 0x749   : > { %v5394_v55 = vpop.f32.mrf.mxu1 }
 0x74b   : > { %v5396_v22 = vpop.f32.mrf.mxu1 }
 0x74c   : > { %v5397_v24 = vadd.f32 %v5396_v22, %v12340_v18 }
 0x74d   : > { %v5398_v25 = vpop.f32.mrf.mxu1 }
 0x74e   : > { %v5399_v20 = vadd.f32 %v5398_v25, %v12342_v26  ;;  %v12436_v26 = vpop.f32.mrf.mxu0  ;;  %v5381_v25 = vadd.f32 %v5380_v61, %v12328_v33  ;;  %v5379_v33 = vadd.f32 %v5378_v38, %v12326_v9 }
 0x74f   : > { %v5400_v29 = vpop.f32.mrf.mxu1 }
 0x750   : > { %v5401_v49 = vadd.f32 %v5400_v29, %v12344_v16  ;;  %v12453_v29 = vpop.f32.mrf.mxu0 }
 0x751   : > { %v5404_v36 = vpop.f32.mrf.mxu1 }
 0x752   : > { %v5405_v27 = vadd.f32 %v5404_v36, %v12346_v15  ;;  %v5664_v16 = vpack.c.bf16 %v5401_v49, %v5397_v24  ;;  %v5395_v15 = vadd.f32 %v5394_v55, %v12338_v54  ;;  %v12469_v24 = vpop.f32.mrf.mxu0 }
 0x753   : > { %v5406_v62 = vpop.f32.mrf.mxu1 }
 0x754   : > { %v5407_v35 = vadd.f32 %v5406_v62, %v5293_v3  ;;  %v5389_v3 = vadd.f32 %v5388_v58, %v12334_v50  ;;  %v12489_v62 = vpop.f32.mrf.mxu0 }
 0x755   : > { %v5408_v56 = vpop.f32.mrf.mxu1 }
 0x756   : > { %v5409_v10 = vadd.f32 %v5408_v56, %v5295_v60  ;;  %v5391_v56 = vadd.f32 %v5390_v32, %v12336_v21  ;;  %v5663_v21 = vpack.c.bf16 %v5399_v20, %v5395_v15  ;;  %v13385_v20 = vld [vmem:[#allocation19_spill] sm:$0xff]  ;;  %v12498_v58 = vpop.f32.mrf.mxu0 }
 0x757   : > { %v5410_v46 = vpop.f32.mrf.mxu1  ;;  %v13391_v32 = vld [vmem:[#allocation27_spill] sm:$0xff] }
 0x758   : > { %v5411_v1 = vadd.f32 %v5410_v46, %v5297_v13  ;;  %v5667_v51 = vpack.c.bf16 %v5409_v10, %v5405_v27 }
 0x759   : > { %v5560_v31 = vpop.f32.mrf.mxu1 }
 0x75a   : > { %v5668_v43 = vpack.c.bf16 %v5411_v1, %v5407_v35  ;;  %v12422_v28 = vadd.f32 %v5560_v31, %v12350_v57  ;;  %v5387_v31 = vadd.f32 %v5386_v0, %v12332_v34  ;;  %v5385_v34 = vadd.f32 %v5384_v14, %v12330_v59 }
 0x75b   : > { %v5562_v60 = vpop.f32.mrf.mxu1  ;;  %v5371_v59 = vadd.f32 %v12398_v45, %v12320_v11  ;;  %v5367_v35 = vadd.f32 %v12392_v2, %v12316_v17  ;;  %v5361_v45 = vadd.f32 %v12386_v23, %v12312_v30  ;;  %v13386_v23 = vld [vmem:[#allocation30_spill] sm:$0xff] }
 0x75c   : > { %v12429_v46 = vadd.f32 %v5562_v60, %v12356_v19  ;;  %5719 = vmatprep.subr.bf16.mxu0 %v5668_v43  ;;  %v5660_v57 = vpack.c.bf16 %v5391_v56, %v5387_v31  ;;  %v13392_v60 = vld [vmem:[#allocation25_spill] sm:$0xff]  ;;  %v12507_v31 = vpop.f32.mrf.mxu0 }
 0x75d   : > { %v5564_v22 = vpop.f32.mrf.mxu1  ;;  %5720 = vmatpush1.bf16.msra.mxu0 %v5667_v51  ;;  %v5377_v51 = vadd.f32 %v5376_v39, %v12324_v5  ;;  %v5375_v5 = vadd.f32 %v12400_v41, %v12322_v47  ;;  %v5652_v47 = vpack.c.bf16 %v5371_v59, %v5367_v35  ;;  %v13387_v39 = vld [vmem:[#allocation17_spill] sm:$0xff]  ;;  %v5341_v56 = vadd.f32 %v13392_v60, %v13391_v32  ;;  %v13398_v59 = vld [vmem:[#allocation28_spill] sm:$0xff] }
 0x75e   : > { %v12434_v18 = vadd.f32 %v5564_v22, %v12364_v8  ;;  %5721 = vmatprep.subr.bf16.mxu0 %v5664_v16  ;;  %v5659_v8 = vpack.c.bf16 %v5389_v3, %v5385_v34  ;;  %v5359_v38 = vadd.f32 %v13387_v39, %v13386_v23  ;;  %v13393_v16 = vld [vmem:[#allocation18_spill] sm:$0xff]  ;;  %v13396_v34 = vld [vmem:[#allocation13_spill] sm:$0xff] }
 0x75f   : > { %v5566_v13 = vpop.f32.mrf.mxu1  ;;  %v5655_v11 = vpack.c.bf16 %v5379_v33, %v5375_v5 }
 0x760   : > { %v12443_v43 = vadd.f32 %v5566_v13, %v12370_v7  ;;  %v5656_v7 = vpack.c.bf16 %v5381_v25, %v5377_v51  ;;  %v5503_v51 = vpop.f32.mrf.mxu0 }
 0x761   : > { %v5570_v19 = vpop.f32.mrf.mxu1  ;;  %5722 = vmatpush1.bf16.msra.mxu0 %v5663_v21  ;;  %v13394_v21 = vld [vmem:[#allocation15_spill] sm:$0xff] }
 0x762   : > { %v12450_v55 = vadd.f32 %v5570_v19, %v12378_v44  ;;  %5723 = vmatprep.subr.bf16.mxu0 %v5660_v57  ;;  %v5369_v44 = vadd.f32 %v12394_v53, %v12318_v48  ;;  %v5357_v48 = vadd.f32 %v12380_v40, %v12308_v52  ;;  %v13390_v40 = vld [vmem:[#allocation32_spill] sm:$0xff]  ;;  %v5640_v13 = vpack.c.bf16 %v5341_v56, %v13394_v21  ;;  %v13395_v57 = vld [vmem:[#allocation33_spill] sm:$0xff] }
 0x763   : > { %v5572_v36 = vpop.f32.mrf.mxu1  ;;  %v5647_v0 = vpack.c.bf16 %v5359_v38, %v13390_v40  ;;  %v13397_v19 = vpack.c.bf16 %v13395_v57, %v13396_v34  ;;  %v12541_v38 = vld [vmem:[%s13208_s13 + $0x10] sm:$0xff]  }
 0x764   : > { %v12458_v1 = vadd.f32 %v5572_v36, %v12384_v12  ;;  %v5648_v10 = vpack.c.bf16 %v5361_v45, %v5357_v48 }
 0x765   : > { %v5574_v27 = vpop.f32.mrf.mxu1  ;;  %5724 = vmatpush1.bf16.msra.mxu0 %v5659_v8  ;;  %v12522_v8 = vld [vmem:[%s13208_s13] sm:$0xff]  }
 0x766   : > { %v12465_v9 = vadd.f32 %v5574_v27, %v12390_v37  ;;  %5725 = vmatprep.subr.bf16.mxu0 %v5656_v7  ;;  %v5365_v37 = vadd.f32 %v12388_v4, %v12314_v63  ;;  %v13388_v63 = vld [vmem:[#allocation14_spill] sm:$0xff]  ;;  %v13389_v4 = vld [vmem:[#allocation31_spill] sm:$0xff]  ;;  %v5507_v27 = vpop.f32.mrf.mxu0 }
 0x767   : > { %v5576_v12 = vpop.f32.mrf.mxu1  ;;  %v5351_v14 = vadd.f32 %v13389_v4, %v13388_v63  ;;  %v13399_v7 = vld [vmem:[#allocation26_spill] sm:$0xff] }
 0x768   : > { %v12476_v17 = vadd.f32 %v5576_v12, %v12396_v6  ;;  %v5651_v6 = vpack.c.bf16 %v5369_v44, %v5365_v37  ;;  %v13400_v5 = vpack.c.bf16 %v13398_v59, %v13399_v7  ;;  %v5509_v12 = vpop.f32.mrf.mxu0  ;;  %v12555_v59 = vld [vmem:[%s13208_s13 + $0x20] sm:$0xff]  }
 0x769   : > { %v5580_v2 = vpop.f32.mrf.mxu1  ;;  %5726 = vmatpush1.bf16.msra.mxu0 %v5655_v11  ;;  %v5644_v15 = vpack.c.bf16 %v5351_v14, %v13393_v16  ;;  %v13401_v11 = vmov 0  }
 0x76a   : > { %v12485_v30 = vadd.f32 %v5580_v2, %v13385_v20  ;;  %5727 = vmatprep.subr.bf16.mxu0 %v5652_v47  ;;  %v12534_v47 = vld [vmem:[%s13208_s13 + $0x8] sm:$0xff]   ;;  %v5511_v2 = vpop.f32.mrf.mxu0 }
 0x76b   : > { %v12491_v61 = vpop.f32.mrf.mxu1 }
 0x76c   : > { %v5513_v23 = vpop.f32.mrf.mxu0 }
 0x76d   : > { %v12495_v52 = vpop.f32.mrf.mxu1  ;;  %5728 = vmatpush1.bf16.msra.mxu0 %v5651_v6 }
 0x76e   : > { %5729 = vmatprep.subr.bf16.mxu0 %v5648_v10  ;;  %v5517_v63 = vpop.f32.mrf.mxu0 }
 0x76f   : > { %v12500_v49 = vpop.f32.mrf.mxu1 }
 0x770   : > { %v5519_v10 = vpop.f32.mrf.mxu0 }
 0x771   : > { %v12505_v22 = vpop.f32.mrf.mxu1  ;;  %5730 = vmatpush1.bf16.msra.mxu0 %v5647_v0  ;;  %v12548_v0 = vld [vmem:[%s13208_s13 + $0x18] sm:$0xff]  }
 0x772   : > { %5731 = vmatprep.subr.bf16.mxu0 %v5644_v15  ;;  %13402 = vst [vmem:[#allocation19_spill] sm:$0xff] %v12548_v0  ;;  %v5521_v60 = vpop.f32.mrf.mxu0 }
 0x773   : > { %v12509_v3 = vpop.f32.mrf.mxu1 }
 0x774   : > { %v5523_v15 = vpop.f32.mrf.mxu0 }
 0x775   : > { %v12512_v25 = vpop.f32.mrf.mxu1  ;;  %5732 = vmatpush1.bf16.msra.mxu0 %v13397_v19 }
 0x776   : > { %5733 = vmatprep.subr.bf16.mxu0 %v5640_v13 }
 0x777   : > { %v12517_v33 = vpop.f32.mrf.mxu1 }
 0x779   : > { %v12524_v36 = vpop.f32.mrf.mxu1  ;;  %5734 = vmatpush1.bf16.msra.mxu0 %v13400_v5 }
 0x77b   : > { %v5602_v35 = vpop.f32.mrf.mxu1 }
 0x77c   : > { %5752 = vmatmul.mubr.bf16.vlgmr.msra.gmra.mxu0 %v12522_v8 }
 0x77d   : > { %v5604_v44 = vpop.f32.mrf.mxu1  ;;  %5761 = vmatprep.mubr.bf16.mxu0 %v13401_v11 }
 0x77f   : > { %v5606_v45 = vpop.f32.mrf.mxu1 }
 0x781   : > { %v5610_v37 = vpop.f32.mrf.mxu1 }
 0x783   : > { %v5612_v48 = vpop.f32.mrf.mxu1 }
 0x784   : > { %5762 = vmatmul.mubr.bf16.gmra.mxu0 %v12534_v47 }
 0x785   : > { %v5614_v20 = vpop.f32.mrf.mxu1  ;;  %5771 = vmatprep.mubr.bf16.mxu0 %v13401_v11 }
 0x787   : > { %v5616_v39 = vpop.f32.mrf.mxu1 }
 0x788   : > { %v5617_v53 = vadd.f32 %v5616_v39, %v5503_v51  ;;  %v10377_v51 = vld [vmem:[%s13208_s13 + $0x28] sm:$0xff]  }
 0x789   : > { %v5620_v6 = vpop.f32.mrf.mxu1 }
 0x78b   : > { %v5622_v4 = vpop.f32.mrf.mxu1 }
 0x78c   : > { %5772 = vmatmul.mubr.bf16.gmra.mxu0 %v12541_v38  ;;  %v5623_v5 = vadd.f32 %v5622_v4, %v5509_v12  ;;  %v5607_v12 = vadd.f32 %v5606_v45, %v12469_v24  ;;  %v5601_v24 = vadd.f32 %v12524_v36, %v12424_v42  ;;  %v13407_v42 = vld [vmem:[#allocation23_spill] sm:$0xff]  ;;  %v13412_v4 = vpack.c.bf16 %v12443_v43, %v12429_v46 }
 0x78d   : > { %v5624_v14 = vpop.f32.mrf.mxu1  ;;  %5781 = vmatprep.mubr.bf16.mxu0 %v13401_v11  ;;  %v5591_v36 = vadd.f32 %v12505_v22, %v13407_v42  ;;  %v10379_v22 = vld [vmem:[%s13208_s13 + $0x38] sm:$0xff]  }
 0x78e   : > { %v5625_v50 = vadd.f32 %v5624_v14, %v5511_v2  ;;  %v5611_v2 = vadd.f32 %v5610_v37, %v12489_v62  ;;  %v10378_v37 = vld [vmem:[%s13208_s13 + $0x30] sm:$0xff]  }
 0x78f   : > { %v5626_v40 = vpop.f32.mrf.mxu1 }
 0x790   : > { %v5627_v57 = vadd.f32 %v5626_v40, %v5513_v23  ;;  %v5613_v23 = vadd.f32 %v5612_v48, %v12498_v58  ;;  %v13408_v48 = vld [vmem:[#allocation21_spill] sm:$0xff] }
 0x791   : > { %v5630_v32 = vpop.f32.mrf.mxu1 }
 0x792   : > { %v5631_v7 = vadd.f32 %v5630_v32, %v5517_v63  ;;  %v5662_v63 = vpack.c.bf16 %v5617_v53, %v5613_v23  ;;  %v13404_v53 = vld [vmem:[#allocation24_spill] sm:$0xff] }
 0x793   : > { %v5632_v56 = vpop.f32.mrf.mxu1  ;;  %v5593_v62 = vadd.f32 %v12509_v3, %v13404_v53  ;;  %v5583_v3 = vadd.f32 %v12491_v61, %v13408_v48  ;;  %v13410_v61 = vpack.c.bf16 %v12476_v17, %v12458_v1  ;;  %v12632_v1 = vld [vmem:[%s13209_s14 + $0x20] sm:$0xff] }
 0x794   : > { %5782 = vmatmul.mubr.bf16.gmra.mxu0 %v12548_v0  ;;  %v5633_v34 = vadd.f32 %v5632_v56, %v5519_v10  ;;  %v5666_v0 = vpack.c.bf16 %v5627_v57, %v5623_v5  ;;  %v5615_v10 = vadd.f32 %v5614_v20, %v12507_v31  ;;  %v13409_v20 = vld [vmem:[#allocation16_spill] sm:$0xff] }
 0x795   : > { %v5634_v16 = vpop.f32.mrf.mxu1  ;;  %5791 = vmatprep.mubr.bf16.mxu0 %v13401_v11  ;;  %v12671_v57 = vld [vmem:[%s13209_s14 + $0x60] sm:$0xff] }
 0x796   : > { %v5635_v21 = vadd.f32 %v5634_v16, %v5521_v60  ;;  %v5621_v60 = vadd.f32 %v5620_v6, %v5507_v27  ;;  %v5661_v58 = vpack.c.bf16 %v5615_v10, %v5611_v2  ;;  %v13403_v27 = vld [vmem:[#allocation29_spill] sm:$0xff] }
 0x797   : > { %v5636_v13 = vpop.f32.mrf.mxu1  ;;  %v5597_v31 = vadd.f32 %v12517_v33, %v13403_v27  ;;  %v12658_v16 = vld [vmem:[%s13209_s14 + $0x40] sm:$0xff] }
 0x798   : > { %v5637_v19 = vadd.f32 %v5636_v13, %v5523_v15  ;;  %v5669_v41 = vpack.c.bf16 %v5635_v21, %v5631_v7  ;;  %v5665_v40 = vpack.c.bf16 %v5625_v50, %v5621_v60  ;;  %v12666_v13 = vld [vmem:[%s13209_s14 + $0x48] sm:$0xff] }
 0x799   : > { %v5654_v33 = vpack.c.bf16 %v5597_v31, %v5593_v62  ;;  %v12682_v7 = vld [vmem:[%s13209_s14 + $0x68] sm:$0xff] }
 0x79a   : > { %v5670_v54 = vpack.c.bf16 %v5637_v19, %v5633_v34 }
 0x79c   : > { %5792 = vmatmul.mubr.bf16.gmra.mxu0 %v12555_v59  ;;  %5832 = vmatprep.subr.bf16.mxu1 %v5670_v54  ;;  %v5603_v54 = vadd.f32 %v5602_v35, %v12436_v26  ;;  %v13405_v26 = vld [vmem:[#allocation20_spill] sm:$0xff] }
 0x79d   : > { %5833 = vmatpush1.bf16.msra.mxu1 %v5669_v41  ;;  %5801 = vmatprep.mubr.bf16.mxu0 %v13401_v11  ;;  %v5605_v41 = vadd.f32 %v5604_v44, %v12453_v29  ;;  %v5595_v35 = vadd.f32 %v12512_v25, %v13405_v26  ;;  %v13406_v44 = vld [vmem:[#allocation22_spill] sm:$0xff]  ;;  %v5585_v25 = vadd.f32 %v12495_v52, %v13409_v20 }
 0x79e   : > { %5834 = vmatprep.subr.bf16.mxu1 %v5666_v0  ;;  %v5658_v50 = vpack.c.bf16 %v5607_v12, %v5603_v54  ;;  %v5587_v45 = vadd.f32 %v12500_v49, %v13406_v44  ;;  %v13411_v52 = vpack.c.bf16 %v12465_v9, %v12450_v55  ;;  %v13414_v55 = vld [vmem:[#allocation19_spill] sm:$0xff] }
 0x79f   : > { %v5657_v29 = vpack.c.bf16 %v5605_v41, %v5601_v24  ;;  %v5653_v39 = vpack.c.bf16 %v5595_v35, %v5591_v36  ;;  %v5649_v49 = vpack.c.bf16 %v5585_v25, %v12485_v30  ;;  %v13413_v30 = vpack.c.bf16 %v12434_v18, %v12422_v28  ;;  %v12622_v28 = vld [vmem:[%s13209_s14] sm:$0xff]  ;;  %v12627_v18 = vld [vmem:[%s13209_s14 + $0x8] sm:$0xff] }
 0x7a0   : > { %v5650_v6 = vpack.c.bf16 %v5587_v45, %v5583_v3 }
 0x7a1   : > { %5835 = vmatpush1.bf16.msra.mxu1 %v5665_v40 }
 0x7a2   : > { %5836 = vmatprep.subr.bf16.mxu1 %v5662_v63 }
 0x7a4   : > { %5802 = vmatmul.mubr.bf16.gmra.mxu0 %v10377_v51 }
 0x7a5   : > { %5837 = vmatpush1.bf16.msra.mxu1 %v5661_v58  ;;  %5811 = vmatprep.mubr.bf16.mxu0 %v13401_v11 }
 0x7a6   : > { %5838 = vmatprep.subr.bf16.mxu1 %v5658_v50 }
 0x7a9   : > { %5839 = vmatpush1.bf16.msra.mxu1 %v5657_v29 }
 0x7aa   : > { %5840 = vmatprep.subr.bf16.mxu1 %v5654_v33 }
 0x7ac   : > { %5812 = vmatmul.mubr.bf16.gmra.mxu0 %v10378_v37 }
 0x7ad   : > { %5841 = vmatpush1.bf16.msra.mxu1 %v5653_v39  ;;  %5821 = vmatprep.mubr.bf16.mxu0 %v13401_v11 }
 0x7ae   : > { %5842 = vmatprep.subr.bf16.mxu1 %v5650_v6 }
 0x7b1   : > { %5843 = vmatpush1.bf16.msra.mxu1 %v5649_v49 }
 0x7b2   : > { %5844 = vmatprep.subr.bf16.mxu1 %v13410_v61 }
 0x7b4   : > { %5822 = vmatmul.mubr.bf16.gmra.mxu0 %v10379_v22 }
 0x7b5   : > { %5845 = vmatpush1.bf16.msra.mxu1 %v13411_v52  ;;  %6267 = vmatprep.mubr.bf16.mxu0 %v13401_v11 }
 0x7b6   : > { %5846 = vmatprep.subr.bf16.mxu1 %v13412_v4 }
 0x7b9   : > { %5847 = vmatpush1.bf16.msra.mxu1 %v13413_v30 }
 0x7bc   : > { %5865 = vmatmul.mubr.bf16.vlgmr.msra.gmra.mxu1 %v12522_v8  ;;  %v12640_v8 = vld [vmem:[%s13209_s14 + $0x28] sm:$0xff] }
 0x7bd   : > { %5874 = vmatprep.mubr.bf16.mxu1 %v13401_v11 }
 0x7c4   : > { %5875 = vmatmul.mubr.bf16.gmra.mxu1 %v12534_v47 }
 0x7c5   : > { %5884 = vmatprep.mubr.bf16.mxu1 %v13401_v11 }
 0x7cc   : > { %5885 = vmatmul.mubr.bf16.gmra.mxu1 %v12541_v38 }
 0x7cd   : > { %5894 = vmatprep.mubr.bf16.mxu1 %v13401_v11 }
 0x7d4   : > { %5895 = vmatmul.mubr.bf16.gmra.mxu1 %v13414_v55 }
 0x7d5   : > { %5904 = vmatprep.mubr.bf16.mxu1 %v13401_v11 }
 0x7dc   : > { %5905 = vmatmul.mubr.bf16.gmra.mxu1 %v12555_v59 }
 0x7dd   : > { %5914 = vmatprep.mubr.bf16.mxu1 %v13401_v11 }
 0x7e4   : > { %5915 = vmatmul.mubr.bf16.gmra.mxu1 %v10377_v51 }
 0x7e5   : > { %5924 = vmatprep.mubr.bf16.mxu1 %v13401_v11 }
 0x7ec   : > { %5925 = vmatmul.mubr.bf16.gmra.mxu1 %v10378_v37 }
 0x7ed   : > { %5934 = vmatprep.mubr.bf16.mxu1 %v13401_v11 }
 0x7f4   : > { %5935 = vmatmul.mubr.bf16.gmra.mxu1 %v10379_v22 }
 0x7f5   : > { %6308 = vmatprep.mubr.bf16.mxu1 %v13401_v11 }
 0x83c   : > { %v5753_v46 = vpop.f32.mrf.mxu0 }
 0x83d   : > { %v12635_v9 = vadd.f32 %v5753_v46, %v12622_v28 }
 0x83e   : > { %v5755_v43 = vpop.f32.mrf.mxu0 }
 0x83f   : > { %v12643_v11 = vadd.f32 %v5755_v43, %v12627_v18 }
 0x840   : > { %v5757_v17 = vpop.f32.mrf.mxu0 }
 0x841   : > { %v12646_v47 = vadd.f32 %v5757_v17, %v12632_v1  ;;  %v12716_v17 = vld [vmem:[%s13209_s14 + $0x10] sm:$0xff] }
 0x842   : > { %v5759_v38 = vpop.f32.mrf.mxu0 }
 0x843   : > { %v5945_v14 = vpack.c.bf16 %v12646_v47, %v12635_v9  ;;  %v12651_v0 = vadd.f32 %v5759_v38, %v12640_v8  ;;  %v6009_v9 = vld [vmem:[#allocation7 + $0x100] sm:$0xff] }
 0x844   : > { %v5763_v32 = vpop.f32.mrf.mxu0  ;;  %v6013_v47 = vld [vmem:[#allocation7 + $0x120] sm:$0xff] }
 0x845   : > { %v5946_v56 = vpack.c.bf16 %v12651_v0, %v12643_v11  ;;  %v12661_v21 = vadd.f32 %v5763_v32, %v12658_v16  ;;  %v12721_v32 = vld [vmem:[%s13209_s14 + $0x30] sm:$0xff]  ;;  %v6017_v11 = vld [vmem:[#allocation7 + $0x140] sm:$0xff] }
 0x846   : > { %v5765_v15 = vpop.f32.mrf.mxu0  ;;  %v6021_v0 = vld [vmem:[#allocation7 + $0x160] sm:$0xff] }
 0x847   : > { %v12674_v19 = vadd.f32 %v5765_v15, %v12666_v13 }
 0x848   : > { %v5767_v34 = vpop.f32.mrf.mxu0 }
 0x849   : > { %v12677_v59 = vadd.f32 %v5767_v34, %v12671_v57 }
 0x84a   : > { %v5769_v5 = vpop.f32.mrf.mxu0 }
 0x84b   : > { %v5949_v60 = vpack.c.bf16 %v12677_v59, %v12661_v21  ;;  %v12687_v23 = vadd.f32 %v5769_v5, %v12682_v7 }
 0x84c   : > { %v12689_v10 = vpop.f32.mrf.mxu0 }
 0x84d   : > { %v5950_v40 = vpack.c.bf16 %v12687_v23, %v12674_v19  ;;  %v6029_v19 = vld [vmem:[#allocation7 + $0x1a0] sm:$0xff] }
 0x84e   : > { %v12693_v12 = vpop.f32.mrf.mxu0 }
 0x850   : > { %v12695_v63 = vpop.f32.mrf.mxu0 }
 0x852   : > { %v12697_v51 = vpop.f32.mrf.mxu0 }
 0x854   : > { %v12699_v2 = vpop.f32.mrf.mxu0 }
 0x856   : > { %v5785_v54 = vpop.f32.mrf.mxu0 }
 0x858   : > { %v12701_v41 = vpop.f32.mrf.mxu0 }
 0x85a   : > { %v5789_v58 = vpop.f32.mrf.mxu0 }
 0x85c   : > { %v5793_v27 = vpop.f32.mrf.mxu0 }
 0x85e   : > { %v5795_v31 = vpop.f32.mrf.mxu0 }
 0x85f   : > { %v5796_v15 = vadd.f32 %v5795_v31, %v12627_v18 }
 0x860   : > { %v5797_v50 = vpop.f32.mrf.mxu0 }
 0x862   : > { %v5799_v24 = vpop.f32.mrf.mxu0 }
 0x864   : > { %v5803_v53 = vpop.f32.mrf.mxu0 }
 0x865   : > { %v5804_v34 = vadd.f32 %v5803_v53, %v12658_v16 }
 0x866   : > { %v5805_v62 = vpop.f32.mrf.mxu0 }
 0x867   : > { %v5806_v30 = vadd.f32 %v5805_v62, %v12666_v13 }
 0x868   : > { %v5807_v26 = vpop.f32.mrf.mxu0 }
 0x869   : > { %v5808_v5 = vadd.f32 %v5807_v26, %v12671_v57 }
 0x86a   : > { %v5809_v35 = vpop.f32.mrf.mxu0 }
 0x86b   : > { %v5810_v55 = vadd.f32 %v5809_v35, %v12682_v7  ;;  %v12729_v35 = vld [vmem:[%s13209_s14 + $0x18] sm:$0xff] }
 0x86c   : > { %v5813_v29 = vpop.f32.mrf.mxu0 }
 0x86d   : > { %v5814_v22 = vadd.f32 %v5813_v29, %v12622_v28  ;;  %v5966_v31 = vpack.c.bf16 %v5810_v55, %v5806_v30 }
 0x86e   : > { %v5815_v44 = vpop.f32.mrf.mxu0 }
 0x86f   : > { %v5816_v3 = vadd.f32 %v5815_v44, %v12627_v18  ;;  %v12734_v44 = vld [vmem:[%s13209_s14 + $0x38] sm:$0xff] }
 0x870   : > { %v5817_v45 = vpop.f32.mrf.mxu0 }
 0x871   : > { %v5818_v61 = vadd.f32 %v5817_v45, %v12632_v1  ;;  %v5800_v45 = vadd.f32 %v5799_v24, %v12640_v8  ;;  %v5794_v24 = vadd.f32 %v5793_v27, %v12622_v28 }
 0x872   : > { %v5819_v33 = vpop.f32.mrf.mxu0 }
 0x873   : > { %v5820_v20 = vadd.f32 %v5819_v33, %v12640_v8  ;;  %v5969_v62 = vpack.c.bf16 %v5818_v61, %v5814_v22  ;;  %v12760_v22 = vld [vmem:[%s13209_s14 + $0x50] sm:$0xff] }
 0x874   : > { %v5823_v37 = vpop.f32.mrf.mxu0 }
 0x875   : > { %v5824_v36 = vadd.f32 %v5823_v37, %v12658_v16  ;;  %v5970_v46 = vpack.c.bf16 %v5820_v20, %v5816_v3  ;;  %v5965_v3 = vpack.c.bf16 %v5808_v5, %v5804_v34 }
 0x876   : > { %v5825_v42 = vpop.f32.mrf.mxu0 }
 0x877   : > { %v5826_v25 = vadd.f32 %v5825_v42, %v12666_v13 }
 0x878   : > { %v5827_v48 = vpop.f32.mrf.mxu0 }
 0x879   : > { %v5828_v39 = vadd.f32 %v5827_v48, %v12671_v57  ;;  %v5798_v48 = vadd.f32 %v5797_v50, %v12632_v1  ;;  %v12765_v50 = vld [vmem:[%s13209_s14 + $0x70] sm:$0xff] }
 0x87a   : > { %v5829_v6 = vpop.f32.mrf.mxu0 }
 0x87b   : > { %v5830_v49 = vadd.f32 %v5829_v6, %v12682_v7  ;;  %v5973_v52 = vpack.c.bf16 %v5828_v39, %v5824_v36  ;;  %v5790_v39 = vadd.f32 %v5789_v58, %v12682_v7  ;;  %v5962_v6 = vpack.c.bf16 %v5800_v45, %v5796_v15  ;;  %v12774_v58 = vld [vmem:[%s13209_s14 + $0x58] sm:$0xff] }
 0x87c   : > { %v5866_v4 = vpop.f32.mrf.mxu1  ;;  %v5788_v7 = vadd.f32 %v12701_v41, %v12671_v57  ;;  %v5776_v57 = vadd.f32 %v12693_v12, %v12627_v18  ;;  %v5780_v41 = vadd.f32 %v12697_v51, %v12640_v8  ;;  %v5774_v8 = vadd.f32 %v12689_v10, %v12622_v28  ;;  %v6037_v10 = vld [vmem:[#allocation7 + $0x1e0] sm:$0xff] }
 0x87d   : > { %v5974_v43 = vpack.c.bf16 %v5830_v49, %v5826_v25  ;;  %v12738_v53 = vadd.f32 %v5866_v4, %v12716_v17  ;;  %v5786_v25 = vadd.f32 %v5785_v54, %v12666_v13  ;;  %v5784_v13 = vadd.f32 %v12699_v2, %v12658_v16 }
 0x87e   : > { %v5868_v38 = vpop.f32.mrf.mxu1  ;;  %v5961_v54 = vpack.c.bf16 %v5798_v48, %v5794_v24  ;;  %v5778_v12 = vadd.f32 %v12695_v63, %v12632_v1  ;;  %v5954_v34 = vpack.c.bf16 %v5780_v41, %v5776_v57  ;;  %v6033_v1 = vld [vmem:[#allocation7 + $0x1c0] sm:$0xff] }
 0x87f   : > { %6235 = vmatprep.subr.bf16.mxu0 %v5974_v43  ;;  %v12744_v37 = vadd.f32 %v5868_v38, %v12729_v35  ;;  %v5958_v4 = vpack.c.bf16 %v5790_v39, %v5786_v25  ;;  %v5957_v38 = vpack.c.bf16 %v5788_v7, %v5784_v13  ;;  %v6025_v24 = vld [vmem:[#allocation7 + $0x180] sm:$0xff]  ;;  %v9341_v48 = vcombine.low %v6033_v1, %v6037_v10 }
 0x880   : > { %v5870_v29 = vpop.f32.mrf.mxu1  ;;  %6236 = vmatpush1.bf16.msra.mxu0 %v5973_v52  ;;  %v12779_v52 = vld [vmem:[%s13209_s14 + $0x78] sm:$0xff]  ;;  %v9334_v21 = vcombine.high %v6025_v24, %v6029_v19  ;;  %v9325_v25 = vcombine.low %v6017_v11, %v6021_v0  ;;  %v9318_v39 = vcombine.high %v6009_v9, %v6013_v47  ;;  %v6005_v13 = vld [vmem:[#allocation7 + $0xe0] sm:$0xff] }
 0x881   : > { %v12741_v26 = vadd.f32 %v5870_v29, %v12721_v32  ;;  %6237 = vmatprep.subr.bf16.mxu0 %v5970_v46  ;;  %v5993_v57 = vld [vmem:[#allocation7 + $0x80] sm:$0xff] }
 0x882   : > { %v5872_v33 = vpop.f32.mrf.mxu1 }
 0x883   : > { %v5947_v42 = vpack.c.bf16 %v12741_v26, %v12738_v53  ;;  %v12749_v36 = vadd.f32 %v5872_v33, %v12734_v44 }
 0x884   : > { %v5876_v20 = vpop.f32.mrf.mxu1  ;;  %6238 = vmatpush1.bf16.msra.mxu0 %v5969_v62  ;;  %v5953_v62 = vpack.c.bf16 %v5778_v12, %v5774_v8 }
 0x885   : > { %v5948_v49 = vpack.c.bf16 %v12749_v36, %v12744_v37  ;;  %6239 = vmatprep.subr.bf16.mxu0 %v5966_v31  ;;  %v12782_v30 = vadd.f32 %v5876_v20, %v12760_v22  ;;  %v9342_v31 = vcombine.high %v6033_v1, %v6037_v10  ;;  %v6157_v36 = vld [vmem:[#allocation7 + $0x5a0] sm:$0xff] }
 0x886   : > { %v5878_v27 = vpop.f32.mrf.mxu1 }
 0x887   : > { %v12792_v55 = vadd.f32 %v5878_v27, %v12774_v58  ;;  %v6001_v27 = vld [vmem:[#allocation7 + $0xc0] sm:$0xff] }
 0x888   : > { %v5880_v61 = vpop.f32.mrf.mxu1  ;;  %6240 = vmatpush1.bf16.msra.mxu0 %v5965_v3  ;;  %v9326_v3 = vcombine.high %v6017_v11, %v6021_v0 }
 0x889   : > { %v12785_v16 = vadd.f32 %v5880_v61, %v12765_v50  ;;  %6241 = vmatprep.subr.bf16.mxu0 %v5962_v6  ;;  %v9310_v61 = vcombine.high %v6001_v27, %v6005_v13 }
 0x88a   : > { %v5882_v2 = vpop.f32.mrf.mxu1 }
 0x88b   : > { %v5951_v46 = vpack.c.bf16 %v12785_v16, %v12782_v30  ;;  %v12797_v43 = vadd.f32 %v5882_v2, %v12779_v52  ;;  %v5997_v2 = vld [vmem:[#allocation7 + $0xa0] sm:$0xff]  ;;  %v12902_v16 = vld [vmem:[#allocation7 + $0x1c8] sm:$0xff] }
 0x88c   : > { %v12799_v15 = vpop.f32.mrf.mxu1  ;;  %6242 = vmatpush1.bf16.msra.mxu0 %v5961_v54  ;;  %v9317_v54 = vcombine.low %v6009_v9, %v6013_v47  ;;  %v9302_v8 = vcombine.high %v5993_v57, %v5997_v2  ;;  %v9301_v10 = vcombine.low %v5993_v57, %v5997_v2  ;;  %v6101_v9 = vld [vmem:[#allocation7 + $0x3e0] sm:$0xff] }
 0x88d   : > { %v5952_v18 = vpack.c.bf16 %v12797_v43, %v12792_v55  ;;  %6243 = vmatprep.subr.bf16.mxu0 %v5958_v4  ;;  %v6165_v30 = vld [vmem:[#allocation7 + $0x5e0] sm:$0xff] }
 0x88e   : > { %v12807_v51 = vpop.f32.mrf.mxu1 }
 0x890   : > { %v12809_v5 = vpop.f32.mrf.mxu1  ;;  %6244 = vmatpush1.bf16.msra.mxu0 %v5957_v38  ;;  %v9309_v38 = vcombine.low %v6001_v27, %v6005_v13 }
 0x891   : > { %6245 = vmatprep.subr.bf16.mxu0 %v5954_v34  ;;  %v5985_v34 = vld [vmem:[#allocation7 + $0x40] sm:$0xff] }
 0x892   : > { %v12811_v29 = vpop.f32.mrf.mxu1 }
 0x894   : > { %v12813_v45 = vpop.f32.mrf.mxu1  ;;  %6246 = vmatpush1.bf16.msra.mxu0 %v5953_v62  ;;  %v5989_v62 = vld [vmem:[#allocation7 + $0x60] sm:$0xff] }
 0x895   : > { %6247 = vmatprep.subr.bf16.mxu0 %v5950_v40  ;;  %v12835_v40 = vld [vmem:[#allocation9] sm:$0x3]  ;;  %v9293_v11 = vcombine.low %v5985_v34, %v5989_v62 }
 0x896   : > { %v12818_v28 = vpop.f32.mrf.mxu1 }
 0x898   : > { %v12820_v63 = vpop.f32.mrf.mxu1  ;;  %6248 = vmatpush1.bf16.msra.mxu0 %v5949_v60  ;;  %v9333_v60 = vcombine.low %v6025_v24, %v6029_v19  ;;  %v5977_v19 = vld [vmem:[#allocation7] sm:$0xff] }
 0x899   : > { %6249 = vmatprep.subr.bf16.mxu0 %v5946_v56 }
 0x89a   : > { %v12828_v33 = vpop.f32.mrf.mxu1 }
 0x89c   : > { %v12830_v23 = vpop.f32.mrf.mxu1  ;;  %6250 = vmatpush1.bf16.msra.mxu0 %v5945_v14 }
 0x89d   : > { %7642 = vmatprep.subr.bf16.mxu0 %v9342_v31  ;;  %v9294_v31 = vcombine.high %v5985_v34, %v5989_v62 }
 0x89e   : > { %v12837_v59 = vpop.f32.mrf.mxu1 }
 0x89f   : > { %6268 = vmatmul.mubr.bf16.vlgmr.msra.gmra.mxu0 %v12835_v40 }
 0x8a0   : > { %v12840_v56 = vpop.f32.mrf.mxu1  ;;  %7643 = vmatpush1.bf16.msra.mxu0 %v9341_v48  ;;  %v5981_v48 = vld [vmem:[#allocation7 + $0x20] sm:$0xff] }
 0x8a1   : > { %7644 = vmatprep.subr.bf16.mxu0 %v9334_v21  ;;  %v9286_v0 = vcombine.high %v5977_v19, %v5981_v48 }
 0x8a2   : > { %v12842_v20 = vpop.f32.mrf.mxu1 }
 0x8a4   : > { %v12844_v14 = vpop.f32.mrf.mxu1  ;;  %7645 = vmatpush1.bf16.msra.mxu0 %v9333_v60 }
 0x8a5   : > { %7646 = vmatprep.subr.bf16.mxu0 %v9326_v3  ;;  %v6097_v3 = vld [vmem:[#allocation7 + $0x3c0] sm:$0xff] }
 0x8a6   : > { %v12846_v6 = vpop.f32.mrf.mxu1  ;;  %v9405_v34 = vcombine.low %v6097_v3, %v6101_v9 }
 0x8a8   : > { %v12848_v7 = vpop.f32.mrf.mxu1  ;;  %7647 = vmatpush1.bf16.msra.mxu0 %v9325_v25  ;;  %v9285_v25 = vcombine.low %v5977_v19, %v5981_v48 }
 0x8a9   : > { %7648 = vmatprep.subr.bf16.mxu0 %v9318_v39  ;;  %v9406_v39 = vcombine.high %v6097_v3, %v6101_v9 }
 0x8aa   : > { %v5922_v4 = vpop.f32.mrf.mxu1 }
 0x8ac   : > { %v5926_v41 = vpop.f32.mrf.mxu1  ;;  %7649 = vmatpush1.bf16.msra.mxu0 %v9317_v54  ;;  %v6089_v54 = vld [vmem:[#allocation7 + $0x380] sm:$0xff] }
 0x8ad   : > { %7650 = vmatprep.subr.bf16.mxu0 %v9310_v61  ;;  %v6093_v61 = vld [vmem:[#allocation7 + $0x3a0] sm:$0xff] }
 0x8ae   : > { %v5928_v12 = vpop.f32.mrf.mxu1 }
 0x8af   : > { %v5929_v62 = vadd.f32 %v5928_v12, %v12729_v35  ;;  %v5919_v12 = vadd.f32 %v12846_v6, %v12774_v58  ;;  %v5909_v6 = vadd.f32 %v12837_v59, %v12729_v35  ;;  %v5899_v59 = vadd.f32 %v12818_v28, %v12774_v58 }
 0x8b0   : > { %v5930_v1 = vpop.f32.mrf.mxu1  ;;  %7651 = vmatpush1.bf16.msra.mxu0 %v9309_v38 }
 0x8b1   : > { %7652 = vmatprep.subr.bf16.mxu0 %v9302_v8  ;;  %v5931_v19 = vadd.f32 %v5930_v1, %v12721_v32  ;;  %v5921_v1 = vadd.f32 %v12848_v7, %v12765_v50  ;;  %v5911_v7 = vadd.f32 %v12840_v56, %v12721_v32  ;;  %v5901_v56 = vadd.f32 %v12820_v63, %v12765_v50 }
 0x8b2   : > { %v5932_v24 = vpop.f32.mrf.mxu1 }
 0x8b3   : > { %v5933_v57 = vadd.f32 %v5932_v24, %v12734_v44  ;;  %v5923_v24 = vadd.f32 %v5922_v4, %v12779_v52  ;;  %v5913_v4 = vadd.f32 %v12842_v20, %v12734_v44  ;;  %v5903_v20 = vadd.f32 %v12828_v33, %v12779_v52 }
 0x8b4   : > { %v5936_v21 = vpop.f32.mrf.mxu1  ;;  %7653 = vmatpush1.bf16.msra.mxu0 %v9301_v10 }
 0x8b5   : > { %7654 = vmatprep.subr.bf16.mxu0 %v9294_v31  ;;  %v5937_v8 = vadd.f32 %v5936_v21, %v12760_v22  ;;  %v9398_v31 = vcombine.high %v6089_v54, %v6093_v61  ;;  %v9397_v21 = vcombine.low %v6089_v54, %v6093_v61  ;;  %v5960_v33 = vpack.c.bf16 %v5903_v20, %v5899_v59 }
 0x8b6   : > { %v5938_v60 = vpop.f32.mrf.mxu1 }
 0x8b7   : > { %v5939_v2 = vadd.f32 %v5938_v60, %v12774_v58  ;;  %v5927_v60 = vadd.f32 %v5926_v41, %v12716_v17  ;;  %v5917_v41 = vadd.f32 %v12844_v14, %v12760_v22  ;;  %v5907_v14 = vadd.f32 %v12830_v23, %v12716_v17 }
 0x8b8   : > { %v5940_v47 = vpop.f32.mrf.mxu1  ;;  %7655 = vmatpush1.bf16.msra.mxu0 %v9293_v11  ;;  %v6081_v11 = vld [vmem:[#allocation7 + $0x340] sm:$0xff]  ;;  %v5897_v23 = vadd.f32 %v12813_v45, %v12760_v22  ;;  %v5889_v58 = vadd.f32 %v12807_v51, %v12729_v35 }
 0x8b9   : > { %7656 = vmatprep.subr.bf16.mxu0 %v9286_v0  ;;  %v5941_v27 = vadd.f32 %v5940_v47, %v12765_v50  ;;  %v6085_v0 = vld [vmem:[#allocation7 + $0x360] sm:$0xff]  ;;  %v5972_v47 = vpack.c.bf16 %v5933_v57, %v5929_v62  ;;  %v5971_v9 = vpack.c.bf16 %v5931_v19, %v5927_v60  ;;  %v5967_v61 = vpack.c.bf16 %v5921_v1, %v5917_v41 }
 0x8ba   : > { %v5942_v13 = vpop.f32.mrf.mxu1  ;;  %v9390_v3 = vcombine.high %v6081_v11, %v6085_v0  ;;  %v6065_v57 = vld [vmem:[#allocation7 + $0x2c0] sm:$0xff]  ;;  %v5963_v62 = vpack.c.bf16 %v5911_v7, %v5907_v14  ;;  %v5891_v50 = vadd.f32 %v12809_v5, %v12721_v32  ;;  %v5959_v63 = vpack.c.bf16 %v5901_v56, %v5897_v23 }
 0x8bb   : > { %v5943_v38 = vadd.f32 %v5942_v13, %v12779_v52  ;;  %v5975_v48 = vpack.c.bf16 %v5941_v27, %v5937_v8  ;;  %v5968_v27 = vpack.c.bf16 %v5923_v24, %v5919_v12  ;;  %v9389_v13 = vcombine.low %v6081_v11, %v6085_v0  ;;  %v6053_v11 = vld [vmem:[#allocation7 + $0x260] sm:$0xff] }
 0x8bc   : > { %7657 = vmatpush1.bf16.msra.mxu0 %v9285_v25  ;;  %v6073_v25 = vld [vmem:[#allocation7 + $0x300] sm:$0xff]  ;;  %v5893_v52 = vadd.f32 %v12811_v29, %v12734_v44  ;;  %v5887_v29 = vadd.f32 %v12799_v15, %v12716_v17 }
 0x8bd   : > { %v5976_v10 = vpack.c.bf16 %v5943_v38, %v5939_v2  ;;  %7658 = vmatprep.subr.bf16.mxu0 %v9406_v39  ;;  %v6077_v39 = vld [vmem:[#allocation7 + $0x320] sm:$0xff]  ;;  %v5964_v38 = vpack.c.bf16 %v5913_v4, %v5909_v6 }
 0x8be   : > { %v9382_v54 = vcombine.high %v6073_v25, %v6077_v39  ;;  %v6069_v2 = vld [vmem:[#allocation7 + $0x2e0] sm:$0xff]  ;;  %v9381_v8 = vcombine.low %v6073_v25, %v6077_v39  ;;  %v5956_v44 = vpack.c.bf16 %v5893_v52, %v5889_v58  ;;  %v5955_v35 = vpack.c.bf16 %v5891_v50, %v5887_v29 }
 0x8bf   : > { %6276 = vmatprep.subr.bf16.mxu1 %v5976_v10  ;;  %v6057_v10 = vld [vmem:[#allocation7 + $0x280] sm:$0xff]  ;;  %v9373_v19 = vcombine.low %v6065_v57, %v6069_v2 }
 0x8c0   : > { %6277 = vmatpush1.bf16.msra.mxu1 %v5975_v48  ;;  %7659 = vmatpush2.bf16.msra.mxu0 %v9405_v34  ;;  %v9374_v34 = vcombine.high %v6065_v57, %v6069_v2  ;;  %v6049_v48 = vld [vmem:[#allocation7 + $0x240] sm:$0xff] }
 0x8c1   : > { %6278 = vmatprep.subr.bf16.mxu1 %v5972_v47  ;;  %7660 = vmatprep.subr.bf16.mxu0 %v9398_v31  ;;  %v6061_v31 = vld [vmem:[#allocation7 + $0x2a0] sm:$0xff]  ;;  %v9358_v45 = vcombine.high %v6049_v48, %v6053_v11  ;;  %v9357_v51 = vcombine.low %v6049_v48, %v6053_v11 }
 0x8c2   : > { %v9366_v28 = vcombine.high %v6057_v10, %v6061_v31  ;;  %v9365_v22 = vcombine.low %v6057_v10, %v6061_v31  ;;  %v6041_v17 = vld [vmem:[#allocation7 + $0x200] sm:$0xff] }
 0x8c3   : > { %v6045_v32 = vld [vmem:[#allocation7 + $0x220] sm:$0xff] }
 0x8c4   : > { %6279 = vmatpush1.bf16.msra.mxu1 %v5971_v9  ;;  %7661 = vmatpush2.bf16.msra.mxu0 %v9397_v21  ;;  %v9350_v55 = vcombine.high %v6041_v17, %v6045_v32  ;;  %v9349_v43 = vcombine.low %v6041_v17, %v6045_v32  ;;  %v6161_v15 = vld [vmem:[#allocation7 + $0x5c0] sm:$0xff] }
 0x8c5   : > { %6280 = vmatprep.subr.bf16.mxu1 %v5968_v27  ;;  %7662 = vmatprep.subr.bf16.mxu0 %v9390_v3  ;;  %v9469_v37 = vcombine.low %v6161_v15, %v6165_v30  ;;  %v6149_v0 = vld [vmem:[#allocation7 + $0x560] sm:$0xff] }
 0x8c6   : > { %v6137_v60 = vld [vmem:[#allocation7 + $0x500] sm:$0xff] }
 0x8c7   : > { %v6141_v21 = vld [vmem:[#allocation7 + $0x520] sm:$0xff] }
 0x8c8   : > { %6281 = vmatpush1.bf16.msra.mxu1 %v5967_v61  ;;  %7663 = vmatpush2.bf16.msra.mxu0 %v9389_v13  ;;  %v9445_v12 = vcombine.low %v6137_v60, %v6141_v21  ;;  %v9446_v3 = vcombine.high %v6137_v60, %v6141_v21  ;;  %v6129_v1 = vld [vmem:[#allocation7 + $0x4c0] sm:$0xff] }
 0x8c9   : > { %6282 = vmatprep.subr.bf16.mxu1 %v5964_v38  ;;  %7664 = vmatprep.subr.bf16.mxu0 %v9382_v54  ;;  %v6133_v9 = vld [vmem:[#allocation7 + $0x4e0] sm:$0xff] }
 0x8ca   : > { %v9437_v25 = vcombine.low %v6129_v1, %v6133_v9  ;;  %v9438_v39 = vcombine.high %v6129_v1, %v6133_v9  ;;  %v6121_v4 = vld [vmem:[#allocation7 + $0x480] sm:$0xff]  ;;  %v6022_v1 = vld [vmem:[#allocation7 + $0x168] sm:$0xff] }
 0x8cb   : > { %v6125_v27 = vld [vmem:[#allocation7 + $0x4a0] sm:$0xff] }
 0x8cc   : > { %6283 = vmatpush1.bf16.msra.mxu1 %v5963_v62  ;;  %7665 = vmatpush2.bf16.msra.mxu0 %v9381_v8  ;;  %v9429_v41 = vcombine.low %v6121_v4, %v6125_v27  ;;  %v9430_v13 = vcombine.high %v6121_v4, %v6125_v27  ;;  %v6113_v6 = vld [vmem:[#allocation7 + $0x440] sm:$0xff]  ;;  %v6010_v4 = vld [vmem:[#allocation7 + $0x108] sm:$0xff] }
 0x8cd   : > { %6284 = vmatprep.subr.bf16.mxu1 %v5960_v33  ;;  %7666 = vmatprep.subr.bf16.mxu0 %v9374_v34  ;;  %v6117_v54 = vld [vmem:[#allocation7 + $0x460] sm:$0xff]  ;;  %v6014_v27 = vld [vmem:[#allocation7 + $0x128] sm:$0xff] }
 0x8ce   : > { %v9421_v7 = vcombine.low %v6113_v6, %v6117_v54  ;;  %v9422_v61 = vcombine.high %v6113_v6, %v6117_v54  ;;  %v6105_v57 = vld [vmem:[#allocation7 + $0x400] sm:$0xff]  ;;  %v6002_v6 = vld [vmem:[#allocation7 + $0xc8] sm:$0xff] }
 0x8cf   : > { %v6109_v2 = vld [vmem:[#allocation7 + $0x420] sm:$0xff]  ;;  %v6006_v54 = vld [vmem:[#allocation7 + $0xe8] sm:$0xff] }
 0x8d0   : > { %6285 = vmatpush1.bf16.msra.mxu1 %v5959_v63  ;;  %7667 = vmatpush2.bf16.msra.mxu0 %v9373_v19  ;;  %v9413_v20 = vcombine.low %v6105_v57, %v6109_v2  ;;  %v9414_v38 = vcombine.high %v6105_v57, %v6109_v2  ;;  %v6225_v14 = vld [vmem:[#allocation7 + $0x7c0] sm:$0xff]  ;;  %v5994_v57 = vld [vmem:[#allocation7 + $0x88] sm:$0xff] }
 0x8d1   : > { %6286 = vmatprep.subr.bf16.mxu1 %v5956_v44  ;;  %7668 = vmatprep.subr.bf16.mxu0 %v9366_v28  ;;  %v6229_v8 = vld [vmem:[#allocation7 + $0x7e0] sm:$0xff]  ;;  %v5986_v2 = vld [vmem:[#allocation7 + $0x48] sm:$0xff] }
 0x8d2   : > { %v9533_v59 = vcombine.low %v6225_v14, %v6229_v8  ;;  %v9534_v34 = vcombine.high %v6225_v14, %v6229_v8  ;;  %v6217_v56 = vld [vmem:[#allocation7 + $0x780] sm:$0xff]  ;;  %v5978_v8 = vld [vmem:[#allocation7 + $0x8] sm:$0xff] }
 0x8d3   : > { %v6221_v62 = vld [vmem:[#allocation7 + $0x7a0] sm:$0xff] }
 0x8d4   : > { %6287 = vmatpush1.bf16.msra.mxu1 %v5955_v35  ;;  %7669 = vmatpush2.bf16.msra.mxu0 %v9365_v22  ;;  %v9525_v10 = vcombine.low %v6217_v56, %v6221_v62  ;;  %v9526_v31 = vcombine.high %v6217_v56, %v6221_v62  ;;  %v6209_v52 = vld [vmem:[#allocation7 + $0x740] sm:$0xff]  ;;  %v6098_v62 = vld [vmem:[#allocation7 + $0x3c8] sm:$0xff] }
 0x8d5   : > { %6288 = vmatprep.subr.bf16.mxu1 %v5952_v18  ;;  %7670 = vmatprep.subr.bf16.mxu0 %v9358_v45  ;;  %v12904_v18 = vld [vmem:[#allocation7 + $0x1e8] sm:$0xff]  ;;  %v6213_v33 = vld [vmem:[#allocation7 + $0x760] sm:$0xff] }
 0x8d6   : > { %v9343_v53 = vcombine.low %v12902_v16, %v12904_v18  ;;  %v9344_v26 = vcombine.high %v12902_v16, %v12904_v18  ;;  %v9517_v23 = vcombine.low %v6209_v52, %v6213_v33  ;;  %v9518_v19 = vcombine.high %v6209_v52, %v6213_v33  ;;  %v6201_v58 = vld [vmem:[#allocation7 + $0x700] sm:$0xff]  ;;  %v5998_v16 = vld [vmem:[#allocation7 + $0xa8] sm:$0xff] }
 0x8d7   : > { %v6205_v28 = vld [vmem:[#allocation7 + $0x720] sm:$0xff]  ;;  %v9311_v18 = vcombine.low %v6002_v6, %v6006_v54  ;;  %v6090_v33 = vld [vmem:[#allocation7 + $0x388] sm:$0xff] }
 0x8d8   : > { %6289 = vmatpush1.bf16.msra.mxu1 %v5951_v46  ;;  %7671 = vmatpush2.bf16.msra.mxu0 %v9357_v51  ;;  %v9470_v46 = vcombine.high %v6161_v15, %v6165_v30  ;;  %v9509_v50 = vcombine.low %v6201_v58, %v6205_v28  ;;  %v9510_v63 = vcombine.high %v6201_v58, %v6205_v28  ;;  %v6193_v48 = vld [vmem:[#allocation7 + $0x6c0] sm:$0xff]  ;;  %v6082_v28 = vld [vmem:[#allocation7 + $0x348] sm:$0xff] }
 0x8d9   : > { %6290 = vmatprep.subr.bf16.mxu1 %v5948_v49  ;;  %7672 = vmatprep.subr.bf16.mxu0 %v9350_v55  ;;  %v6197_v11 = vld [vmem:[#allocation7 + $0x6e0] sm:$0xff] }
 0x8da   : > { %v9501_v44 = vcombine.low %v6193_v48, %v6197_v11  ;;  %v9502_v29 = vcombine.high %v6193_v48, %v6197_v11  ;;  %v6185_v22 = vld [vmem:[#allocation7 + $0x680] sm:$0xff]  ;;  %v6074_v11 = vld [vmem:[#allocation7 + $0x308] sm:$0xff] }
 0x8db   : > { %v6189_v45 = vld [vmem:[#allocation7 + $0x6a0] sm:$0xff] }
 0x8dc   : > { %6291 = vmatpush1.bf16.msra.mxu1 %v5947_v42  ;;  %7673 = vmatpush2.bf16.msra.mxu0 %v9349_v43  ;;  %v6153_v42 = vld [vmem:[#allocation7 + $0x580] sm:$0xff]  ;;  %v9493_v35 = vcombine.low %v6185_v22, %v6189_v45  ;;  %v9494_v51 = vcombine.high %v6185_v22, %v6189_v45  ;;  %v6066_v45 = vld [vmem:[#allocation7 + $0x2c8] sm:$0xff] }
 0x8dd   : > { %7683 = vmatprep.subr.bf16.mxu1 %v9470_v46  ;;  %7724 = vmatprep.subr.bf16.mxu0 %v9344_v26  ;;  %v9461_v49 = vcombine.low %v6153_v42, %v6157_v36  ;;  %v9462_v5 = vcombine.high %v6153_v42, %v6157_v36  ;;  %v6177_v17 = vld [vmem:[#allocation7 + $0x640] sm:$0xff]  ;;  %v12910_v26 = vld [vmem:[#allocation7 + $0x5c8] sm:$0xff] }
 0x8de   : > { %v6181_v32 = vld [vmem:[#allocation7 + $0x660] sm:$0xff]  ;;  %v12912_v42 = vld [vmem:[#allocation7 + $0x5e8] sm:$0xff] }
 0x8df   : > { %6309 = vmatmul.mubr.bf16.vlgmr.msra.gmra.mxu1 %v12835_v40  ;;  %v6145_v40 = vld [vmem:[#allocation7 + $0x540] sm:$0xff]  ;;  %v9485_v55 = vcombine.low %v6177_v17, %v6181_v32  ;;  %v9486_v43 = vcombine.high %v6177_v17, %v6181_v32  ;;  %v9472_v36 = vcombine.high %v12910_v26, %v12912_v42  ;;  %v6058_v32 = vld [vmem:[#allocation7 + $0x288] sm:$0xff] }
 0x8e0   : > { %7684 = vmatpush1.bf16.msra.mxu1 %v9469_v37  ;;  %v9453_v24 = vcombine.low %v6145_v40, %v6149_v0  ;;  %v9454_v47 = vcombine.high %v6145_v40, %v6149_v0  ;;  %v6169_v15 = vld [vmem:[#allocation7 + $0x600] sm:$0xff]  ;;  %v6026_v40 = vld [vmem:[#allocation7 + $0x188] sm:$0xff] }
 0x8e1   : > { %7685 = vmatprep.subr.bf16.mxu1 %v9462_v5  ;;  %v6173_v30 = vld [vmem:[#allocation7 + $0x620] sm:$0xff]  ;;  %v6030_v0 = vld [vmem:[#allocation7 + $0x1a8] sm:$0xff] }
 0x8e2   : > { %v9478_v46 = vcombine.high %v6169_v15, %v6173_v30  ;;  %v9477_v37 = vcombine.low %v6169_v15, %v6173_v30  ;;  %v9336_v21 = vcombine.high %v6026_v40, %v6030_v0  ;;  %v6050_v30 = vld [vmem:[#allocation7 + $0x248] sm:$0xff] }
 0x8e4   : > { %7686 = vmatpush1.bf16.msra.mxu1 %v9461_v49  ;;  %v9471_v49 = vcombine.low %v12910_v26, %v12912_v42 }
 0x8e5   : > { %7687 = vmatprep.subr.bf16.mxu1 %v9454_v47 }
 0x8e8   : > { %7688 = vmatpush1.bf16.msra.mxu1 %v9453_v24 }
 0x8e9   : > { %7689 = vmatprep.subr.bf16.mxu1 %v9446_v3  ;;  %v6018_v3 = vld [vmem:[#allocation7 + $0x148] sm:$0xff] }
 0x8ec   : > { %7690 = vmatpush1.bf16.msra.mxu1 %v9445_v12 }
 0x8ed   : > { %7691 = vmatprep.subr.bf16.mxu1 %v9438_v39  ;;  %v9328_v39 = vcombine.high %v6018_v3, %v6022_v1 }
 0x8f0   : > { %7692 = vmatpush1.bf16.msra.mxu1 %v9437_v25  ;;  %v9335_v25 = vcombine.low %v6026_v40, %v6030_v0  ;;  %v6046_v40 = vld [vmem:[#allocation7 + $0x228] sm:$0xff] }
 0x8f1   : > { %7693 = vmatprep.subr.bf16.mxu1 %v9430_v13  ;;  %v9320_v13 = vcombine.high %v6010_v4, %v6014_v27 }
 0x8f4   : > { %7694 = vmatpush1.bf16.msra.mxu1 %v9429_v41  ;;  %v9327_v41 = vcombine.low %v6018_v3, %v6022_v1 }
 0x8f5   : > { %7695 = vmatprep.subr.bf16.mxu1 %v9422_v61  ;;  %v9312_v61 = vcombine.high %v6002_v6, %v6006_v54 }
 0x8f8   : > { %7696 = vmatpush1.bf16.msra.mxu1 %v9421_v7  ;;  %v9319_v7 = vcombine.low %v6010_v4, %v6014_v27  ;;  %v6027_v4 = vld [vmem:[#allocation7 + $0x190] sm:$0xff] }
 0x8f9   : > { %7697 = vmatprep.subr.bf16.mxu1 %v9414_v38  ;;  %v9303_v38 = vcombine.low %v5994_v57, %v5998_v16  ;;  %v6031_v27 = vld [vmem:[#allocation7 + $0x1b0] sm:$0xff] }
 0x8fc   : > { %7698 = vmatpush1.bf16.msra.mxu1 %v9413_v20  ;;  %v5990_v20 = vld [vmem:[#allocation7 + $0x68] sm:$0xff] }
 0x8fd   : > { %7699 = vmatprep.subr.bf16.mxu1 %v9534_v34  ;;  %v9296_v14 = vcombine.high %v5986_v2, %v5990_v20  ;;  %v9295_v34 = vcombine.low %v5986_v2, %v5990_v20  ;;  %v6023_v2 = vld [vmem:[#allocation7 + $0x170] sm:$0xff] }
 0x900   : > { %7700 = vmatpush2.bf16.msra.mxu1 %v9533_v59  ;;  %v5982_v59 = vld [vmem:[#allocation7 + $0x28] sm:$0xff] }
 0x901   : > { %7701 = vmatprep.subr.bf16.mxu1 %v9526_v31  ;;  %v9288_v56 = vcombine.high %v5978_v8, %v5982_v59  ;;  %v9287_v31 = vcombine.low %v5978_v8, %v5982_v59 }
 0x904   : > { %7702 = vmatpush2.bf16.msra.mxu1 %v9525_v10  ;;  %v6102_v10 = vld [vmem:[#allocation7 + $0x3e8] sm:$0xff] }
 0x905   : > { %7703 = vmatprep.subr.bf16.mxu1 %v9518_v19  ;;  %v9408_v52 = vcombine.high %v6098_v62, %v6102_v10  ;;  %v9407_v19 = vcombine.low %v6098_v62, %v6102_v10  ;;  %v6011_v62 = vld [vmem:[#allocation7 + $0x110] sm:$0xff] }
 0x906   : > { %v6015_v10 = vld [vmem:[#allocation7 + $0x130] sm:$0xff] }
 0x908   : > { %7704 = vmatpush2.bf16.msra.mxu1 %v9517_v23  ;;  %v6094_v23 = vld [vmem:[#allocation7 + $0x3a8] sm:$0xff] }
 0x909   : > { %7705 = vmatprep.subr.bf16.mxu1 %v9510_v63  ;;  %v9400_v58 = vcombine.high %v6090_v33, %v6094_v23  ;;  %v9399_v63 = vcombine.low %v6090_v33, %v6094_v23  ;;  %v6134_v33 = vld [vmem:[#allocation7 + $0x4e8] sm:$0xff]  ;;  %v6003_v23 = vld [vmem:[#allocation7 + $0xd0] sm:$0xff] }
 0x90c   : > { %7706 = vmatpush2.bf16.msra.mxu1 %v9509_v50  ;;  %v6086_v50 = vld [vmem:[#allocation7 + $0x368] sm:$0xff] }
 0x90d   : > { %7707 = vmatprep.subr.bf16.mxu1 %v9502_v29  ;;  %v9392_v48 = vcombine.high %v6082_v28, %v6086_v50  ;;  %v9391_v29 = vcombine.low %v6082_v28, %v6086_v50  ;;  %v9321_v28 = vcombine.low %v6011_v62, %v6015_v10 }
 0x910   : > { %7708 = vmatpush2.bf16.msra.mxu1 %v9501_v44  ;;  %v6078_v44 = vld [vmem:[#allocation7 + $0x328] sm:$0xff] }
 0x911   : > { %7709 = vmatprep.subr.bf16.mxu1 %v9494_v51  ;;  %v9384_v22 = vcombine.high %v6074_v11, %v6078_v44  ;;  %v9383_v51 = vcombine.low %v6074_v11, %v6078_v44  ;;  %v6126_v11 = vld [vmem:[#allocation7 + $0x4a8] sm:$0xff]  ;;  %v5995_v44 = vld [vmem:[#allocation7 + $0x90] sm:$0xff] }
 0x914   : > { %7710 = vmatpush2.bf16.msra.mxu1 %v9493_v35  ;;  %v6070_v35 = vld [vmem:[#allocation7 + $0x2e8] sm:$0xff] }
 0x915   : > { %7711 = vmatprep.subr.bf16.mxu1 %v9486_v43  ;;  %v9376_v17 = vcombine.high %v6066_v45, %v6070_v35  ;;  %v9375_v43 = vcombine.low %v6066_v45, %v6070_v35 }
 0x918   : > { %7712 = vmatpush2.bf16.msra.mxu1 %v9485_v55  ;;  %v6062_v55 = vld [vmem:[#allocation7 + $0x2a8] sm:$0xff] }
 0x919   : > { %7713 = vmatprep.subr.bf16.mxu1 %v9478_v46  ;;  %v9368_v15 = vcombine.high %v6058_v32, %v6062_v55  ;;  %v6054_v46 = vld [vmem:[#allocation7 + $0x268] sm:$0xff] }
 0x91a   : > { %v9359_v0 = vcombine.low %v6050_v30, %v6054_v46 }
 0x91c   : > { %7714 = vmatpush2.bf16.msra.mxu1 %v9477_v37  ;;  %v9367_v37 = vcombine.low %v6058_v32, %v6062_v55  ;;  %v6118_v32 = vld [vmem:[#allocation7 + $0x468] sm:$0xff]  ;;  %v5987_v55 = vld [vmem:[#allocation7 + $0x50] sm:$0xff] }
 0x91d   : > { %7765 = vmatprep.subr.bf16.mxu1 %v9472_v36  ;;  %v9360_v36 = vcombine.high %v6050_v30, %v6054_v46 }
 0x95f   : > { %v6269_v5 = vpop.f32.mrf.mxu0 }
 0x960   : > { %v12918_v24 = vpack.c.bf16 %v6269_v5, %v6269_v5  ;;  %v6042_v5 = vld [vmem:[#allocation7 + $0x208] sm:$0xff] }
 0x961   : > { %v6271_v47 = vpop.f32.mrf.mxu0  ;;  %v9351_v3 = vcombine.low %v6042_v5, %v6046_v40 }
 0x962   : > { %v12920_v60 = vpack.c.bf16 %v6271_v47, %v6271_v47  ;;  %v9352_v47 = vcombine.high %v6042_v5, %v6046_v40  ;;  %v6110_v5 = vld [vmem:[#allocation7 + $0x428] sm:$0xff]  ;;  %v5979_v40 = vld [vmem:[#allocation7 + $0x10] sm:$0xff] }
 0x963   : > { %v6273_v12 = vpop.f32.mrf.mxu0 }
 0x964   : > { %7674 = vmatprep.mubr.bf16.mxu0 %v12920_v60  ;;  %v6039_v12 = vld [vmem:[#allocation7 + $0x1f0] sm:$0xff] }
 0x965   : > { %7675 = vmatmul.mubr.bf16.vlgmr.msra.gmra.mxu0 %v12918_v24  ;;  %v6274_v9 = vpop.f32.mrf.mxu0 }
 0x966   : > { %7725 = vmatpush1.bf16.msra.mxu0 %v9343_v53  ;;  %7756 = vmatprep.mubr.bf16.mxu0 %v12920_v60  ;;  %v9304_v53 = vcombine.high %v5994_v57, %v5998_v16  ;;  %v6146_v57 = vld [vmem:[#allocation7 + $0x548] sm:$0xff] }
 0x967   : > { %7726 = vmatprep.subr.bf16.mxu0 %v9336_v21  ;;  %v6035_v21 = vld [vmem:[#allocation7 + $0x1d0] sm:$0xff] }
 0x968   : > { %v9346_v9 = vcombine.high %v6035_v21, %v6039_v12  ;;  %v9345_v6 = vcombine.low %v6035_v21, %v6039_v12 }
 0x96a   : > { %7727 = vmatpush1.bf16.msra.mxu0 %v9335_v25  ;;  %v6154_v25 = vld [vmem:[#allocation7 + $0x588] sm:$0xff] }
 0x96b   : > { %7728 = vmatprep.subr.bf16.mxu0 %v9328_v39  ;;  %v6158_v39 = vld [vmem:[#allocation7 + $0x5a8] sm:$0xff] }
 0x96e   : > { %7729 = vmatpush1.bf16.msra.mxu0 %v9327_v41 }
 0x96f   : > { %7730 = vmatprep.subr.bf16.mxu0 %v9320_v13 }
 0x972   : > { %7731 = vmatpush1.bf16.msra.mxu0 %v9319_v7  ;;  %v9464_v7 = vcombine.high %v6154_v25, %v6158_v39 }
 0x973   : > { %7732 = vmatprep.subr.bf16.mxu0 %v9312_v61  ;;  %v9338_v61 = vcombine.high %v6027_v4, %v6031_v27 }
 0x976   : > { %7733 = vmatpush1.bf16.msra.mxu0 %v9311_v18  ;;  %v6150_v18 = vld [vmem:[#allocation7 + $0x568] sm:$0xff] }
 0x977   : > { %7734 = vmatprep.subr.bf16.mxu0 %v9304_v53  ;;  %v6019_v53 = vld [vmem:[#allocation7 + $0x150] sm:$0xff]  ;;  %v9456_v8 = vcombine.high %v6146_v57, %v6150_v18 }
 0x978   : > { %v9330_v59 = vcombine.high %v6019_v53, %v6023_v2  ;;  %v9329_v26 = vcombine.low %v6019_v53, %v6023_v2 }
 0x97a   : > { %7735 = vmatpush1.bf16.msra.mxu0 %v9303_v38  ;;  %v9463_v38 = vcombine.low %v6154_v25, %v6158_v39  ;;  %v6099_v25 = vld [vmem:[#allocation7 + $0x3d0] sm:$0xff] }
 0x97b   : > { %7736 = vmatprep.subr.bf16.mxu0 %v9296_v14  ;;  %v9337_v14 = vcombine.low %v6027_v4, %v6031_v27  ;;  %v6103_v39 = vld [vmem:[#allocation7 + $0x3f0] sm:$0xff] }
 0x97c   : > { %v9409_v53 = vcombine.low %v6099_v25, %v6103_v39 }
 0x97e   : > { %7737 = vmatpush1.bf16.msra.mxu0 %v9295_v34  ;;  %v6138_v34 = vld [vmem:[#allocation7 + $0x508] sm:$0xff] }
 0x97f   : > { %7738 = vmatprep.subr.bf16.mxu0 %v9288_v56  ;;  %v6142_v56 = vld [vmem:[#allocation7 + $0x528] sm:$0xff] }
 0x980   : > { %v9448_v42 = vcombine.high %v6138_v34, %v6142_v56 }
 0x982   : > { %7739 = vmatpush1.bf16.msra.mxu0 %v9287_v31  ;;  %v9455_v31 = vcombine.low %v6146_v57, %v6150_v18  ;;  %v6091_v57 = vld [vmem:[#allocation7 + $0x390] sm:$0xff] }
 0x983   : > { %7740 = vmatprep.subr.bf16.mxu0 %v9408_v52  ;;  %v6130_v52 = vld [vmem:[#allocation7 + $0x4c8] sm:$0xff] }
 0x984   : > { %v9440_v50 = vcombine.high %v6130_v52, %v6134_v33 }
 0x986   : > { %7741 = vmatpush2.bf16.msra.mxu0 %v9407_v19  ;;  %v6007_v19 = vld [vmem:[#allocation7 + $0xf0] sm:$0xff] }
 0x987   : > { %7742 = vmatprep.subr.bf16.mxu0 %v9400_v58  ;;  %v9447_v58 = vcombine.low %v6138_v34, %v6142_v56  ;;  %v9313_v45 = vcombine.low %v6003_v23, %v6007_v19 }
 0x98a   : > { %7743 = vmatpush2.bf16.msra.mxu0 %v9399_v63  ;;  %v9314_v63 = vcombine.high %v6003_v23, %v6007_v19 }
 0x98b   : > { %7744 = vmatprep.subr.bf16.mxu0 %v9392_v48  ;;  %v6122_v48 = vld [vmem:[#allocation7 + $0x488] sm:$0xff] }
 0x98c   : > { %v9432_v35 = vcombine.high %v6122_v48, %v6126_v11 }
 0x98e   : > { %7745 = vmatpush2.bf16.msra.mxu0 %v9391_v29  ;;  %v5999_v29 = vld [vmem:[#allocation7 + $0xb0] sm:$0xff] }
 0x98f   : > { %7746 = vmatprep.subr.bf16.mxu0 %v9384_v22  ;;  %v9439_v22 = vcombine.low %v6130_v52, %v6134_v33  ;;  %v9305_v30 = vcombine.low %v5995_v44, %v5999_v29 }
 0x992   : > { %7747 = vmatpush2.bf16.msra.mxu0 %v9383_v51  ;;  %v9306_v51 = vcombine.high %v5995_v44, %v5999_v29 }
 0x993   : > { %7748 = vmatprep.subr.bf16.mxu0 %v9376_v17  ;;  %v6114_v17 = vld [vmem:[#allocation7 + $0x448] sm:$0xff] }
 0x994   : > { %v9424_v46 = vcombine.high %v6114_v17, %v6118_v32 }
 0x996   : > { %7749 = vmatpush2.bf16.msra.mxu0 %v9375_v43  ;;  %v5991_v43 = vld [vmem:[#allocation7 + $0x70] sm:$0xff] }
 0x997   : > { %7750 = vmatprep.subr.bf16.mxu0 %v9368_v15  ;;  %v9431_v15 = vcombine.low %v6122_v48, %v6126_v11  ;;  %v9297_v21 = vcombine.low %v5987_v55, %v5991_v43 }
 0x99a   : > { %7751 = vmatpush2.bf16.msra.mxu0 %v9367_v37  ;;  %v9298_v37 = vcombine.high %v5987_v55, %v5991_v43 }
 0x99b   : > { %7752 = vmatprep.subr.bf16.mxu0 %v9360_v36  ;;  %v6106_v36 = vld [vmem:[#allocation7 + $0x408] sm:$0xff] }
 0x99c   : > { %v9416_v12 = vcombine.high %v6106_v36, %v6110_v5  ;;  %v9415_v4 = vcombine.low %v6106_v36, %v6110_v5 }
 0x99e   : > { %7753 = vmatpush2.bf16.msra.mxu0 %v9359_v0  ;;  %v5983_v0 = vld [vmem:[#allocation7 + $0x30] sm:$0xff] }
 0x99f   : > { %v6310_v1 = vpop.f32.mrf.mxu1  ;;  %7754 = vmatprep.subr.bf16.mxu0 %v9352_v47  ;;  %v9423_v47 = vcombine.low %v6114_v17, %v6118_v32  ;;  %v9289_v27 = vcombine.low %v5979_v40, %v5983_v0 }
 0x9a0   : > { %v12930_v54 = vpack.c.bf16 %v6310_v1, %v6310_v1  ;;  %v6226_v1 = vld [vmem:[#allocation7 + $0x7c8] sm:$0xff] }
 0x9a1   : > { %v6312_v41 = vpop.f32.mrf.mxu1 }
 0x9a2   : > { %v12928_v13 = vpack.c.bf16 %v6312_v41, %v6312_v41  ;;  %7755 = vmatpush2.bf16.msra.mxu0 %v9351_v3  ;;  %v9290_v3 = vcombine.high %v5979_v40, %v5983_v0 }
 0x9a3   : > { %7806 = vmatprep.subr.bf16.mxu0 %v9346_v9  ;;  %v6314_v16 = vpop.f32.mrf.mxu1  ;;  %v6230_v9 = vld [vmem:[#allocation7 + $0x7e8] sm:$0xff] }
 0x9a4   : > { %7715 = vmatprep.mubr.bf16.mxu1 %v12928_v13  ;;  %v9536_v41 = vcombine.high %v6226_v1, %v6230_v9  ;;  %v6095_v16 = vld [vmem:[#allocation7 + $0x3b0] sm:$0xff]  ;;  %v9535_v18 = vcombine.low %v6226_v1, %v6230_v9 }
 0x9a5   : > { %7716 = vmatmul.mubr.bf16.vlgmr.msra.gmra.mxu1 %v12930_v54  ;;  %7757 = vmatmul.mubr.bf16.vlgmr.msra.gmra.mxu0 %v12918_v24  ;;  %v6315_v20 = vpop.f32.mrf.mxu1  ;;  %v9401_v56 = vcombine.low %v6091_v57, %v6095_v16 }
 0x9a6   : > { %7766 = vmatpush1.bf16.msra.mxu1 %v9471_v49  ;;  %7807 = vmatpush1.bf16.msra.mxu0 %v9345_v6  ;;  %v9322_v49 = vcombine.high %v6011_v62, %v6015_v10  ;;  %v9410_v6 = vcombine.high %v6099_v25, %v6103_v39  ;;  %v9402_v20 = vcombine.high %v6091_v57, %v6095_v16 }
 0x9a7   : > { %7767 = vmatprep.subr.bf16.mxu1 %v9464_v7  ;;  %7808 = vmatprep.subr.bf16.mxu0 %v9338_v61  ;;  %v6218_v7 = vld [vmem:[#allocation7 + $0x788] sm:$0xff] }
 0x9a8   : > { %7838 = vmatprep.mubr.bf16.mxu0 %v12920_v60  ;;  %7797 = vmatprep.mubr.bf16.mxu1 %v12928_v13  ;;  %v6222_v61 = vld [vmem:[#allocation7 + $0x7a8] sm:$0xff] }
 0x9a9   : > { %v9528_v2 = vcombine.high %v6218_v7, %v6222_v61  ;;  %v9527_v34 = vcombine.low %v6218_v7, %v6222_v61 }
 0x9aa   : > { %7768 = vmatpush1.bf16.msra.mxu1 %v9463_v38  ;;  %7809 = vmatpush1.bf16.msra.mxu0 %v9337_v14  ;;  %v6210_v38 = vld [vmem:[#allocation7 + $0x748] sm:$0xff] }
 0x9ab   : > { %7769 = vmatprep.subr.bf16.mxu1 %v9456_v8  ;;  %7810 = vmatprep.subr.bf16.mxu0 %v9330_v59  ;;  %v6214_v14 = vld [vmem:[#allocation7 + $0x768] sm:$0xff]  ;;  %v6083_v8 = vld [vmem:[#allocation7 + $0x350] sm:$0xff] }
 0x9ac   : > { %v6087_v59 = vld [vmem:[#allocation7 + $0x370] sm:$0xff]  ;;  %v9520_v62 = vcombine.high %v6210_v38, %v6214_v14  ;;  %v9519_v52 = vcombine.low %v6210_v38, %v6214_v14 }
 0x9ad   : > { %v9394_v10 = vcombine.high %v6083_v8, %v6087_v59  ;;  %v9393_v33 = vcombine.low %v6083_v8, %v6087_v59 }
 0x9ae   : > { %7770 = vmatpush1.bf16.msra.mxu1 %v9455_v31  ;;  %7811 = vmatpush1.bf16.msra.mxu0 %v9329_v26  ;;  %v6202_v31 = vld [vmem:[#allocation7 + $0x708] sm:$0xff] }
 0x9af   : > { %7771 = vmatprep.subr.bf16.mxu1 %v9448_v42  ;;  %7812 = vmatprep.subr.bf16.mxu0 %v9322_v49  ;;  %v6206_v26 = vld [vmem:[#allocation7 + $0x728] sm:$0xff]  ;;  %v6075_v42 = vld [vmem:[#allocation7 + $0x310] sm:$0xff] }
 0x9b0   : > { %v6079_v49 = vld [vmem:[#allocation7 + $0x330] sm:$0xff]  ;;  %v9512_v23 = vcombine.high %v6202_v31, %v6206_v26  ;;  %v9511_v48 = vcombine.low %v6202_v31, %v6206_v26 }
 0x9b1   : > { %v9386_v19 = vcombine.high %v6075_v42, %v6079_v49  ;;  %v9385_v11 = vcombine.low %v6075_v42, %v6079_v49 }
 0x9b2   : > { %7772 = vmatpush1.bf16.msra.mxu1 %v9447_v58  ;;  %7813 = vmatpush1.bf16.msra.mxu0 %v9321_v28  ;;  %v6194_v58 = vld [vmem:[#allocation7 + $0x6c8] sm:$0xff] }
 0x9b3   : > { %7773 = vmatprep.subr.bf16.mxu1 %v9440_v50  ;;  %7814 = vmatprep.subr.bf16.mxu0 %v9314_v63  ;;  %v6198_v28 = vld [vmem:[#allocation7 + $0x6e8] sm:$0xff]  ;;  %v6067_v50 = vld [vmem:[#allocation7 + $0x2d0] sm:$0xff] }
 0x9b4   : > { %v6071_v63 = vld [vmem:[#allocation7 + $0x2f0] sm:$0xff]  ;;  %v9504_v44 = vcombine.high %v6194_v58, %v6198_v28  ;;  %v9503_v17 = vcombine.low %v6194_v58, %v6198_v28 }
 0x9b5   : > { %v9378_v29 = vcombine.high %v6067_v50, %v6071_v63  ;;  %v9377_v32 = vcombine.low %v6067_v50, %v6071_v63 }
 0x9b6   : > { %7774 = vmatpush1.bf16.msra.mxu1 %v9439_v22  ;;  %7815 = vmatpush1.bf16.msra.mxu0 %v9313_v45  ;;  %v6186_v22 = vld [vmem:[#allocation7 + $0x688] sm:$0xff] }
 0x9b7   : > { %7775 = vmatprep.subr.bf16.mxu1 %v9432_v35  ;;  %7816 = vmatprep.subr.bf16.mxu0 %v9306_v51  ;;  %v6190_v45 = vld [vmem:[#allocation7 + $0x6a8] sm:$0xff]  ;;  %v6059_v35 = vld [vmem:[#allocation7 + $0x290] sm:$0xff] }
 0x9b8   : > { %v6063_v51 = vld [vmem:[#allocation7 + $0x2b0] sm:$0xff]  ;;  %v9496_v55 = vcombine.high %v6186_v22, %v6190_v45  ;;  %v9495_v36 = vcombine.low %v6186_v22, %v6190_v45 }
 0x9b9   : > { %v9370_v43 = vcombine.high %v6059_v35, %v6063_v51  ;;  %v9369_v5 = vcombine.low %v6059_v35, %v6063_v51  ;;  %v6123_v51 = vld [vmem:[#allocation7 + $0x490] sm:$0xff] }
 0x9ba   : > { %7776 = vmatpush1.bf16.msra.mxu1 %v9431_v15  ;;  %7817 = vmatpush1.bf16.msra.mxu0 %v9305_v30  ;;  %v6178_v15 = vld [vmem:[#allocation7 + $0x648] sm:$0xff] }
 0x9bb   : > { %7777 = vmatprep.subr.bf16.mxu1 %v9424_v46  ;;  %7818 = vmatprep.subr.bf16.mxu0 %v9298_v37  ;;  %v6182_v30 = vld [vmem:[#allocation7 + $0x668] sm:$0xff]  ;;  %v6051_v46 = vld [vmem:[#allocation7 + $0x250] sm:$0xff] }
 0x9bc   : > { %v6055_v37 = vld [vmem:[#allocation7 + $0x270] sm:$0xff]  ;;  %v9488_v40 = vcombine.high %v6178_v15, %v6182_v30  ;;  %v9487_v1 = vcombine.low %v6178_v15, %v6182_v30 }
 0x9bd   : > { %v9362_v0 = vcombine.high %v6051_v46, %v6055_v37  ;;  %v9361_v9 = vcombine.low %v6051_v46, %v6055_v37  ;;  %v6115_v37 = vld [vmem:[#allocation7 + $0x450] sm:$0xff] }
 0x9be   : > { %7778 = vmatpush1.bf16.msra.mxu1 %v9423_v47  ;;  %7819 = vmatpush1.bf16.msra.mxu0 %v9297_v21  ;;  %v6170_v47 = vld [vmem:[#allocation7 + $0x608] sm:$0xff] }
 0x9bf   : > { %7779 = vmatprep.subr.bf16.mxu1 %v9416_v12  ;;  %7820 = vmatprep.subr.bf16.mxu0 %v9290_v3  ;;  %v6174_v21 = vld [vmem:[#allocation7 + $0x628] sm:$0xff]  ;;  %v6043_v12 = vld [vmem:[#allocation7 + $0x210] sm:$0xff] }
 0x9c0   : > { %v6047_v3 = vld [vmem:[#allocation7 + $0x230] sm:$0xff]  ;;  %v9480_v25 = vcombine.high %v6170_v47, %v6174_v21  ;;  %v9479_v7 = vcombine.low %v6170_v47, %v6174_v21 }
 0x9c1   : > { %v9354_v39 = vcombine.high %v6043_v12, %v6047_v3  ;;  %v9353_v61 = vcombine.low %v6043_v12, %v6047_v3  ;;  %v6107_v3 = vld [vmem:[#allocation7 + $0x410] sm:$0xff] }
 0x9c2   : > { %7780 = vmatpush1.bf16.msra.mxu1 %v9415_v4  ;;  %7821 = vmatpush1.bf16.msra.mxu0 %v9289_v27  ;;  %v6163_v4 = vld [vmem:[#allocation7 + $0x5d0] sm:$0xff] }
 0x9c3   : > { %7781 = vmatprep.subr.bf16.mxu1 %v9536_v41  ;;  %7822 = vmatprep.subr.bf16.mxu0 %v9410_v6  ;;  %v6167_v27 = vld [vmem:[#allocation7 + $0x5f0] sm:$0xff]  ;;  %v6036_v41 = vld [vmem:[#allocation7 + $0x1d8] sm:$0xff] }
 0x9c4   : > { %v6040_v6 = vld [vmem:[#allocation7 + $0x1f8] sm:$0xff]  ;;  %v9474_v57 = vcombine.high %v6163_v4, %v6167_v27  ;;  %v9473_v38 = vcombine.low %v6163_v4, %v6167_v27 }
 0x9c5   : > { %v9348_v16 = vcombine.high %v6036_v41, %v6040_v6  ;;  %v9347_v14 = vcombine.low %v6036_v41, %v6040_v6  ;;  %v6227_v6 = vld [vmem:[#allocation7 + $0x7d0] sm:$0xff] }
 0x9c6   : > { %7782 = vmatpush2.bf16.msra.mxu1 %v9535_v18  ;;  %7823 = vmatpush2.bf16.msra.mxu0 %v9409_v53  ;;  %v6155_v18 = vld [vmem:[#allocation7 + $0x590] sm:$0xff] }
 0x9c7   : > { %7783 = vmatprep.subr.bf16.mxu1 %v9528_v2  ;;  %7824 = vmatprep.subr.bf16.mxu0 %v9402_v20  ;;  %v6159_v53 = vld [vmem:[#allocation7 + $0x5b0] sm:$0xff]  ;;  %v6028_v2 = vld [vmem:[#allocation7 + $0x198] sm:$0xff] }
 0x9c8   : > { %v6032_v20 = vld [vmem:[#allocation7 + $0x1b8] sm:$0xff]  ;;  %v9466_v8 = vcombine.high %v6155_v18, %v6159_v53  ;;  %v9465_v31 = vcombine.low %v6155_v18, %v6159_v53 }
 0x9c9   : > { %v9340_v59 = vcombine.high %v6028_v2, %v6032_v20  ;;  %v9339_v26 = vcombine.low %v6028_v2, %v6032_v20  ;;  %v6219_v20 = vld [vmem:[#allocation7 + $0x790] sm:$0xff] }
 0x9ca   : > { %7784 = vmatpush2.bf16.msra.mxu1 %v9527_v34  ;;  %7825 = vmatpush2.bf16.msra.mxu0 %v9401_v56  ;;  %v6147_v34 = vld [vmem:[#allocation7 + $0x550] sm:$0xff] }
 0x9cb   : > { %7785 = vmatprep.subr.bf16.mxu1 %v9520_v62  ;;  %7826 = vmatprep.subr.bf16.mxu0 %v9394_v10  ;;  %v6151_v56 = vld [vmem:[#allocation7 + $0x570] sm:$0xff]  ;;  %v6020_v62 = vld [vmem:[#allocation7 + $0x158] sm:$0xff] }
 0x9cc   : > { %v6024_v10 = vld [vmem:[#allocation7 + $0x178] sm:$0xff]  ;;  %v9458_v42 = vcombine.high %v6147_v34, %v6151_v56  ;;  %v9457_v58 = vcombine.low %v6147_v34, %v6151_v56 }
 0x9cd   : > { %v9332_v49 = vcombine.high %v6020_v62, %v6024_v10  ;;  %v9331_v28 = vcombine.low %v6020_v62, %v6024_v10  ;;  %v6211_v10 = vld [vmem:[#allocation7 + $0x750] sm:$0xff] }
 0x9ce   : > { %7786 = vmatpush2.bf16.msra.mxu1 %v9519_v52  ;;  %7827 = vmatpush2.bf16.msra.mxu0 %v9393_v33  ;;  %v6139_v52 = vld [vmem:[#allocation7 + $0x510] sm:$0xff] }
 0x9cf   : > { %7787 = vmatprep.subr.bf16.mxu1 %v9512_v23  ;;  %7828 = vmatprep.subr.bf16.mxu0 %v9386_v19  ;;  %v6143_v33 = vld [vmem:[#allocation7 + $0x530] sm:$0xff]  ;;  %v6012_v23 = vld [vmem:[#allocation7 + $0x118] sm:$0xff] }
 0x9d0   : > { %v6016_v19 = vld [vmem:[#allocation7 + $0x138] sm:$0xff]  ;;  %v9450_v50 = vcombine.high %v6139_v52, %v6143_v33 }
 0x9d1   : > { %v9324_v63 = vcombine.high %v6012_v23, %v6016_v19  ;;  %v9323_v22 = vcombine.low %v6012_v23, %v6016_v19  ;;  %v6203_v19 = vld [vmem:[#allocation7 + $0x710] sm:$0xff] }
 0x9d2   : > { %7788 = vmatpush2.bf16.msra.mxu1 %v9511_v48  ;;  %7829 = vmatpush2.bf16.msra.mxu0 %v9385_v11  ;;  %v6131_v48 = vld [vmem:[#allocation7 + $0x4d0] sm:$0xff] }
 0x9d3   : > { %7789 = vmatprep.subr.bf16.mxu1 %v9504_v44  ;;  %7830 = vmatprep.subr.bf16.mxu0 %v9378_v29  ;;  %v6135_v11 = vld [vmem:[#allocation7 + $0x4f0] sm:$0xff]  ;;  %v6008_v44 = vld [vmem:[#allocation7 + $0xf8] sm:$0xff]  ;;  %v9449_v29 = vcombine.low %v6139_v52, %v6143_v33 }
 0x9d4   : > { %v9442_v45 = vcombine.high %v6131_v48, %v6135_v11 }
 0x9d6   : > { %7790 = vmatpush2.bf16.msra.mxu1 %v9503_v17  ;;  %7831 = vmatpush2.bf16.msra.mxu0 %v9377_v32  ;;  %v6127_v17 = vld [vmem:[#allocation7 + $0x4b0] sm:$0xff]  ;;  %v5996_v32 = vld [vmem:[#allocation7 + $0x98] sm:$0xff] }
 0x9d7   : > { %7791 = vmatprep.subr.bf16.mxu1 %v9496_v55  ;;  %7832 = vmatprep.subr.bf16.mxu0 %v9370_v43  ;;  %v6000_v55 = vld [vmem:[#allocation7 + $0xb8] sm:$0xff]  ;;  %v9441_v43 = vcombine.low %v6131_v48, %v6135_v11  ;;  %v9434_v30 = vcombine.high %v6123_v51, %v6127_v17 }
 0x9d8   : > { %v9308_v46 = vcombine.high %v5996_v32, %v6000_v55  ;;  %v9307_v47 = vcombine.low %v5996_v32, %v6000_v55  ;;  %v6187_v55 = vld [vmem:[#allocation7 + $0x690] sm:$0xff] }
 0x9da   : > { %7792 = vmatpush2.bf16.msra.mxu1 %v9495_v36  ;;  %7833 = vmatpush2.bf16.msra.mxu0 %v9369_v5  ;;  %v6119_v36 = vld [vmem:[#allocation7 + $0x470] sm:$0xff]  ;;  %v5988_v5 = vld [vmem:[#allocation7 + $0x58] sm:$0xff] }
 0x9db   : > { %7793 = vmatprep.subr.bf16.mxu1 %v9488_v40  ;;  %7834 = vmatprep.subr.bf16.mxu0 %v9362_v0  ;;  %v5992_v40 = vld [vmem:[#allocation7 + $0x78] sm:$0xff]  ;;  %v9433_v0 = vcombine.low %v6123_v51, %v6127_v17  ;;  %v9426_v21 = vcombine.high %v6115_v37, %v6119_v36 }
 0x9dc   : > { %v9300_v12 = vcombine.high %v5988_v5, %v5992_v40  ;;  %v9299_v4 = vcombine.low %v5988_v5, %v5992_v40  ;;  %v6179_v40 = vld [vmem:[#allocation7 + $0x650] sm:$0xff] }
 0x9de   : > { %7794 = vmatpush2.bf16.msra.mxu1 %v9487_v1  ;;  %7835 = vmatpush2.bf16.msra.mxu0 %v9361_v9  ;;  %v6111_v1 = vld [vmem:[#allocation7 + $0x430] sm:$0xff]  ;;  %v5980_v9 = vld [vmem:[#allocation7 + $0x18] sm:$0xff] }
 0x9df   : > { %7795 = vmatprep.subr.bf16.mxu1 %v9480_v25  ;;  %7836 = vmatprep.subr.bf16.mxu0 %v9354_v39  ;;  %v5984_v25 = vld [vmem:[#allocation7 + $0x38] sm:$0xff]  ;;  %v9425_v39 = vcombine.low %v6115_v37, %v6119_v36  ;;  %v9418_v27 = vcombine.high %v6107_v3, %v6111_v1 }
 0x9e0   : > { %v9292_v41 = vcombine.high %v5980_v9, %v5984_v25  ;;  %v9291_v18 = vcombine.low %v5980_v9, %v5984_v25  ;;  %v6171_v25 = vld [vmem:[#allocation7 + $0x610] sm:$0xff] }
 0x9e2   : > { %7796 = vmatpush2.bf16.msra.mxu1 %v9479_v7  ;;  %7837 = vmatpush2.bf16.msra.mxu0 %v9353_v61  ;;  %v6231_v7 = vld [vmem:[#allocation7 + $0x7f0] sm:$0xff]  ;;  %v6100_v61 = vld [vmem:[#allocation7 + $0x3d8] sm:$0xff] }
 0x9e3   : > { %7847 = vmatprep.subr.bf16.mxu1 %v9474_v57  ;;  %7888 = vmatprep.subr.bf16.mxu0 %v9348_v16  ;;  %v6104_v57 = vld [vmem:[#allocation7 + $0x3f8] sm:$0xff]  ;;  %v9417_v16 = vcombine.low %v6107_v3, %v6111_v1  ;;  %v9538_v53 = vcombine.high %v6227_v6, %v6231_v7 }
 0x9e4   : > { %v9412_v2 = vcombine.high %v6100_v61, %v6104_v57  ;;  %v9411_v34 = vcombine.low %v6100_v61, %v6104_v57  ;;  %v6164_v57 = vld [vmem:[#allocation7 + $0x5d8] sm:$0xff] }
 0x9e5   : > { %7798 = vmatmul.mubr.bf16.vlgmr.msra.gmra.mxu1 %v12930_v54  ;;  %7839 = vmatmul.mubr.bf16.vlgmr.msra.gmra.mxu0 %v12918_v24 }
 0x9e6   : > { %7848 = vmatpush1.bf16.msra.mxu1 %v9473_v38  ;;  %7879 = vmatprep.mubr.bf16.mxu1 %v12928_v13  ;;  %v6223_v38 = vld [vmem:[#allocation7 + $0x7b0] sm:$0xff] }
 0x9e7   : > { %7889 = vmatpush1.bf16.msra.mxu0 %v9347_v14  ;;  %7920 = vmatprep.mubr.bf16.mxu0 %v12920_v60  ;;  %v6004_v60 = vld [vmem:[#allocation7 + $0xd8] sm:$0xff]  ;;  %v9530_v56 = vcombine.high %v6219_v20, %v6223_v38 }
 0x9e8   : > { %7849 = vmatprep.subr.bf16.mxu1 %v9466_v8  ;;  %7890 = vmatprep.subr.bf16.mxu0 %v9340_v59  ;;  %v9316_v35 = vcombine.high %v6004_v60, %v6008_v44  ;;  %v9315_v15 = vcombine.low %v6004_v60, %v6008_v44  ;;  %v6092_v14 = vld [vmem:[#allocation7 + $0x398] sm:$0xff]  ;;  %v9537_v59 = vcombine.low %v6227_v6, %v6231_v7  ;;  %v6195_v44 = vld [vmem:[#allocation7 + $0x6d0] sm:$0xff] }
 0x9e9   : > { %v6096_v8 = vld [vmem:[#allocation7 + $0x3b8] sm:$0xff] }
 0x9ea   : > { %7850 = vmatpush1.bf16.msra.mxu1 %v9465_v31  ;;  %v9404_v62 = vcombine.high %v6092_v14, %v6096_v8  ;;  %v6215_v31 = vld [vmem:[#allocation7 + $0x770] sm:$0xff]  ;;  %v9403_v52 = vcombine.low %v6092_v14, %v6096_v8  ;;  %v10380_v14 = vld [vmem:[%s13415_s25 + $0x78] sm:$0xff]  }
 0x9eb   : > { %7891 = vmatpush1.bf16.msra.mxu0 %v9339_v26  ;;  %7851 = vmatprep.subr.bf16.mxu1 %v9458_v42  ;;  %v6084_v26 = vld [vmem:[#allocation7 + $0x358] sm:$0xff]  ;;  %v9522_v33 = vcombine.high %v6211_v10, %v6215_v31 }
 0x9ec   : > { %7892 = vmatprep.subr.bf16.mxu0 %v9332_v49  ;;  %v6088_v42 = vld [vmem:[#allocation7 + $0x378] sm:$0xff]  ;;  %v9529_v49 = vcombine.low %v6219_v20, %v6223_v38 }
 0x9ed   : > { %v9396_v23 = vcombine.high %v6084_v26, %v6088_v42  ;;  %v9395_v48 = vcombine.low %v6084_v26, %v6088_v42  ;;  %v6156_v20 = vld [vmem:[#allocation7 + $0x598] sm:$0xff] }
 0x9ee   : > { %7852 = vmatpush1.bf16.msra.mxu1 %v9457_v58  ;;  %v6207_v58 = vld [vmem:[#allocation7 + $0x730] sm:$0xff]  ;;  %v6160_v38 = vld [vmem:[#allocation7 + $0x5b8] sm:$0xff] }
 0x9ef   : > { %7893 = vmatpush1.bf16.msra.mxu0 %v9331_v28  ;;  %7853 = vmatprep.subr.bf16.mxu1 %v9450_v50  ;;  %v6076_v28 = vld [vmem:[#allocation7 + $0x318] sm:$0xff]  ;;  %v9514_v11 = vcombine.high %v6203_v19, %v6207_v58  ;;  %v9467_v26 = vcombine.low %v6156_v20, %v6160_v38 }
 0x9f0   : > { %7894 = vmatprep.subr.bf16.mxu0 %v9324_v63  ;;  %v6080_v50 = vld [vmem:[#allocation7 + $0x338] sm:$0xff]  ;;  %v9521_v63 = vcombine.low %v6211_v10, %v6215_v31  ;;  %v10382_v10 = vld [vmem:[%s13415_s25 + $0x70] sm:$0xff]  }
 0x9f1   : > { %v9388_v60 = vcombine.high %v6076_v28, %v6080_v50  ;;  %v9387_v51 = vcombine.low %v6076_v28, %v6080_v50  ;;  %v6132_v50 = vld [vmem:[#allocation7 + $0x4d8] sm:$0xff] }
 0x9f2   : > { %7854 = vmatpush1.bf16.msra.mxu1 %v9449_v29  ;;  %v6199_v29 = vld [vmem:[#allocation7 + $0x6f0] sm:$0xff] }
 0x9f3   : > { %7895 = vmatpush1.bf16.msra.mxu0 %v9323_v22  ;;  %7855 = vmatprep.subr.bf16.mxu1 %v9442_v45  ;;  %v6068_v22 = vld [vmem:[#allocation7 + $0x2d8] sm:$0xff]  ;;  %v9506_v17 = vcombine.high %v6195_v44, %v6199_v29 }
 0x9f4   : > { %7896 = vmatprep.subr.bf16.mxu0 %v9316_v35  ;;  %v6072_v45 = vld [vmem:[#allocation7 + $0x2f8] sm:$0xff]  ;;  %v9513_v35 = vcombine.low %v6203_v19, %v6207_v58 }
 0x9f5   : > { %v9380_v32 = vcombine.high %v6068_v22, %v6072_v45  ;;  %v9379_v37 = vcombine.low %v6068_v22, %v6072_v45  ;;  %v6128_v22 = vld [vmem:[#allocation7 + $0x4b8] sm:$0xff]  ;;  %v10387_v45 = vld [vmem:[%s13415_s25 + $0x20] sm:$0xff]  }
 0x9f6   : > { %7856 = vmatpush1.bf16.msra.mxu1 %v9441_v43  ;;  %v6191_v43 = vld [vmem:[#allocation7 + $0x6b0] sm:$0xff] }
 0x9f7   : > { %7897 = vmatpush1.bf16.msra.mxu0 %v9315_v15  ;;  %7857 = vmatprep.subr.bf16.mxu1 %v9434_v30  ;;  %v6060_v15 = vld [vmem:[#allocation7 + $0x298] sm:$0xff]  ;;  %v9498_v36 = vcombine.high %v6187_v55, %v6191_v43 }
 0x9f8   : > { %7898 = vmatprep.subr.bf16.mxu0 %v9308_v46  ;;  %v6064_v30 = vld [vmem:[#allocation7 + $0x2b8] sm:$0xff]  ;;  %v9505_v46 = vcombine.low %v6195_v44, %v6199_v29 }
 0x9f9   : > { %v9372_v5 = vcombine.high %v6060_v15, %v6064_v30  ;;  %v9371_v3 = vcombine.low %v6060_v15, %v6064_v30  ;;  %v6124_v29 = vld [vmem:[#allocation7 + $0x498] sm:$0xff]  ;;  %v10390_v15 = vld [vmem:[%s13415_s25 + $0x50] sm:$0xff]  }
 0x9fa   : > { %7858 = vmatpush1.bf16.msra.mxu1 %v9433_v0  ;;  %v6183_v0 = vld [vmem:[#allocation7 + $0x670] sm:$0xff]  ;;  %v9435_v30 = vcombine.low %v6124_v29, %v6128_v22 }
 0x9fb   : > { %7899 = vmatpush1.bf16.msra.mxu0 %v9307_v47  ;;  %7859 = vmatprep.subr.bf16.mxu1 %v9426_v21  ;;  %v6052_v47 = vld [vmem:[#allocation7 + $0x258] sm:$0xff]  ;;  %v9490_v1 = vcombine.high %v6179_v40, %v6183_v0 }
 0x9fc   : > { %7900 = vmatprep.subr.bf16.mxu0 %v9300_v12  ;;  %v6056_v21 = vld [vmem:[#allocation7 + $0x278] sm:$0xff]  ;;  %v9497_v12 = vcombine.low %v6187_v55, %v6191_v43 }
 0x9fd   : > { %v9364_v9 = vcombine.high %v6052_v47, %v6056_v21  ;;  %v9363_v6 = vcombine.low %v6052_v47, %v6056_v21  ;;  %v6120_v55 = vld [vmem:[#allocation7 + $0x478] sm:$0xff] }
 0x9fe   : > { %7860 = vmatpush1.bf16.msra.mxu1 %v9425_v39  ;;  %v6175_v39 = vld [vmem:[#allocation7 + $0x630] sm:$0xff]  ;;  %v10389_v43 = vld [vmem:[%s13415_s25 + $0x18] sm:$0xff]  }
 0x9ff   : > { %7901 = vmatpush1.bf16.msra.mxu0 %v9299_v4  ;;  %7861 = vmatprep.subr.bf16.mxu1 %v9418_v27  ;;  %v6044_v4 = vld [vmem:[#allocation7 + $0x218] sm:$0xff]  ;;  %v9482_v7 = vcombine.high %v6171_v25, %v6175_v39 }
 0xa00   : > { %7902 = vmatprep.subr.bf16.mxu0 %v9292_v41  ;;  %v6048_v27 = vld [vmem:[#allocation7 + $0x238] sm:$0xff]  ;;  %v9489_v41 = vcombine.low %v6179_v40, %v6183_v0  ;;  %v10392_v40 = vld [vmem:[%s13415_s25 + $0x48] sm:$0xff]  }
 0xa01   : > { %v9356_v61 = vcombine.high %v6044_v4, %v6048_v27  ;;  %v6228_v21 = vld [vmem:[#allocation7 + $0x7d8] sm:$0xff] }
 0xa02   : > { %7862 = vmatpush1.bf16.msra.mxu1 %v9417_v16  ;;  %v6168_v16 = vld [vmem:[#allocation7 + $0x5f8] sm:$0xff] }
 0xa03   : > { %7903 = vmatpush1.bf16.msra.mxu0 %v9291_v18  ;;  %7863 = vmatprep.subr.bf16.mxu1 %v9538_v53  ;;  %v9481_v18 = vcombine.low %v6171_v25, %v6175_v39  ;;  %v9355_v53 = vcombine.low %v6044_v4, %v6048_v27  ;;  %v9475_v8 = vcombine.low %v6164_v57, %v6168_v16  ;;  %v6220_v39 = vld [vmem:[#allocation7 + $0x798] sm:$0xff]  ;;  %v10395_v27 = vld [vmem:[%s13415_s25] sm:$0xff]  }
 0xa04   : > { %7904 = vmatprep.subr.bf16.mxu0 %v9412_v2  ;;  %v9476_v2 = vcombine.high %v6164_v57, %v6168_v16  ;;  %v6224_v4 = vld [vmem:[#allocation7 + $0x7b8] sm:$0xff] }
 0xa05   : > { %v6216_v57 = vld [vmem:[#allocation7 + $0x778] sm:$0xff]  ;;  %v9531_v16 = vcombine.low %v6220_v39, %v6224_v4 }
 0xa06   : > { %7864 = vmatpush2.bf16.msra.mxu1 %v9537_v59  ;;  %v9468_v59 = vcombine.high %v6156_v20, %v6160_v38 }
 0xa07   : > { %7905 = vmatpush2.bf16.msra.mxu0 %v9411_v34  ;;  %7865 = vmatprep.subr.bf16.mxu1 %v9530_v56  ;;  %v6148_v34 = vld [vmem:[#allocation7 + $0x558] sm:$0xff] }
 0xa08   : > { %7906 = vmatprep.subr.bf16.mxu0 %v9404_v62  ;;  %v6152_v56 = vld [vmem:[#allocation7 + $0x578] sm:$0xff] }
 0xa09   : > { %v10381_v62 = vld [vmem:[%s13415_s25 + $0x38] sm:$0xff]   ;;  %v9460_v42 = vcombine.high %v6148_v34, %v6152_v56  ;;  %v9459_v58 = vcombine.low %v6148_v34, %v6152_v56 }
 0xa0a   : > { %7866 = vmatpush2.bf16.msra.mxu1 %v9529_v49  ;;  %v6188_v56 = vld [vmem:[#allocation7 + $0x698] sm:$0xff] }
 0xa0b   : > { %7907 = vmatpush2.bf16.msra.mxu0 %v9403_v52  ;;  %7867 = vmatprep.subr.bf16.mxu1 %v9522_v33  ;;  %v6140_v52 = vld [vmem:[#allocation7 + $0x518] sm:$0xff] }
 0xa0c   : > { %7908 = vmatprep.subr.bf16.mxu0 %v9396_v23  ;;  %v6144_v33 = vld [vmem:[#allocation7 + $0x538] sm:$0xff]  ;;  %v10383_v23 = vld [vmem:[%s13415_s25 + $0x30] sm:$0xff]  }
 0xa0e   : > { %7868 = vmatpush2.bf16.msra.mxu1 %v9521_v63  ;;  %v6136_v63 = vld [vmem:[#allocation7 + $0x4f8] sm:$0xff] }
 0xa0f   : > { %7909 = vmatpush2.bf16.msra.mxu0 %v9395_v48  ;;  %7869 = vmatprep.subr.bf16.mxu1 %v9514_v11  ;;  %v10385_v48 = vld [vmem:[%s13415_s25 + $0x28] sm:$0xff]   ;;  %v10386_v11 = vld [vmem:[%s13415_s25 + $0x60] sm:$0xff]   ;;  %v9444_v44 = vcombine.high %v6132_v50, %v6136_v63 }
 0xa10   : > { %7910 = vmatprep.subr.bf16.mxu0 %v9388_v60  ;;  %v9451_v60 = vcombine.low %v6140_v52, %v6144_v33 }
 0xa12   : > { %7870 = vmatpush2.bf16.msra.mxu1 %v9513_v35  ;;  %v10388_v35 = vld [vmem:[%s13415_s25 + $0x58] sm:$0xff]  }
 0xa13   : > { %7911 = vmatpush2.bf16.msra.mxu0 %v9387_v51  ;;  %7871 = vmatprep.subr.bf16.mxu1 %v9506_v17  ;;  %v9443_v51 = vcombine.low %v6132_v50, %v6136_v63  ;;  %v9436_v17 = vcombine.high %v6124_v29, %v6128_v22 }
 0xa14   : > { %7912 = vmatprep.subr.bf16.mxu0 %v9380_v32  ;;  %v6116_v32 = vld [vmem:[#allocation7 + $0x458] sm:$0xff] }
 0xa15   : > { %v9427_v0 = vcombine.low %v6116_v32, %v6120_v55 }
 0xa16   : > { %7872 = vmatpush2.bf16.msra.mxu1 %v9505_v46  ;;  %v9428_v46 = vcombine.high %v6116_v32, %v6120_v55 }
 0xa17   : > { %7913 = vmatpush2.bf16.msra.mxu0 %v9379_v37  ;;  %7873 = vmatprep.subr.bf16.mxu1 %v9498_v36  ;;  %v6108_v37 = vld [vmem:[#allocation7 + $0x418] sm:$0xff] }
 0xa18   : > { %7914 = vmatprep.subr.bf16.mxu0 %v9372_v5  ;;  %v6112_v36 = vld [vmem:[#allocation7 + $0x438] sm:$0xff]  ;;  %v10391_v5 = vld [vmem:[%s13415_s25 + $0x10] sm:$0xff]  }
 0xa19   : > { %v9420_v47 = vcombine.high %v6108_v37, %v6112_v36 }
 0xa1a   : > { %7874 = vmatpush2.bf16.msra.mxu1 %v9497_v12  ;;  %v6232_v12 = vld [vmem:[#allocation7 + $0x7f8] sm:$0xff] }
 0xa1b   : > { %7915 = vmatpush2.bf16.msra.mxu0 %v9371_v3  ;;  %7875 = vmatprep.subr.bf16.mxu1 %v9490_v1  ;;  %v10393_v3 = vld [vmem:[%s13415_s25 + $0x8] sm:$0xff]   ;;  %v10394_v1 = vld [vmem:[%s13415_s25 + $0x40] sm:$0xff]   ;;  %v9540_v25 = vcombine.high %v6228_v21, %v6232_v12 }
 0xa1c   : > { %7916 = vmatprep.subr.bf16.mxu0 %v9364_v9  ;;  %v9419_v9 = vcombine.low %v6108_v37, %v6112_v36 }
 0xa1e   : > { %7876 = vmatpush2.bf16.msra.mxu1 %v9489_v41  ;;  %v10412_v41 = vld [vmem:[%s13415_s25 + $0x178] sm:$0xff]  }
 0xa1f   : > { %7917 = vmatpush2.bf16.msra.mxu0 %v9363_v6  ;;  %7877 = vmatprep.subr.bf16.mxu1 %v9482_v7  ;;  %v9539_v6 = vcombine.low %v6228_v21, %v6232_v12  ;;  %v9532_v7 = vcombine.high %v6220_v39, %v6224_v4  ;;  %v10404_v39 = vld [vmem:[%s13415_s25 + $0xd8] sm:$0xff]   ;;  %v10416_v4 = vld [vmem:[%s13415_s25 + $0x168] sm:$0xff]  }
 0xa20   : > { %7918 = vmatprep.subr.bf16.mxu0 %v9356_v61  ;;  %v6212_v61 = vld [vmem:[#allocation7 + $0x758] sm:$0xff] }
 0xa21   : > { %v9523_v20 = vcombine.low %v6212_v61, %v6216_v57 }
 0xa22   : > { %7878 = vmatpush2.bf16.msra.mxu1 %v9481_v18  ;;  %v9524_v18 = vcombine.high %v6212_v61, %v6216_v57  ;;  %v10407_v61 = vld [vmem:[%s13415_s25 + $0x90] sm:$0xff]   ;;  %v10419_v57 = vld [vmem:[%s13415_s25 + $0x120] sm:$0xff]  }
 0xa23   : > { %7919 = vmatpush2.bf16.msra.mxu0 %v9355_v53  ;;  %7929 = vmatprep.subr.bf16.mxu1 %v9476_v2  ;;  %v6204_v53 = vld [vmem:[#allocation7 + $0x718] sm:$0xff] }
 0xa24   : > { %9608 = vmatprep.subr.bf16.mxu0 %v10380_v14  ;;  %v6208_v2 = vld [vmem:[#allocation7 + $0x738] sm:$0xff] }
 0xa25   : > { %7880 = vmatmul.mubr.bf16.vlgmr.msra.gmra.mxu1 %v12930_v54  ;;  %v12954_v31 = vpop.f32.mrf.mxu0  ;;  %v9516_v38 = vcombine.high %v6204_v53, %v6208_v2  ;;  %v6196_v14 = vld [vmem:[#allocation7 + $0x6d8] sm:$0xff] }
 0xa26   : > { %7921 = vmatmul.mubr.bf16.vlgmr.msra.gmra.mxu0 %v12918_v24  ;;  %7930 = vmatpush1.bf16.msra.mxu1 %v9475_v8  ;;  %v10384_v24 = vld [vmem:[%s13415_s25 + $0x68] sm:$0xff]   ;;  %v6200_v8 = vld [vmem:[#allocation7 + $0x6f8] sm:$0xff] }
 0xa27   : > { %7961 = vmatprep.mubr.bf16.mxu1 %v12928_v13  ;;  %7931 = vmatprep.subr.bf16.mxu1 %v9468_v59  ;;  %v12958_v49 = vpop.f32.mrf.mxu0  ;;  %v9452_v13 = vcombine.high %v6140_v52, %v6144_v33  ;;  %v9515_v59 = vcombine.low %v6204_v53, %v6208_v2  ;;  %v9508_v34 = vcombine.high %v6196_v14, %v6200_v8  ;;  %v6184_v52 = vld [vmem:[#allocation7 + $0x678] sm:$0xff]  ;;  %v6322_v33 = vlaneseq  ;;  %v10409_v53 = vld [vmem:[%s13415_s25 + $0x88] sm:$0xff]  }
 0xa28   : > { %9609 = vmatpush3.bf16.msra.mxu0 %v10381_v62  ;;  %v6192_v62 = vld [vmem:[#allocation7 + $0x6b8] sm:$0xff] }
 0xa29   : > { %9610 = vmatprep.subr.bf16.mxu0 %v10382_v10  ;;  %v7680_v19 = vpop.f32.mrf.mxu0  ;;  %v9507_v10 = vcombine.low %v6196_v14, %v6200_v8  ;;  %v10421_v2 = vld [vmem:[%s13415_s25 + $0x118] sm:$0xff]   ;;  %v10411_v14 = vld [vmem:[%s13415_s25 + $0x80] sm:$0xff]   ;;  %v10423_v8 = vld [vmem:[%s13415_s25 + $0x110] sm:$0xff]  }
 0xa2a   : > { %7932 = vmatpush1.bf16.msra.mxu1 %v9467_v26  ;;  %v9500_v26 = vcombine.high %v6188_v56, %v6192_v62  ;;  %v6172_v19 = vld [vmem:[#allocation7 + $0x618] sm:$0xff] }
 0xa2b   : > { %7933 = vmatprep.subr.bf16.mxu1 %v9460_v42  ;;  %v7681_v28 = vpop.f32.mrf.mxu0  ;;  %v6180_v42 = vld [vmem:[#allocation7 + $0x658] sm:$0xff] }
 0xa2c   : > { %9611 = vmatpush3.bf16.msra.mxu0 %v10383_v23  ;;  %v9499_v23 = vcombine.low %v6188_v56, %v6192_v62  ;;  %v9491_v28 = vcombine.low %v6180_v42, %v6184_v52  ;;  %v10425_v56 = vld [vmem:[%s13415_s25 + $0x108] sm:$0xff]   ;;  %v10426_v62 = vld [vmem:[%s13415_s25 + $0x140] sm:$0xff]  }
 0xa2d   : > { %9612 = vmatprep.subr.bf16.mxu0 %v10384_v24  ;;  %v9492_v24 = vcombine.high %v6180_v42, %v6184_v52 }
 0xa2e   : > { %7934 = vmatpush1.bf16.msra.mxu1 %v9459_v58  ;;  %v6176_v58 = vld [vmem:[#allocation7 + $0x638] sm:$0xff] }
 0xa2f   : > { %7935 = vmatprep.subr.bf16.mxu1 %v9452_v13  ;;  %v13002_v13 = vshrl.u32 %v6322_v33, 7  ;;  %v9484_v50 = vcombine.high %v6172_v19, %v6176_v58 }
 0xa30   : > { %9613 = vmatpush3.bf16.msra.mxu0 %v10385_v48  ;;  %v9483_v48 = vcombine.low %v6172_v19, %v6176_v58 }
 0xa31   : > { %9614 = vmatprep.subr.bf16.mxu0 %v10386_v11  ;;  %v6324_v63 = vsub.s32 0, %v13002_v13  ;;  %v13008_v11 = vld [vmem:[%s13212_s17] sm:$0xff]  ;;  %v6336_v42 = vsub.s32 3, %v13002_v13 }
 0xa32   : > { %7936 = vmatpush1.bf16.msra.mxu1 %v9451_v60  ;;  %v6328_v60 = vsub.s32 1, %v13002_v13 }
 0xa33   : > { %7937 = vmatprep.subr.bf16.mxu1 %v9444_v44  ;;  %v10396_v44 = vld [vmem:[%s13415_s25 + $0xf8] sm:$0xff]   ;;  %v6325_v29 = vrot.slane %v13008_v11, %v6324_v63  ;;  %v6337_v33 = vrot.slane %v13008_v11, %v6336_v42 }
 0xa34   : > { %9615 = vmatpush3.bf16.msra.mxu0 %v10387_v45  ;;  %v6329_v22 = vrot.slane %v13008_v11, %v6328_v60  ;;  %v10397_v45 = vld [vmem:[%s13415_s25 + $0xb8] sm:$0xff]  }
 0xa35   : > { %9616 = vmatprep.subr.bf16.mxu0 %v10388_v35  ;;  %v10398_v35 = vld [vmem:[%s13415_s25 + $0xf0] sm:$0xff]  }
 0xa36   : > { %7938 = vmatpush1.bf16.msra.mxu1 %v9443_v51  ;;  %v7677_v51 = vadd.f32 %v12954_v31, %v6325_v29  ;;  %v7679_v55 = vadd.f32 %v12958_v49, %v6329_v22 }
 0xa37   : > { %7939 = vmatprep.subr.bf16.mxu1 %v9436_v17 }
 0xa38   : > { %9617 = vmatpush3.bf16.msra.mxu0 %v10389_v43  ;;  %v10399_v43 = vld [vmem:[%s13415_s25 + $0xb0] sm:$0xff]  }
 0xa39   : > { %9618 = vmatprep.subr.bf16.mxu0 %v10390_v15 }
 0xa3a   : > { %7940 = vmatpush1.bf16.msra.mxu1 %v9435_v30 }
 0xa3b   : > { %7941 = vmatprep.subr.bf16.mxu1 %v9428_v46 }
 0xa3c   : > { %9619 = vmatpush3.bf16.msra.mxu0 %v10391_v5 }
 0xa3d   : > { %9620 = vmatprep.subr.bf16.mxu0 %v10392_v40  ;;  %v10401_v40 = vld [vmem:[%s13415_s25 + $0xa8] sm:$0xff]  }
 0xa3e   : > { %7942 = vmatpush1.bf16.msra.mxu1 %v9427_v0  ;;  %v10413_v0 = vld [vmem:[%s13415_s25 + $0x138] sm:$0xff]  }
 0xa3f   : > { %7943 = vmatprep.subr.bf16.mxu1 %v9420_v47 }
 0xa40   : > { %9621 = vmatpush3.bf16.msra.mxu0 %v10393_v3  ;;  %v10402_v3 = vld [vmem:[%s13415_s25 + $0xe0] sm:$0xff]  }
 0xa41   : > { %9622 = vmatprep.subr.bf16.mxu0 %v10394_v1  ;;  %v10414_v1 = vld [vmem:[%s13415_s25 + $0x170] sm:$0xff]  }
 0xa42   : > { %7944 = vmatpush1.bf16.msra.mxu1 %v9419_v9  ;;  %v10403_v9 = vld [vmem:[%s13415_s25 + $0xa0] sm:$0xff]  }
 0xa43   : > { %7945 = vmatprep.subr.bf16.mxu1 %v9540_v25  ;;  %v10415_v25 = vld [vmem:[%s13415_s25 + $0x130] sm:$0xff]  }
 0xa44   : > { %9623 = vmatpush3.bf16.msra.mxu0 %v10395_v27  ;;  %v10405_v27 = vld [vmem:[%s13415_s25 + $0x98] sm:$0xff]  }
 0xa45   : > { %9652 = vmatprep.subr.bf16.mxu0 %v10412_v41  ;;  %v10417_v41 = vld [vmem:[%s13415_s25 + $0x128] sm:$0xff]  }
 0xa46   : > { %7946 = vmatpush2.bf16.msra.mxu1 %v9539_v6  ;;  %v10406_v6 = vld [vmem:[%s13415_s25 + $0xd0] sm:$0xff]  }
 0xa47   : > { %7947 = vmatprep.subr.bf16.mxu1 %v9532_v7  ;;  %v10418_v7 = vld [vmem:[%s13415_s25 + $0x160] sm:$0xff]  }
 0xa4a   : > { %7948 = vmatpush2.bf16.msra.mxu1 %v9531_v16  ;;  %v10408_v16 = vld [vmem:[%s13415_s25 + $0xc8] sm:$0xff]  }
 0xa4b   : > { %7949 = vmatprep.subr.bf16.mxu1 %v9524_v18  ;;  %v10420_v18 = vld [vmem:[%s13415_s25 + $0x158] sm:$0xff]  }
 0xa4e   : > { %7950 = vmatpush2.bf16.msra.mxu1 %v9523_v20  ;;  %v10410_v20 = vld [vmem:[%s13415_s25 + $0xc0] sm:$0xff]  }
 0xa4f   : > { %7951 = vmatprep.subr.bf16.mxu1 %v9516_v38  ;;  %v10422_v38 = vld [vmem:[%s13415_s25 + $0x150] sm:$0xff]  }
 0xa52   : > { %7952 = vmatpush2.bf16.msra.mxu1 %v9515_v59  ;;  %v10424_v59 = vld [vmem:[%s13415_s25 + $0x148] sm:$0xff]  }
 0xa53   : > { %7953 = vmatprep.subr.bf16.mxu1 %v9508_v34  ;;  %v10428_v34 = vld [vmem:[%s13415_s25 + $0x1f8] sm:$0xff]  }
 0xa56   : > { %7954 = vmatpush2.bf16.msra.mxu1 %v9507_v10  ;;  %v10427_v10 = vld [vmem:[%s13415_s25 + $0x100] sm:$0xff]  }
 0xa57   : > { %7955 = vmatprep.subr.bf16.mxu1 %v9500_v26  ;;  %v6332_v26 = vsub.s32 2, %v13002_v13 }
 0xa59   : > { %v6333_v52 = vrot.slane %v13008_v11, %v6332_v26 }
 0xa5a   : > { %7956 = vmatpush2.bf16.msra.mxu1 %v9499_v23 }
 0xa5b   : > { %7957 = vmatprep.subr.bf16.mxu1 %v9492_v24 }
 0xa5e   : > { %7958 = vmatpush2.bf16.msra.mxu1 %v9491_v28 }
 0xa5f   : > { %7959 = vmatprep.subr.bf16.mxu1 %v9484_v50 }
 0xa62   : > { %7960 = vmatpush2.bf16.msra.mxu1 %v9483_v48 }
 0xa63   : > { %9630 = vmatprep.subr.bf16.mxu1 %v10396_v44 }
 0xa65   : > { %7962 = vmatmul.mubr.bf16.vlgmr.msra.gmra.mxu1 %v12930_v54  ;;  %v7717_v17 = vpop.f32.mrf.mxu1  ;;  %v13024_v32 = vpop.f32.mrf.mxu0  ;;  %v10400_v54 = vld [vmem:[%s13415_s25 + $0xe8] sm:$0xff]  }
 0xa66   : > { %9631 = vmatpush3.bf16.msra.mxu1 %v10397_v45  ;;  %v7718_v15 = vadd.f32 %v7717_v17, %v7677_v51  ;;  %v7759_v23 = vadd.f32 %v13024_v32, %v6333_v52  ;;  %v10429_v45 = vld [vmem:[%s13415_s25 + $0x1b8] sm:$0xff]   ;;  %v10430_v32 = vld [vmem:[%s13415_s25 + $0x1f0] sm:$0xff]  }
 0xa67   : > { %v7719_v30 = vpop.f32.mrf.mxu1  ;;  %v13031_v46 = vpop.f32.mrf.mxu0  ;;  %9632 = vmatprep.subr.bf16.mxu1 %v10398_v35 }
 0xa68   : > { %v7720_v31 = vadd.f32 %v7719_v30, %v7679_v55  ;;  %v7970_v47 = vpack.c.bf16 %v7718_v15, %v7718_v15  ;;  %v7761_v58 = vadd.f32 %v13031_v46, %v6337_v33  ;;  %v10431_v55 = vld [vmem:[%s13415_s25 + $0x1b0] sm:$0xff]   ;;  %v10434_v30 = vld [vmem:[%s13415_s25 + $0x1e0] sm:$0xff]  }
 0xa69   : > { %v7762_v49 = vpop.f32.mrf.mxu0  ;;  %v7721_v37 = vpop.f32.mrf.mxu1  ;;  %v10435_v46 = vld [vmem:[%s13415_s25 + $0x1a0] sm:$0xff]  }
 0xa6a   : > { %v7971_v36 = vpack.c.bf16 %v7720_v31, %v7720_v31  ;;  %v7986_v5 = vcombine.low %v7718_v15, %v7720_v31  ;;  %9633 = vmatpush3.bf16.msra.mxu1 %v10399_v43  ;;  %v10432_v43 = vld [vmem:[%s13415_s25 + $0x1e8] sm:$0xff]   ;;  %v10437_v31 = vld [vmem:[%s13415_s25 + $0x198] sm:$0xff]   ;;  %v10438_v49 = vld [vmem:[%s13415_s25 + $0x1d0] sm:$0xff]  }
 0xa6b   : > { %v7763_v21 = vpop.f32.mrf.mxu0  ;;  %v7722_v12 = vpop.f32.mrf.mxu1  ;;  %9634 = vmatprep.subr.bf16.mxu1 %v10400_v54  ;;  %v10433_v15 = vld [vmem:[%s13415_s25 + $0x1a8] sm:$0xff]   ;;  %v10436_v54 = vld [vmem:[%s13415_s25 + $0x1d8] sm:$0xff]   ;;  %v10439_v37 = vld [vmem:[%s13415_s25 + $0x190] sm:$0xff]  }
 0xa6c   : > { %7994 = vst [vmem:[%s13039_s26] sm:$0xff] %v7986_v5  ;;  %8543 = vmatprep.mubr.bf16.mxu0 %v7971_v36  ;;  %v10440_v36 = vld [vmem:[%s13415_s25 + $0x1c8] sm:$0xff]   ;;  %v6344_v21 = vsub.s32 5, %v13002_v13 }
 0xa6d   : > { %8544 = vmatmul.mubr.bf16.vlgmr.msra.gmra.mxu0 %v7970_v47  ;;  %v10441_v5 = vld [vmem:[%s13415_s25 + $0x188] sm:$0xff]   ;;  %v6340_v47 = vsub.s32 4, %v13002_v13 }
 0xa6e   : > { %9635 = vmatpush3.bf16.msra.mxu1 %v10401_v40  ;;  %9653 = vmatpush3.bf16.msra.mxu0 %v10413_v0  ;;  %v10442_v40 = vld [vmem:[%s13415_s25 + $0x1c0] sm:$0xff]  }
 0xa6f   : > { %9636 = vmatprep.subr.bf16.mxu1 %v10402_v3  ;;  %9654 = vmatprep.subr.bf16.mxu0 %v10414_v1  ;;  %v10443_v0 = vld [vmem:[%s13415_s25 + $0x180] sm:$0xff]   ;;  %v6341_v12 = vrot.slane %v13008_v11, %v6340_v47  ;;  %v6345_v3 = vrot.slane %v13008_v11, %v6344_v21 }
 0xa72   : > { %9637 = vmatpush3.bf16.msra.mxu1 %v10403_v9  ;;  %9655 = vmatpush3.bf16.msra.mxu0 %v10415_v25 }
 0xa73   : > { %9638 = vmatprep.subr.bf16.mxu1 %v10404_v39  ;;  %9656 = vmatprep.subr.bf16.mxu0 %v10416_v4 }
 0xa76   : > { %9639 = vmatpush3.bf16.msra.mxu1 %v10405_v27  ;;  %9657 = vmatpush3.bf16.msra.mxu0 %v10417_v41 }
 0xa77   : > { %9640 = vmatprep.subr.bf16.mxu1 %v10406_v6  ;;  %9658 = vmatprep.subr.bf16.mxu0 %v10418_v7 }
 0xa7a   : > { %9641 = vmatpush3.bf16.msra.mxu1 %v10407_v61  ;;  %9659 = vmatpush3.bf16.msra.mxu0 %v10419_v57 }
 0xa7b   : > { %9642 = vmatprep.subr.bf16.mxu1 %v10408_v16  ;;  %9660 = vmatprep.subr.bf16.mxu0 %v10420_v18 }
 0xa7e   : > { %9643 = vmatpush3.bf16.msra.mxu1 %v10409_v53  ;;  %9661 = vmatpush3.bf16.msra.mxu0 %v10421_v2 }
 0xa7f   : > { %9644 = vmatprep.subr.bf16.mxu1 %v10410_v20  ;;  %9662 = vmatprep.subr.bf16.mxu0 %v10422_v38  ;;  %v6348_v20 = vsub.s32 6, %v13002_v13  ;;  %v6352_v38 = vsub.s32 7, %v13002_v13 }
 0xa82   : > { %9645 = vmatpush3.bf16.msra.mxu1 %v10411_v14  ;;  %9663 = vmatpush3.bf16.msra.mxu0 %v10423_v8  ;;  %v6349_v14 = vrot.slane %v13008_v11, %v6348_v20  ;;  %v6353_v8 = vrot.slane %v13008_v11, %v6352_v38 }
 0xa83   : > { %9664 = vmatprep.subr.bf16.mxu0 %v10424_v59  ;;  %9674 = vmatprep.subr.bf16.mxu1 %v10428_v34 }
 0xa86   : > { %9665 = vmatpush3.bf16.msra.mxu0 %v10425_v56 }
 0xa87   : > { %9666 = vmatprep.subr.bf16.mxu0 %v10426_v62 }
 0xa8a   : > { %9667 = vmatpush3.bf16.msra.mxu0 %v10427_v10 }
 0xaa5   : > { %v7799_v24 = vpop.f32.mrf.mxu1  ;;  %v7840_v19 = vpop.f32.mrf.mxu0 }
 0xaa6   : > { %v7800_v28 = vadd.f32 %v7799_v24, %v7759_v23  ;;  %v7841_v1 = vadd.f32 %v7840_v19, %v6341_v12 }
 0xaa7   : > { %v7801_v50 = vpop.f32.mrf.mxu1  ;;  %v7842_v63 = vpop.f32.mrf.mxu0 }
 0xaa8   : > { %v7802_v48 = vadd.f32 %v7801_v50, %v7761_v58  ;;  %v7972_v35 = vpack.c.bf16 %v7800_v28, %v7800_v28  ;;  %v7843_v25 = vadd.f32 %v7842_v63, %v6345_v3  ;;  %v8126_v50 = vld [vmem:[%s689_s3] sm:$0xf] }
 0xaa9   : > { %v7803_v60 = vpop.f32.mrf.mxu1  ;;  %v7844_v44 = vpop.f32.mrf.mxu0 }
 0xaaa   : > { %v7973_v29 = vpack.c.bf16 %v7802_v48, %v7802_v48  ;;  %v7987_v22 = vcombine.low %v7800_v28, %v7802_v48 }
 0xaab   : > { %v7804_v51 = vpop.f32.mrf.mxu1  ;;  %v7845_v17 = vpop.f32.mrf.mxu0 }
 0xaac   : > { %7995 = vst [vmem:[%s13039_s26 + $0x8] sm:$0xff] %v7987_v22  ;;  %8583 = vmatprep.mubr.bf16.mxu1 %v7973_v29 }
 0xaad   : > { %8584 = vmatmul.mubr.bf16.vlgmr.msra.gmra.mxu1 %v7972_v35 }
 0xaae   : > { %9675 = vmatpush3.bf16.msra.mxu1 %v10429_v45 }
 0xaaf   : > { %9676 = vmatprep.subr.bf16.mxu1 %v10430_v32 }
 0xab2   : > { %9677 = vmatpush3.bf16.msra.mxu1 %v10431_v55 }
 0xab3   : > { %9678 = vmatprep.subr.bf16.mxu1 %v10432_v43 }
 0xab6   : > { %9679 = vmatpush3.bf16.msra.mxu1 %v10433_v15 }
 0xab7   : > { %9680 = vmatprep.subr.bf16.mxu1 %v10434_v30 }
 0xaba   : > { %9681 = vmatpush3.bf16.msra.mxu1 %v10435_v46 }
 0xabb   : > { %9682 = vmatprep.subr.bf16.mxu1 %v10436_v54 }
 0xabe   : > { %9683 = vmatpush3.bf16.msra.mxu1 %v10437_v31 }
 0xabf   : > { %9684 = vmatprep.subr.bf16.mxu1 %v10438_v49 }
 0xac2   : > { %9685 = vmatpush3.bf16.msra.mxu1 %v10439_v37 }
 0xac3   : > { %9686 = vmatprep.subr.bf16.mxu1 %v10440_v36 }
 0xac6   : > { %9687 = vmatpush3.bf16.msra.mxu1 %v10441_v5 }
 0xac7   : > { %9688 = vmatprep.subr.bf16.mxu1 %v10442_v40 }
 0xaca   : > { %9689 = vmatpush3.bf16.msra.mxu1 %v10443_v0 }
 0xae5   : > { %v7881_v9 = vpop.f32.mrf.mxu1 }
 0xae6   : > { %v7922_v39 = vpop.f32.mrf.mxu0  ;;  %v7882_v4 = vadd.f32 %v7881_v9, %v7841_v1 }
 0xae7   : > { %v7883_v27 = vpop.f32.mrf.mxu1  ;;  %v7923_v59 = vadd.f32 %v7922_v39, %v6349_v14 }
 0xae8   : > { %v7884_v41 = vadd.f32 %v7883_v27, %v7843_v25  ;;  %v7924_v6 = vpop.f32.mrf.mxu0  ;;  %v7974_v18 = vpack.c.bf16 %v7882_v4, %v7882_v4 }
 0xae9   : > { %v7885_v7 = vpop.f32.mrf.mxu1  ;;  %v7925_v56 = vadd.f32 %v7924_v6, %v6353_v8 }
 0xaea   : > { %v7975_v61 = vpack.c.bf16 %v7884_v41, %v7884_v41  ;;  %v7988_v57 = vcombine.low %v7882_v4, %v7884_v41  ;;  %v7926_v16 = vpop.f32.mrf.mxu0 }
 0xaeb   : > { %v7886_v53 = vpop.f32.mrf.mxu1 }
 0xaec   : > { %7996 = vst [vmem:[%s13039_s26 + $0x10] sm:$0xff] %v7988_v57  ;;  %v7927_v2 = vpop.f32.mrf.mxu0  ;;  %8623 = vmatprep.mubr.bf16.mxu0 %v7975_v61 }
 0xaed   : > { %8624 = vmatmul.mubr.bf16.vlgmr.msra.gmra.mxu0 %v7974_v18 }
 0xb25   : > { %v7963_v34 = vpop.f32.mrf.mxu1 }
 0xb26   : > { %v7964_v62 = vadd.f32 %v7963_v34, %v7923_v59 }
 0xb27   : > { %v7965_v10 = vpop.f32.mrf.mxu1 }
 0xb28   : > { %v7966_v26 = vadd.f32 %v7965_v10, %v7925_v56  ;;  %v7976_v23 = vpack.c.bf16 %v7964_v62, %v7964_v62 }
 0xb29   : > { %v7967_v42 = vpop.f32.mrf.mxu1 }
 0xb2a   : > { %v7977_v52 = vpack.c.bf16 %v7966_v26, %v7966_v26  ;;  %v7989_v33 = vcombine.low %v7964_v62, %v7966_v26 }
 0xb2b   : > { %v7968_v24 = vpop.f32.mrf.mxu1 }
 0xb2c   : > { %7997 = vst [vmem:[%s13039_s26 + $0x18] sm:$0xff] %v7989_v33  ;;  %8663 = vmatprep.mubr.bf16.mxu1 %v7977_v52 }
 0xb2d   : > { %8664 = vmatmul.mubr.bf16.vlgmr.msra.gmra.mxu1 %v7976_v23  ;;  %v9624_v13 = vpop.f32.mrf.mxu0 }
 0xb2f   : > { %v9625_v19 = vpop.f32.mrf.mxu0 }
 0xb30   : > { %v9626_v58 = vadd.f32 %v9625_v19, %v9624_v13 }
 0xb31   : > { %v9627_v28 = vpop.f32.mrf.mxu0 }
 0xb32   : > { %v8546_v60 = vadd.f32 %v9626_v58, %v8126_v50 }
 0xb33   : > { %v9628_v11 = vpop.f32.mrf.mxu0 }
 0xb6d   : > { %v9646_v63 = vpop.f32.mrf.mxu1 }
 0xb6f   : > { %v9647_v48 = vpop.f32.mrf.mxu1 }
 0xb70   : > { %v9648_v44 = vadd.f32 %v9647_v48, %v9646_v63 }
 0xb71   : > { %v9649_v29 = vpop.f32.mrf.mxu1 }
 0xb72   : > { %v8586_v22 = vadd.f32 %v9648_v44, %v8546_v60 }
 0xb73   : > { %v9650_v45 = vpop.f32.mrf.mxu1 }
 0xbad   : > { %v9668_v35 = vpop.f32.mrf.mxu0 }
 0xbaf   : > { %v9669_v51 = vpop.f32.mrf.mxu0 }
 0xbb0   : > { %v9670_v17 = vadd.f32 %v9669_v51, %v9668_v35 }
 0xbb1   : > { %v9671_v32 = vpop.f32.mrf.mxu0 }
 0xbb2   : > { %v8626_v55 = vadd.f32 %v9670_v17, %v8586_v22 }
 0xbb3   : > { %v9672_v43 = vpop.f32.mrf.mxu0 }
 0xbed   : > { %v9690_v15 = vpop.f32.mrf.mxu1 }
 0xbef   : > { %v9691_v30 = vpop.f32.mrf.mxu1 }
 0xbf0   : > { %v9692_v46 = vadd.f32 %v9691_v30, %v9690_v15 }
 0xbf1   : > { %v9693_v54 = vpop.f32.mrf.mxu1 }
 0xbf2   : > { %v8666_v31 = vadd.f32 %v9692_v46, %v8626_v55 }
 0xbf3   : > { %v9694_v49 = vpop.f32.mrf.mxu1 }
 0xbf4   : > { %8672 = vst.msk [vmem:[%s693_s1] sm:$0xf] %vm8671_vm3, %v8666_v31 }
 0xbf5 PF: > { %s33_s0 = sadd.s32 1, %s10592_s0  }
 0xbf6   : > { %p30_p2 = scmp.ge.s32.totalorder %s33_s0, 4  }
 0xbf8   :  { %32 = sbr.rel (!%p30_p2) target bundleno = 9 (0x9), region = 158 }
 0xbfd   :  { %8708 = vsyncpa [#allocation3], 1 }
 0xbfe   :  { %8710 = vsyncpa [#allocation3 + $0x1], 1 }
 0xbff   :  { %8711 = vsyncpa [#allocation5], 1 }
 0xc00   :  { %8712 = vsyncpa [#allocation8], 1 }

</bundles_post_ra>
